<compile_context>
chip_gen: v7x
topology: tpu7x:2x2x1
jax: 0.10.0
libtpu: 0.0.40
codegen_flags: <defaults>
</compile_context>

<pallas_src>
import functools
import math

import jax
import jax.numpy as jnp
from jax.experimental import pallas as pl
from jax.experimental.pallas import tpu as pltpu


# ------------------------- in-kernel helper math -------------------------

def _bf(x):
    """Cast to bf16 only if needed (weights are already stored bf16)."""
    return x if x.dtype == jnp.bfloat16 else x.astype(jnp.bfloat16)


def _dot(a, w):
    """MXU matmul: bf16 operands, f32 accumulation."""
    return jnp.dot(_bf(a), _bf(w), preferred_element_type=jnp.float32)


def _bmm(spec, a, b):
    """Single-batch-dim batched MXU matmul, bf16 operands, f32 accumulation."""
    return jnp.einsum(spec, _bf(a), _bf(b), preferred_element_type=jnp.float32)


def _layernorm(x, g, b, eps=1e-5):
    """LayerNorm over the last dim, f32 statistics.  x: (M, D), g/b: (1, D)."""
    mean = jnp.mean(x, axis=-1, keepdims=True)
    xc = x - mean
    var = jnp.mean(xc * xc, axis=-1, keepdims=True)
    return xc * jax.lax.rsqrt(var + eps) * g + b


def _attention(xq, xkv, B, Sq, Skv,
               wq_ref, bq_ref, wk_ref, bk_ref, wv_ref, bv_ref,
               wo_ref, bo_ref, mask_full, nhead):
    """Multi-head attention with per-head weight slabs.

    xq: (B*Sq, Dq) bf16, xkv: (B*Skv, Dkv) bf16.
    Weight refs are blocks of shape (1, H, Din, dh) / (1, H, dh, Dout) so
    every head split is a leading-axis index (no lane-dim slicing), and the
    per-head outputs are accumulated through W_o (no lane-dim concat).
    mask_full: pre-broadcast additive mask (B, Sq, Skv) or None.
    Returns (B*Sq, Dout) f32.
    """
    dh = wq_ref.shape[-1]
    scale = 1.0 / math.sqrt(dh)
    out = None
    for h in range(nhead):                       # static, unrolled at trace time
        q = (_dot(xq, wq_ref[0, h]) + bq_ref[0, h]).reshape(B, Sq, dh)
        k = (_dot(xkv, wk_ref[0, h]) + bk_ref[0, h]).reshape(B, Skv, dh)
        v = (_dot(xkv, wv_ref[0, h]) + bv_ref[0, h]).reshape(B, Skv, dh)
        s = _bmm('bqd,bkd->bqk', q, k) * scale             # (B, Sq, Skv) f32
        if mask_full is not None:
            s = s + mask_full
        s = s - jnp.max(s, axis=-1, keepdims=True)
        p = jnp.exp(s)
        p = p * pl.reciprocal(jnp.sum(p, axis=-1, keepdims=True), approx=True)
        o = _bmm('bqk,bkd->bqd', p, v).reshape(B * Sq, dh)  # (B*Sq, dh) f32
        head_out = _dot(o, wo_ref[0, h])                    # (B*Sq, Dout) f32
        out = head_out if out is None else out + head_out
    return out + bo_ref[0]


# --------------------------- BlockSpec helpers ---------------------------

def _const_spec(shape):
    """Full array, same block every grid step."""
    nd = len(shape)
    return pl.BlockSpec(tuple(shape), lambda *args: (0,) * nd)


def _layer_spec(shape):
    """Per-layer stacked parameter of shape (L, ...): stream layer l."""
    nd = len(shape)
    return pl.BlockSpec((1,) + tuple(shape[1:]), lambda l: (l,) + (0,) * (nd - 1))


# ----------------------------- encoder kernel -----------------------------

ENC_KEYS = ("wq", "bq", "wk", "bk", "wv", "bv", "wo", "bo",
            "ln1_g", "ln1_b", "w1", "b1", "w2", "b2", "ln2_g", "ln2_b")


def _encoder_stack_kernel(x_ref, mask_ref,
                          wq, bq, wk, bk, wv, bv, wo, bo,
                          ln1g, ln1b, w1, b1, w2, b2, ln2g, ln2b,
                          o_ref, x_scr, *, nhead):
    """One grid step == one post-norm TransformerEncoderLayer (ReLU FFN)."""
    l = pl.program_id(0)

    @pl.when(l == 0)
    def _():
        x_scr[...] = x_ref[...]

    x = x_scr[...]                                       # (B, S, E) f32
    B, S, E = x.shape
    # Hoisted mask broadcast (additive key-padding mask).
    mask_full = jnp.broadcast_to(mask_ref[...].reshape(B, 1, S), (B, S, S))

    x2d = x.reshape(B * S, E)
    xb = _bf(x2d)

    # --- self attention + residual + LayerNorm 1 ---
    sa = _attention(xb, xb, B, S, S, wq, bq, wk, bk, wv, bv, wo, bo,
                    mask_full, nhead)
    x1 = _layernorm(x2d + sa, ln1g[0], ln1b[0])
    x1b = _bf(x1)

    # --- feed-forward + residual + LayerNorm 2 ---
    h = jnp.maximum(_dot(x1b, w1[0]) + b1[0], 0.0)
    ff = _dot(h, w2[0]) + b2[0]
    x_new = _layernorm(x1 + ff, ln2g[0], ln2b[0]).reshape(B, S, E)

    x_scr[...] = x_new

    @pl.when(l == pl.num_programs(0) - 1)
    def _():
        o_ref[...] = x_new


def run_encoder(x, pad_add, ep, nhead):
    """x: (B, S, E) f32, pad_add: (B, S) additive mask. One pallas_call."""
    B, S, E = x.shape
    L = ep["wq"].shape[0]
    layer_params = [ep[k] for k in ENC_KEYS]

    in_specs = ([_const_spec(x.shape), _const_spec(pad_add.shape)]
                + [_layer_spec(p.shape) for p in layer_params])

    return pl.pallas_call(
        functools.partial(_encoder_stack_kernel, nhead=nhead),
        out_shape=jax.ShapeDtypeStruct((B, S, E), jnp.float32),
        grid=(L,),
        in_specs=in_specs,
        out_specs=_const_spec((B, S, E)),
        scratch_shapes=[pltpu.VMEM((B, S, E), jnp.float32)],
        compiler_params=pltpu.CompilerParams(dimension_semantics=("arbitrary",)),
    )(x, pad_add, *layer_params)


# ----------------------------- decoder kernel -----------------------------

DEC_KEYS = ("sa_wq", "sa_bq", "sa_wk", "sa_bk", "sa_wv", "sa_bv", "sa_wo", "sa_bo",
            "ln1_g", "ln1_b",
            "ca_wq", "ca_bq", "ca_wk", "ca_bk", "ca_wv", "ca_bv", "ca_wo", "ca_bo",
            "ln2_g", "ln2_b",
            "w1", "b1", "w2", "b2", "ln3_g", "ln3_b")


def _decoder_stack_kernel(y0_ref, mem_ref, causal_ref,
                          sa_wq, sa_bq, sa_wk, sa_bk, sa_wv, sa_bv, sa_wo, sa_bo,
                          ln1g, ln1b,
                          ca_wq, ca_bq, ca_wk, ca_bk, ca_wv, ca_bv, ca_wo, ca_bo,
                          ln2g, ln2b,
                          w1, b1, w2, b2, ln3g, ln3b,
                          unemb_ref,
                          logits_ref, y_scr, *, nhead):
    """One grid step == one post-norm TransformerDecoderLayer (ReLU FFN).
    The (lane-dense, V padded to 128) unembedding matmul is fused into the
    final grid step."""
    l = pl.program_id(0)

    @pl.when(l == 0)
    def _():
        y_scr[...] = y0_ref[...]

    y = y_scr[...]                                       # (B, S, D) f32
    B, S, D = y.shape
    mem = mem_ref[...]                                   # (B, M, D)
    M = mem.shape[1]
    causal_full = jnp.broadcast_to(causal_ref[...].reshape(1, S, S), (B, S, S))

    y2d = y.reshape(B * S, D)
    yb = _bf(y2d)

    # --- masked self-attention + residual + LayerNorm 1 ---
    sa = _attention(yb, yb, B, S, S, sa_wq, sa_bq, sa_wk, sa_bk, sa_wv, sa_bv,
                    sa_wo, sa_bo, causal_full, nhead)
    y1 = _layernorm(y2d + sa, ln1g[0], ln1b[0])
    y1b = _bf(y1)

    # --- cross-attention over the latent memory + residual + LayerNorm 2 ---
    memb = _bf(mem.reshape(B * M, D))
    ca = _attention(y1b, memb, B, S, M, ca_wq, ca_bq, ca_wk, ca_bk, ca_wv, ca_bv,
                    ca_wo, ca_bo, None, nhead)
    y2 = _layernorm(y1 + ca, ln2g[0], ln2b[0])
    y2b = _bf(y2)

    # --- feed-forward + residual + LayerNorm 3 ---
    h = jnp.maximum(_dot(y2b, w1[0]) + b1[0], 0.0)
    ff = _dot(h, w2[0]) + b2[0]
    y3 = _layernorm(y2 + ff, ln3g[0], ln3b[0])

    y_scr[...] = y3.reshape(B, S, D)

    @pl.when(l == pl.num_programs(0) - 1)
    def _():
        logits = _dot(y3, unemb_ref[...])                # (B*S, Vp), lane-dense
        logits_ref[...] = logits.reshape(B, S, -1)


def run_decoder(y0, mem, causal, dp, unembed, nhead):
    """y0: (B, S, D), mem: (B, M, D), causal: (S, S) additive, unembed (D, Vp)."""
    B, S, D = y0.shape
    L = dp["sa_wq"].shape[0]
    Vp = unembed.shape[1]
    layer_params = [dp[k] for k in DEC_KEYS]

    in_specs = ([_const_spec(y0.shape), _const_spec(mem.shape),
                 _const_spec(causal.shape)]
                + [_layer_spec(p.shape) for p in layer_params]
                + [_const_spec(unembed.shape)])

    return pl.pallas_call(
        functools.partial(_decoder_stack_kernel, nhead=nhead),
        out_shape=jax.ShapeDtypeStruct((B, S, Vp), jnp.float32),
        grid=(L,),
        in_specs=in_specs,
        out_specs=_const_spec((B, S, Vp)),
        scratch_shapes=[pltpu.VMEM((B, S, D), jnp.float32)],
        compiler_params=pltpu.CompilerParams(dimension_semantics=("arbitrary",)),
    )(y0, mem, causal, *layer_params, unembed)


# ------------------------------ model glue ------------------------------

def sinusoidal_pe(max_len, d):
    pos = jnp.arange(max_len, dtype=jnp.float32)[:, None]
    div = jnp.exp(jnp.arange(0, d, 2, dtype=jnp.float32) * (-math.log(10000.0) / d))
    pe = jnp.zeros((max_len, d), jnp.float32)
    pe = pe.at[:, 0::2].set(jnp.sin(pos * div))
    pe = pe.at[:, 1::2].set(jnp.cos(pos * div))
    return pe


def generate_pad_mask(tokens, stop):
    """Mask telling the encoder to ignore all but the first stop token."""
    mask = tokens == stop
    idxs = jnp.argmax(mask.astype(jnp.float32), axis=-1)
    mask = mask.at[jnp.arange(tokens.shape[0]), idxs].set(False)
    return mask


def make_forward(cfg):
    nhead_e = cfg["encoder_nhead"]
    nhead_d = cfg["decoder_nhead"]
    D = cfg["model_dim"]
    bneck = cfg["bottleneck_size"]
    stop = cfg["stop"]
    start = cfg["start"]
    min_logvar = cfg["min_posterior_logvar"]
    V = cfg["num_embeddings"]

    @jax.jit
    def forward(params, tokens, noise_key):
        """Returns logits (B, N, V), mu / logvar (B, bottleneck, model_dim)."""
        B, N = tokens.shape

        # -------- encode --------
        emb = params["enc_emb"][tokens] + params["consts"]["pe_enc"][:N][None]
        pad_mask = generate_pad_mask(tokens, stop)
        pad_add = jnp.where(pad_mask, -1e9, 0.0).astype(jnp.float32)    # (B, N)
        x = run_encoder(emb, pad_add, params["encoder"], nhead_e)       # (B,N,2D)

        mu = x[:, :bneck, :D]
        logvar = min_logvar + jax.nn.softplus(x[:, :bneck, D:])
        eps = jax.random.normal(noise_key, mu.shape, jnp.float32)
        z = mu + eps * jnp.exp(0.5 * logvar)                            # posterior

        # -------- decode --------
        demb = params["dec_emb"][tokens[:, :-1]]                        # (B,N-1,D)
        # Faithful to the reference: torch.full((B,1,D), fill_value=start)
        # broadcasts the raw start-token *id* as the first activation row.
        start_col = jnp.full((B, 1, D), float(start), jnp.float32)
        demb = jnp.concatenate([start_col, demb], axis=1)               # (B,N,D)
        demb = demb + params["consts"]["pe_dec"][:N][None]
        causal = params["consts"]["causal"][:N, :N]
        logits_p = run_decoder(demb, z, causal, params["decoder"],
                               params["unembed"], nhead_d)              # (B,N,Vp)
        logits = logits_p[:, :, :V]                                     # drop pad
        return logits, mu, logvar

    return forward


# ---------------------------- param init ----------------------------

def init_params(key, cfg, num_embeddings, scale=0.05):
    """Matmul weights stored bf16, pre-split per head on leading axes, and
    stacked over layers so each stack feeds a single pallas_call."""
    D = cfg["model_dim"]
    E = 2 * D
    He, Hd = cfg["encoder_nhead"], cfg["decoder_nhead"]
    dhe, dhd = E // He, D // Hd
    Le, Ld = cfg["encoder_num_layers"], cfg["decoder_num_layers"]
    FFe, FFd = cfg["encoder_dim_feedforward"], cfg["decoder_dim_feedforward"]
    V = num_embeddings
    Vp = ((V + 127) // 128) * 128          # lane-dense logits width

    counter = [0]

    def nrm(shape):
        counter[0] += 1
        k = jax.random.fold_in(key, counter[0])
        return jax.random.normal(k, shape, jnp.float32) * scale

    def nrm_bf(shape):
        return nrm(shape).astype(jnp.bfloat16)

    encoder = {
        "wq": nrm_bf((Le, He, E, dhe)), "bq": nrm((Le, He, 1, dhe)),
        "wk": nrm_bf((Le, He, E, dhe)), "bk": nrm((Le, He, 1, dhe)),
        "wv": nrm_bf((Le, He, E, dhe)), "bv": nrm((Le, He, 1, dhe)),
        "wo": nrm_bf((Le, He, dhe, E)), "bo": nrm((Le, 1, E)),
        "ln1_g": jnp.ones((Le, 1, E), jnp.float32),
        "ln1_b": jnp.zeros((Le, 1, E), jnp.float32),
        "w1": nrm_bf((Le, E, FFe)), "b1": jnp.zeros((Le, 1, FFe), jnp.float32),
        "w2": nrm_bf((Le, FFe, E)), "b2": jnp.zeros((Le, 1, E), jnp.float32),
        "ln2_g": jnp.ones((Le, 1, E), jnp.float32),
        "ln2_b": jnp.zeros((Le, 1, E), jnp.float32),
    }
    decoder = {
        "sa_wq": nrm_bf((Ld, Hd, D, dhd)), "sa_bq": nrm((Ld, Hd, 1, dhd)),
        "sa_wk": nrm_bf((Ld, Hd, D, dhd)), "sa_bk": nrm((Ld, Hd, 1, dhd)),
        "sa_wv": nrm_bf((Ld, Hd, D, dhd)), "sa_bv": nrm((Ld, Hd, 1, dhd)),
        "sa_wo": nrm_bf((Ld, Hd, dhd, D)), "sa_bo": nrm((Ld, 1, D)),
        "ln1_g": jnp.ones((Ld, 1, D), jnp.float32),
        "ln1_b": jnp.zeros((Ld, 1, D), jnp.float32),
        "ca_wq": nrm_bf((Ld, Hd, D, dhd)), "ca_bq": nrm((Ld, Hd, 1, dhd)),
        "ca_wk": nrm_bf((Ld, Hd, D, dhd)), "ca_bk": nrm((Ld, Hd, 1, dhd)),
        "ca_wv": nrm_bf((Ld, Hd, D, dhd)), "ca_bv": nrm((Ld, Hd, 1, dhd)),
        "ca_wo": nrm_bf((Ld, Hd, dhd, D)), "ca_bo": nrm((Ld, 1, D)),
        "ln2_g": jnp.ones((Ld, 1, D), jnp.float32),
        "ln2_b": jnp.zeros((Ld, 1, D), jnp.float32),
        "w1": nrm_bf((Ld, D, FFd)), "b1": jnp.zeros((Ld, 1, FFd), jnp.float32),
        "w2": nrm_bf((Ld, FFd, D)), "b2": jnp.zeros((Ld, 1, D), jnp.float32),
        "ln3_g": jnp.ones((Ld, 1, D), jnp.float32),
        "ln3_b": jnp.zeros((Ld, 1, D), jnp.float32),
    }
    unembed_f32 = nrm((D, V))
    unembed = (jnp.zeros((D, Vp), jnp.float32)
               .at[:, :V].set(unembed_f32)
               .astype(jnp.bfloat16))
    consts = {
        "pe_enc": sinusoidal_pe(cfg["max_len"], E),
        "pe_dec": sinusoidal_pe(cfg["max_len"], D),
        "causal": jnp.where(
            jnp.triu(jnp.ones((cfg["max_len"], cfg["max_len"]), bool), k=1),
            -1e9, 0.0).astype(jnp.float32),
    }
    return {
        "enc_emb": nrm((num_embeddings, E)),
        "dec_emb": nrm((num_embeddings, D)),
        "unembed": unembed,
        "encoder": encoder,
        "decoder": decoder,
        "consts": consts,
    }


# ------------------------------- main -------------------------------

if __name__ == "__main__":
    cfg = dict(
        num_classes=12, fixed_length=True, bottleneck_size=2, model_dim=32,
        is_autoencoder=False, min_posterior_logvar=-25.0,
        encoder_nhead=4, encoder_dim_feedforward=64, encoder_num_layers=2,
        decoder_nhead=4, decoder_dim_feedforward=64, decoder_num_layers=2,
        max_len=64,
    )
    cfg["start"] = cfg["num_classes"]
    cfg["stop"] = cfg["num_classes"] + 1
    num_embeddings = cfg["num_classes"] + 3 - (2 if cfg["fixed_length"] else 0)
    cfg["num_embeddings"] = num_embeddings

    key = jax.random.PRNGKey(0)
    k_param, k_tok, k_noise = jax.random.split(key, 3)
    params = init_params(k_param, cfg, num_embeddings)

    B, N = 2, 8
    tokens = jax.random.randint(k_tok, (B, N), 0, cfg["num_classes"], dtype=jnp.int32)

    forward = make_forward(cfg)
    logits, mu, logvar = forward(params, tokens, k_noise)
    jax.block_until_ready((logits, mu, logvar))

    assert logits.shape == (B, N, num_embeddings)
    assert mu.shape == (B, cfg["bottleneck_size"], cfg["model_dim"])
    assert logvar.shape == (B, cfg["bottleneck_size"], cfg["model_dim"])
    assert bool(jnp.all(jnp.isfinite(logits)))
    assert bool(jnp.all(jnp.isfinite(mu)))
    assert bool(jnp.all(jnp.isfinite(logvar)))
    print("KERNEL_OK")
</pallas_src>

<mosaic_0001>
module attributes {stable_mosaic.version = 11 : i64} {
  func.func @_encoder_stack_kernel(%arg0: i32, %arg1: memref<2x8x64xf32, #tpu.memory_space<vmem>>, %arg2: memref<2x8xf32, #tpu.memory_space<vmem>>, %arg3: memref<1x4x64x16xbf16, #tpu.memory_space<vmem>>, %arg4: memref<1x4x1x16xf32, #tpu.memory_space<vmem>>, %arg5: memref<1x4x64x16xbf16, #tpu.memory_space<vmem>>, %arg6: memref<1x4x1x16xf32, #tpu.memory_space<vmem>>, %arg7: memref<1x4x64x16xbf16, #tpu.memory_space<vmem>>, %arg8: memref<1x4x1x16xf32, #tpu.memory_space<vmem>>, %arg9: memref<1x4x16x64xbf16, #tpu.memory_space<vmem>>, %arg10: memref<1x1x64xf32, #tpu.memory_space<vmem>>, %arg11: memref<1x1x64xf32, #tpu.memory_space<vmem>>, %arg12: memref<1x1x64xf32, #tpu.memory_space<vmem>>, %arg13: memref<1x64x64xbf16, #tpu.memory_space<vmem>>, %arg14: memref<1x1x64xf32, #tpu.memory_space<vmem>>, %arg15: memref<1x64x64xbf16, #tpu.memory_space<vmem>>, %arg16: memref<1x1x64xf32, #tpu.memory_space<vmem>>, %arg17: memref<1x1x64xf32, #tpu.memory_space<vmem>>, %arg18: memref<1x1x64xf32, #tpu.memory_space<vmem>>, %arg19: memref<2x8x64xf32, #tpu.memory_space<vmem>>, %arg20: memref<2x8x64xf32, #tpu.memory_space<vmem>>) attributes {dimension_semantics = [#tpu.dimension_semantics<arbitrary>], iteration_bounds = array<i64: 2>, scalar_prefetch = 0 : i64, scratch_operands = 1 : i64, tpu.core_type = #tpu.core_type<tc>, window_params = [{pipeline_mode = #tpu.pipeline_mode<synchronous>, transform_indices = @transform_0, window_bounds = array<i64: 2, 8, 64>}, {pipeline_mode = #tpu.pipeline_mode<synchronous>, transform_indices = @transform_1, window_bounds = array<i64: 2, 8>}, {transform_indices = @transform_2, window_bounds = array<i64: 1, 4, 64, 16>}, {transform_indices = @transform_3, window_bounds = array<i64: 1, 4, 1, 16>}, {transform_indices = @transform_4, window_bounds = array<i64: 1, 4, 64, 16>}, {transform_indices = @transform_5, window_bounds = array<i64: 1, 4, 1, 16>}, {transform_indices = @transform_6, window_bounds = array<i64: 1, 4, 64, 16>}, {transform_indices = @transform_7, window_bounds = array<i64: 1, 4, 1, 16>}, {transform_indices = @transform_8, window_bounds = array<i64: 1, 4, 16, 64>}, {transform_indices = @transform_9, window_bounds = array<i64: 1, 1, 64>}, {transform_indices = @transform_10, window_bounds = array<i64: 1, 1, 64>}, {transform_indices = @transform_11, window_bounds = array<i64: 1, 1, 64>}, {transform_indices = @transform_12, window_bounds = array<i64: 1, 64, 64>}, {transform_indices = @transform_13, window_bounds = array<i64: 1, 1, 64>}, {transform_indices = @transform_14, window_bounds = array<i64: 1, 64, 64>}, {transform_indices = @transform_15, window_bounds = array<i64: 1, 1, 64>}, {transform_indices = @transform_16, window_bounds = array<i64: 1, 1, 64>}, {transform_indices = @transform_17, window_bounds = array<i64: 1, 1, 64>}, {pipeline_mode = #tpu.pipeline_mode<synchronous>, transform_indices = @transform_18, window_bounds = array<i64: 2, 8, 64>}]} {
    %c0_i32 = arith.constant 0 : i32
    %0 = arith.cmpi eq, %arg0, %c0_i32 : i32
    %1 = arith.extui %0 : i1 to i32
    %c0_i32_0 = arith.constant 0 : i32
    %2 = arith.cmpi ne, %1, %c0_i32_0 : i32
    scf.if %2 {
      %c0_193 = arith.constant 0 : index
      %c0_194 = arith.constant 0 : index
      %c0_195 = arith.constant 0 : index
      %282 = vector.load %arg1[%c0_193, %c0_194, %c0_195] : memref<2x8x64xf32, #tpu.memory_space<vmem>>, vector<2x8x64xf32>
      %c0_196 = arith.constant 0 : index
      %c0_197 = arith.constant 0 : index
      %c0_198 = arith.constant 0 : index
      %283 = vector.load %arg20[%c0_196, %c0_197, %c0_198] : memref<2x8x64xf32, #tpu.memory_space<vmem>>, vector<2x8x64xf32>
      tpu.vector_store %arg20[%c0_196, %c0_197, %c0_198], %282 {strides = array<i32>} : memref<2x8x64xf32, #tpu.memory_space<vmem>>, vector<2x8x64xf32>,
    } else {
    }
    %c0 = arith.constant 0 : index
    %c0_1 = arith.constant 0 : index
    %c0_2 = arith.constant 0 : index
    %3 = vector.load %arg20[%c0, %c0_1, %c0_2] : memref<2x8x64xf32, #tpu.memory_space<vmem>>, vector<2x8x64xf32>
    %c0_3 = arith.constant 0 : index
    %c0_4 = arith.constant 0 : index
    %4 = vector.load %arg2[%c0_3, %c0_4] : memref<2x8xf32, #tpu.memory_space<vmem>>, vector<2x8xf32>
    %5 = vector.shape_cast %4 : vector<2x8xf32> to vector<2x1x8xf32>
    %6 = vector.shape_cast %5 : vector<2x1x8xf32> to vector<2x1x8xf32>
    %7 = vector.broadcast %6 : vector<2x1x8xf32> to vector<2x8x8xf32>
    %8 = vector.shape_cast %3 : vector<2x8x64xf32> to vector<16x64xf32>
    %9 = arith.truncf %8 : vector<16x64xf32> to vector<16x64xbf16>
    %c0_5 = arith.constant 0 : index
    %c0_6 = arith.constant 0 : index
    %c0_7 = arith.constant 0 : index
    %c0_8 = arith.constant 0 : index
    %10 = vector.load %arg3[%c0_5, %c0_6, %c0_7, %c0_8] : memref<1x4x64x16xbf16, #tpu.memory_space<vmem>>, vector<1x1x64x16xbf16>
    %11 = vector.shape_cast %10 : vector<1x1x64x16xbf16> to vector<64x16xbf16>
    %cst = arith.constant dense<0.000000e+00> : vector<16x16xf32>
    %12 = tpu.matmul %9, %11, %cst {dimension_numbers = #tpu.dot_dimension_numbers<[1], [0], [0], [1], [0, 0, 1, 1], [], []>} : vector<16x64xbf16>, vector<64x16xbf16>, vector<16x16xf32> -> vector<16x16xf32>
    %c0_9 = arith.constant 0 : index
    %c0_10 = arith.constant 0 : index
    %c0_11 = arith.constant 0 : index
    %c0_12 = arith.constant 0 : index
    %13 = vector.load %arg4[%c0_9, %c0_10, %c0_11, %c0_12] : memref<1x4x1x16xf32, #tpu.memory_space<vmem>>, vector<1x1x1x16xf32>
    %14 = vector.shape_cast %13 : vector<1x1x1x16xf32> to vector<1x16xf32>
    %15 = vector.broadcast %14 : vector<1x16xf32> to vector<16x16xf32>
    %16 = arith.addf %12, %15 : vector<16x16xf32>
    %17 = vector.shape_cast %16 : vector<16x16xf32> to vector<2x8x16xf32>
    %c0_13 = arith.constant 0 : index
    %c0_14 = arith.constant 0 : index
    %c0_15 = arith.constant 0 : index
    %c0_16 = arith.constant 0 : index
    %18 = vector.load %arg5[%c0_13, %c0_14, %c0_15, %c0_16] : memref<1x4x64x16xbf16, #tpu.memory_space<vmem>>, vector<1x1x64x16xbf16>
    %19 = vector.shape_cast %18 : vector<1x1x64x16xbf16> to vector<64x16xbf16>
    %cst_17 = arith.constant dense<0.000000e+00> : vector<16x16xf32>
    %20 = tpu.matmul %9, %19, %cst_17 {dimension_numbers = #tpu.dot_dimension_numbers<[1], [0], [0], [1], [0, 0, 1, 1], [], []>} : vector<16x64xbf16>, vector<64x16xbf16>, vector<16x16xf32> -> vector<16x16xf32>
    %c0_18 = arith.constant 0 : index
    %c0_19 = arith.constant 0 : index
    %c0_20 = arith.constant 0 : index
    %c0_21 = arith.constant 0 : index
    %21 = vector.load %arg6[%c0_18, %c0_19, %c0_20, %c0_21] : memref<1x4x1x16xf32, #tpu.memory_space<vmem>>, vector<1x1x1x16xf32>
    %22 = vector.shape_cast %21 : vector<1x1x1x16xf32> to vector<1x16xf32>
    %23 = vector.broadcast %22 : vector<1x16xf32> to vector<16x16xf32>
    %24 = arith.addf %20, %23 : vector<16x16xf32>
    %25 = vector.shape_cast %24 : vector<16x16xf32> to vector<2x8x16xf32>
    %c0_22 = arith.constant 0 : index
    %c0_23 = arith.constant 0 : index
    %c0_24 = arith.constant 0 : index
    %c0_25 = arith.constant 0 : index
    %26 = vector.load %arg7[%c0_22, %c0_23, %c0_24, %c0_25] : memref<1x4x64x16xbf16, #tpu.memory_space<vmem>>, vector<1x1x64x16xbf16>
    %27 = vector.shape_cast %26 : vector<1x1x64x16xbf16> to vector<64x16xbf16>
    %cst_26 = arith.constant dense<0.000000e+00> : vector<16x16xf32>
    %28 = tpu.matmul %9, %27, %cst_26 {dimension_numbers = #tpu.dot_dimension_numbers<[1], [0], [0], [1], [0, 0, 1, 1], [], []>} : vector<16x64xbf16>, vector<64x16xbf16>, vector<16x16xf32> -> vector<16x16xf32>
    %c0_27 = arith.constant 0 : index
    %c0_28 = arith.constant 0 : index
    %c0_29 = arith.constant 0 : index
    %c0_30 = arith.constant 0 : index
    %29 = vector.load %arg8[%c0_27, %c0_28, %c0_29, %c0_30] : memref<1x4x1x16xf32, #tpu.memory_space<vmem>>, vector<1x1x1x16xf32>
    %30 = vector.shape_cast %29 : vector<1x1x1x16xf32> to vector<1x16xf32>
    %31 = vector.broadcast %30 : vector<1x16xf32> to vector<16x16xf32>
    %32 = arith.addf %28, %31 : vector<16x16xf32>
    %33 = vector.shape_cast %32 : vector<16x16xf32> to vector<2x8x16xf32>
    %34 = arith.truncf %17 : vector<2x8x16xf32> to vector<2x8x16xbf16>
    %35 = arith.truncf %25 : vector<2x8x16xf32> to vector<2x8x16xbf16>
    "tpu.trace_start"() <{level = 10 : i32, message = "bqd,bkd->bqk"}> : () -> ()
    %cst_31 = arith.constant dense<0.000000e+00> : vector<2x8x8xf32>
    %36 = tpu.matmul %34, %35, %cst_31 {dimension_numbers = #tpu.dot_dimension_numbers<[2], [2], [1], [1], [0, 0, 0, 1, 1, 1], [0], [0]>} : vector<2x8x16xbf16>, vector<2x8x16xbf16>, vector<2x8x8xf32> -> vector<2x8x8xf32>
    "tpu.trace_stop"() : () -> ()
    %cst_32 = arith.constant 2.500000e-01 : f32
    %37 = vector.broadcast %cst_32 : f32 to vector<2x8x8xf32>
    %38 = arith.mulf %36, %37 : vector<2x8x8xf32>
    %39 = arith.addf %38, %7 : vector<2x8x8xf32>
    %cst_33 = arith.constant dense<0xFF800000> : vector<2x8xf32>
    %40 = vector.multi_reduction <maximumf>, %39, %cst_33 [2] : vector<2x8x8xf32> to vector<2x8xf32>
    %41 = vector.shape_cast %40 : vector<2x8xf32> to vector<2x8x1xf32>
    %42 = vector.broadcast %41 : vector<2x8x1xf32> to vector<2x8x8xf32>
    %43 = arith.subf %39, %42 : vector<2x8x8xf32>
    %44 = math.exp %43 : vector<2x8x8xf32>
    %cst_34 = arith.constant dense<0.000000e+00> : vector<2x8xf32>
    %45 = vector.multi_reduction <add>, %44, %cst_34 [2] : vector<2x8x8xf32> to vector<2x8xf32>
    %46 = vector.shape_cast %45 : vector<2x8xf32> to vector<2x8x1xf32>
    %47 = tpu.reciprocal %46 {approx = true} : vector<2x8x1xf32> -> vector<2x8x1xf32>
    %48 = vector.broadcast %47 : vector<2x8x1xf32> to vector<2x8x8xf32>
    %49 = arith.mulf %44, %48 : vector<2x8x8xf32>
    %50 = arith.truncf %49 : vector<2x8x8xf32> to vector<2x8x8xbf16>
    %51 = arith.truncf %33 : vector<2x8x16xf32> to vector<2x8x16xbf16>
    "tpu.trace_start"() <{level = 10 : i32, message = "bqk,bkd->bqd"}> : () -> ()
    %cst_35 = arith.constant dense<0.000000e+00> : vector<2x8x16xf32>
    %52 = tpu.matmul %50, %51, %cst_35 {dimension_numbers = #tpu.dot_dimension_numbers<[2], [1], [1], [2], [0, 0, 0, 1, 1, 2], [0], [0]>} : vector<2x8x8xbf16>, vector<2x8x16xbf16>, vector<2x8x16xf32> -> vector<2x8x16xf32>
    "tpu.trace_stop"() : () -> ()
    %53 = vector.shape_cast %52 : vector<2x8x16xf32> to vector<16x16xf32>
    %c0_36 = arith.constant 0 : index
    %c0_37 = arith.constant 0 : index
    %c0_38 = arith.constant 0 : index
    %c0_39 = arith.constant 0 : index
    %54 = vector.load %arg9[%c0_36, %c0_37, %c0_38, %c0_39] : memref<1x4x16x64xbf16, #tpu.memory_space<vmem>>, vector<1x1x16x64xbf16>
    %55 = vector.shape_cast %54 : vector<1x1x16x64xbf16> to vector<16x64xbf16>
    %56 = arith.truncf %53 : vector<16x16xf32> to vector<16x16xbf16>
    %cst_40 = arith.constant dense<0.000000e+00> : vector<16x64xf32>
    %57 = tpu.matmul %56, %55, %cst_40 {dimension_numbers = #tpu.dot_dimension_numbers<[1], [0], [0], [1], [0, 0, 1, 1], [], []>} : vector<16x16xbf16>, vector<16x64xbf16>, vector<16x64xf32> -> vector<16x64xf32>
    %c0_41 = arith.constant 0 : index
    %c1 = arith.constant 1 : index
    %c0_42 = arith.constant 0 : index
    %c0_43 = arith.constant 0 : index
    %58 = vector.load %arg3[%c0_41, %c1, %c0_42, %c0_43] : memref<1x4x64x16xbf16, #tpu.memory_space<vmem>>, vector<1x1x64x16xbf16>
    %59 = vector.shape_cast %58 : vector<1x1x64x16xbf16> to vector<64x16xbf16>
    %cst_44 = arith.constant dense<0.000000e+00> : vector<16x16xf32>
    %60 = tpu.matmul %9, %59, %cst_44 {dimension_numbers = #tpu.dot_dimension_numbers<[1], [0], [0], [1], [0, 0, 1, 1], [], []>} : vector<16x64xbf16>, vector<64x16xbf16>, vector<16x16xf32> -> vector<16x16xf32>
    %c0_45 = arith.constant 0 : index
    %c1_46 = arith.constant 1 : index
    %c0_47 = arith.constant 0 : index
    %c0_48 = arith.constant 0 : index
    %61 = vector.load %arg4[%c0_45, %c1_46, %c0_47, %c0_48] : memref<1x4x1x16xf32, #tpu.memory_space<vmem>>, vector<1x1x1x16xf32>
    %62 = vector.shape_cast %61 : vector<1x1x1x16xf32> to vector<1x16xf32>
    %63 = vector.broadcast %62 : vector<1x16xf32> to vector<16x16xf32>
    %64 = arith.addf %60, %63 : vector<16x16xf32>
    %65 = vector.shape_cast %64 : vector<16x16xf32> to vector<2x8x16xf32>
    %c0_49 = arith.constant 0 : index
    %c1_50 = arith.constant 1 : index
    %c0_51 = arith.constant 0 : index
    %c0_52 = arith.constant 0 : index
    %66 = vector.load %arg5[%c0_49, %c1_50, %c0_51, %c0_52] : memref<1x4x64x16xbf16, #tpu.memory_space<vmem>>, vector<1x1x64x16xbf16>
    %67 = vector.shape_cast %66 : vector<1x1x64x16xbf16> to vector<64x16xbf16>
    %cst_53 = arith.constant dense<0.000000e+00> : vector<16x16xf32>
    %68 = tpu.matmul %9, %67, %cst_53 {dimension_numbers = #tpu.dot_dimension_numbers<[1], [0], [0], [1], [0, 0, 1, 1], [], []>} : vector<16x64xbf16>, vector<64x16xbf16>, vector<16x16xf32> -> vector<16x16xf32>
    %c0_54 = arith.constant 0 : index
    %c1_55 = arith.constant 1 : index
    %c0_56 = arith.constant 0 : index
    %c0_57 = arith.constant 0 : index
    %69 = vector.load %arg6[%c0_54, %c1_55, %c0_56, %c0_57] : memref<1x4x1x16xf32, #tpu.memory_space<vmem>>, vector<1x1x1x16xf32>
    %70 = vector.shape_cast %69 : vector<1x1x1x16xf32> to vector<1x16xf32>
    %71 = vector.broadcast %70 : vector<1x16xf32> to vector<16x16xf32>
    %72 = arith.addf %68, %71 : vector<16x16xf32>
    %73 = vector.shape_cast %72 : vector<16x16xf32> to vector<2x8x16xf32>
    %c0_58 = arith.constant 0 : index
    %c1_59 = arith.constant 1 : index
    %c0_60 = arith.constant 0 : index
    %c0_61 = arith.constant 0 : index
    %74 = vector.load %arg7[%c0_58, %c1_59, %c0_60, %c0_61] : memref<1x4x64x16xbf16, #tpu.memory_space<vmem>>, vector<1x1x64x16xbf16>
    %75 = vector.shape_cast %74 : vector<1x1x64x16xbf16> to vector<64x16xbf16>
    %cst_62 = arith.constant dense<0.000000e+00> : vector<16x16xf32>
    %76 = tpu.matmul %9, %75, %cst_62 {dimension_numbers = #tpu.dot_dimension_numbers<[1], [0], [0], [1], [0, 0, 1, 1], [], []>} : vector<16x64xbf16>, vector<64x16xbf16>, vector<16x16xf32> -> vector<16x16xf32>
    %c0_63 = arith.constant 0 : index
    %c1_64 = arith.constant 1 : index
    %c0_65 = arith.constant 0 : index
    %c0_66 = arith.constant 0 : index
    %77 = vector.load %arg8[%c0_63, %c1_64, %c0_65, %c0_66] : memref<1x4x1x16xf32, #tpu.memory_space<vmem>>, vector<1x1x1x16xf32>
    %78 = vector.shape_cast %77 : vector<1x1x1x16xf32> to vector<1x16xf32>
    %79 = vector.broadcast %78 : vector<1x16xf32> to vector<16x16xf32>
    %80 = arith.addf %76, %79 : vector<16x16xf32>
    %81 = vector.shape_cast %80 : vector<16x16xf32> to vector<2x8x16xf32>
    %82 = arith.truncf %65 : vector<2x8x16xf32> to vector<2x8x16xbf16>
    %83 = arith.truncf %73 : vector<2x8x16xf32> to vector<2x8x16xbf16>
    "tpu.trace_start"() <{level = 10 : i32, message = "bqd,bkd->bqk"}> : () -> ()
    %cst_67 = arith.constant dense<0.000000e+00> : vector<2x8x8xf32>
    %84 = tpu.matmul %82, %83, %cst_67 {dimension_numbers = #tpu.dot_dimension_numbers<[2], [2], [1], [1], [0, 0, 0, 1, 1, 1], [0], [0]>} : vector<2x8x16xbf16>, vector<2x8x16xbf16>, vector<2x8x8xf32> -> vector<2x8x8xf32>
    "tpu.trace_stop"() : () -> ()
    %cst_68 = arith.constant 2.500000e-01 : f32
    %85 = vector.broadcast %cst_68 : f32 to vector<2x8x8xf32>
    %86 = arith.mulf %84, %85 : vector<2x8x8xf32>
    %87 = arith.addf %86, %7 : vector<2x8x8xf32>
    %cst_69 = arith.constant dense<0xFF800000> : vector<2x8xf32>
    %88 = vector.multi_reduction <maximumf>, %87, %cst_69 [2] : vector<2x8x8xf32> to vector<2x8xf32>
    %89 = vector.shape_cast %88 : vector<2x8xf32> to vector<2x8x1xf32>
    %90 = vector.broadcast %89 : vector<2x8x1xf32> to vector<2x8x8xf32>
    %91 = arith.subf %87, %90 : vector<2x8x8xf32>
    %92 = math.exp %91 : vector<2x8x8xf32>
    %cst_70 = arith.constant dense<0.000000e+00> : vector<2x8xf32>
    %93 = vector.multi_reduction <add>, %92, %cst_70 [2] : vector<2x8x8xf32> to vector<2x8xf32>
    %94 = vector.shape_cast %93 : vector<2x8xf32> to vector<2x8x1xf32>
    %95 = tpu.reciprocal %94 {approx = true} : vector<2x8x1xf32> -> vector<2x8x1xf32>
    %96 = vector.broadcast %95 : vector<2x8x1xf32> to vector<2x8x8xf32>
    %97 = arith.mulf %92, %96 : vector<2x8x8xf32>
    %98 = arith.truncf %97 : vector<2x8x8xf32> to vector<2x8x8xbf16>
    %99 = arith.truncf %81 : vector<2x8x16xf32> to vector<2x8x16xbf16>
    "tpu.trace_start"() <{level = 10 : i32, message = "bqk,bkd->bqd"}> : () -> ()
    %cst_71 = arith.constant dense<0.000000e+00> : vector<2x8x16xf32>
    %100 = tpu.matmul %98, %99, %cst_71 {dimension_numbers = #tpu.dot_dimension_numbers<[2], [1], [1], [2], [0, 0, 0, 1, 1, 2], [0], [0]>} : vector<2x8x8xbf16>, vector<2x8x16xbf16>, vector<2x8x16xf32> -> vector<2x8x16xf32>
    "tpu.trace_stop"() : () -> ()
    %101 = vector.shape_cast %100 : vector<2x8x16xf32> to vector<16x16xf32>
    %c0_72 = arith.constant 0 : index
    %c1_73 = arith.constant 1 : index
    %c0_74 = arith.constant 0 : index
    %c0_75 = arith.constant 0 : index
    %102 = vector.load %arg9[%c0_72, %c1_73, %c0_74, %c0_75] : memref<1x4x16x64xbf16, #tpu.memory_space<vmem>>, vector<1x1x16x64xbf16>
    %103 = vector.shape_cast %102 : vector<1x1x16x64xbf16> to vector<16x64xbf16>
    %104 = arith.truncf %101 : vector<16x16xf32> to vector<16x16xbf16>
    %cst_76 = arith.constant dense<0.000000e+00> : vector<16x64xf32>
    %105 = tpu.matmul %104, %103, %cst_76 {dimension_numbers = #tpu.dot_dimension_numbers<[1], [0], [0], [1], [0, 0, 1, 1], [], []>} : vector<16x16xbf16>, vector<16x64xbf16>, vector<16x64xf32> -> vector<16x64xf32>
    %106 = arith.addf %57, %105 : vector<16x64xf32>
    %c0_77 = arith.constant 0 : index
    %c2 = arith.constant 2 : index
    %c0_78 = arith.constant 0 : index
    %c0_79 = arith.constant 0 : index
    %107 = vector.load %arg3[%c0_77, %c2, %c0_78, %c0_79] : memref<1x4x64x16xbf16, #tpu.memory_space<vmem>>, vector<1x1x64x16xbf16>
    %108 = vector.shape_cast %107 : vector<1x1x64x16xbf16> to vector<64x16xbf16>
    %cst_80 = arith.constant dense<0.000000e+00> : vector<16x16xf32>
    %109 = tpu.matmul %9, %108, %cst_80 {dimension_numbers = #tpu.dot_dimension_numbers<[1], [0], [0], [1], [0, 0, 1, 1], [], []>} : vector<16x64xbf16>, vector<64x16xbf16>, vector<16x16xf32> -> vector<16x16xf32>
    %c0_81 = arith.constant 0 : index
    %c2_82 = arith.constant 2 : index
    %c0_83 = arith.constant 0 : index
    %c0_84 = arith.constant 0 : index
    %110 = vector.load %arg4[%c0_81, %c2_82, %c0_83, %c0_84] : memref<1x4x1x16xf32, #tpu.memory_space<vmem>>, vector<1x1x1x16xf32>
    %111 = vector.shape_cast %110 : vector<1x1x1x16xf32> to vector<1x16xf32>
    %112 = vector.broadcast %111 : vector<1x16xf32> to vector<16x16xf32>
    %113 = arith.addf %109, %112 : vector<16x16xf32>
    %114 = vector.shape_cast %113 : vector<16x16xf32> to vector<2x8x16xf32>
    %c0_85 = arith.constant 0 : index
    %c2_86 = arith.constant 2 : index
    %c0_87 = arith.constant 0 : index
    %c0_88 = arith.constant 0 : index
    %115 = vector.load %arg5[%c0_85, %c2_86, %c0_87, %c0_88] : memref<1x4x64x16xbf16, #tpu.memory_space<vmem>>, vector<1x1x64x16xbf16>
    %116 = vector.shape_cast %115 : vector<1x1x64x16xbf16> to vector<64x16xbf16>
    %cst_89 = arith.constant dense<0.000000e+00> : vector<16x16xf32>
    %117 = tpu.matmul %9, %116, %cst_89 {dimension_numbers = #tpu.dot_dimension_numbers<[1], [0], [0], [1], [0, 0, 1, 1], [], []>} : vector<16x64xbf16>, vector<64x16xbf16>, vector<16x16xf32> -> vector<16x16xf32>
    %c0_90 = arith.constant 0 : index
    %c2_91 = arith.constant 2 : index
    %c0_92 = arith.constant 0 : index
    %c0_93 = arith.constant 0 : index
    %118 = vector.load %arg6[%c0_90, %c2_91, %c0_92, %c0_93] : memref<1x4x1x16xf32, #tpu.memory_space<vmem>>, vector<1x1x1x16xf32>
    %119 = vector.shape_cast %118 : vector<1x1x1x16xf32> to vector<1x16xf32>
    %120 = vector.broadcast %119 : vector<1x16xf32> to vector<16x16xf32>
    %121 = arith.addf %117, %120 : vector<16x16xf32>
    %122 = vector.shape_cast %121 : vector<16x16xf32> to vector<2x8x16xf32>
    %c0_94 = arith.constant 0 : index
    %c2_95 = arith.constant 2 : index
    %c0_96 = arith.constant 0 : index
    %c0_97 = arith.constant 0 : index
    %123 = vector.load %arg7[%c0_94, %c2_95, %c0_96, %c0_97] : memref<1x4x64x16xbf16, #tpu.memory_space<vmem>>, vector<1x1x64x16xbf16>
    %124 = vector.shape_cast %123 : vector<1x1x64x16xbf16> to vector<64x16xbf16>
    %cst_98 = arith.constant dense<0.000000e+00> : vector<16x16xf32>
    %125 = tpu.matmul %9, %124, %cst_98 {dimension_numbers = #tpu.dot_dimension_numbers<[1], [0], [0], [1], [0, 0, 1, 1], [], []>} : vector<16x64xbf16>, vector<64x16xbf16>, vector<16x16xf32> -> vector<16x16xf32>
    %c0_99 = arith.constant 0 : index
    %c2_100 = arith.constant 2 : index
    %c0_101 = arith.constant 0 : index
    %c0_102 = arith.constant 0 : index
    %126 = vector.load %arg8[%c0_99, %c2_100, %c0_101, %c0_102] : memref<1x4x1x16xf32, #tpu.memory_space<vmem>>, vector<1x1x1x16xf32>
    %127 = vector.shape_cast %126 : vector<1x1x1x16xf32> to vector<1x16xf32>
    %128 = vector.broadcast %127 : vector<1x16xf32> to vector<16x16xf32>
    %129 = arith.addf %125, %128 : vector<16x16xf32>
    %130 = vector.shape_cast %129 : vector<16x16xf32> to vector<2x8x16xf32>
    %131 = arith.truncf %114 : vector<2x8x16xf32> to vector<2x8x16xbf16>
    %132 = arith.truncf %122 : vector<2x8x16xf32> to vector<2x8x16xbf16>
    "tpu.trace_start"() <{level = 10 : i32, message = "bqd,bkd->bqk"}> : () -> ()
    %cst_103 = arith.constant dense<0.000000e+00> : vector<2x8x8xf32>
    %133 = tpu.matmul %131, %132, %cst_103 {dimension_numbers = #tpu.dot_dimension_numbers<[2], [2], [1], [1], [0, 0, 0, 1, 1, 1], [0], [0]>} : vector<2x8x16xbf16>, vector<2x8x16xbf16>, vector<2x8x8xf32> -> vector<2x8x8xf32>
    "tpu.trace_stop"() : () -> ()
    %cst_104 = arith.constant 2.500000e-01 : f32
    %134 = vector.broadcast %cst_104 : f32 to vector<2x8x8xf32>
    %135 = arith.mulf %133, %134 : vector<2x8x8xf32>
    %136 = arith.addf %135, %7 : vector<2x8x8xf32>
    %cst_105 = arith.constant dense<0xFF800000> : vector<2x8xf32>
    %137 = vector.multi_reduction <maximumf>, %136, %cst_105 [2] : vector<2x8x8xf32> to vector<2x8xf32>
    %138 = vector.shape_cast %137 : vector<2x8xf32> to vector<2x8x1xf32>
    %139 = vector.broadcast %138 : vector<2x8x1xf32> to vector<2x8x8xf32>
    %140 = arith.subf %136, %139 : vector<2x8x8xf32>
    %141 = math.exp %140 : vector<2x8x8xf32>
    %cst_106 = arith.constant dense<0.000000e+00> : vector<2x8xf32>
    %142 = vector.multi_reduction <add>, %141, %cst_106 [2] : vector<2x8x8xf32> to vector<2x8xf32>
    %143 = vector.shape_cast %142 : vector<2x8xf32> to vector<2x8x1xf32>
    %144 = tpu.reciprocal %143 {approx = true} : vector<2x8x1xf32> -> vector<2x8x1xf32>
    %145 = vector.broadcast %144 : vector<2x8x1xf32> to vector<2x8x8xf32>
    %146 = arith.mulf %141, %145 : vector<2x8x8xf32>
    %147 = arith.truncf %146 : vector<2x8x8xf32> to vector<2x8x8xbf16>
    %148 = arith.truncf %130 : vector<2x8x16xf32> to vector<2x8x16xbf16>
    "tpu.trace_start"() <{level = 10 : i32, message = "bqk,bkd->bqd"}> : () -> ()
    %cst_107 = arith.constant dense<0.000000e+00> : vector<2x8x16xf32>
    %149 = tpu.matmul %147, %148, %cst_107 {dimension_numbers = #tpu.dot_dimension_numbers<[2], [1], [1], [2], [0, 0, 0, 1, 1, 2], [0], [0]>} : vector<2x8x8xbf16>, vector<2x8x16xbf16>, vector<2x8x16xf32> -> vector<2x8x16xf32>
    "tpu.trace_stop"() : () -> ()
    %150 = vector.shape_cast %149 : vector<2x8x16xf32> to vector<16x16xf32>
    %c0_108 = arith.constant 0 : index
    %c2_109 = arith.constant 2 : index
    %c0_110 = arith.constant 0 : index
    %c0_111 = arith.constant 0 : index
    %151 = vector.load %arg9[%c0_108, %c2_109, %c0_110, %c0_111] : memref<1x4x16x64xbf16, #tpu.memory_space<vmem>>, vector<1x1x16x64xbf16>
    %152 = vector.shape_cast %151 : vector<1x1x16x64xbf16> to vector<16x64xbf16>
    %153 = arith.truncf %150 : vector<16x16xf32> to vector<16x16xbf16>
    %cst_112 = arith.constant dense<0.000000e+00> : vector<16x64xf32>
    %154 = tpu.matmul %153, %152, %cst_112 {dimension_numbers = #tpu.dot_dimension_numbers<[1], [0], [0], [1], [0, 0, 1, 1], [], []>} : vector<16x16xbf16>, vector<16x64xbf16>, vector<16x64xf32> -> vector<16x64xf32>
    %155 = arith.addf %106, %154 : vector<16x64xf32>
    %c0_113 = arith.constant 0 : index
    %c3 = arith.constant 3 : index
    %c0_114 = arith.constant 0 : index
    %c0_115 = arith.constant 0 : index
    %156 = vector.load %arg3[%c0_113, %c3, %c0_114, %c0_115] : memref<1x4x64x16xbf16, #tpu.memory_space<vmem>>, vector<1x1x64x16xbf16>
    %157 = vector.shape_cast %156 : vector<1x1x64x16xbf16> to vector<64x16xbf16>
    %cst_116 = arith.constant dense<0.000000e+00> : vector<16x16xf32>
    %158 = tpu.matmul %9, %157, %cst_116 {dimension_numbers = #tpu.dot_dimension_numbers<[1], [0], [0], [1], [0, 0, 1, 1], [], []>} : vector<16x64xbf16>, vector<64x16xbf16>, vector<16x16xf32> -> vector<16x16xf32>
    %c0_117 = arith.constant 0 : index
    %c3_118 = arith.constant 3 : index
    %c0_119 = arith.constant 0 : index
    %c0_120 = arith.constant 0 : index
    %159 = vector.load %arg4[%c0_117, %c3_118, %c0_119, %c0_120] : memref<1x4x1x16xf32, #tpu.memory_space<vmem>>, vector<1x1x1x16xf32>
    %160 = vector.shape_cast %159 : vector<1x1x1x16xf32> to vector<1x16xf32>
    %161 = vector.broadcast %160 : vector<1x16xf32> to vector<16x16xf32>
    %162 = arith.addf %158, %161 : vector<16x16xf32>
    %163 = vector.shape_cast %162 : vector<16x16xf32> to vector<2x8x16xf32>
    %c0_121 = arith.constant 0 : index
    %c3_122 = arith.constant 3 : index
    %c0_123 = arith.constant 0 : index
    %c0_124 = arith.constant 0 : index
    %164 = vector.load %arg5[%c0_121, %c3_122, %c0_123, %c0_124] : memref<1x4x64x16xbf16, #tpu.memory_space<vmem>>, vector<1x1x64x16xbf16>
    %165 = vector.shape_cast %164 : vector<1x1x64x16xbf16> to vector<64x16xbf16>
    %cst_125 = arith.constant dense<0.000000e+00> : vector<16x16xf32>
    %166 = tpu.matmul %9, %165, %cst_125 {dimension_numbers = #tpu.dot_dimension_numbers<[1], [0], [0], [1], [0, 0, 1, 1], [], []>} : vector<16x64xbf16>, vector<64x16xbf16>, vector<16x16xf32> -> vector<16x16xf32>
    %c0_126 = arith.constant 0 : index
    %c3_127 = arith.constant 3 : index
    %c0_128 = arith.constant 0 : index
    %c0_129 = arith.constant 0 : index
    %167 = vector.load %arg6[%c0_126, %c3_127, %c0_128, %c0_129] : memref<1x4x1x16xf32, #tpu.memory_space<vmem>>, vector<1x1x1x16xf32>
    %168 = vector.shape_cast %167 : vector<1x1x1x16xf32> to vector<1x16xf32>
    %169 = vector.broadcast %168 : vector<1x16xf32> to vector<16x16xf32>
    %170 = arith.addf %166, %169 : vector<16x16xf32>
    %171 = vector.shape_cast %170 : vector<16x16xf32> to vector<2x8x16xf32>
    %c0_130 = arith.constant 0 : index
    %c3_131 = arith.constant 3 : index
    %c0_132 = arith.constant 0 : index
    %c0_133 = arith.constant 0 : index
    %172 = vector.load %arg7[%c0_130, %c3_131, %c0_132, %c0_133] : memref<1x4x64x16xbf16, #tpu.memory_space<vmem>>, vector<1x1x64x16xbf16>
    %173 = vector.shape_cast %172 : vector<1x1x64x16xbf16> to vector<64x16xbf16>
    %cst_134 = arith.constant dense<0.000000e+00> : vector<16x16xf32>
    %174 = tpu.matmul %9, %173, %cst_134 {dimension_numbers = #tpu.dot_dimension_numbers<[1], [0], [0], [1], [0, 0, 1, 1], [], []>} : vector<16x64xbf16>, vector<64x16xbf16>, vector<16x16xf32> -> vector<16x16xf32>
    %c0_135 = arith.constant 0 : index
    %c3_136 = arith.constant 3 : index
    %c0_137 = arith.constant 0 : index
    %c0_138 = arith.constant 0 : index
    %175 = vector.load %arg8[%c0_135, %c3_136, %c0_137, %c0_138] : memref<1x4x1x16xf32, #tpu.memory_space<vmem>>, vector<1x1x1x16xf32>
    %176 = vector.shape_cast %175 : vector<1x1x1x16xf32> to vector<1x16xf32>
    %177 = vector.broadcast %176 : vector<1x16xf32> to vector<16x16xf32>
    %178 = arith.addf %174, %177 : vector<16x16xf32>
    %179 = vector.shape_cast %178 : vector<16x16xf32> to vector<2x8x16xf32>
    %180 = arith.truncf %163 : vector<2x8x16xf32> to vector<2x8x16xbf16>
    %181 = arith.truncf %171 : vector<2x8x16xf32> to vector<2x8x16xbf16>
    "tpu.trace_start"() <{level = 10 : i32, message = "bqd,bkd->bqk"}> : () -> ()
    %cst_139 = arith.constant dense<0.000000e+00> : vector<2x8x8xf32>
    %182 = tpu.matmul %180, %181, %cst_139 {dimension_numbers = #tpu.dot_dimension_numbers<[2], [2], [1], [1], [0, 0, 0, 1, 1, 1], [0], [0]>} : vector<2x8x16xbf16>, vector<2x8x16xbf16>, vector<2x8x8xf32> -> vector<2x8x8xf32>
    "tpu.trace_stop"() : () -> ()
    %cst_140 = arith.constant 2.500000e-01 : f32
    %183 = vector.broadcast %cst_140 : f32 to vector<2x8x8xf32>
    %184 = arith.mulf %182, %183 : vector<2x8x8xf32>
    %185 = arith.addf %184, %7 : vector<2x8x8xf32>
    %cst_141 = arith.constant dense<0xFF800000> : vector<2x8xf32>
    %186 = vector.multi_reduction <maximumf>, %185, %cst_141 [2] : vector<2x8x8xf32> to vector<2x8xf32>
    %187 = vector.shape_cast %186 : vector<2x8xf32> to vector<2x8x1xf32>
    %188 = vector.broadcast %187 : vector<2x8x1xf32> to vector<2x8x8xf32>
    %189 = arith.subf %185, %188 : vector<2x8x8xf32>
    %190 = math.exp %189 : vector<2x8x8xf32>
    %cst_142 = arith.constant dense<0.000000e+00> : vector<2x8xf32>
    %191 = vector.multi_reduction <add>, %190, %cst_142 [2] : vector<2x8x8xf32> to vector<2x8xf32>
    %192 = vector.shape_cast %191 : vector<2x8xf32> to vector<2x8x1xf32>
    %193 = tpu.reciprocal %192 {approx = true} : vector<2x8x1xf32> -> vector<2x8x1xf32>
    %194 = vector.broadcast %193 : vector<2x8x1xf32> to vector<2x8x8xf32>
    %195 = arith.mulf %190, %194 : vector<2x8x8xf32>
    %196 = arith.truncf %195 : vector<2x8x8xf32> to vector<2x8x8xbf16>
    %197 = arith.truncf %179 : vector<2x8x16xf32> to vector<2x8x16xbf16>
    "tpu.trace_start"() <{level = 10 : i32, message = "bqk,bkd->bqd"}> : () -> ()
    %cst_143 = arith.constant dense<0.000000e+00> : vector<2x8x16xf32>
    %198 = tpu.matmul %196, %197, %cst_143 {dimension_numbers = #tpu.dot_dimension_numbers<[2], [1], [1], [2], [0, 0, 0, 1, 1, 2], [0], [0]>} : vector<2x8x8xbf16>, vector<2x8x16xbf16>, vector<2x8x16xf32> -> vector<2x8x16xf32>
    "tpu.trace_stop"() : () -> ()
    %199 = vector.shape_cast %198 : vector<2x8x16xf32> to vector<16x16xf32>
    %c0_144 = arith.constant 0 : index
    %c3_145 = arith.constant 3 : index
    %c0_146 = arith.constant 0 : index
    %c0_147 = arith.constant 0 : index
    %200 = vector.load %arg9[%c0_144, %c3_145, %c0_146, %c0_147] : memref<1x4x16x64xbf16, #tpu.memory_space<vmem>>, vector<1x1x16x64xbf16>
    %201 = vector.shape_cast %200 : vector<1x1x16x64xbf16> to vector<16x64xbf16>
    %202 = arith.truncf %199 : vector<16x16xf32> to vector<16x16xbf16>
    %cst_148 = arith.constant dense<0.000000e+00> : vector<16x64xf32>
    %203 = tpu.matmul %202, %201, %cst_148 {dimension_numbers = #tpu.dot_dimension_numbers<[1], [0], [0], [1], [0, 0, 1, 1], [], []>} : vector<16x16xbf16>, vector<16x64xbf16>, vector<16x64xf32> -> vector<16x64xf32>
    %204 = arith.addf %155, %203 : vector<16x64xf32>
    %c0_149 = arith.constant 0 : index
    %c0_150 = arith.constant 0 : index
    %c0_151 = arith.constant 0 : index
    %205 = vector.load %arg10[%c0_149, %c0_150, %c0_151] : memref<1x1x64xf32, #tpu.memory_space<vmem>>, vector<1x1x64xf32>
    %206 = vector.shape_cast %205 : vector<1x1x64xf32> to vector<1x64xf32>
    %207 = vector.broadcast %206 : vector<1x64xf32> to vector<16x64xf32>
    %208 = arith.addf %204, %207 : vector<16x64xf32>
    %209 = arith.addf %8, %208 : vector<16x64xf32>
    %c0_152 = arith.constant 0 : index
    %c0_153 = arith.constant 0 : index
    %c0_154 = arith.constant 0 : index
    %210 = vector.load %arg11[%c0_152, %c0_153, %c0_154] : memref<1x1x64xf32, #tpu.memory_space<vmem>>, vector<1x1x64xf32>
    %211 = vector.shape_cast %210 : vector<1x1x64xf32> to vector<1x64xf32>
    %c0_155 = arith.constant 0 : index
    %c0_156 = arith.constant 0 : index
    %c0_157 = arith.constant 0 : index
    %212 = vector.load %arg12[%c0_155, %c0_156, %c0_157] : memref<1x1x64xf32, #tpu.memory_space<vmem>>, vector<1x1x64xf32>
    %213 = vector.shape_cast %212 : vector<1x1x64xf32> to vector<1x64xf32>
    %cst_158 = arith.constant dense<0.000000e+00> : vector<16xf32>
    %214 = vector.multi_reduction <add>, %209, %cst_158 [1] : vector<16x64xf32> to vector<16xf32>
    %215 = vector.shape_cast %214 : vector<16xf32> to vector<16x1xf32>
    %cst_159 = arith.constant 6.400000e+01 : f32
    %216 = vector.broadcast %cst_159 : f32 to vector<16x1xf32>
    %217 = arith.divf %215, %216 : vector<16x1xf32>
    %218 = vector.broadcast %217 : vector<16x1xf32> to vector<16x64xf32>
    %219 = arith.subf %209, %218 : vector<16x64xf32>
    %220 = arith.mulf %219, %219 : vector<16x64xf32>
    %cst_160 = arith.constant dense<0.000000e+00> : vector<16xf32>
    %221 = vector.multi_reduction <add>, %220, %cst_160 [1] : vector<16x64xf32> to vector<16xf32>
    %222 = vector.shape_cast %221 : vector<16xf32> to vector<16x1xf32>
    %cst_161 = arith.constant 6.400000e+01 : f32
    %223 = vector.broadcast %cst_161 : f32 to vector<16x1xf32>
    %224 = arith.divf %222, %223 : vector<16x1xf32>
    %cst_162 = arith.constant 9.99999974E-6 : f32
    %225 = vector.broadcast %cst_162 : f32 to vector<16x1xf32>
    %226 = arith.addf %224, %225 : vector<16x1xf32>
    %227 = math.rsqrt %226 : vector<16x1xf32>
    %228 = vector.broadcast %227 : vector<16x1xf32> to vector<16x64xf32>
    %229 = arith.mulf %219, %228 : vector<16x64xf32>
    %230 = vector.broadcast %211 : vector<1x64xf32> to vector<16x64xf32>
    %231 = arith.mulf %229, %230 : vector<16x64xf32>
    %232 = vector.broadcast %213 : vector<1x64xf32> to vector<16x64xf32>
    %233 = arith.addf %231, %232 : vector<16x64xf32>
    %234 = arith.truncf %233 : vector<16x64xf32> to vector<16x64xbf16>
    %c0_163 = arith.constant 0 : index
    %c0_164 = arith.constant 0 : index
    %c0_165 = arith.constant 0 : index
    %235 = vector.load %arg13[%c0_163, %c0_164, %c0_165] : memref<1x64x64xbf16, #tpu.memory_space<vmem>>, vector<1x64x64xbf16>
    %236 = vector.shape_cast %235 : vector<1x64x64xbf16> to vector<64x64xbf16>
    %cst_166 = arith.constant dense<0.000000e+00> : vector<16x64xf32>
    %237 = tpu.matmul %234, %236, %cst_166 {dimension_numbers = #tpu.dot_dimension_numbers<[1], [0], [0], [1], [0, 0, 1, 1], [], []>} : vector<16x64xbf16>, vector<64x64xbf16>, vector<16x64xf32> -> vector<16x64xf32>
    %c0_167 = arith.constant 0 : index
    %c0_168 = arith.constant 0 : index
    %c0_169 = arith.constant 0 : index
    %238 = vector.load %arg14[%c0_167, %c0_168, %c0_169] : memref<1x1x64xf32, #tpu.memory_space<vmem>>, vector<1x1x64xf32>
    %239 = vector.shape_cast %238 : vector<1x1x64xf32> to vector<1x64xf32>
    %240 = vector.broadcast %239 : vector<1x64xf32> to vector<16x64xf32>
    %241 = arith.addf %237, %240 : vector<16x64xf32>
    %cst_170 = arith.constant 0.000000e+00 : f32
    %242 = vector.broadcast %cst_170 : f32 to vector<16x64xf32>
    %243 = arith.maximumf %241, %242 : vector<16x64xf32>
    %c0_171 = arith.constant 0 : index
    %c0_172 = arith.constant 0 : index
    %c0_173 = arith.constant 0 : index
    %244 = vector.load %arg15[%c0_171, %c0_172, %c0_173] : memref<1x64x64xbf16, #tpu.memory_space<vmem>>, vector<1x64x64xbf16>
    %245 = vector.shape_cast %244 : vector<1x64x64xbf16> to vector<64x64xbf16>
    %246 = arith.truncf %243 : vector<16x64xf32> to vector<16x64xbf16>
    %cst_174 = arith.constant dense<0.000000e+00> : vector<16x64xf32>
    %247 = tpu.matmul %246, %245, %cst_174 {dimension_numbers = #tpu.dot_dimension_numbers<[1], [0], [0], [1], [0, 0, 1, 1], [], []>} : vector<16x64xbf16>, vector<64x64xbf16>, vector<16x64xf32> -> vector<16x64xf32>
    %c0_175 = arith.constant 0 : index
    %c0_176 = arith.constant 0 : index
    %c0_177 = arith.constant 0 : index
    %248 = vector.load %arg16[%c0_175, %c0_176, %c0_177] : memref<1x1x64xf32, #tpu.memory_space<vmem>>, vector<1x1x64xf32>
    %249 = vector.shape_cast %248 : vector<1x1x64xf32> to vector<1x64xf32>
    %250 = vector.broadcast %249 : vector<1x64xf32> to vector<16x64xf32>
    %251 = arith.addf %247, %250 : vector<16x64xf32>
    %252 = arith.addf %233, %251 : vector<16x64xf32>
    %c0_178 = arith.constant 0 : index
    %c0_179 = arith.constant 0 : index
    %c0_180 = arith.constant 0 : index
    %253 = vector.load %arg17[%c0_178, %c0_179, %c0_180] : memref<1x1x64xf32, #tpu.memory_space<vmem>>, vector<1x1x64xf32>
    %254 = vector.shape_cast %253 : vector<1x1x64xf32> to vector<1x64xf32>
    %c0_181 = arith.constant 0 : index
    %c0_182 = arith.constant 0 : index
    %c0_183 = arith.constant 0 : index
    %255 = vector.load %arg18[%c0_181, %c0_182, %c0_183] : memref<1x1x64xf32, #tpu.memory_space<vmem>>, vector<1x1x64xf32>
    %256 = vector.shape_cast %255 : vector<1x1x64xf32> to vector<1x64xf32>
    %cst_184 = arith.constant dense<0.000000e+00> : vector<16xf32>
    %257 = vector.multi_reduction <add>, %252, %cst_184 [1] : vector<16x64xf32> to vector<16xf32>
    %258 = vector.shape_cast %257 : vector<16xf32> to vector<16x1xf32>
    %cst_185 = arith.constant 6.400000e+01 : f32
    %259 = vector.broadcast %cst_185 : f32 to vector<16x1xf32>
    %260 = arith.divf %258, %259 : vector<16x1xf32>
    %261 = vector.broadcast %260 : vector<16x1xf32> to vector<16x64xf32>
    %262 = arith.subf %252, %261 : vector<16x64xf32>
    %263 = arith.mulf %262, %262 : vector<16x64xf32>
    %cst_186 = arith.constant dense<0.000000e+00> : vector<16xf32>
    %264 = vector.multi_reduction <add>, %263, %cst_186 [1] : vector<16x64xf32> to vector<16xf32>
    %265 = vector.shape_cast %264 : vector<16xf32> to vector<16x1xf32>
    %cst_187 = arith.constant 6.400000e+01 : f32
    %266 = vector.broadcast %cst_187 : f32 to vector<16x1xf32>
    %267 = arith.divf %265, %266 : vector<16x1xf32>
    %cst_188 = arith.constant 9.99999974E-6 : f32
    %268 = vector.broadcast %cst_188 : f32 to vector<16x1xf32>
    %269 = arith.addf %267, %268 : vector<16x1xf32>
    %270 = math.rsqrt %269 : vector<16x1xf32>
    %271 = vector.broadcast %270 : vector<16x1xf32> to vector<16x64xf32>
    %272 = arith.mulf %262, %271 : vector<16x64xf32>
    %273 = vector.broadcast %254 : vector<1x64xf32> to vector<16x64xf32>
    %274 = arith.mulf %272, %273 : vector<16x64xf32>
    %275 = vector.broadcast %256 : vector<1x64xf32> to vector<16x64xf32>
    %276 = arith.addf %274, %275 : vector<16x64xf32>
    %277 = vector.shape_cast %276 : vector<16x64xf32> to vector<2x8x64xf32>
    %c0_189 = arith.constant 0 : index
    %c0_190 = arith.constant 0 : index
    %c0_191 = arith.constant 0 : index
    %278 = vector.load %arg20[%c0_189, %c0_190, %c0_191] : memref<2x8x64xf32, #tpu.memory_space<vmem>>, vector<2x8x64xf32>
    tpu.vector_store %arg20[%c0_189, %c0_190, %c0_191], %277 {strides = array<i32>} : memref<2x8x64xf32, #tpu.memory_space<vmem>>, vector<2x8x64xf32>,
    %c1_i32 = arith.constant 1 : i32
    %279 = arith.cmpi eq, %arg0, %c1_i32 : i32
    %280 = arith.extui %279 : i1 to i32
    %c0_i32_192 = arith.constant 0 : i32
    %281 = arith.cmpi ne, %280, %c0_i32_192 : i32
    scf.if %281 {
      %c0_193 = arith.constant 0 : index
      %c0_194 = arith.constant 0 : index
      %c0_195 = arith.constant 0 : index
      %282 = vector.load %arg19[%c0_193, %c0_194, %c0_195] : memref<2x8x64xf32, #tpu.memory_space<vmem>>, vector<2x8x64xf32>
      tpu.vector_store %arg19[%c0_193, %c0_194, %c0_195], %277 {strides = array<i32>} : memref<2x8x64xf32, #tpu.memory_space<vmem>>, vector<2x8x64xf32>,
    } else {
    }
    return
  }
  func.func @transform_0(%arg0: i32) -> (i32, i32, i32) {
    %c0_i32 = arith.constant 0 : i32
    %c0_i32_0 = arith.constant 0 : i32
    %c0_i32_1 = arith.constant 0 : i32
    %c0_i32_2 = arith.constant 0 : i32
    return %c0_i32, %c0_i32_0, %c0_i32_1 : i32, i32, i32
  }
  func.func @transform_1(%arg0: i32) -> (i32, i32) {
    %c0_i32 = arith.constant 0 : i32
    %c0_i32_0 = arith.constant 0 : i32
    %c0_i32_1 = arith.constant 0 : i32
    return %c0_i32, %c0_i32_0 : i32, i32
  }
  func.func @transform_2(%arg0: i32) -> (i32, i32, i32, i32) {
    %c0_i32 = arith.constant 0 : i32
    %c0_i32_0 = arith.constant 0 : i32
    %c0_i32_1 = arith.constant 0 : i32
    %c0_i32_2 = arith.constant 0 : i32
    return %arg0, %c0_i32, %c0_i32_0, %c0_i32_1 : i32, i32, i32, i32
  }
  func.func @transform_3(%arg0: i32) -> (i32, i32, i32, i32) {
    %c0_i32 = arith.constant 0 : i32
    %c0_i32_0 = arith.constant 0 : i32
    %c0_i32_1 = arith.constant 0 : i32
    %c0_i32_2 = arith.constant 0 : i32
    return %arg0, %c0_i32, %c0_i32_0, %c0_i32_1 : i32, i32, i32, i32
  }
  func.func @transform_4(%arg0: i32) -> (i32, i32, i32, i32) {
    %c0_i32 = arith.constant 0 : i32
    %c0_i32_0 = arith.constant 0 : i32
    %c0_i32_1 = arith.constant 0 : i32
    %c0_i32_2 = arith.constant 0 : i32
    return %arg0, %c0_i32, %c0_i32_0, %c0_i32_1 : i32, i32, i32, i32
  }
  func.func @transform_5(%arg0: i32) -> (i32, i32, i32, i32) {
    %c0_i32 = arith.constant 0 : i32
    %c0_i32_0 = arith.constant 0 : i32
    %c0_i32_1 = arith.constant 0 : i32
    %c0_i32_2 = arith.constant 0 : i32
    return %arg0, %c0_i32, %c0_i32_0, %c0_i32_1 : i32, i32, i32, i32
  }
  func.func @transform_6(%arg0: i32) -> (i32, i32, i32, i32) {
    %c0_i32 = arith.constant 0 : i32
    %c0_i32_0 = arith.constant 0 : i32
    %c0_i32_1 = arith.constant 0 : i32
    %c0_i32_2 = arith.constant 0 : i32
    return %arg0, %c0_i32, %c0_i32_0, %c0_i32_1 : i32, i32, i32, i32
  }
  func.func @transform_7(%arg0: i32) -> (i32, i32, i32, i32) {
    %c0_i32 = arith.constant 0 : i32
    %c0_i32_0 = arith.constant 0 : i32
    %c0_i32_1 = arith.constant 0 : i32
    %c0_i32_2 = arith.constant 0 : i32
    return %arg0, %c0_i32, %c0_i32_0, %c0_i32_1 : i32, i32, i32, i32
  }
  func.func @transform_8(%arg0: i32) -> (i32, i32, i32, i32) {
    %c0_i32 = arith.constant 0 : i32
    %c0_i32_0 = arith.constant 0 : i32
    %c0_i32_1 = arith.constant 0 : i32
    %c0_i32_2 = arith.constant 0 : i32
    return %arg0, %c0_i32, %c0_i32_0, %c0_i32_1 : i32, i32, i32, i32
  }
  func.func @transform_9(%arg0: i32) -> (i32, i32, i32) {
    %c0_i32 = arith.constant 0 : i32
    %c0_i32_0 = arith.constant 0 : i32
    %c0_i32_1 = arith.constant 0 : i32
    return %arg0, %c0_i32, %c0_i32_0 : i32, i32, i32
  }
  func.func @transform_10(%arg0: i32) -> (i32, i32, i32) {
    %c0_i32 = arith.constant 0 : i32
    %c0_i32_0 = arith.constant 0 : i32
    %c0_i32_1 = arith.constant 0 : i32
    return %arg0, %c0_i32, %c0_i32_0 : i32, i32, i32
  }
  func.func @transform_11(%arg0: i32) -> (i32, i32, i32) {
    %c0_i32 = arith.constant 0 : i32
    %c0_i32_0 = arith.constant 0 : i32
    %c0_i32_1 = arith.constant 0 : i32
    return %arg0, %c0_i32, %c0_i32_0 : i32, i32, i32
  }
  func.func @transform_12(%arg0: i32) -> (i32, i32, i32) {
    %c0_i32 = arith.constant 0 : i32
    %c0_i32_0 = arith.constant 0 : i32
    %c0_i32_1 = arith.constant 0 : i32
    return %arg0, %c0_i32, %c0_i32_0 : i32, i32, i32
  }
  func.func @transform_13(%arg0: i32) -> (i32, i32, i32) {
    %c0_i32 = arith.constant 0 : i32
    %c0_i32_0 = arith.constant 0 : i32
    %c0_i32_1 = arith.constant 0 : i32
    return %arg0, %c0_i32, %c0_i32_0 : i32, i32, i32
  }
  func.func @transform_14(%arg0: i32) -> (i32, i32, i32) {
    %c0_i32 = arith.constant 0 : i32
    %c0_i32_0 = arith.constant 0 : i32
    %c0_i32_1 = arith.constant 0 : i32
    return %arg0, %c0_i32, %c0_i32_0 : i32, i32, i32
  }
  func.func @transform_15(%arg0: i32) -> (i32, i32, i32) {
    %c0_i32 = arith.constant 0 : i32
    %c0_i32_0 = arith.constant 0 : i32
    %c0_i32_1 = arith.constant 0 : i32
    return %arg0, %c0_i32, %c0_i32_0 : i32, i32, i32
  }
  func.func @transform_16(%arg0: i32) -> (i32, i32, i32) {
    %c0_i32 = arith.constant 0 : i32
    %c0_i32_0 = arith.constant 0 : i32
    %c0_i32_1 = arith.constant 0 : i32
    return %arg0, %c0_i32, %c0_i32_0 : i32, i32, i32
  }
  func.func @transform_17(%arg0: i32) -> (i32, i32, i32) {
    %c0_i32 = arith.constant 0 : i32
    %c0_i32_0 = arith.constant 0 : i32
    %c0_i32_1 = arith.constant 0 : i32
    return %arg0, %c0_i32, %c0_i32_0 : i32, i32, i32
  }
  func.func @transform_18(%arg0: i32) -> (i32, i32, i32) {
    %c0_i32 = arith.constant 0 : i32
    %c0_i32_0 = arith.constant 0 : i32
    %c0_i32_1 = arith.constant 0 : i32
    %c0_i32_2 = arith.constant 0 : i32
    return %c0_i32, %c0_i32_0, %c0_i32_1 : i32, i32, i32
  }
}

module attributes {stable_mosaic.version = 11 : i64} {
  func.func @_decoder_stack_kernel(%arg0: i32, %arg1: memref<2x8x32xf32, #tpu.memory_space<vmem>>, %arg2: memref<2x2x32xf32, #tpu.memory_space<vmem>>, %arg3: memref<8x8xf32, #tpu.memory_space<vmem>>, %arg4: memref<1x4x32x8xbf16, #tpu.memory_space<vmem>>, %arg5: memref<1x4x1x8xf32, #tpu.memory_space<vmem>>, %arg6: memref<1x4x32x8xbf16, #tpu.memory_space<vmem>>, %arg7: memref<1x4x1x8xf32, #tpu.memory_space<vmem>>, %arg8: memref<1x4x32x8xbf16, #tpu.memory_space<vmem>>, %arg9: memref<1x4x1x8xf32, #tpu.memory_space<vmem>>, %arg10: memref<1x4x8x32xbf16, #tpu.memory_space<vmem>>, %arg11: memref<1x1x32xf32, #tpu.memory_space<vmem>>, %arg12: memref<1x1x32xf32, #tpu.memory_space<vmem>>, %arg13: memref<1x1x32xf32, #tpu.memory_space<vmem>>, %arg14: memref<1x4x32x8xbf16, #tpu.memory_space<vmem>>, %arg15: memref<1x4x1x8xf32, #tpu.memory_space<vmem>>, %arg16: memref<1x4x32x8xbf16, #tpu.memory_space<vmem>>, %arg17: memref<1x4x1x8xf32, #tpu.memory_space<vmem>>, %arg18: memref<1x4x32x8xbf16, #tpu.memory_space<vmem>>, %arg19: memref<1x4x1x8xf32, #tpu.memory_space<vmem>>, %arg20: memref<1x4x8x32xbf16, #tpu.memory_space<vmem>>, %arg21: memref<1x1x32xf32, #tpu.memory_space<vmem>>, %arg22: memref<1x1x32xf32, #tpu.memory_space<vmem>>, %arg23: memref<1x1x32xf32, #tpu.memory_space<vmem>>, %arg24: memref<1x32x64xbf16, #tpu.memory_space<vmem>>, %arg25: memref<1x1x64xf32, #tpu.memory_space<vmem>>, %arg26: memref<1x64x32xbf16, #tpu.memory_space<vmem>>, %arg27: memref<1x1x32xf32, #tpu.memory_space<vmem>>, %arg28: memref<1x1x32xf32, #tpu.memory_space<vmem>>, %arg29: memref<1x1x32xf32, #tpu.memory_space<vmem>>, %arg30: memref<32x128xbf16, #tpu.memory_space<vmem>>, %arg31: memref<2x8x128xf32, #tpu.memory_space<vmem>>, %arg32: memref<2x8x32xf32, #tpu.memory_space<vmem>>) attributes {dimension_semantics = [#tpu.dimension_semantics<arbitrary>], iteration_bounds = array<i64: 2>, scalar_prefetch = 0 : i64, scratch_operands = 1 : i64, tpu.core_type = #tpu.core_type<tc>, window_params = [{pipeline_mode = #tpu.pipeline_mode<synchronous>, transform_indices = @transform_0, window_bounds = array<i64: 2, 8, 32>}, {pipeline_mode = #tpu.pipeline_mode<synchronous>, transform_indices = @transform_1, window_bounds = array<i64: 2, 2, 32>}, {pipeline_mode = #tpu.pipeline_mode<synchronous>, transform_indices = @transform_2, window_bounds = array<i64: 8, 8>}, {transform_indices = @transform_3, window_bounds = array<i64: 1, 4, 32, 8>}, {transform_indices = @transform_4, window_bounds = array<i64: 1, 4, 1, 8>}, {transform_indices = @transform_5, window_bounds = array<i64: 1, 4, 32, 8>}, {transform_indices = @transform_6, window_bounds = array<i64: 1, 4, 1, 8>}, {transform_indices = @transform_7, window_bounds = array<i64: 1, 4, 32, 8>}, {transform_indices = @transform_8, window_bounds = array<i64: 1, 4, 1, 8>}, {transform_indices = @transform_9, window_bounds = array<i64: 1, 4, 8, 32>}, {transform_indices = @transform_10, window_bounds = array<i64: 1, 1, 32>}, {transform_indices = @transform_11, window_bounds = array<i64: 1, 1, 32>}, {transform_indices = @transform_12, window_bounds = array<i64: 1, 1, 32>}, {transform_indices = @transform_13, window_bounds = array<i64: 1, 4, 32, 8>}, {transform_indices = @transform_14, window_bounds = array<i64: 1, 4, 1, 8>}, {transform_indices = @transform_15, window_bounds = array<i64: 1, 4, 32, 8>}, {transform_indices = @transform_16, window_bounds = array<i64: 1, 4, 1, 8>}, {transform_indices = @transform_17, window_bounds = array<i64: 1, 4, 32, 8>}, {transform_indices = @transform_18, window_bounds = array<i64: 1, 4, 1, 8>}, {transform_indices = @transform_19, window_bounds = array<i64: 1, 4, 8, 32>}, {transform_indices = @transform_20, window_bounds = array<i64: 1, 1, 32>}, {transform_indices = @transform_21, window_bounds = array<i64: 1, 1, 32>}, {transform_indices = @transform_22, window_bounds = array<i64: 1, 1, 32>}, {transform_indices = @transform_23, window_bounds = array<i64: 1, 32, 64>}, {transform_indices = @transform_24, window_bounds = array<i64: 1, 1, 64>}, {transform_indices = @transform_25, window_bounds = array<i64: 1, 64, 32>}, {transform_indices = @transform_26, window_bounds = array<i64: 1, 1, 32>}, {transform_indices = @transform_27, window_bounds = array<i64: 1, 1, 32>}, {transform_indices = @transform_28, window_bounds = array<i64: 1, 1, 32>}, {pipeline_mode = #tpu.pipeline_mode<synchronous>, transform_indices = @transform_29, window_bounds = array<i64: 32, 128>}, {pipeline_mode = #tpu.pipeline_mode<synchronous>, transform_indices = @transform_30, window_bounds = array<i64: 2, 8, 128>}]} {
    %c0_i32 = arith.constant 0 : i32
    %0 = arith.cmpi eq, %arg0, %c0_i32 : i32
    %1 = arith.extui %0 : i1 to i32
    %c0_i32_0 = arith.constant 0 : i32
    %2 = arith.cmpi ne, %1, %c0_i32_0 : i32
    scf.if %2 {
      %c0_358 = arith.constant 0 : index
      %c0_359 = arith.constant 0 : index
      %c0_360 = arith.constant 0 : index
      %506 = vector.load %arg1[%c0_358, %c0_359, %c0_360] : memref<2x8x32xf32, #tpu.memory_space<vmem>>, vector<2x8x32xf32>
      %c0_361 = arith.constant 0 : index
      %c0_362 = arith.constant 0 : index
      %c0_363 = arith.constant 0 : index
      %507 = vector.load %arg32[%c0_361, %c0_362, %c0_363] : memref<2x8x32xf32, #tpu.memory_space<vmem>>, vector<2x8x32xf32>
      tpu.vector_store %arg32[%c0_361, %c0_362, %c0_363], %506 {strides = array<i32>} : memref<2x8x32xf32, #tpu.memory_space<vmem>>, vector<2x8x32xf32>,
    } else {
    }
    %c0 = arith.constant 0 : index
    %c0_1 = arith.constant 0 : index
    %c0_2 = arith.constant 0 : index
    %3 = vector.load %arg32[%c0, %c0_1, %c0_2] : memref<2x8x32xf32, #tpu.memory_space<vmem>>, vector<2x8x32xf32>
    %c0_3 = arith.constant 0 : index
    %c0_4 = arith.constant 0 : index
    %c0_5 = arith.constant 0 : index
    %4 = vector.load %arg2[%c0_3, %c0_4, %c0_5] : memref<2x2x32xf32, #tpu.memory_space<vmem>>, vector<2x2x32xf32>
    %c0_6 = arith.constant 0 : index
    %c0_7 = arith.constant 0 : index
    %5 = vector.load %arg3[%c0_6, %c0_7] : memref<8x8xf32, #tpu.memory_space<vmem>>, vector<8x8xf32>
    %6 = vector.shape_cast %5 : vector<8x8xf32> to vector<1x8x8xf32>
    %7 = vector.shape_cast %6 : vector<1x8x8xf32> to vector<1x8x8xf32>
    %8 = vector.broadcast %7 : vector<1x8x8xf32> to vector<2x8x8xf32>
    %9 = vector.shape_cast %3 : vector<2x8x32xf32> to vector<16x32xf32>
    %10 = arith.truncf %9 : vector<16x32xf32> to vector<16x32xbf16>
    %c0_8 = arith.constant 0 : index
    %c0_9 = arith.constant 0 : index
    %c0_10 = arith.constant 0 : index
    %c0_11 = arith.constant 0 : index
    %11 = vector.load %arg4[%c0_8, %c0_9, %c0_10, %c0_11] : memref<1x4x32x8xbf16, #tpu.memory_space<vmem>>, vector<1x1x32x8xbf16>
    %12 = vector.shape_cast %11 : vector<1x1x32x8xbf16> to vector<32x8xbf16>
    %cst = arith.constant dense<0.000000e+00> : vector<16x8xf32>
    %13 = tpu.matmul %10, %12, %cst {dimension_numbers = #tpu.dot_dimension_numbers<[1], [0], [0], [1], [0, 0, 1, 1], [], []>} : vector<16x32xbf16>, vector<32x8xbf16>, vector<16x8xf32> -> vector<16x8xf32>
    %c0_12 = arith.constant 0 : index
    %c0_13 = arith.constant 0 : index
    %c0_14 = arith.constant 0 : index
    %c0_15 = arith.constant 0 : index
    %14 = vector.load %arg5[%c0_12, %c0_13, %c0_14, %c0_15] : memref<1x4x1x8xf32, #tpu.memory_space<vmem>>, vector<1x1x1x8xf32>
    %15 = vector.shape_cast %14 : vector<1x1x1x8xf32> to vector<1x8xf32>
    %16 = vector.broadcast %15 : vector<1x8xf32> to vector<16x8xf32>
    %17 = arith.addf %13, %16 : vector<16x8xf32>
    %18 = vector.shape_cast %17 : vector<16x8xf32> to vector<2x8x8xf32>
    %c0_16 = arith.constant 0 : index
    %c0_17 = arith.constant 0 : index
    %c0_18 = arith.constant 0 : index
    %c0_19 = arith.constant 0 : index
    %19 = vector.load %arg6[%c0_16, %c0_17, %c0_18, %c0_19] : memref<1x4x32x8xbf16, #tpu.memory_space<vmem>>, vector<1x1x32x8xbf16>
    %20 = vector.shape_cast %19 : vector<1x1x32x8xbf16> to vector<32x8xbf16>
    %cst_20 = arith.constant dense<0.000000e+00> : vector<16x8xf32>
    %21 = tpu.matmul %10, %20, %cst_20 {dimension_numbers = #tpu.dot_dimension_numbers<[1], [0], [0], [1], [0, 0, 1, 1], [], []>} : vector<16x32xbf16>, vector<32x8xbf16>, vector<16x8xf32> -> vector<16x8xf32>
    %c0_21 = arith.constant 0 : index
    %c0_22 = arith.constant 0 : index
    %c0_23 = arith.constant 0 : index
    %c0_24 = arith.constant 0 : index
    %22 = vector.load %arg7[%c0_21, %c0_22, %c0_23, %c0_24] : memref<1x4x1x8xf32, #tpu.memory_space<vmem>>, vector<1x1x1x8xf32>
    %23 = vector.shape_cast %22 : vector<1x1x1x8xf32> to vector<1x8xf32>
    %24 = vector.broadcast %23 : vector<1x8xf32> to vector<16x8xf32>
    %25 = arith.addf %21, %24 : vector<16x8xf32>
    %26 = vector.shape_cast %25 : vector<16x8xf32> to vector<2x8x8xf32>
    %c0_25 = arith.constant 0 : index
    %c0_26 = arith.constant 0 : index
    %c0_27 = arith.constant 0 : index
    %c0_28 = arith.constant 0 : index
    %27 = vector.load %arg8[%c0_25, %c0_26, %c0_27, %c0_28] : memref<1x4x32x8xbf16, #tpu.memory_space<vmem>>, vector<1x1x32x8xbf16>
    %28 = vector.shape_cast %27 : vector<1x1x32x8xbf16> to vector<32x8xbf16>
    %cst_29 = arith.constant dense<0.000000e+00> : vector<16x8xf32>
    %29 = tpu.matmul %10, %28, %cst_29 {dimension_numbers = #tpu.dot_dimension_numbers<[1], [0], [0], [1], [0, 0, 1, 1], [], []>} : vector<16x32xbf16>, vector<32x8xbf16>, vector<16x8xf32> -> vector<16x8xf32>
    %c0_30 = arith.constant 0 : index
    %c0_31 = arith.constant 0 : index
    %c0_32 = arith.constant 0 : index
    %c0_33 = arith.constant 0 : index
    %30 = vector.load %arg9[%c0_30, %c0_31, %c0_32, %c0_33] : memref<1x4x1x8xf32, #tpu.memory_space<vmem>>, vector<1x1x1x8xf32>
    %31 = vector.shape_cast %30 : vector<1x1x1x8xf32> to vector<1x8xf32>
    %32 = vector.broadcast %31 : vector<1x8xf32> to vector<16x8xf32>
    %33 = arith.addf %29, %32 : vector<16x8xf32>
    %34 = vector.shape_cast %33 : vector<16x8xf32> to vector<2x8x8xf32>
    %35 = arith.truncf %18 : vector<2x8x8xf32> to vector<2x8x8xbf16>
    %36 = arith.truncf %26 : vector<2x8x8xf32> to vector<2x8x8xbf16>
    "tpu.trace_start"() <{level = 10 : i32, message = "bqd,bkd->bqk"}> : () -> ()
    %cst_34 = arith.constant dense<0.000000e+00> : vector<2x8x8xf32>
    %37 = tpu.matmul %35, %36, %cst_34 {dimension_numbers = #tpu.dot_dimension_numbers<[2], [2], [1], [1], [0, 0, 0, 1, 1, 1], [0], [0]>} : vector<2x8x8xbf16>, vector<2x8x8xbf16>, vector<2x8x8xf32> -> vector<2x8x8xf32>
    "tpu.trace_stop"() : () -> ()
    %cst_35 = arith.constant 0.353553385 : f32
    %38 = vector.broadcast %cst_35 : f32 to vector<2x8x8xf32>
    %39 = arith.mulf %37, %38 : vector<2x8x8xf32>
    %40 = arith.addf %39, %8 : vector<2x8x8xf32>
    %cst_36 = arith.constant dense<0xFF800000> : vector<2x8xf32>
    %41 = vector.multi_reduction <maximumf>, %40, %cst_36 [2] : vector<2x8x8xf32> to vector<2x8xf32>
    %42 = vector.shape_cast %41 : vector<2x8xf32> to vector<2x8x1xf32>
    %43 = vector.broadcast %42 : vector<2x8x1xf32> to vector<2x8x8xf32>
    %44 = arith.subf %40, %43 : vector<2x8x8xf32>
    %45 = math.exp %44 : vector<2x8x8xf32>
    %cst_37 = arith.constant dense<0.000000e+00> : vector<2x8xf32>
    %46 = vector.multi_reduction <add>, %45, %cst_37 [2] : vector<2x8x8xf32> to vector<2x8xf32>
    %47 = vector.shape_cast %46 : vector<2x8xf32> to vector<2x8x1xf32>
    %48 = tpu.reciprocal %47 {approx = true} : vector<2x8x1xf32> -> vector<2x8x1xf32>
    %49 = vector.broadcast %48 : vector<2x8x1xf32> to vector<2x8x8xf32>
    %50 = arith.mulf %45, %49 : vector<2x8x8xf32>
    %51 = arith.truncf %50 : vector<2x8x8xf32> to vector<2x8x8xbf16>
    %52 = arith.truncf %34 : vector<2x8x8xf32> to vector<2x8x8xbf16>
    "tpu.trace_start"() <{level = 10 : i32, message = "bqk,bkd->bqd"}> : () -> ()
    %cst_38 = arith.constant dense<0.000000e+00> : vector<2x8x8xf32>
    %53 = tpu.matmul %51, %52, %cst_38 {dimension_numbers = #tpu.dot_dimension_numbers<[2], [1], [1], [2], [0, 0, 0, 1, 1, 2], [0], [0]>} : vector<2x8x8xbf16>, vector<2x8x8xbf16>, vector<2x8x8xf32> -> vector<2x8x8xf32>
    "tpu.trace_stop"() : () -> ()
    %54 = vector.shape_cast %53 : vector<2x8x8xf32> to vector<16x8xf32>
    %c0_39 = arith.constant 0 : index
    %c0_40 = arith.constant 0 : index
    %c0_41 = arith.constant 0 : index
    %c0_42 = arith.constant 0 : index
    %55 = vector.load %arg10[%c0_39, %c0_40, %c0_41, %c0_42] : memref<1x4x8x32xbf16, #tpu.memory_space<vmem>>, vector<1x1x8x32xbf16>
    %56 = vector.shape_cast %55 : vector<1x1x8x32xbf16> to vector<8x32xbf16>
    %57 = arith.truncf %54 : vector<16x8xf32> to vector<16x8xbf16>
    %cst_43 = arith.constant dense<0.000000e+00> : vector<16x32xf32>
    %58 = tpu.matmul %57, %56, %cst_43 {dimension_numbers = #tpu.dot_dimension_numbers<[1], [0], [0], [1], [0, 0, 1, 1], [], []>} : vector<16x8xbf16>, vector<8x32xbf16>, vector<16x32xf32> -> vector<16x32xf32>
    %c0_44 = arith.constant 0 : index
    %c1 = arith.constant 1 : index
    %c0_45 = arith.constant 0 : index
    %c0_46 = arith.constant 0 : index
    %59 = vector.load %arg4[%c0_44, %c1, %c0_45, %c0_46] : memref<1x4x32x8xbf16, #tpu.memory_space<vmem>>, vector<1x1x32x8xbf16>
    %60 = vector.shape_cast %59 : vector<1x1x32x8xbf16> to vector<32x8xbf16>
    %cst_47 = arith.constant dense<0.000000e+00> : vector<16x8xf32>
    %61 = tpu.matmul %10, %60, %cst_47 {dimension_numbers = #tpu.dot_dimension_numbers<[1], [0], [0], [1], [0, 0, 1, 1], [], []>} : vector<16x32xbf16>, vector<32x8xbf16>, vector<16x8xf32> -> vector<16x8xf32>
    %c0_48 = arith.constant 0 : index
    %c1_49 = arith.constant 1 : index
    %c0_50 = arith.constant 0 : index
    %c0_51 = arith.constant 0 : index
    %62 = vector.load %arg5[%c0_48, %c1_49, %c0_50, %c0_51] : memref<1x4x1x8xf32, #tpu.memory_space<vmem>>, vector<1x1x1x8xf32>
    %63 = vector.shape_cast %62 : vector<1x1x1x8xf32> to vector<1x8xf32>
    %64 = vector.broadcast %63 : vector<1x8xf32> to vector<16x8xf32>
    %65 = arith.addf %61, %64 : vector<16x8xf32>
    %66 = vector.shape_cast %65 : vector<16x8xf32> to vector<2x8x8xf32>
    %c0_52 = arith.constant 0 : index
    %c1_53 = arith.constant 1 : index
    %c0_54 = arith.constant 0 : index
    %c0_55 = arith.constant 0 : index
    %67 = vector.load %arg6[%c0_52, %c1_53, %c0_54, %c0_55] : memref<1x4x32x8xbf16, #tpu.memory_space<vmem>>, vector<1x1x32x8xbf16>
    %68 = vector.shape_cast %67 : vector<1x1x32x8xbf16> to vector<32x8xbf16>
    %cst_56 = arith.constant dense<0.000000e+00> : vector<16x8xf32>
    %69 = tpu.matmul %10, %68, %cst_56 {dimension_numbers = #tpu.dot_dimension_numbers<[1], [0], [0], [1], [0, 0, 1, 1], [], []>} : vector<16x32xbf16>, vector<32x8xbf16>, vector<16x8xf32> -> vector<16x8xf32>
    %c0_57 = arith.constant 0 : index
    %c1_58 = arith.constant 1 : index
    %c0_59 = arith.constant 0 : index
    %c0_60 = arith.constant 0 : index
    %70 = vector.load %arg7[%c0_57, %c1_58, %c0_59, %c0_60] : memref<1x4x1x8xf32, #tpu.memory_space<vmem>>, vector<1x1x1x8xf32>
    %71 = vector.shape_cast %70 : vector<1x1x1x8xf32> to vector<1x8xf32>
    %72 = vector.broadcast %71 : vector<1x8xf32> to vector<16x8xf32>
    %73 = arith.addf %69, %72 : vector<16x8xf32>
    %74 = vector.shape_cast %73 : vector<16x8xf32> to vector<2x8x8xf32>
    %c0_61 = arith.constant 0 : index
    %c1_62 = arith.constant 1 : index
    %c0_63 = arith.constant 0 : index
    %c0_64 = arith.constant 0 : index
    %75 = vector.load %arg8[%c0_61, %c1_62, %c0_63, %c0_64] : memref<1x4x32x8xbf16, #tpu.memory_space<vmem>>, vector<1x1x32x8xbf16>
    %76 = vector.shape_cast %75 : vector<1x1x32x8xbf16> to vector<32x8xbf16>
    %cst_65 = arith.constant dense<0.000000e+00> : vector<16x8xf32>
    %77 = tpu.matmul %10, %76, %cst_65 {dimension_numbers = #tpu.dot_dimension_numbers<[1], [0], [0], [1], [0, 0, 1, 1], [], []>} : vector<16x32xbf16>, vector<32x8xbf16>, vector<16x8xf32> -> vector<16x8xf32>
    %c0_66 = arith.constant 0 : index
    %c1_67 = arith.constant 1 : index
    %c0_68 = arith.constant 0 : index
    %c0_69 = arith.constant 0 : index
    %78 = vector.load %arg9[%c0_66, %c1_67, %c0_68, %c0_69] : memref<1x4x1x8xf32, #tpu.memory_space<vmem>>, vector<1x1x1x8xf32>
    %79 = vector.shape_cast %78 : vector<1x1x1x8xf32> to vector<1x8xf32>
    %80 = vector.broadcast %79 : vector<1x8xf32> to vector<16x8xf32>
    %81 = arith.addf %77, %80 : vector<16x8xf32>
    %82 = vector.shape_cast %81 : vector<16x8xf32> to vector<2x8x8xf32>
    %83 = arith.truncf %66 : vector<2x8x8xf32> to vector<2x8x8xbf16>
    %84 = arith.truncf %74 : vector<2x8x8xf32> to vector<2x8x8xbf16>
    "tpu.trace_start"() <{level = 10 : i32, message = "bqd,bkd->bqk"}> : () -> ()
    %cst_70 = arith.constant dense<0.000000e+00> : vector<2x8x8xf32>
    %85 = tpu.matmul %83, %84, %cst_70 {dimension_numbers = #tpu.dot_dimension_numbers<[2], [2], [1], [1], [0, 0, 0, 1, 1, 1], [0], [0]>} : vector<2x8x8xbf16>, vector<2x8x8xbf16>, vector<2x8x8xf32> -> vector<2x8x8xf32>
    "tpu.trace_stop"() : () -> ()
    %cst_71 = arith.constant 0.353553385 : f32
    %86 = vector.broadcast %cst_71 : f32 to vector<2x8x8xf32>
    %87 = arith.mulf %85, %86 : vector<2x8x8xf32>
    %88 = arith.addf %87, %8 : vector<2x8x8xf32>
    %cst_72 = arith.constant dense<0xFF800000> : vector<2x8xf32>
    %89 = vector.multi_reduction <maximumf>, %88, %cst_72 [2] : vector<2x8x8xf32> to vector<2x8xf32>
    %90 = vector.shape_cast %89 : vector<2x8xf32> to vector<2x8x1xf32>
    %91 = vector.broadcast %90 : vector<2x8x1xf32> to vector<2x8x8xf32>
    %92 = arith.subf %88, %91 : vector<2x8x8xf32>
    %93 = math.exp %92 : vector<2x8x8xf32>
    %cst_73 = arith.constant dense<0.000000e+00> : vector<2x8xf32>
    %94 = vector.multi_reduction <add>, %93, %cst_73 [2] : vector<2x8x8xf32> to vector<2x8xf32>
    %95 = vector.shape_cast %94 : vector<2x8xf32> to vector<2x8x1xf32>
    %96 = tpu.reciprocal %95 {approx = true} : vector<2x8x1xf32> -> vector<2x8x1xf32>
    %97 = vector.broadcast %96 : vector<2x8x1xf32> to vector<2x8x8xf32>
    %98 = arith.mulf %93, %97 : vector<2x8x8xf32>
    %99 = arith.truncf %98 : vector<2x8x8xf32> to vector<2x8x8xbf16>
    %100 = arith.truncf %82 : vector<2x8x8xf32> to vector<2x8x8xbf16>
    "tpu.trace_start"() <{level = 10 : i32, message = "bqk,bkd->bqd"}> : () -> ()
    %cst_74 = arith.constant dense<0.000000e+00> : vector<2x8x8xf32>
    %101 = tpu.matmul %99, %100, %cst_74 {dimension_numbers = #tpu.dot_dimension_numbers<[2], [1], [1], [2], [0, 0, 0, 1, 1, 2], [0], [0]>} : vector<2x8x8xbf16>, vector<2x8x8xbf16>, vector<2x8x8xf32> -> vector<2x8x8xf32>
    "tpu.trace_stop"() : () -> ()
    %102 = vector.shape_cast %101 : vector<2x8x8xf32> to vector<16x8xf32>
    %c0_75 = arith.constant 0 : index
    %c1_76 = arith.constant 1 : index
    %c0_77 = arith.constant 0 : index
    %c0_78 = arith.constant 0 : index
    %103 = vector.load %arg10[%c0_75, %c1_76, %c0_77, %c0_78] : memref<1x4x8x32xbf16, #tpu.memory_space<vmem>>, vector<1x1x8x32xbf16>
    %104 = vector.shape_cast %103 : vector<1x1x8x32xbf16> to vector<8x32xbf16>
    %105 = arith.truncf %102 : vector<16x8xf32> to vector<16x8xbf16>
    %cst_79 = arith.constant dense<0.000000e+00> : vector<16x32xf32>
    %106 = tpu.matmul %105, %104, %cst_79 {dimension_numbers = #tpu.dot_dimension_numbers<[1], [0], [0], [1], [0, 0, 1, 1], [], []>} : vector<16x8xbf16>, vector<8x32xbf16>, vector<16x32xf32> -> vector<16x32xf32>
    %107 = arith.addf %58, %106 : vector<16x32xf32>
    %c0_80 = arith.constant 0 : index
    %c2 = arith.constant 2 : index
    %c0_81 = arith.constant 0 : index
    %c0_82 = arith.constant 0 : index
    %108 = vector.load %arg4[%c0_80, %c2, %c0_81, %c0_82] : memref<1x4x32x8xbf16, #tpu.memory_space<vmem>>, vector<1x1x32x8xbf16>
    %109 = vector.shape_cast %108 : vector<1x1x32x8xbf16> to vector<32x8xbf16>
    %cst_83 = arith.constant dense<0.000000e+00> : vector<16x8xf32>
    %110 = tpu.matmul %10, %109, %cst_83 {dimension_numbers = #tpu.dot_dimension_numbers<[1], [0], [0], [1], [0, 0, 1, 1], [], []>} : vector<16x32xbf16>, vector<32x8xbf16>, vector<16x8xf32> -> vector<16x8xf32>
    %c0_84 = arith.constant 0 : index
    %c2_85 = arith.constant 2 : index
    %c0_86 = arith.constant 0 : index
    %c0_87 = arith.constant 0 : index
    %111 = vector.load %arg5[%c0_84, %c2_85, %c0_86, %c0_87] : memref<1x4x1x8xf32, #tpu.memory_space<vmem>>, vector<1x1x1x8xf32>
    %112 = vector.shape_cast %111 : vector<1x1x1x8xf32> to vector<1x8xf32>
    %113 = vector.broadcast %112 : vector<1x8xf32> to vector<16x8xf32>
    %114 = arith.addf %110, %113 : vector<16x8xf32>
    %115 = vector.shape_cast %114 : vector<16x8xf32> to vector<2x8x8xf32>
    %c0_88 = arith.constant 0 : index
    %c2_89 = arith.constant 2 : index
    %c0_90 = arith.constant 0 : index
    %c0_91 = arith.constant 0 : index
    %116 = vector.load %arg6[%c0_88, %c2_89, %c0_90, %c0_91] : memref<1x4x32x8xbf16, #tpu.memory_space<vmem>>, vector<1x1x32x8xbf16>
    %117 = vector.shape_cast %116 : vector<1x1x32x8xbf16> to vector<32x8xbf16>
    %cst_92 = arith.constant dense<0.000000e+00> : vector<16x8xf32>
    %118 = tpu.matmul %10, %117, %cst_92 {dimension_numbers = #tpu.dot_dimension_numbers<[1], [0], [0], [1], [0, 0, 1, 1], [], []>} : vector<16x32xbf16>, vector<32x8xbf16>, vector<16x8xf32> -> vector<16x8xf32>
    %c0_93 = arith.constant 0 : index
    %c2_94 = arith.constant 2 : index
    %c0_95 = arith.constant 0 : index
    %c0_96 = arith.constant 0 : index
    %119 = vector.load %arg7[%c0_93, %c2_94, %c0_95, %c0_96] : memref<1x4x1x8xf32, #tpu.memory_space<vmem>>, vector<1x1x1x8xf32>
    %120 = vector.shape_cast %119 : vector<1x1x1x8xf32> to vector<1x8xf32>
    %121 = vector.broadcast %120 : vector<1x8xf32> to vector<16x8xf32>
    %122 = arith.addf %118, %121 : vector<16x8xf32>
    %123 = vector.shape_cast %122 : vector<16x8xf32> to vector<2x8x8xf32>
    %c0_97 = arith.constant 0 : index
    %c2_98 = arith.constant 2 : index
    %c0_99 = arith.constant 0 : index
    %c0_100 = arith.constant 0 : index
    %124 = vector.load %arg8[%c0_97, %c2_98, %c0_99, %c0_100] : memref<1x4x32x8xbf16, #tpu.memory_space<vmem>>, vector<1x1x32x8xbf16>
    %125 = vector.shape_cast %124 : vector<1x1x32x8xbf16> to vector<32x8xbf16>
    %cst_101 = arith.constant dense<0.000000e+00> : vector<16x8xf32>
    %126 = tpu.matmul %10, %125, %cst_101 {dimension_numbers = #tpu.dot_dimension_numbers<[1], [0], [0], [1], [0, 0, 1, 1], [], []>} : vector<16x32xbf16>, vector<32x8xbf16>, vector<16x8xf32> -> vector<16x8xf32>
    %c0_102 = arith.constant 0 : index
    %c2_103 = arith.constant 2 : index
    %c0_104 = arith.constant 0 : index
    %c0_105 = arith.constant 0 : index
    %127 = vector.load %arg9[%c0_102, %c2_103, %c0_104, %c0_105] : memref<1x4x1x8xf32, #tpu.memory_space<vmem>>, vector<1x1x1x8xf32>
    %128 = vector.shape_cast %127 : vector<1x1x1x8xf32> to vector<1x8xf32>
    %129 = vector.broadcast %128 : vector<1x8xf32> to vector<16x8xf32>
    %130 = arith.addf %126, %129 : vector<16x8xf32>
    %131 = vector.shape_cast %130 : vector<16x8xf32> to vector<2x8x8xf32>
    %132 = arith.truncf %115 : vector<2x8x8xf32> to vector<2x8x8xbf16>
    %133 = arith.truncf %123 : vector<2x8x8xf32> to vector<2x8x8xbf16>
    "tpu.trace_start"() <{level = 10 : i32, message = "bqd,bkd->bqk"}> : () -> ()
    %cst_106 = arith.constant dense<0.000000e+00> : vector<2x8x8xf32>
    %134 = tpu.matmul %132, %133, %cst_106 {dimension_numbers = #tpu.dot_dimension_numbers<[2], [2], [1], [1], [0, 0, 0, 1, 1, 1], [0], [0]>} : vector<2x8x8xbf16>, vector<2x8x8xbf16>, vector<2x8x8xf32> -> vector<2x8x8xf32>
    "tpu.trace_stop"() : () -> ()
    %cst_107 = arith.constant 0.353553385 : f32
    %135 = vector.broadcast %cst_107 : f32 to vector<2x8x8xf32>
    %136 = arith.mulf %134, %135 : vector<2x8x8xf32>
    %137 = arith.addf %136, %8 : vector<2x8x8xf32>
    %cst_108 = arith.constant dense<0xFF800000> : vector<2x8xf32>
    %138 = vector.multi_reduction <maximumf>, %137, %cst_108 [2] : vector<2x8x8xf32> to vector<2x8xf32>
    %139 = vector.shape_cast %138 : vector<2x8xf32> to vector<2x8x1xf32>
    %140 = vector.broadcast %139 : vector<2x8x1xf32> to vector<2x8x8xf32>
    %141 = arith.subf %137, %140 : vector<2x8x8xf32>
    %142 = math.exp %141 : vector<2x8x8xf32>
    %cst_109 = arith.constant dense<0.000000e+00> : vector<2x8xf32>
    %143 = vector.multi_reduction <add>, %142, %cst_109 [2] : vector<2x8x8xf32> to vector<2x8xf32>
    %144 = vector.shape_cast %143 : vector<2x8xf32> to vector<2x8x1xf32>
    %145 = tpu.reciprocal %144 {approx = true} : vector<2x8x1xf32> -> vector<2x8x1xf32>
    %146 = vector.broadcast %145 : vector<2x8x1xf32> to vector<2x8x8xf32>
    %147 = arith.mulf %142, %146 : vector<2x8x8xf32>
    %148 = arith.truncf %147 : vector<2x8x8xf32> to vector<2x8x8xbf16>
    %149 = arith.truncf %131 : vector<2x8x8xf32> to vector<2x8x8xbf16>
    "tpu.trace_start"() <{level = 10 : i32, message = "bqk,bkd->bqd"}> : () -> ()
    %cst_110 = arith.constant dense<0.000000e+00> : vector<2x8x8xf32>
    %150 = tpu.matmul %148, %149, %cst_110 {dimension_numbers = #tpu.dot_dimension_numbers<[2], [1], [1], [2], [0, 0, 0, 1, 1, 2], [0], [0]>} : vector<2x8x8xbf16>, vector<2x8x8xbf16>, vector<2x8x8xf32> -> vector<2x8x8xf32>
    "tpu.trace_stop"() : () -> ()
    %151 = vector.shape_cast %150 : vector<2x8x8xf32> to vector<16x8xf32>
    %c0_111 = arith.constant 0 : index
    %c2_112 = arith.constant 2 : index
    %c0_113 = arith.constant 0 : index
    %c0_114 = arith.constant 0 : index
    %152 = vector.load %arg10[%c0_111, %c2_112, %c0_113, %c0_114] : memref<1x4x8x32xbf16, #tpu.memory_space<vmem>>, vector<1x1x8x32xbf16>
    %153 = vector.shape_cast %152 : vector<1x1x8x32xbf16> to vector<8x32xbf16>
    %154 = arith.truncf %151 : vector<16x8xf32> to vector<16x8xbf16>
    %cst_115 = arith.constant dense<0.000000e+00> : vector<16x32xf32>
    %155 = tpu.matmul %154, %153, %cst_115 {dimension_numbers = #tpu.dot_dimension_numbers<[1], [0], [0], [1], [0, 0, 1, 1], [], []>} : vector<16x8xbf16>, vector<8x32xbf16>, vector<16x32xf32> -> vector<16x32xf32>
    %156 = arith.addf %107, %155 : vector<16x32xf32>
    %c0_116 = arith.constant 0 : index
    %c3 = arith.constant 3 : index
    %c0_117 = arith.constant 0 : index
    %c0_118 = arith.constant 0 : index
    %157 = vector.load %arg4[%c0_116, %c3, %c0_117, %c0_118] : memref<1x4x32x8xbf16, #tpu.memory_space<vmem>>, vector<1x1x32x8xbf16>
    %158 = vector.shape_cast %157 : vector<1x1x32x8xbf16> to vector<32x8xbf16>
    %cst_119 = arith.constant dense<0.000000e+00> : vector<16x8xf32>
    %159 = tpu.matmul %10, %158, %cst_119 {dimension_numbers = #tpu.dot_dimension_numbers<[1], [0], [0], [1], [0, 0, 1, 1], [], []>} : vector<16x32xbf16>, vector<32x8xbf16>, vector<16x8xf32> -> vector<16x8xf32>
    %c0_120 = arith.constant 0 : index
    %c3_121 = arith.constant 3 : index
    %c0_122 = arith.constant 0 : index
    %c0_123 = arith.constant 0 : index
    %160 = vector.load %arg5[%c0_120, %c3_121, %c0_122, %c0_123] : memref<1x4x1x8xf32, #tpu.memory_space<vmem>>, vector<1x1x1x8xf32>
    %161 = vector.shape_cast %160 : vector<1x1x1x8xf32> to vector<1x8xf32>
    %162 = vector.broadcast %161 : vector<1x8xf32> to vector<16x8xf32>
    %163 = arith.addf %159, %162 : vector<16x8xf32>
    %164 = vector.shape_cast %163 : vector<16x8xf32> to vector<2x8x8xf32>
    %c0_124 = arith.constant 0 : index
    %c3_125 = arith.constant 3 : index
    %c0_126 = arith.constant 0 : index
    %c0_127 = arith.constant 0 : index
    %165 = vector.load %arg6[%c0_124, %c3_125, %c0_126, %c0_127] : memref<1x4x32x8xbf16, #tpu.memory_space<vmem>>, vector<1x1x32x8xbf16>
    %166 = vector.shape_cast %165 : vector<1x1x32x8xbf16> to vector<32x8xbf16>
    %cst_128 = arith.constant dense<0.000000e+00> : vector<16x8xf32>
    %167 = tpu.matmul %10, %166, %cst_128 {dimension_numbers = #tpu.dot_dimension_numbers<[1], [0], [0], [1], [0, 0, 1, 1], [], []>} : vector<16x32xbf16>, vector<32x8xbf16>, vector<16x8xf32> -> vector<16x8xf32>
    %c0_129 = arith.constant 0 : index
    %c3_130 = arith.constant 3 : index
    %c0_131 = arith.constant 0 : index
    %c0_132 = arith.constant 0 : index
    %168 = vector.load %arg7[%c0_129, %c3_130, %c0_131, %c0_132] : memref<1x4x1x8xf32, #tpu.memory_space<vmem>>, vector<1x1x1x8xf32>
    %169 = vector.shape_cast %168 : vector<1x1x1x8xf32> to vector<1x8xf32>
    %170 = vector.broadcast %169 : vector<1x8xf32> to vector<16x8xf32>
    %171 = arith.addf %167, %170 : vector<16x8xf32>
    %172 = vector.shape_cast %171 : vector<16x8xf32> to vector<2x8x8xf32>
    %c0_133 = arith.constant 0 : index
    %c3_134 = arith.constant 3 : index
    %c0_135 = arith.constant 0 : index
    %c0_136 = arith.constant 0 : index
    %173 = vector.load %arg8[%c0_133, %c3_134, %c0_135, %c0_136] : memref<1x4x32x8xbf16, #tpu.memory_space<vmem>>, vector<1x1x32x8xbf16>
    %174 = vector.shape_cast %173 : vector<1x1x32x8xbf16> to vector<32x8xbf16>
    %cst_137 = arith.constant dense<0.000000e+00> : vector<16x8xf32>
    %175 = tpu.matmul %10, %174, %cst_137 {dimension_numbers = #tpu.dot_dimension_numbers<[1], [0], [0], [1], [0, 0, 1, 1], [], []>} : vector<16x32xbf16>, vector<32x8xbf16>, vector<16x8xf32> -> vector<16x8xf32>
    %c0_138 = arith.constant 0 : index
    %c3_139 = arith.constant 3 : index
    %c0_140 = arith.constant 0 : index
    %c0_141 = arith.constant 0 : index
    %176 = vector.load %arg9[%c0_138, %c3_139, %c0_140, %c0_141] : memref<1x4x1x8xf32, #tpu.memory_space<vmem>>, vector<1x1x1x8xf32>
    %177 = vector.shape_cast %176 : vector<1x1x1x8xf32> to vector<1x8xf32>
    %178 = vector.broadcast %177 : vector<1x8xf32> to vector<16x8xf32>
    %179 = arith.addf %175, %178 : vector<16x8xf32>
    %180 = vector.shape_cast %179 : vector<16x8xf32> to vector<2x8x8xf32>
    %181 = arith.truncf %164 : vector<2x8x8xf32> to vector<2x8x8xbf16>
    %182 = arith.truncf %172 : vector<2x8x8xf32> to vector<2x8x8xbf16>
    "tpu.trace_start"() <{level = 10 : i32, message = "bqd,bkd->bqk"}> : () -> ()
    %cst_142 = arith.constant dense<0.000000e+00> : vector<2x8x8xf32>
    %183 = tpu.matmul %181, %182, %cst_142 {dimension_numbers = #tpu.dot_dimension_numbers<[2], [2], [1], [1], [0, 0, 0, 1, 1, 1], [0], [0]>} : vector<2x8x8xbf16>, vector<2x8x8xbf16>, vector<2x8x8xf32> -> vector<2x8x8xf32>
    "tpu.trace_stop"() : () -> ()
    %cst_143 = arith.constant 0.353553385 : f32
    %184 = vector.broadcast %cst_143 : f32 to vector<2x8x8xf32>
    %185 = arith.mulf %183, %184 : vector<2x8x8xf32>
    %186 = arith.addf %185, %8 : vector<2x8x8xf32>
    %cst_144 = arith.constant dense<0xFF800000> : vector<2x8xf32>
    %187 = vector.multi_reduction <maximumf>, %186, %cst_144 [2] : vector<2x8x8xf32> to vector<2x8xf32>
    %188 = vector.shape_cast %187 : vector<2x8xf32> to vector<2x8x1xf32>
    %189 = vector.broadcast %188 : vector<2x8x1xf32> to vector<2x8x8xf32>
    %190 = arith.subf %186, %189 : vector<2x8x8xf32>
    %191 = math.exp %190 : vector<2x8x8xf32>
    %cst_145 = arith.constant dense<0.000000e+00> : vector<2x8xf32>
    %192 = vector.multi_reduction <add>, %191, %cst_145 [2] : vector<2x8x8xf32> to vector<2x8xf32>
    %193 = vector.shape_cast %192 : vector<2x8xf32> to vector<2x8x1xf32>
    %194 = tpu.reciprocal %193 {approx = true} : vector<2x8x1xf32> -> vector<2x8x1xf32>
    %195 = vector.broadcast %194 : vector<2x8x1xf32> to vector<2x8x8xf32>
    %196 = arith.mulf %191, %195 : vector<2x8x8xf32>
    %197 = arith.truncf %196 : vector<2x8x8xf32> to vector<2x8x8xbf16>
    %198 = arith.truncf %180 : vector<2x8x8xf32> to vector<2x8x8xbf16>
    "tpu.trace_start"() <{level = 10 : i32, message = "bqk,bkd->bqd"}> : () -> ()
    %cst_146 = arith.constant dense<0.000000e+00> : vector<2x8x8xf32>
    %199 = tpu.matmul %197, %198, %cst_146 {dimension_numbers = #tpu.dot_dimension_numbers<[2], [1], [1], [2], [0, 0, 0, 1, 1, 2], [0], [0]>} : vector<2x8x8xbf16>, vector<2x8x8xbf16>, vector<2x8x8xf32> -> vector<2x8x8xf32>
    "tpu.trace_stop"() : () -> ()
    %200 = vector.shape_cast %199 : vector<2x8x8xf32> to vector<16x8xf32>
    %c0_147 = arith.constant 0 : index
    %c3_148 = arith.constant 3 : index
    %c0_149 = arith.constant 0 : index
    %c0_150 = arith.constant 0 : index
    %201 = vector.load %arg10[%c0_147, %c3_148, %c0_149, %c0_150] : memref<1x4x8x32xbf16, #tpu.memory_space<vmem>>, vector<1x1x8x32xbf16>
    %202 = vector.shape_cast %201 : vector<1x1x8x32xbf16> to vector<8x32xbf16>
    %203 = arith.truncf %200 : vector<16x8xf32> to vector<16x8xbf16>
    %cst_151 = arith.constant dense<0.000000e+00> : vector<16x32xf32>
    %204 = tpu.matmul %203, %202, %cst_151 {dimension_numbers = #tpu.dot_dimension_numbers<[1], [0], [0], [1], [0, 0, 1, 1], [], []>} : vector<16x8xbf16>, vector<8x32xbf16>, vector<16x32xf32> -> vector<16x32xf32>
    %205 = arith.addf %156, %204 : vector<16x32xf32>
    %c0_152 = arith.constant 0 : index
    %c0_153 = arith.constant 0 : index
    %c0_154 = arith.constant 0 : index
    %206 = vector.load %arg11[%c0_152, %c0_153, %c0_154] : memref<1x1x32xf32, #tpu.memory_space<vmem>>, vector<1x1x32xf32>
    %207 = vector.shape_cast %206 : vector<1x1x32xf32> to vector<1x32xf32>
    %208 = vector.broadcast %207 : vector<1x32xf32> to vector<16x32xf32>
    %209 = arith.addf %205, %208 : vector<16x32xf32>
    %210 = arith.addf %9, %209 : vector<16x32xf32>
    %c0_155 = arith.constant 0 : index
    %c0_156 = arith.constant 0 : index
    %c0_157 = arith.constant 0 : index
    %211 = vector.load %arg12[%c0_155, %c0_156, %c0_157] : memref<1x1x32xf32, #tpu.memory_space<vmem>>, vector<1x1x32xf32>
    %212 = vector.shape_cast %211 : vector<1x1x32xf32> to vector<1x32xf32>
    %c0_158 = arith.constant 0 : index
    %c0_159 = arith.constant 0 : index
    %c0_160 = arith.constant 0 : index
    %213 = vector.load %arg13[%c0_158, %c0_159, %c0_160] : memref<1x1x32xf32, #tpu.memory_space<vmem>>, vector<1x1x32xf32>
    %214 = vector.shape_cast %213 : vector<1x1x32xf32> to vector<1x32xf32>
    %cst_161 = arith.constant dense<0.000000e+00> : vector<16xf32>
    %215 = vector.multi_reduction <add>, %210, %cst_161 [1] : vector<16x32xf32> to vector<16xf32>
    %216 = vector.shape_cast %215 : vector<16xf32> to vector<16x1xf32>
    %cst_162 = arith.constant 3.200000e+01 : f32
    %217 = vector.broadcast %cst_162 : f32 to vector<16x1xf32>
    %218 = arith.divf %216, %217 : vector<16x1xf32>
    %219 = vector.broadcast %218 : vector<16x1xf32> to vector<16x32xf32>
    %220 = arith.subf %210, %219 : vector<16x32xf32>
    %221 = arith.mulf %220, %220 : vector<16x32xf32>
    %cst_163 = arith.constant dense<0.000000e+00> : vector<16xf32>
    %222 = vector.multi_reduction <add>, %221, %cst_163 [1] : vector<16x32xf32> to vector<16xf32>
    %223 = vector.shape_cast %222 : vector<16xf32> to vector<16x1xf32>
    %cst_164 = arith.constant 3.200000e+01 : f32
    %224 = vector.broadcast %cst_164 : f32 to vector<16x1xf32>
    %225 = arith.divf %223, %224 : vector<16x1xf32>
    %cst_165 = arith.constant 9.99999974E-6 : f32
    %226 = vector.broadcast %cst_165 : f32 to vector<16x1xf32>
    %227 = arith.addf %225, %226 : vector<16x1xf32>
    %228 = math.rsqrt %227 : vector<16x1xf32>
    %229 = vector.broadcast %228 : vector<16x1xf32> to vector<16x32xf32>
    %230 = arith.mulf %220, %229 : vector<16x32xf32>
    %231 = vector.broadcast %212 : vector<1x32xf32> to vector<16x32xf32>
    %232 = arith.mulf %230, %231 : vector<16x32xf32>
    %233 = vector.broadcast %214 : vector<1x32xf32> to vector<16x32xf32>
    %234 = arith.addf %232, %233 : vector<16x32xf32>
    %235 = arith.truncf %234 : vector<16x32xf32> to vector<16x32xbf16>
    %236 = vector.shape_cast %4 : vector<2x2x32xf32> to vector<4x32xf32>
    %237 = arith.truncf %236 : vector<4x32xf32> to vector<4x32xbf16>
    %c0_166 = arith.constant 0 : index
    %c0_167 = arith.constant 0 : index
    %c0_168 = arith.constant 0 : index
    %c0_169 = arith.constant 0 : index
    %238 = vector.load %arg14[%c0_166, %c0_167, %c0_168, %c0_169] : memref<1x4x32x8xbf16, #tpu.memory_space<vmem>>, vector<1x1x32x8xbf16>
    %239 = vector.shape_cast %238 : vector<1x1x32x8xbf16> to vector<32x8xbf16>
    %cst_170 = arith.constant dense<0.000000e+00> : vector<16x8xf32>
    %240 = tpu.matmul %235, %239, %cst_170 {dimension_numbers = #tpu.dot_dimension_numbers<[1], [0], [0], [1], [0, 0, 1, 1], [], []>} : vector<16x32xbf16>, vector<32x8xbf16>, vector<16x8xf32> -> vector<16x8xf32>
    %c0_171 = arith.constant 0 : index
    %c0_172 = arith.constant 0 : index
    %c0_173 = arith.constant 0 : index
    %c0_174 = arith.constant 0 : index
    %241 = vector.load %arg15[%c0_171, %c0_172, %c0_173, %c0_174] : memref<1x4x1x8xf32, #tpu.memory_space<vmem>>, vector<1x1x1x8xf32>
    %242 = vector.shape_cast %241 : vector<1x1x1x8xf32> to vector<1x8xf32>
    %243 = vector.broadcast %242 : vector<1x8xf32> to vector<16x8xf32>
    %244 = arith.addf %240, %243 : vector<16x8xf32>
    %245 = vector.shape_cast %244 : vector<16x8xf32> to vector<2x8x8xf32>
    %c0_175 = arith.constant 0 : index
    %c0_176 = arith.constant 0 : index
    %c0_177 = arith.constant 0 : index
    %c0_178 = arith.constant 0 : index
    %246 = vector.load %arg16[%c0_175, %c0_176, %c0_177, %c0_178] : memref<1x4x32x8xbf16, #tpu.memory_space<vmem>>, vector<1x1x32x8xbf16>
    %247 = vector.shape_cast %246 : vector<1x1x32x8xbf16> to vector<32x8xbf16>
    %cst_179 = arith.constant dense<0.000000e+00> : vector<4x8xf32>
    %248 = tpu.matmul %237, %247, %cst_179 {dimension_numbers = #tpu.dot_dimension_numbers<[1], [0], [0], [1], [0, 0, 1, 1], [], []>} : vector<4x32xbf16>, vector<32x8xbf16>, vector<4x8xf32> -> vector<4x8xf32>
    %c0_180 = arith.constant 0 : index
    %c0_181 = arith.constant 0 : index
    %c0_182 = arith.constant 0 : index
    %c0_183 = arith.constant 0 : index
    %249 = vector.load %arg17[%c0_180, %c0_181, %c0_182, %c0_183] : memref<1x4x1x8xf32, #tpu.memory_space<vmem>>, vector<1x1x1x8xf32>
    %250 = vector.shape_cast %249 : vector<1x1x1x8xf32> to vector<1x8xf32>
    %251 = vector.broadcast %250 : vector<1x8xf32> to vector<4x8xf32>
    %252 = arith.addf %248, %251 : vector<4x8xf32>
    %253 = vector.shape_cast %252 : vector<4x8xf32> to vector<2x2x8xf32>
    %c0_184 = arith.constant 0 : index
    %c0_185 = arith.constant 0 : index
    %c0_186 = arith.constant 0 : index
    %c0_187 = arith.constant 0 : index
    %254 = vector.load %arg18[%c0_184, %c0_185, %c0_186, %c0_187] : memref<1x4x32x8xbf16, #tpu.memory_space<vmem>>, vector<1x1x32x8xbf16>
    %255 = vector.shape_cast %254 : vector<1x1x32x8xbf16> to vector<32x8xbf16>
    %cst_188 = arith.constant dense<0.000000e+00> : vector<4x8xf32>
    %256 = tpu.matmul %237, %255, %cst_188 {dimension_numbers = #tpu.dot_dimension_numbers<[1], [0], [0], [1], [0, 0, 1, 1], [], []>} : vector<4x32xbf16>, vector<32x8xbf16>, vector<4x8xf32> -> vector<4x8xf32>
    %c0_189 = arith.constant 0 : index
    %c0_190 = arith.constant 0 : index
    %c0_191 = arith.constant 0 : index
    %c0_192 = arith.constant 0 : index
    %257 = vector.load %arg19[%c0_189, %c0_190, %c0_191, %c0_192] : memref<1x4x1x8xf32, #tpu.memory_space<vmem>>, vector<1x1x1x8xf32>
    %258 = vector.shape_cast %257 : vector<1x1x1x8xf32> to vector<1x8xf32>
    %259 = vector.broadcast %258 : vector<1x8xf32> to vector<4x8xf32>
    %260 = arith.addf %256, %259 : vector<4x8xf32>
    %261 = vector.shape_cast %260 : vector<4x8xf32> to vector<2x2x8xf32>
    %262 = arith.truncf %245 : vector<2x8x8xf32> to vector<2x8x8xbf16>
    %263 = arith.truncf %253 : vector<2x2x8xf32> to vector<2x2x8xbf16>
    "tpu.trace_start"() <{level = 10 : i32, message = "bqd,bkd->bqk"}> : () -> ()
    %cst_193 = arith.constant dense<0.000000e+00> : vector<2x8x2xf32>
    %264 = tpu.matmul %262, %263, %cst_193 {dimension_numbers = #tpu.dot_dimension_numbers<[2], [2], [1], [1], [0, 0, 0, 1, 1, 1], [0], [0]>} : vector<2x8x8xbf16>, vector<2x2x8xbf16>, vector<2x8x2xf32> -> vector<2x8x2xf32>
    "tpu.trace_stop"() : () -> ()
    %cst_194 = arith.constant 0.353553385 : f32
    %265 = vector.broadcast %cst_194 : f32 to vector<2x8x2xf32>
    %266 = arith.mulf %264, %265 : vector<2x8x2xf32>
    %cst_195 = arith.constant dense<0xFF800000> : vector<2x8xf32>
    %267 = vector.multi_reduction <maximumf>, %266, %cst_195 [2] : vector<2x8x2xf32> to vector<2x8xf32>
    %268 = vector.shape_cast %267 : vector<2x8xf32> to vector<2x8x1xf32>
    %269 = vector.broadcast %268 : vector<2x8x1xf32> to vector<2x8x2xf32>
    %270 = arith.subf %266, %269 : vector<2x8x2xf32>
    %271 = math.exp %270 : vector<2x8x2xf32>
    %cst_196 = arith.constant dense<0.000000e+00> : vector<2x8xf32>
    %272 = vector.multi_reduction <add>, %271, %cst_196 [2] : vector<2x8x2xf32> to vector<2x8xf32>
    %273 = vector.shape_cast %272 : vector<2x8xf32> to vector<2x8x1xf32>
    %274 = tpu.reciprocal %273 {approx = true} : vector<2x8x1xf32> -> vector<2x8x1xf32>
    %275 = vector.broadcast %274 : vector<2x8x1xf32> to vector<2x8x2xf32>
    %276 = arith.mulf %271, %275 : vector<2x8x2xf32>
    %277 = arith.truncf %276 : vector<2x8x2xf32> to vector<2x8x2xbf16>
    %278 = arith.truncf %261 : vector<2x2x8xf32> to vector<2x2x8xbf16>
    "tpu.trace_start"() <{level = 10 : i32, message = "bqk,bkd->bqd"}> : () -> ()
    %cst_197 = arith.constant dense<0.000000e+00> : vector<2x8x8xf32>
    %279 = tpu.matmul %277, %278, %cst_197 {dimension_numbers = #tpu.dot_dimension_numbers<[2], [1], [1], [2], [0, 0, 0, 1, 1, 2], [0], [0]>} : vector<2x8x2xbf16>, vector<2x2x8xbf16>, vector<2x8x8xf32> -> vector<2x8x8xf32>
    "tpu.trace_stop"() : () -> ()
    %280 = vector.shape_cast %279 : vector<2x8x8xf32> to vector<16x8xf32>
    %c0_198 = arith.constant 0 : index
    %c0_199 = arith.constant 0 : index
    %c0_200 = arith.constant 0 : index
    %c0_201 = arith.constant 0 : index
    %281 = vector.load %arg20[%c0_198, %c0_199, %c0_200, %c0_201] : memref<1x4x8x32xbf16, #tpu.memory_space<vmem>>, vector<1x1x8x32xbf16>
    %282 = vector.shape_cast %281 : vector<1x1x8x32xbf16> to vector<8x32xbf16>
    %283 = arith.truncf %280 : vector<16x8xf32> to vector<16x8xbf16>
    %cst_202 = arith.constant dense<0.000000e+00> : vector<16x32xf32>
    %284 = tpu.matmul %283, %282, %cst_202 {dimension_numbers = #tpu.dot_dimension_numbers<[1], [0], [0], [1], [0, 0, 1, 1], [], []>} : vector<16x8xbf16>, vector<8x32xbf16>, vector<16x32xf32> -> vector<16x32xf32>
    %c0_203 = arith.constant 0 : index
    %c1_204 = arith.constant 1 : index
    %c0_205 = arith.constant 0 : index
    %c0_206 = arith.constant 0 : index
    %285 = vector.load %arg14[%c0_203, %c1_204, %c0_205, %c0_206] : memref<1x4x32x8xbf16, #tpu.memory_space<vmem>>, vector<1x1x32x8xbf16>
    %286 = vector.shape_cast %285 : vector<1x1x32x8xbf16> to vector<32x8xbf16>
    %cst_207 = arith.constant dense<0.000000e+00> : vector<16x8xf32>
    %287 = tpu.matmul %235, %286, %cst_207 {dimension_numbers = #tpu.dot_dimension_numbers<[1], [0], [0], [1], [0, 0, 1, 1], [], []>} : vector<16x32xbf16>, vector<32x8xbf16>, vector<16x8xf32> -> vector<16x8xf32>
    %c0_208 = arith.constant 0 : index
    %c1_209 = arith.constant 1 : index
    %c0_210 = arith.constant 0 : index
    %c0_211 = arith.constant 0 : index
    %288 = vector.load %arg15[%c0_208, %c1_209, %c0_210, %c0_211] : memref<1x4x1x8xf32, #tpu.memory_space<vmem>>, vector<1x1x1x8xf32>
    %289 = vector.shape_cast %288 : vector<1x1x1x8xf32> to vector<1x8xf32>
    %290 = vector.broadcast %289 : vector<1x8xf32> to vector<16x8xf32>
    %291 = arith.addf %287, %290 : vector<16x8xf32>
    %292 = vector.shape_cast %291 : vector<16x8xf32> to vector<2x8x8xf32>
    %c0_212 = arith.constant 0 : index
    %c1_213 = arith.constant 1 : index
    %c0_214 = arith.constant 0 : index
    %c0_215 = arith.constant 0 : index
    %293 = vector.load %arg16[%c0_212, %c1_213, %c0_214, %c0_215] : memref<1x4x32x8xbf16, #tpu.memory_space<vmem>>, vector<1x1x32x8xbf16>
    %294 = vector.shape_cast %293 : vector<1x1x32x8xbf16> to vector<32x8xbf16>
    %cst_216 = arith.constant dense<0.000000e+00> : vector<4x8xf32>
    %295 = tpu.matmul %237, %294, %cst_216 {dimension_numbers = #tpu.dot_dimension_numbers<[1], [0], [0], [1], [0, 0, 1, 1], [], []>} : vector<4x32xbf16>, vector<32x8xbf16>, vector<4x8xf32> -> vector<4x8xf32>
    %c0_217 = arith.constant 0 : index
    %c1_218 = arith.constant 1 : index
    %c0_219 = arith.constant 0 : index
    %c0_220 = arith.constant 0 : index
    %296 = vector.load %arg17[%c0_217, %c1_218, %c0_219, %c0_220] : memref<1x4x1x8xf32, #tpu.memory_space<vmem>>, vector<1x1x1x8xf32>
    %297 = vector.shape_cast %296 : vector<1x1x1x8xf32> to vector<1x8xf32>
    %298 = vector.broadcast %297 : vector<1x8xf32> to vector<4x8xf32>
    %299 = arith.addf %295, %298 : vector<4x8xf32>
    %300 = vector.shape_cast %299 : vector<4x8xf32> to vector<2x2x8xf32>
    %c0_221 = arith.constant 0 : index
    %c1_222 = arith.constant 1 : index
    %c0_223 = arith.constant 0 : index
    %c0_224 = arith.constant 0 : index
    %301 = vector.load %arg18[%c0_221, %c1_222, %c0_223, %c0_224] : memref<1x4x32x8xbf16, #tpu.memory_space<vmem>>, vector<1x1x32x8xbf16>
    %302 = vector.shape_cast %301 : vector<1x1x32x8xbf16> to vector<32x8xbf16>
    %cst_225 = arith.constant dense<0.000000e+00> : vector<4x8xf32>
    %303 = tpu.matmul %237, %302, %cst_225 {dimension_numbers = #tpu.dot_dimension_numbers<[1], [0], [0], [1], [0, 0, 1, 1], [], []>} : vector<4x32xbf16>, vector<32x8xbf16>, vector<4x8xf32> -> vector<4x8xf32>
    %c0_226 = arith.constant 0 : index
    %c1_227 = arith.constant 1 : index
    %c0_228 = arith.constant 0 : index
    %c0_229 = arith.constant 0 : index
    %304 = vector.load %arg19[%c0_226, %c1_227, %c0_228, %c0_229] : memref<1x4x1x8xf32, #tpu.memory_space<vmem>>, vector<1x1x1x8xf32>
    %305 = vector.shape_cast %304 : vector<1x1x1x8xf32> to vector<1x8xf32>
    %306 = vector.broadcast %305 : vector<1x8xf32> to vector<4x8xf32>
    %307 = arith.addf %303, %306 : vector<4x8xf32>
    %308 = vector.shape_cast %307 : vector<4x8xf32> to vector<2x2x8xf32>
    %309 = arith.truncf %292 : vector<2x8x8xf32> to vector<2x8x8xbf16>
    %310 = arith.truncf %300 : vector<2x2x8xf32> to vector<2x2x8xbf16>
    "tpu.trace_start"() <{level = 10 : i32, message = "bqd,bkd->bqk"}> : () -> ()
    %cst_230 = arith.constant dense<0.000000e+00> : vector<2x8x2xf32>
    %311 = tpu.matmul %309, %310, %cst_230 {dimension_numbers = #tpu.dot_dimension_numbers<[2], [2], [1], [1], [0, 0, 0, 1, 1, 1], [0], [0]>} : vector<2x8x8xbf16>, vector<2x2x8xbf16>, vector<2x8x2xf32> -> vector<2x8x2xf32>
    "tpu.trace_stop"() : () -> ()
    %cst_231 = arith.constant 0.353553385 : f32
    %312 = vector.broadcast %cst_231 : f32 to vector<2x8x2xf32>
    %313 = arith.mulf %311, %312 : vector<2x8x2xf32>
    %cst_232 = arith.constant dense<0xFF800000> : vector<2x8xf32>
    %314 = vector.multi_reduction <maximumf>, %313, %cst_232 [2] : vector<2x8x2xf32> to vector<2x8xf32>
    %315 = vector.shape_cast %314 : vector<2x8xf32> to vector<2x8x1xf32>
    %316 = vector.broadcast %315 : vector<2x8x1xf32> to vector<2x8x2xf32>
    %317 = arith.subf %313, %316 : vector<2x8x2xf32>
    %318 = math.exp %317 : vector<2x8x2xf32>
    %cst_233 = arith.constant dense<0.000000e+00> : vector<2x8xf32>
    %319 = vector.multi_reduction <add>, %318, %cst_233 [2] : vector<2x8x2xf32> to vector<2x8xf32>
    %320 = vector.shape_cast %319 : vector<2x8xf32> to vector<2x8x1xf32>
    %321 = tpu.reciprocal %320 {approx = true} : vector<2x8x1xf32> -> vector<2x8x1xf32>
    %322 = vector.broadcast %321 : vector<2x8x1xf32> to vector<2x8x2xf32>
    %323 = arith.mulf %318, %322 : vector<2x8x2xf32>
    %324 = arith.truncf %323 : vector<2x8x2xf32> to vector<2x8x2xbf16>
    %325 = arith.truncf %308 : vector<2x2x8xf32> to vector<2x2x8xbf16>
    "tpu.trace_start"() <{level = 10 : i32, message = "bqk,bkd->bqd"}> : () -> ()
    %cst_234 = arith.constant dense<0.000000e+00> : vector<2x8x8xf32>
    %326 = tpu.matmul %324, %325, %cst_234 {dimension_numbers = #tpu.dot_dimension_numbers<[2], [1], [1], [2], [0, 0, 0, 1, 1, 2], [0], [0]>} : vector<2x8x2xbf16>, vector<2x2x8xbf16>, vector<2x8x8xf32> -> vector<2x8x8xf32>
    "tpu.trace_stop"() : () -> ()
    %327 = vector.shape_cast %326 : vector<2x8x8xf32> to vector<16x8xf32>
    %c0_235 = arith.constant 0 : index
    %c1_236 = arith.constant 1 : index
    %c0_237 = arith.constant 0 : index
    %c0_238 = arith.constant 0 : index
    %328 = vector.load %arg20[%c0_235, %c1_236, %c0_237, %c0_238] : memref<1x4x8x32xbf16, #tpu.memory_space<vmem>>, vector<1x1x8x32xbf16>
    %329 = vector.shape_cast %328 : vector<1x1x8x32xbf16> to vector<8x32xbf16>
    %330 = arith.truncf %327 : vector<16x8xf32> to vector<16x8xbf16>
    %cst_239 = arith.constant dense<0.000000e+00> : vector<16x32xf32>
    %331 = tpu.matmul %330, %329, %cst_239 {dimension_numbers = #tpu.dot_dimension_numbers<[1], [0], [0], [1], [0, 0, 1, 1], [], []>} : vector<16x8xbf16>, vector<8x32xbf16>, vector<16x32xf32> -> vector<16x32xf32>
    %332 = arith.addf %284, %331 : vector<16x32xf32>
    %c0_240 = arith.constant 0 : index
    %c2_241 = arith.constant 2 : index
    %c0_242 = arith.constant 0 : index
    %c0_243 = arith.constant 0 : index
    %333 = vector.load %arg14[%c0_240, %c2_241, %c0_242, %c0_243] : memref<1x4x32x8xbf16, #tpu.memory_space<vmem>>, vector<1x1x32x8xbf16>
    %334 = vector.shape_cast %333 : vector<1x1x32x8xbf16> to vector<32x8xbf16>
    %cst_244 = arith.constant dense<0.000000e+00> : vector<16x8xf32>
    %335 = tpu.matmul %235, %334, %cst_244 {dimension_numbers = #tpu.dot_dimension_numbers<[1], [0], [0], [1], [0, 0, 1, 1], [], []>} : vector<16x32xbf16>, vector<32x8xbf16>, vector<16x8xf32> -> vector<16x8xf32>
    %c0_245 = arith.constant 0 : index
    %c2_246 = arith.constant 2 : index
    %c0_247 = arith.constant 0 : index
    %c0_248 = arith.constant 0 : index
    %336 = vector.load %arg15[%c0_245, %c2_246, %c0_247, %c0_248] : memref<1x4x1x8xf32, #tpu.memory_space<vmem>>, vector<1x1x1x8xf32>
    %337 = vector.shape_cast %336 : vector<1x1x1x8xf32> to vector<1x8xf32>
    %338 = vector.broadcast %337 : vector<1x8xf32> to vector<16x8xf32>
    %339 = arith.addf %335, %338 : vector<16x8xf32>
    %340 = vector.shape_cast %339 : vector<16x8xf32> to vector<2x8x8xf32>
    %c0_249 = arith.constant 0 : index
    %c2_250 = arith.constant 2 : index
    %c0_251 = arith.constant 0 : index
    %c0_252 = arith.constant 0 : index
    %341 = vector.load %arg16[%c0_249, %c2_250, %c0_251, %c0_252] : memref<1x4x32x8xbf16, #tpu.memory_space<vmem>>, vector<1x1x32x8xbf16>
    %342 = vector.shape_cast %341 : vector<1x1x32x8xbf16> to vector<32x8xbf16>
    %cst_253 = arith.constant dense<0.000000e+00> : vector<4x8xf32>
    %343 = tpu.matmul %237, %342, %cst_253 {dimension_numbers = #tpu.dot_dimension_numbers<[1], [0], [0], [1], [0, 0, 1, 1], [], []>} : vector<4x32xbf16>, vector<32x8xbf16>, vector<4x8xf32> -> vector<4x8xf32>
    %c0_254 = arith.constant 0 : index
    %c2_255 = arith.constant 2 : index
    %c0_256 = arith.constant 0 : index
    %c0_257 = arith.constant 0 : index
    %344 = vector.load %arg17[%c0_254, %c2_255, %c0_256, %c0_257] : memref<1x4x1x8xf32, #tpu.memory_space<vmem>>, vector<1x1x1x8xf32>
    %345 = vector.shape_cast %344 : vector<1x1x1x8xf32> to vector<1x8xf32>
    %346 = vector.broadcast %345 : vector<1x8xf32> to vector<4x8xf32>
    %347 = arith.addf %343, %346 : vector<4x8xf32>
    %348 = vector.shape_cast %347 : vector<4x8xf32> to vector<2x2x8xf32>
    %c0_258 = arith.constant 0 : index
    %c2_259 = arith.constant 2 : index
    %c0_260 = arith.constant 0 : index
    %c0_261 = arith.constant 0 : index
    %349 = vector.load %arg18[%c0_258, %c2_259, %c0_260, %c0_261] : memref<1x4x32x8xbf16, #tpu.memory_space<vmem>>, vector<1x1x32x8xbf16>
    %350 = vector.shape_cast %349 : vector<1x1x32x8xbf16> to vector<32x8xbf16>
    %cst_262 = arith.constant dense<0.000000e+00> : vector<4x8xf32>
    %351 = tpu.matmul %237, %350, %cst_262 {dimension_numbers = #tpu.dot_dimension_numbers<[1], [0], [0], [1], [0, 0, 1, 1], [], []>} : vector<4x32xbf16>, vector<32x8xbf16>, vector<4x8xf32> -> vector<4x8xf32>
    %c0_263 = arith.constant 0 : index
    %c2_264 = arith.constant 2 : index
    %c0_265 = arith.constant 0 : index
    %c0_266 = arith.constant 0 : index
    %352 = vector.load %arg19[%c0_263, %c2_264, %c0_265, %c0_266] : memref<1x4x1x8xf32, #tpu.memory_space<vmem>>, vector<1x1x1x8xf32>
    %353 = vector.shape_cast %352 : vector<1x1x1x8xf32> to vector<1x8xf32>
    %354 = vector.broadcast %353 : vector<1x8xf32> to vector<4x8xf32>
    %355 = arith.addf %351, %354 : vector<4x8xf32>
    %356 = vector.shape_cast %355 : vector<4x8xf32> to vector<2x2x8xf32>
    %357 = arith.truncf %340 : vector<2x8x8xf32> to vector<2x8x8xbf16>
    %358 = arith.truncf %348 : vector<2x2x8xf32> to vector<2x2x8xbf16>
    "tpu.trace_start"() <{level = 10 : i32, message = "bqd,bkd->bqk"}> : () -> ()
    %cst_267 = arith.constant dense<0.000000e+00> : vector<2x8x2xf32>
    %359 = tpu.matmul %357, %358, %cst_267 {dimension_numbers = #tpu.dot_dimension_numbers<[2], [2], [1], [1], [0, 0, 0, 1, 1, 1], [0], [0]>} : vector<2x8x8xbf16>, vector<2x2x8xbf16>, vector<2x8x2xf32> -> vector<2x8x2xf32>
    "tpu.trace_stop"() : () -> ()
    %cst_268 = arith.constant 0.353553385 : f32
    %360 = vector.broadcast %cst_268 : f32 to vector<2x8x2xf32>
    %361 = arith.mulf %359, %360 : vector<2x8x2xf32>
    %cst_269 = arith.constant dense<0xFF800000> : vector<2x8xf32>
    %362 = vector.multi_reduction <maximumf>, %361, %cst_269 [2] : vector<2x8x2xf32> to vector<2x8xf32>
    %363 = vector.shape_cast %362 : vector<2x8xf32> to vector<2x8x1xf32>
    %364 = vector.broadcast %363 : vector<2x8x1xf32> to vector<2x8x2xf32>
    %365 = arith.subf %361, %364 : vector<2x8x2xf32>
    %366 = math.exp %365 : vector<2x8x2xf32>
    %cst_270 = arith.constant dense<0.000000e+00> : vector<2x8xf32>
    %367 = vector.multi_reduction <add>, %366, %cst_270 [2] : vector<2x8x2xf32> to vector<2x8xf32>
    %368 = vector.shape_cast %367 : vector<2x8xf32> to vector<2x8x1xf32>
    %369 = tpu.reciprocal %368 {approx = true} : vector<2x8x1xf32> -> vector<2x8x1xf32>
    %370 = vector.broadcast %369 : vector<2x8x1xf32> to vector<2x8x2xf32>
    %371 = arith.mulf %366, %370 : vector<2x8x2xf32>
    %372 = arith.truncf %371 : vector<2x8x2xf32> to vector<2x8x2xbf16>
    %373 = arith.truncf %356 : vector<2x2x8xf32> to vector<2x2x8xbf16>
    "tpu.trace_start"() <{level = 10 : i32, message = "bqk,bkd->bqd"}> : () -> ()
    %cst_271 = arith.constant dense<0.000000e+00> : vector<2x8x8xf32>
    %374 = tpu.matmul %372, %373, %cst_271 {dimension_numbers = #tpu.dot_dimension_numbers<[2], [1], [1], [2], [0, 0, 0, 1, 1, 2], [0], [0]>} : vector<2x8x2xbf16>, vector<2x2x8xbf16>, vector<2x8x8xf32> -> vector<2x8x8xf32>
    "tpu.trace_stop"() : () -> ()
    %375 = vector.shape_cast %374 : vector<2x8x8xf32> to vector<16x8xf32>
    %c0_272 = arith.constant 0 : index
    %c2_273 = arith.constant 2 : index
    %c0_274 = arith.constant 0 : index
    %c0_275 = arith.constant 0 : index
    %376 = vector.load %arg20[%c0_272, %c2_273, %c0_274, %c0_275] : memref<1x4x8x32xbf16, #tpu.memory_space<vmem>>, vector<1x1x8x32xbf16>
    %377 = vector.shape_cast %376 : vector<1x1x8x32xbf16> to vector<8x32xbf16>
    %378 = arith.truncf %375 : vector<16x8xf32> to vector<16x8xbf16>
    %cst_276 = arith.constant dense<0.000000e+00> : vector<16x32xf32>
    %379 = tpu.matmul %378, %377, %cst_276 {dimension_numbers = #tpu.dot_dimension_numbers<[1], [0], [0], [1], [0, 0, 1, 1], [], []>} : vector<16x8xbf16>, vector<8x32xbf16>, vector<16x32xf32> -> vector<16x32xf32>
    %380 = arith.addf %332, %379 : vector<16x32xf32>
    %c0_277 = arith.constant 0 : index
    %c3_278 = arith.constant 3 : index
    %c0_279 = arith.constant 0 : index
    %c0_280 = arith.constant 0 : index
    %381 = vector.load %arg14[%c0_277, %c3_278, %c0_279, %c0_280] : memref<1x4x32x8xbf16, #tpu.memory_space<vmem>>, vector<1x1x32x8xbf16>
    %382 = vector.shape_cast %381 : vector<1x1x32x8xbf16> to vector<32x8xbf16>
    %cst_281 = arith.constant dense<0.000000e+00> : vector<16x8xf32>
    %383 = tpu.matmul %235, %382, %cst_281 {dimension_numbers = #tpu.dot_dimension_numbers<[1], [0], [0], [1], [0, 0, 1, 1], [], []>} : vector<16x32xbf16>, vector<32x8xbf16>, vector<16x8xf32> -> vector<16x8xf32>
    %c0_282 = arith.constant 0 : index
    %c3_283 = arith.constant 3 : index
    %c0_284 = arith.constant 0 : index
    %c0_285 = arith.constant 0 : index
    %384 = vector.load %arg15[%c0_282, %c3_283, %c0_284, %c0_285] : memref<1x4x1x8xf32, #tpu.memory_space<vmem>>, vector<1x1x1x8xf32>
    %385 = vector.shape_cast %384 : vector<1x1x1x8xf32> to vector<1x8xf32>
    %386 = vector.broadcast %385 : vector<1x8xf32> to vector<16x8xf32>
    %387 = arith.addf %383, %386 : vector<16x8xf32>
    %388 = vector.shape_cast %387 : vector<16x8xf32> to vector<2x8x8xf32>
    %c0_286 = arith.constant 0 : index
    %c3_287 = arith.constant 3 : index
    %c0_288 = arith.constant 0 : index
    %c0_289 = arith.constant 0 : index
    %389 = vector.load %arg16[%c0_286, %c3_287, %c0_288, %c0_289] : memref<1x4x32x8xbf16, #tpu.memory_space<vmem>>, vector<1x1x32x8xbf16>
    %390 = vector.shape_cast %389 : vector<1x1x32x8xbf16> to vector<32x8xbf16>
    %cst_290 = arith.constant dense<0.000000e+00> : vector<4x8xf32>
    %391 = tpu.matmul %237, %390, %cst_290 {dimension_numbers = #tpu.dot_dimension_numbers<[1], [0], [0], [1], [0, 0, 1, 1], [], []>} : vector<4x32xbf16>, vector<32x8xbf16>, vector<4x8xf32> -> vector<4x8xf32>
    %c0_291 = arith.constant 0 : index
    %c3_292 = arith.constant 3 : index
    %c0_293 = arith.constant 0 : index
    %c0_294 = arith.constant 0 : index
    %392 = vector.load %arg17[%c0_291, %c3_292, %c0_293, %c0_294] : memref<1x4x1x8xf32, #tpu.memory_space<vmem>>, vector<1x1x1x8xf32>
    %393 = vector.shape_cast %392 : vector<1x1x1x8xf32> to vector<1x8xf32>
    %394 = vector.broadcast %393 : vector<1x8xf32> to vector<4x8xf32>
    %395 = arith.addf %391, %394 : vector<4x8xf32>
    %396 = vector.shape_cast %395 : vector<4x8xf32> to vector<2x2x8xf32>
    %c0_295 = arith.constant 0 : index
    %c3_296 = arith.constant 3 : index
    %c0_297 = arith.constant 0 : index
    %c0_298 = arith.constant 0 : index
    %397 = vector.load %arg18[%c0_295, %c3_296, %c0_297, %c0_298] : memref<1x4x32x8xbf16, #tpu.memory_space<vmem>>, vector<1x1x32x8xbf16>
    %398 = vector.shape_cast %397 : vector<1x1x32x8xbf16> to vector<32x8xbf16>
    %cst_299 = arith.constant dense<0.000000e+00> : vector<4x8xf32>
    %399 = tpu.matmul %237, %398, %cst_299 {dimension_numbers = #tpu.dot_dimension_numbers<[1], [0], [0], [1], [0, 0, 1, 1], [], []>} : vector<4x32xbf16>, vector<32x8xbf16>, vector<4x8xf32> -> vector<4x8xf32>
    %c0_300 = arith.constant 0 : index
    %c3_301 = arith.constant 3 : index
    %c0_302 = arith.constant 0 : index
    %c0_303 = arith.constant 0 : index
    %400 = vector.load %arg19[%c0_300, %c3_301, %c0_302, %c0_303] : memref<1x4x1x8xf32, #tpu.memory_space<vmem>>, vector<1x1x1x8xf32>
    %401 = vector.shape_cast %400 : vector<1x1x1x8xf32> to vector<1x8xf32>
    %402 = vector.broadcast %401 : vector<1x8xf32> to vector<4x8xf32>
    %403 = arith.addf %399, %402 : vector<4x8xf32>
    %404 = vector.shape_cast %403 : vector<4x8xf32> to vector<2x2x8xf32>
    %405 = arith.truncf %388 : vector<2x8x8xf32> to vector<2x8x8xbf16>
    %406 = arith.truncf %396 : vector<2x2x8xf32> to vector<2x2x8xbf16>
    "tpu.trace_start"() <{level = 10 : i32, message = "bqd,bkd->bqk"}> : () -> ()
    %cst_304 = arith.constant dense<0.000000e+00> : vector<2x8x2xf32>
    %407 = tpu.matmul %405, %406, %cst_304 {dimension_numbers = #tpu.dot_dimension_numbers<[2], [2], [1], [1], [0, 0, 0, 1, 1, 1], [0], [0]>} : vector<2x8x8xbf16>, vector<2x2x8xbf16>, vector<2x8x2xf32> -> vector<2x8x2xf32>
    "tpu.trace_stop"() : () -> ()
    %cst_305 = arith.constant 0.353553385 : f32
    %408 = vector.broadcast %cst_305 : f32 to vector<2x8x2xf32>
    %409 = arith.mulf %407, %408 : vector<2x8x2xf32>
    %cst_306 = arith.constant dense<0xFF800000> : vector<2x8xf32>
    %410 = vector.multi_reduction <maximumf>, %409, %cst_306 [2] : vector<2x8x2xf32> to vector<2x8xf32>
    %411 = vector.shape_cast %410 : vector<2x8xf32> to vector<2x8x1xf32>
    %412 = vector.broadcast %411 : vector<2x8x1xf32> to vector<2x8x2xf32>
    %413 = arith.subf %409, %412 : vector<2x8x2xf32>
    %414 = math.exp %413 : vector<2x8x2xf32>
    %cst_307 = arith.constant dense<0.000000e+00> : vector<2x8xf32>
    %415 = vector.multi_reduction <add>, %414, %cst_307 [2] : vector<2x8x2xf32> to vector<2x8xf32>
    %416 = vector.shape_cast %415 : vector<2x8xf32> to vector<2x8x1xf32>
    %417 = tpu.reciprocal %416 {approx = true} : vector<2x8x1xf32> -> vector<2x8x1xf32>
    %418 = vector.broadcast %417 : vector<2x8x1xf32> to vector<2x8x2xf32>
    %419 = arith.mulf %414, %418 : vector<2x8x2xf32>
    %420 = arith.truncf %419 : vector<2x8x2xf32> to vector<2x8x2xbf16>
    %421 = arith.truncf %404 : vector<2x2x8xf32> to vector<2x2x8xbf16>
    "tpu.trace_start"() <{level = 10 : i32, message = "bqk,bkd->bqd"}> : () -> ()
    %cst_308 = arith.constant dense<0.000000e+00> : vector<2x8x8xf32>
    %422 = tpu.matmul %420, %421, %cst_308 {dimension_numbers = #tpu.dot_dimension_numbers<[2], [1], [1], [2], [0, 0, 0, 1, 1, 2], [0], [0]>} : vector<2x8x2xbf16>, vector<2x2x8xbf16>, vector<2x8x8xf32> -> vector<2x8x8xf32>
    "tpu.trace_stop"() : () -> ()
    %423 = vector.shape_cast %422 : vector<2x8x8xf32> to vector<16x8xf32>
    %c0_309 = arith.constant 0 : index
    %c3_310 = arith.constant 3 : index
    %c0_311 = arith.constant 0 : index
    %c0_312 = arith.constant 0 : index
    %424 = vector.load %arg20[%c0_309, %c3_310, %c0_311, %c0_312] : memref<1x4x8x32xbf16, #tpu.memory_space<vmem>>, vector<1x1x8x32xbf16>
    %425 = vector.shape_cast %424 : vector<1x1x8x32xbf16> to vector<8x32xbf16>
    %426 = arith.truncf %423 : vector<16x8xf32> to vector<16x8xbf16>
    %cst_313 = arith.constant dense<0.000000e+00> : vector<16x32xf32>
    %427 = tpu.matmul %426, %425, %cst_313 {dimension_numbers = #tpu.dot_dimension_numbers<[1], [0], [0], [1], [0, 0, 1, 1], [], []>} : vector<16x8xbf16>, vector<8x32xbf16>, vector<16x32xf32> -> vector<16x32xf32>
    %428 = arith.addf %380, %427 : vector<16x32xf32>
    %c0_314 = arith.constant 0 : index
    %c0_315 = arith.constant 0 : index
    %c0_316 = arith.constant 0 : index
    %429 = vector.load %arg21[%c0_314, %c0_315, %c0_316] : memref<1x1x32xf32, #tpu.memory_space<vmem>>, vector<1x1x32xf32>
    %430 = vector.shape_cast %429 : vector<1x1x32xf32> to vector<1x32xf32>
    %431 = vector.broadcast %430 : vector<1x32xf32> to vector<16x32xf32>
    %432 = arith.addf %428, %431 : vector<16x32xf32>
    %433 = arith.addf %234, %432 : vector<16x32xf32>
    %c0_317 = arith.constant 0 : index
    %c0_318 = arith.constant 0 : index
    %c0_319 = arith.constant 0 : index
    %434 = vector.load %arg22[%c0_317, %c0_318, %c0_319] : memref<1x1x32xf32, #tpu.memory_space<vmem>>, vector<1x1x32xf32>
    %435 = vector.shape_cast %434 : vector<1x1x32xf32> to vector<1x32xf32>
    %c0_320 = arith.constant 0 : index
    %c0_321 = arith.constant 0 : index
    %c0_322 = arith.constant 0 : index
    %436 = vector.load %arg23[%c0_320, %c0_321, %c0_322] : memref<1x1x32xf32, #tpu.memory_space<vmem>>, vector<1x1x32xf32>
    %437 = vector.shape_cast %436 : vector<1x1x32xf32> to vector<1x32xf32>
    %cst_323 = arith.constant dense<0.000000e+00> : vector<16xf32>
    %438 = vector.multi_reduction <add>, %433, %cst_323 [1] : vector<16x32xf32> to vector<16xf32>
    %439 = vector.shape_cast %438 : vector<16xf32> to vector<16x1xf32>
    %cst_324 = arith.constant 3.200000e+01 : f32
    %440 = vector.broadcast %cst_324 : f32 to vector<16x1xf32>
    %441 = arith.divf %439, %440 : vector<16x1xf32>
    %442 = vector.broadcast %441 : vector<16x1xf32> to vector<16x32xf32>
    %443 = arith.subf %433, %442 : vector<16x32xf32>
    %444 = arith.mulf %443, %443 : vector<16x32xf32>
    %cst_325 = arith.constant dense<0.000000e+00> : vector<16xf32>
    %445 = vector.multi_reduction <add>, %444, %cst_325 [1] : vector<16x32xf32> to vector<16xf32>
    %446 = vector.shape_cast %445 : vector<16xf32> to vector<16x1xf32>
    %cst_326 = arith.constant 3.200000e+01 : f32
    %447 = vector.broadcast %cst_326 : f32 to vector<16x1xf32>
    %448 = arith.divf %446, %447 : vector<16x1xf32>
    %cst_327 = arith.constant 9.99999974E-6 : f32
    %449 = vector.broadcast %cst_327 : f32 to vector<16x1xf32>
    %450 = arith.addf %448, %449 : vector<16x1xf32>
    %451 = math.rsqrt %450 : vector<16x1xf32>
    %452 = vector.broadcast %451 : vector<16x1xf32> to vector<16x32xf32>
    %453 = arith.mulf %443, %452 : vector<16x32xf32>
    %454 = vector.broadcast %435 : vector<1x32xf32> to vector<16x32xf32>
    %455 = arith.mulf %453, %454 : vector<16x32xf32>
    %456 = vector.broadcast %437 : vector<1x32xf32> to vector<16x32xf32>
    %457 = arith.addf %455, %456 : vector<16x32xf32>
    %458 = arith.truncf %457 : vector<16x32xf32> to vector<16x32xbf16>
    %c0_328 = arith.constant 0 : index
    %c0_329 = arith.constant 0 : index
    %c0_330 = arith.constant 0 : index
    %459 = vector.load %arg24[%c0_328, %c0_329, %c0_330] : memref<1x32x64xbf16, #tpu.memory_space<vmem>>, vector<1x32x64xbf16>
    %460 = vector.shape_cast %459 : vector<1x32x64xbf16> to vector<32x64xbf16>
    %cst_331 = arith.constant dense<0.000000e+00> : vector<16x64xf32>
    %461 = tpu.matmul %458, %460, %cst_331 {dimension_numbers = #tpu.dot_dimension_numbers<[1], [0], [0], [1], [0, 0, 1, 1], [], []>} : vector<16x32xbf16>, vector<32x64xbf16>, vector<16x64xf32> -> vector<16x64xf32>
    %c0_332 = arith.constant 0 : index
    %c0_333 = arith.constant 0 : index
    %c0_334 = arith.constant 0 : index
    %462 = vector.load %arg25[%c0_332, %c0_333, %c0_334] : memref<1x1x64xf32, #tpu.memory_space<vmem>>, vector<1x1x64xf32>
    %463 = vector.shape_cast %462 : vector<1x1x64xf32> to vector<1x64xf32>
    %464 = vector.broadcast %463 : vector<1x64xf32> to vector<16x64xf32>
    %465 = arith.addf %461, %464 : vector<16x64xf32>
    %cst_335 = arith.constant 0.000000e+00 : f32
    %466 = vector.broadcast %cst_335 : f32 to vector<16x64xf32>
    %467 = arith.maximumf %465, %466 : vector<16x64xf32>
    %c0_336 = arith.constant 0 : index
    %c0_337 = arith.constant 0 : index
    %c0_338 = arith.constant 0 : index
    %468 = vector.load %arg26[%c0_336, %c0_337, %c0_338] : memref<1x64x32xbf16, #tpu.memory_space<vmem>>, vector<1x64x32xbf16>
    %469 = vector.shape_cast %468 : vector<1x64x32xbf16> to vector<64x32xbf16>
    %470 = arith.truncf %467 : vector<16x64xf32> to vector<16x64xbf16>
    %cst_339 = arith.constant dense<0.000000e+00> : vector<16x32xf32>
    %471 = tpu.matmul %470, %469, %cst_339 {dimension_numbers = #tpu.dot_dimension_numbers<[1], [0], [0], [1], [0, 0, 1, 1], [], []>} : vector<16x64xbf16>, vector<64x32xbf16>, vector<16x32xf32> -> vector<16x32xf32>
    %c0_340 = arith.constant 0 : index
    %c0_341 = arith.constant 0 : index
    %c0_342 = arith.constant 0 : index
    %472 = vector.load %arg27[%c0_340, %c0_341, %c0_342] : memref<1x1x32xf32, #tpu.memory_space<vmem>>, vector<1x1x32xf32>
    %473 = vector.shape_cast %472 : vector<1x1x32xf32> to vector<1x32xf32>
    %474 = vector.broadcast %473 : vector<1x32xf32> to vector<16x32xf32>
    %475 = arith.addf %471, %474 : vector<16x32xf32>
    %476 = arith.addf %457, %475 : vector<16x32xf32>
    %c0_343 = arith.constant 0 : index
    %c0_344 = arith.constant 0 : index
    %c0_345 = arith.constant 0 : index
    %477 = vector.load %arg28[%c0_343, %c0_344, %c0_345] : memref<1x1x32xf32, #tpu.memory_space<vmem>>, vector<1x1x32xf32>
    %478 = vector.shape_cast %477 : vector<1x1x32xf32> to vector<1x32xf32>
    %c0_346 = arith.constant 0 : index
    %c0_347 = arith.constant 0 : index
    %c0_348 = arith.constant 0 : index
    %479 = vector.load %arg29[%c0_346, %c0_347, %c0_348] : memref<1x1x32xf32, #tpu.memory_space<vmem>>, vector<1x1x32xf32>
    %480 = vector.shape_cast %479 : vector<1x1x32xf32> to vector<1x32xf32>
    %cst_349 = arith.constant dense<0.000000e+00> : vector<16xf32>
    %481 = vector.multi_reduction <add>, %476, %cst_349 [1] : vector<16x32xf32> to vector<16xf32>
    %482 = vector.shape_cast %481 : vector<16xf32> to vector<16x1xf32>
    %cst_350 = arith.constant 3.200000e+01 : f32
    %483 = vector.broadcast %cst_350 : f32 to vector<16x1xf32>
    %484 = arith.divf %482, %483 : vector<16x1xf32>
    %485 = vector.broadcast %484 : vector<16x1xf32> to vector<16x32xf32>
    %486 = arith.subf %476, %485 : vector<16x32xf32>
    %487 = arith.mulf %486, %486 : vector<16x32xf32>
    %cst_351 = arith.constant dense<0.000000e+00> : vector<16xf32>
    %488 = vector.multi_reduction <add>, %487, %cst_351 [1] : vector<16x32xf32> to vector<16xf32>
    %489 = vector.shape_cast %488 : vector<16xf32> to vector<16x1xf32>
    %cst_352 = arith.constant 3.200000e+01 : f32
    %490 = vector.broadcast %cst_352 : f32 to vector<16x1xf32>
    %491 = arith.divf %489, %490 : vector<16x1xf32>
    %cst_353 = arith.constant 9.99999974E-6 : f32
    %492 = vector.broadcast %cst_353 : f32 to vector<16x1xf32>
    %493 = arith.addf %491, %492 : vector<16x1xf32>
    %494 = math.rsqrt %493 : vector<16x1xf32>
    %495 = vector.broadcast %494 : vector<16x1xf32> to vector<16x32xf32>
    %496 = arith.mulf %486, %495 : vector<16x32xf32>
    %497 = vector.broadcast %478 : vector<1x32xf32> to vector<16x32xf32>
    %498 = arith.mulf %496, %497 : vector<16x32xf32>
    %499 = vector.broadcast %480 : vector<1x32xf32> to vector<16x32xf32>
    %500 = arith.addf %498, %499 : vector<16x32xf32>
    %501 = vector.shape_cast %500 : vector<16x32xf32> to vector<2x8x32xf32>
    %c0_354 = arith.constant 0 : index
    %c0_355 = arith.constant 0 : index
    %c0_356 = arith.constant 0 : index
    %502 = vector.load %arg32[%c0_354, %c0_355, %c0_356] : memref<2x8x32xf32, #tpu.memory_space<vmem>>, vector<2x8x32xf32>
    tpu.vector_store %arg32[%c0_354, %c0_355, %c0_356], %501 {strides = array<i32>} : memref<2x8x32xf32, #tpu.memory_space<vmem>>, vector<2x8x32xf32>,
    %c1_i32 = arith.constant 1 : i32
    %503 = arith.cmpi eq, %arg0, %c1_i32 : i32
    %504 = arith.extui %503 : i1 to i32
    %c0_i32_357 = arith.constant 0 : i32
    %505 = arith.cmpi ne, %504, %c0_i32_357 : i32
    scf.if %505 {
      %c0_358 = arith.constant 0 : index
      %c0_359 = arith.constant 0 : index
      %506 = vector.load %arg30[%c0_358, %c0_359] : memref<32x128xbf16, #tpu.memory_space<vmem>>, vector<32x128xbf16>
      %507 = arith.truncf %500 : vector<16x32xf32> to vector<16x32xbf16>
      %cst_360 = arith.constant dense<0.000000e+00> : vector<16x128xf32>
      %508 = tpu.matmul %507, %506, %cst_360 {dimension_numbers = #tpu.dot_dimension_numbers<[1], [0], [0], [1], [0, 0, 1, 1], [], []>} : vector<16x32xbf16>, vector<32x128xbf16>, vector<16x128xf32> -> vector<16x128xf32>
      %509 = vector.shape_cast %508 : vector<16x128xf32> to vector<2x8x128xf32>
      %c0_361 = arith.constant 0 : index
      %c0_362 = arith.constant 0 : index
      %c0_363 = arith.constant 0 : index
      %510 = vector.load %arg31[%c0_361, %c0_362, %c0_363] : memref<2x8x128xf32, #tpu.memory_space<vmem>>, vector<2x8x128xf32>
      tpu.vector_store %arg31[%c0_361, %c0_362, %c0_363], %509 {strides = array<i32>} : memref<2x8x128xf32, #tpu.memory_space<vmem>>, vector<2x8x128xf32>,
    } else {
    }
    return
  }
  func.func @transform_0(%arg0: i32) -> (i32, i32, i32) {
    %c0_i32 = arith.constant 0 : i32
    %c0_i32_0 = arith.constant 0 : i32
    %c0_i32_1 = arith.constant 0 : i32
    %c0_i32_2 = arith.constant 0 : i32
    return %c0_i32, %c0_i32_0, %c0_i32_1 : i32, i32, i32
  }
  func.func @transform_1(%arg0: i32) -> (i32, i32, i32) {
    %c0_i32 = arith.constant 0 : i32
    %c0_i32_0 = arith.constant 0 : i32
    %c0_i32_1 = arith.constant 0 : i32
    %c0_i32_2 = arith.constant 0 : i32
    return %c0_i32, %c0_i32_0, %c0_i32_1 : i32, i32, i32
  }
  func.func @transform_2(%arg0: i32) -> (i32, i32) {
    %c0_i32 = arith.constant 0 : i32
    %c0_i32_0 = arith.constant 0 : i32
    %c0_i32_1 = arith.constant 0 : i32
    return %c0_i32, %c0_i32_0 : i32, i32
  }
  func.func @transform_3(%arg0: i32) -> (i32, i32, i32, i32) {
    %c0_i32 = arith.constant 0 : i32
    %c0_i32_0 = arith.constant 0 : i32
    %c0_i32_1 = arith.constant 0 : i32
    %c0_i32_2 = arith.constant 0 : i32
    return %arg0, %c0_i32, %c0_i32_0, %c0_i32_1 : i32, i32, i32, i32
  }
  func.func @transform_4(%arg0: i32) -> (i32, i32, i32, i32) {
    %c0_i32 = arith.constant 0 : i32
    %c0_i32_0 = arith.constant 0 : i32
    %c0_i32_1 = arith.constant 0 : i32
    %c0_i32_2 = arith.constant 0 : i32
    return %arg0, %c0_i32, %c0_i32_0, %c0_i32_1 : i32, i32, i32, i32
  }
  func.func @transform_5(%arg0: i32) -> (i32, i32, i32, i32) {
    %c0_i32 = arith.constant 0 : i32
    %c0_i32_0 = arith.constant 0 : i32
    %c0_i32_1 = arith.constant 0 : i32
    %c0_i32_2 = arith.constant 0 : i32
    return %arg0, %c0_i32, %c0_i32_0, %c0_i32_1 : i32, i32, i32, i32
  }
  func.func @transform_6(%arg0: i32) -> (i32, i32, i32, i32) {
    %c0_i32 = arith.constant 0 : i32
    %c0_i32_0 = arith.constant 0 : i32
    %c0_i32_1 = arith.constant 0 : i32
    %c0_i32_2 = arith.constant 0 : i32
    return %arg0, %c0_i32, %c0_i32_0, %c0_i32_1 : i32, i32, i32, i32
  }
  func.func @transform_7(%arg0: i32) -> (i32, i32, i32, i32) {
    %c0_i32 = arith.constant 0 : i32
    %c0_i32_0 = arith.constant 0 : i32
    %c0_i32_1 = arith.constant 0 : i32
    %c0_i32_2 = arith.constant 0 : i32
    return %arg0, %c0_i32, %c0_i32_0, %c0_i32_1 : i32, i32, i32, i32
  }
  func.func @transform_8(%arg0: i32) -> (i32, i32, i32, i32) {
    %c0_i32 = arith.constant 0 : i32
    %c0_i32_0 = arith.constant 0 : i32
    %c0_i32_1 = arith.constant 0 : i32
    %c0_i32_2 = arith.constant 0 : i32
    return %arg0, %c0_i32, %c0_i32_0, %c0_i32_1 : i32, i32, i32, i32
  }
  func.func @transform_9(%arg0: i32) -> (i32, i32, i32, i32) {
    %c0_i32 = arith.constant 0 : i32
    %c0_i32_0 = arith.constant 0 : i32
    %c0_i32_1 = arith.constant 0 : i32
    %c0_i32_2 = arith.constant 0 : i32
    return %arg0, %c0_i32, %c0_i32_0, %c0_i32_1 : i32, i32, i32, i32
  }
  func.func @transform_10(%arg0: i32) -> (i32, i32, i32) {
    %c0_i32 = arith.constant 0 : i32
    %c0_i32_0 = arith.constant 0 : i32
    %c0_i32_1 = arith.constant 0 : i32
    return %arg0, %c0_i32, %c0_i32_0 : i32, i32, i32
  }
  func.func @transform_11(%arg0: i32) -> (i32, i32, i32) {
    %c0_i32 = arith.constant 0 : i32
    %c0_i32_0 = arith.constant 0 : i32
    %c0_i32_1 = arith.constant 0 : i32
    return %arg0, %c0_i32, %c0_i32_0 : i32, i32, i32
  }
  func.func @transform_12(%arg0: i32) -> (i32, i32, i32) {
    %c0_i32 = arith.constant 0 : i32
    %c0_i32_0 = arith.constant 0 : i32
    %c0_i32_1 = arith.constant 0 : i32
    return %arg0, %c0_i32, %c0_i32_0 : i32, i32, i32
  }
  func.func @transform_13(%arg0: i32) -> (i32, i32, i32, i32) {
    %c0_i32 = arith.constant 0 : i32
    %c0_i32_0 = arith.constant 0 : i32
    %c0_i32_1 = arith.constant 0 : i32
    %c0_i32_2 = arith.constant 0 : i32
    return %arg0, %c0_i32, %c0_i32_0, %c0_i32_1 : i32, i32, i32, i32
  }
  func.func @transform_14(%arg0: i32) -> (i32, i32, i32, i32) {
    %c0_i32 = arith.constant 0 : i32
    %c0_i32_0 = arith.constant 0 : i32
    %c0_i32_1 = arith.constant 0 : i32
    %c0_i32_2 = arith.constant 0 : i32
    return %arg0, %c0_i32, %c0_i32_0, %c0_i32_1 : i32, i32, i32, i32
  }
  func.func @transform_15(%arg0: i32) -> (i32, i32, i32, i32) {
    %c0_i32 = arith.constant 0 : i32
    %c0_i32_0 = arith.constant 0 : i32
    %c0_i32_1 = arith.constant 0 : i32
    %c0_i32_2 = arith.constant 0 : i32
    return %arg0, %c0_i32, %c0_i32_0, %c0_i32_1 : i32, i32, i32, i32
  }
  func.func @transform_16(%arg0: i32) -> (i32, i32, i32, i32) {
    %c0_i32 = arith.constant 0 : i32
    %c0_i32_0 = arith.constant 0 : i32
    %c0_i32_1 = arith.constant 0 : i32
    %c0_i32_2 = arith.constant 0 : i32
    return %arg0, %c0_i32, %c0_i32_0, %c0_i32_1 : i32, i32, i32, i32
  }
  func.func @transform_17(%arg0: i32) -> (i32, i32, i32, i32) {
    %c0_i32 = arith.constant 0 : i32
    %c0_i32_0 = arith.constant 0 : i32
    %c0_i32_1 = arith.constant 0 : i32
    %c0_i32_2 = arith.constant 0 : i32
    return %arg0, %c0_i32, %c0_i32_0, %c0_i32_1 : i32, i32, i32, i32
  }
  func.func @transform_18(%arg0: i32) -> (i32, i32, i32, i32) {
    %c0_i32 = arith.constant 0 : i32
    %c0_i32_0 = arith.constant 0 : i32
    %c0_i32_1 = arith.constant 0 : i32
    %c0_i32_2 = arith.constant 0 : i32
    return %arg0, %c0_i32, %c0_i32_0, %c0_i32_1 : i32, i32, i32, i32
  }
  func.func @transform_19(%arg0: i32) -> (i32, i32, i32, i32) {
    %c0_i32 = arith.constant 0 : i32
    %c0_i32_0 = arith.constant 0 : i32
    %c0_i32_1 = arith.constant 0 : i32
    %c0_i32_2 = arith.constant 0 : i32
    return %arg0, %c0_i32, %c0_i32_0, %c0_i32_1 : i32, i32, i32, i32
  }
  func.func @transform_20(%arg0: i32) -> (i32, i32, i32) {
    %c0_i32 = arith.constant 0 : i32
    %c0_i32_0 = arith.constant 0 : i32
    %c0_i32_1 = arith.constant 0 : i32
    return %arg0, %c0_i32, %c0_i32_0 : i32, i32, i32
  }
  func.func @transform_21(%arg0: i32) -> (i32, i32, i32) {
    %c0_i32 = arith.constant 0 : i32
    %c0_i32_0 = arith.constant 0 : i32
    %c0_i32_1 = arith.constant 0 : i32
    return %arg0, %c0_i32, %c0_i32_0 : i32, i32, i32
  }
  func.func @transform_22(%arg0: i32) -> (i32, i32, i32) {
    %c0_i32 = arith.constant 0 : i32
    %c0_i32_0 = arith.constant 0 : i32
    %c0_i32_1 = arith.constant 0 : i32
    return %arg0, %c0_i32, %c0_i32_0 : i32, i32, i32
  }
  func.func @transform_23(%arg0: i32) -> (i32, i32, i32) {
    %c0_i32 = arith.constant 0 : i32
    %c0_i32_0 = arith.constant 0 : i32
    %c0_i32_1 = arith.constant 0 : i32
    return %arg0, %c0_i32, %c0_i32_0 : i32, i32, i32
  }
  func.func @transform_24(%arg0: i32) -> (i32, i32, i32) {
    %c0_i32 = arith.constant 0 : i32
    %c0_i32_0 = arith.constant 0 : i32
    %c0_i32_1 = arith.constant 0 : i32
    return %arg0, %c0_i32, %c0_i32_0 : i32, i32, i32
  }
  func.func @transform_25(%arg0: i32) -> (i32, i32, i32) {
    %c0_i32 = arith.constant 0 : i32
    %c0_i32_0 = arith.constant 0 : i32
    %c0_i32_1 = arith.constant 0 : i32
    return %arg0, %c0_i32, %c0_i32_0 : i32, i32, i32
  }
  func.func @transform_26(%arg0: i32) -> (i32, i32, i32) {
    %c0_i32 = arith.constant 0 : i32
    %c0_i32_0 = arith.constant 0 : i32
    %c0_i32_1 = arith.constant 0 : i32
    return %arg0, %c0_i32, %c0_i32_0 : i32, i32, i32
  }
  func.func @transform_27(%arg0: i32) -> (i32, i32, i32) {
    %c0_i32 = arith.constant 0 : i32
    %c0_i32_0 = arith.constant 0 : i32
    %c0_i32_1 = arith.constant 0 : i32
    return %arg0, %c0_i32, %c0_i32_0 : i32, i32, i32
  }
  func.func @transform_28(%arg0: i32) -> (i32, i32, i32) {
    %c0_i32 = arith.constant 0 : i32
    %c0_i32_0 = arith.constant 0 : i32
    %c0_i32_1 = arith.constant 0 : i32
    return %arg0, %c0_i32, %c0_i32_0 : i32, i32, i32
  }
  func.func @transform_29(%arg0: i32) -> (i32, i32) {
    %c0_i32 = arith.constant 0 : i32
    %c0_i32_0 = arith.constant 0 : i32
    %c0_i32_1 = arith.constant 0 : i32
    return %c0_i32, %c0_i32_0 : i32, i32
  }
  func.func @transform_30(%arg0: i32) -> (i32, i32, i32) {
    %c0_i32 = arith.constant 0 : i32
    %c0_i32_0 = arith.constant 0 : i32
    %c0_i32_1 = arith.constant 0 : i32
    %c0_i32_2 = arith.constant 0 : i32
    return %c0_i32, %c0_i32_0, %c0_i32_1 : i32, i32, i32
  }
}

</mosaic_0001>

<bundles_post_ra>
// kernel: forward.2
= control target key start
LH: loop header
LB: loop body
LE: loop exit
PB: predicated region body
PF: predicated region fallthrough
CT: control target
= control target key end

     0   :  { %s4247_s27 = smov 0   ;;  %s4733_s0 = inlined_call_operand.vmem [shape: f32[2,8,64], index: 0, kind: input, shape index: {}]   ;;  %s4734_s1 = inlined_call_operand.vmem [shape: f32[2,8], index: 1, kind: input, shape index: {}]   ;;  %s4735_s2 = inlined_call_operand.vmem [shape: bf16[2,4,64,16], index: 2, kind: input, shape index: {}]   ;;  %s4736_s3 = inlined_call_operand.vmem [shape: f32[2,4,1,16], index: 3, kind: input, shape index: {}]   ;;  %s4737_s4 = inlined_call_operand.vmem [shape: bf16[2,4,64,16], index: 4, kind: input, shape index: {}]   ;;  %s4738_s5 = inlined_call_operand.vmem [shape: f32[2,4,1,16], index: 5, kind: input, shape index: {}]   ;;  %s4739_s6 = inlined_call_operand.vmem [shape: bf16[2,4,64,16], index: 6, kind: input, shape index: {}]   ;;  %s4740_s7 = inlined_call_operand.vmem [shape: f32[2,4,1,16], index: 7, kind: input, shape index: {}]   ;;  %s4741_s8 = inlined_call_operand.vmem [shape: bf16[2,4,16,64], index: 8, kind: input, shape index: {}]   ;;  %s4742_s9 = inlined_call_operand.vmem [shape: f32[2,1,64], index: 9, kind: input, shape index: {}]   ;;  %s4743_s10 = inlined_call_operand.vmem [shape: f32[2,1,64], index: 10, kind: input, shape index: {}]   ;;  %s4744_s11 = inlined_call_operand.vmem [shape: f32[2,1,64], index: 11, kind: input, shape index: {}]   ;;  %s4745_s12 = inlined_call_operand.vmem [shape: bf16[2,64,64], index: 12, kind: input, shape index: {}]   ;;  %s4746_s13 = inlined_call_operand.vmem [shape: f32[2,1,64], index: 13, kind: input, shape index: {}]   ;;  %s4747_s14 = inlined_call_operand.vmem [shape: bf16[2,64,64], index: 14, kind: input, shape index: {}]   ;;  %s4748_s15 = inlined_call_operand.vmem [shape: f32[2,1,64], index: 15, kind: input, shape index: {}]   ;;  %s4749_s16 = inlined_call_operand.vmem [shape: f32[2,1,64], index: 16, kind: input, shape index: {}]   ;;  %s4750_s17 = inlined_call_operand.vmem [shape: f32[2,1,64], index: 17, kind: input, shape index: {}]   ;;  %s4751_s18 = inlined_call_operand.vmem [shape: f32[2,8,64], index: 18, kind: output, shape index: {}]  }
   0x1   :  { %4759 = sst [smem:[#allocation8_spill]] %s4733_s0 }
   0x2   :  { %4760 = sst [smem:[#allocation9_spill]] %s4734_s1 }
   0x3   :  { %4761 = sst [smem:[#allocation10_spill]] %s4735_s2 }
   0x4   :  { %4762 = sst [smem:[#allocation11_spill]] %s4736_s3 }
   0x5   :  { %4763 = sst [smem:[#allocation12_spill]] %s4737_s4 }
   0x6   :  { %4764 = sst [smem:[#allocation13_spill]] %s4738_s5 }
   0x7   :  { %4765 = sst [smem:[#allocation14_spill]] %s4739_s6 }
   0x8   :  { %4766 = sst [smem:[#allocation15_spill]] %s4740_s7 }
   0x9   :  { %4767 = sst [smem:[#allocation16_spill]] %s4741_s8 }
   0xa   :  { %4768 = sst [smem:[#allocation17_spill]] %s4745_s12 }
   0xb   :  { %4769 = sst [smem:[#allocation18_spill]] %s4751_s18 }
   0xc LB: > { %4770 = sst [smem:[#allocation3_spill]] %s4147_s27  ;;  %s4253_s28 = sadd.s32 4294967295, %s4147_s27   ;;  %s4147_s27 = sphi %s4247_s27, %s28_s27  }
   0xd   : > { %4771 = sst [smem:[#allocation4_spill]] %s4253_s28  ;;  %p3403_p0 = scmp.ge.s32.totalorder %s4147_s27, 1 }
   0xe   : > { %p640_p1 = scmp.lt.s32.totalorder %s4147_s27, 3 }
  0x10   : > { %p641_p2 = pnand %p3403_p0, %p640_p1 }
  0x12   : > { %644 = sbr.rel (%p641_p2) target bundleno = 5102 (0x13ee), region = 92 }
  0x19   : > { %p747_p3 = scmp.lt.s32.totalorder %s4253_s28, 1  ;;  %s4772_s20 = sld [smem:[#allocation10_spill]] }
  0x1a   : > { %s4774_s3 = sld [smem:[#allocation11_spill]]  ;;  %s4776_s4 = sld [smem:[#allocation12_spill]] }
  0x1b   : > { %s4259_s29 = scalar_select %p747_p3, %s4253_s28, 1 }
  0x1c   : > { %s4778_s5 = sld [smem:[#allocation13_spill]]  ;;  %s4779_s6 = sld [smem:[#allocation14_spill]] }
  0x1d   : > { %s3624_s30 = sshll.u32 %s4259_s29, 7  ;;  %s3406_s0 = sshll.u32 %s4259_s29, 2 }
  0x1e   : > { %s4780_s7 = sld [smem:[#allocation15_spill]]  ;;  %s4781_s8 = sld [smem:[#allocation16_spill]] }
  0x1f   : > { %s4266_s21 = scalar_lea.vmem %s4772_s20, %s3624_s30  ;;  %s4782_s12 = sld [smem:[#allocation17_spill]] }
  0x20   : > { %4773 = sst [smem:[#allocation5_spill]] %s4266_s21  ;;  %s4271_s23 = scalar_lea.vmem %s4774_s3, %s3406_s0 }
  0x21   : > { %4775 = sst [smem:[#allocation6_spill]] %s4271_s23  ;;  %s4276_s26 = scalar_lea.vmem %s4776_s4, %s3624_s30 }
  0x22   : > { %4777 = sst [smem:[#allocation7_spill]] %s4276_s26  ;;  %s4281_s28 = scalar_lea.vmem %s4778_s5, %s3406_s0 }
  0x23   : > { %s4286_s20 = scalar_lea.vmem %s4779_s6, %s3624_s30  ;;  %s3627_s3 = sshll.u32 %s4259_s29, 5 }
  0x24   : > { %s4291_s2 = scalar_lea.vmem %s4780_s7, %s3406_s0  ;;  %s4301_s18 = scalar_lea.vmem %s4781_s8, %s3627_s3 }
  0x25   : > { %s4314_s6 = scalar_lea.vmem %s4782_s12, %s3627_s3  ;;  %s795_s25 = scalar_lea.vmem %s4746_s13, %s4259_s29 }
  0x26   : > { %s4323_s7 = scalar_lea.vmem %s4747_s14, %s3627_s3  ;;  %s803_s30 = scalar_lea.vmem %s4748_s15, %s4259_s29 }
  0x27   : > { %s806_s21 = scalar_lea.vmem %s4749_s16, %s4259_s29  ;;  %s809_s8 = scalar_lea.vmem %s4750_s17, %s4259_s29 }
  0x28   : > { %s4783_s12 = sld [smem:[#allocation4_spill]] }
  0x2e   : > { %p3419_p4 = scmp.ne.s32.totalorder %s4783_s12, 0 }
  0x2f   : > { %s4784_s4 = sld [smem:[#allocation8_spill]] (!%p3419_p4)  ;;  %vm817_vm0 = vcmask (!%p3419_p4), 523264  }
  0x30   : > { %814 = sbr.rel (%p3419_p4) target bundleno = 55 (0x37), region = 96 }
  0x35   : > { %v815_v0 = vld [vmem:[%s4784_s4] sm:$0xff] (!%p3419_p4)  ;;  %v816_v1 = vld [vmem:[%s4784_s4 + $0x8] sm:$0xff] (!%p3419_p4) }
  0x36   : > { %818 = vst.msk [vmem:[#allocation2] sm:$0xff] (!%p3419_p4), %vm817_vm0, %v815_v0  ;;  %819 = vst.msk [vmem:[#allocation2 + $0x8] sm:$0xff] (!%p3419_p4), %vm817_vm0, %v816_v1 }
  0x37 PF: > { %s4785_s5 = sld [smem:[#allocation7_spill]]  ;;  %s4786_s27 = sld [smem:[#allocation5_spill]]  ;;  %v4149_v3 = vmov 0.0   ;;  %vm4150_vm1 = vmmov 0   ;;  %vm896_vm2 = vcmask 523264   ;;  %vm1105_vm3 = vcmask 130048  }
  0x38   : > { %3752 = vmatprep.subr.bf16.mxu1 %v4149_v3  ;;  %3740 = vmatprep.subr.bf16.mxu0 %v4149_v3  ;;  %s4787_s12 = sld [smem:[#allocation6_spill]]  ;;  %v3427_v14 = vld [vmem:[%s4281_s28] ss:$0 sm:$0xff]  ;;  %v4048_v35 = vld [vmem:[%s4286_s20 + $0x8] sm:$0xff]   ;;  %v4049_v36 = vld [vmem:[%s4286_s20 + $0x10] sm:$0xff]   ;;  %v835_v40 = vlaneseq  ;;  %s4788_s0 = sld [smem:[#allocation9_spill]] }
  0x39   : > { %3760 = vmatprep.mubr.msk.bf16.mxu1 %vm4150_vm1, %v4149_v3  ;;  %3748 = vmatprep.mubr.msk.bf16.mxu0 %vm4150_vm1, %v4149_v3  ;;  %v4047_v34 = vld [vmem:[%s4286_s20] sm:$0xff]   ;;  %v4050_v37 = vld [vmem:[%s4286_s20 + $0x18] sm:$0xff]   ;;  %v4151_v38 = vmov 1966171168   ;;  %vm1202_vm4 = vcmask 64512   ;;  %vm1232_vm5 = vcmask 1043456   ;;  %s4790_s22 = scalar_lea.vmem %s4743_s10, %s4259_s29  ;;  %s4791_s3 = scalar_lea.vmem %s4744_s11, %s4259_s29 }
  0x3a   : > { %v833_v39 = vunpack.c.l.s4 %v4151_v38  ;;  %v836_v42 = vshrl.u32 %v835_v40, 7  ;;  %v3433_v1 = vld [vmem:[%s4291_s2] ss:$0 sm:$0xff]  ;;  %s4792_s1 = sld [smem:[#allocation4_spill]] }
  0x3c   : > { %v834_v41 = vunpack.c.0.s8 %v833_v39  ;;  %v848_v51 = vsub.s32 0, %v836_v42 }
  0x3d   : > { %v4039_v2 = vld [vmem:[%s4785_s5] sm:$0xff]   ;;  %v4040_v4 = vld [vmem:[%s4785_s5 + $0x8] sm:$0xff]   ;;  %v4042_v7 = vld [vmem:[%s4785_s5 + $0x10] sm:$0xff]  }
  0x3e   : > { %3753 = vmatpush3.bf16.msra.mxu1 %v4039_v2  ;;  %v4041_v5 = vld [vmem:[%s4786_s27] sm:$0xff]   ;;  %v4043_v6 = vld [vmem:[%s4786_s27 + $0x8] sm:$0xff]   ;;  %v4045_v8 = vld [vmem:[%s4786_s27 + $0x10] sm:$0xff]   ;;  %v837_v47 = vsub.s32 %v834_v41, %v836_v42 }
  0x3f   : > { %3754 = vmatprep.subr.bf16.mxu1 %v4149_v3  ;;  %3741 = vmatpush3.bf16.msra.mxu0 %v4041_v5  ;;  %v4044_v9 = vld [vmem:[%s4785_s5 + $0x18] sm:$0xff]   ;;  %v820_v10 = vld [vmem:[#allocation2] sm:$0xff]  ;;  %v821_v11 = vld [vmem:[#allocation2 + $0x8] sm:$0xff] }
  0x40   : > { %3742 = vmatprep.subr.bf16.mxu0 %v4149_v3  ;;  %v4046_v12 = vld [vmem:[%s4786_s27 + $0x18] sm:$0xff]   ;;  %v4363_v13 = vpack.c.bf16 %v821_v11, %v820_v10  ;;  %v3421_v19 = vld [vmem:[%s4787_s12] ss:$0 sm:$0xff]  ;;  %v4057_v38 = vld [vmem:[%s4786_s27 + $0x30] sm:$0xff]   ;;  %p3621_p5 = scmp.ne.s32.totalorder %s4792_s1, 1 }
  0x41   : > { %v3420_v43 = vld.sshfl [vmem:[%s4788_s0] sm:$0x11 pattern:$0x75316420]  ;;  %v4058_v39 = vld [vmem:[%s4786_s27 + $0x38] sm:$0xff]  }
  0x42   : > { %3755 = vmatpush3.bf16.msra.mxu1 %v4040_v4  ;;  %v831_v44 = vcombine.high %v3420_v43, %v3420_v43  ;;  %v838_v52 = vrot.slane %v3420_v43, %v837_v47 }
  0x43   : > { %3756 = vmatprep.subr.bf16.mxu1 %v4149_v3  ;;  %3743 = vmatpush3.bf16.msra.mxu0 %v4043_v6 }
  0x44   : > { %3744 = vmatprep.subr.bf16.mxu0 %v4149_v3  ;;  %v845_v50 = vrot.slane %v831_v44, %v837_v47  ;;  %v4405_v58 = vrot.slane %v838_v52, %v848_v51 }
  0x46   : > { %3757 = vmatpush3.bf16.msra.mxu1 %v4042_v7  ;;  %v4403_v53 = vrot.slane %v845_v50, %v848_v51 }
  0x47   : > { %3758 = vmatprep.subr.bf16.mxu1 %v4149_v3  ;;  %3745 = vmatpush3.bf16.msra.mxu0 %v4045_v8 }
  0x48   : > { %3746 = vmatprep.subr.bf16.mxu0 %v4149_v3 }
  0x4a   : > { %3759 = vmatpush3.bf16.msra.mxu1 %v4044_v9 }
  0x4b   : > { %3776 = vmatprep.subr.bf16.mxu1 %v4149_v3  ;;  %3747 = vmatpush3.bf16.msra.mxu0 %v4046_v12 }
  0x4c   : > { %3764 = vmatprep.subr.bf16.mxu0 %v4149_v3 }
  0x4d   : > { %3761 = vmatmul.mubr.msk.bf16.vlgmr.msra.gmra.mrb[0].mxu1 %vm896_vm2, %v4363_v13 }
  0x4e   : > { %3778 = vmatprep.mubr.msk.bf16.mxu1 %vm4150_vm1, %v4149_v3  ;;  %3749 = vmatmul.mubr.msk.bf16.vlgmr.msra.gmra.mrb[0].mxu0 %vm896_vm2, %v4363_v13 }
  0x4f   : > { %3772 = vmatprep.mubr.msk.bf16.mxu0 %vm4150_vm1, %v4149_v3  ;;  %3765 = vmatpush3.bf16.msra.mxu0 %v4047_v34 }
  0x50   : > { %3766 = vmatprep.subr.bf16.mxu0 %v4149_v3 }
  0x53   : > { %3767 = vmatpush3.bf16.msra.mxu0 %v4048_v35  ;;  %v4054_v35 = vld [vmem:[%s4785_s5 + $0x30] sm:$0xff]  }
  0x54   : > { %3768 = vmatprep.subr.bf16.mxu0 %v4149_v3 }
  0x57   : > { %3769 = vmatpush3.bf16.msra.mxu0 %v4049_v36  ;;  %v4055_v36 = vld [vmem:[%s4786_s27 + $0x28] sm:$0xff]  }
  0x58   : > { %3770 = vmatprep.subr.bf16.mxu0 %v4149_v3 }
  0x5b   : > { %3771 = vmatpush3.bf16.msra.mxu0 %v4050_v37  ;;  %v4056_v37 = vld [vmem:[%s4785_s5 + $0x38] sm:$0xff]  }
  0x5c   : > { %3788 = vmatprep.subr.bf16.mxu0 %v4149_v3 }
  0x5e   : > { %3773 = vmatmul.mubr.msk.bf16.vlgmr.msra.gmra.mrb[4].mxu0 %vm896_vm2, %v4363_v13 }
  0x5f   : > { %3790 = vmatprep.mubr.msk.bf16.mxu0 %vm4150_vm1, %v4149_v3 }
 0x120   : > { %v1014_v15 = vpop.f32.mrb[0].mxu1 }
 0x121   : > { %v1015_v16 = vadd.f32 %v3427_v14, %v1014_v15  ;;  %v3762_v17 = vpop.f32.mrb[1].mxu1  ;;  %v934_v20 = vpop.f32.mrb[0].mxu0 }
 0x122   : > { %v1017_v18 = vpop.f32.mrb[2].mxu1  ;;  %v3750_v23 = vpop.f32.mrb[1].mxu0  ;;  %v935_v27 = vadd.f32 %v3421_v19, %v934_v20 }
 0x123   : > { %v1103_v21 = vpack.c.bf16 %v1015_v16, %v1015_v16  ;;  %v3763_v22 = vpop.f32.mrb[3].mxu1  ;;  %v937_v24 = vpop.f32.mrb[2].mxu0  ;;  %v1018_v26 = vadd.f32 %v3427_v14, %v1017_v18 }
 0x124   : > { %v3751_v28 = vpop.f32.mrb[3].mxu0  ;;  %v1101_v30 = vpack.c.bf16 %v935_v27, %v935_v27  ;;  %v938_v32 = vadd.f32 %v3421_v19, %v937_v24 }
 0x125   : > { %v1110_v25 = vsel %vm1105_vm3, %v1103_v21, 0  ;;  %v1104_v29 = vpack.c.bf16 %v1018_v26, %v1018_v26  ;;  %v4051_v28 = vld [vmem:[%s4785_s5 + $0x20] sm:$0xff]  }
 0x126   : > { %3777 = vmatpush3.bf16.xpose.msra.mxu1 %v1110_v25  ;;  %v1102_v33 = vpack.c.bf16 %v938_v32, %v938_v32  ;;  %v4052_v32 = vld [vmem:[%s4785_s5 + $0x28] sm:$0xff]  }
 0x127   : > { %3782 = vmatprep.subr.bf16.mxu1 %v4149_v3  ;;  %v1156_v31 = vsel %vm1105_vm3, %v1104_v29, 0 }
 0x12d   : > { %3779 = vmatmul.mubr.msk.bf16.vlgmr.msra.gmra.mrb[4].mxu1 %vm1105_vm3, %v1101_v30 }
 0x12e   : > { %3783 = vmatpush3.bf16.xpose.msra.mxu1 %v1156_v31  ;;  %3784 = vmatprep.mubr.msk.bf16.mxu1 %vm4150_vm1, %v4149_v3 }
 0x12f   : > { %3794 = vmatprep.subr.bf16.mxu1 %v4149_v3 }
 0x131   : > { %v1094_v2 = vpop.f32.mrb[4].mxu0 }
 0x132   : > { %v1095_v4 = vadd.f32 %v3433_v1, %v1094_v2  ;;  %v3774_v5 = vpop.f32.mrb[5].mxu0 }
 0x133   : > { %v1097_v19 = vpop.f32.mrb[6].mxu0 }
 0x134   : > { %v1227_v6 = vpack.c.bf16 %v1095_v4, %v1095_v4  ;;  %v3775_v20 = vpop.f32.mrb[7].mxu0  ;;  %v1098_v21 = vadd.f32 %v3433_v1, %v1097_v19 }
 0x135   : > { %3785 = vmatmul.mubr.msk.bf16.vlgmr.msra.gmra.mrb[8].mxu1 %vm1105_vm3, %v1102_v33  ;;  %v4053_v33 = vld [vmem:[%s4786_s27 + $0x20] sm:$0xff]  }
 0x136   : > { %3796 = vmatprep.mubr.msk.bf16.mxu1 %vm4150_vm1, %v4149_v3  ;;  %v1234_v7 = vsel %vm1232_vm5, %v1227_v6, 0  ;;  %v1228_v22 = vpack.c.bf16 %v1098_v21, %v1098_v21 }
 0x137   : > { %3789 = vmatpush3.bf16.msra.mxu0 %v1234_v7 }
 0x138   : > { %3800 = vmatprep.subr.bf16.mxu0 %v4149_v3  ;;  %v1280_v23 = vsel %vm1232_vm5, %v1228_v22, 0 }
 0x139   : > { %3795 = vmatpush3.bf16.msra.mxu1 %v1280_v23 }
 0x13a   : > { %3812 = vmatprep.subr.bf16.mxu1 %v4149_v3 }
 0x200   : > { %v1146_v45 = vpop.f32.mrb[4].mxu1 }
 0x201   : > { %v3780_v46 = vpop.f32.mrb[5].mxu1  ;;  %v1198_v55 = vmul.f32 0.25, %v1146_v45 }
 0x202   : > { %v1149_v48 = vpop.f32.mrb[6].mxu1 }
 0x203   : > { %v3781_v49 = vpop.f32.mrb[7].mxu1  ;;  %v1200_v63 = vadd.f32 %v1198_v55, %v4405_v58  ;;  %v3452_v55 = vld [vmem:[%s4787_s12 + $0x1] ss:$0 sm:$0xff] }
 0x204   : > { %v3467_v49 = vld [vmem:[%s4281_s28 + $0x1] ss:$0 sm:$0xff] }
 0x205   : > { %v1203_v0 = vsel %vm1202_vm4, %v1200_v63, -inf }
 0x208   : > { %v1192_v54 = vpop.f32.mrb[8].mxu1 }
 0x209   : > { %v1199_v56 = vmul.f32 0.25, %v1192_v54  ;;  %v3786_v57 = vpop.f32.mrb[9].mxu1 }
 0x20a   : > { %v1195_v59 = vpop.f32.mrb[10].mxu1 }
 0x20b   : > { %v3787_v60 = vpop.f32.mrb[11].mxu1  ;;  %v1201_v61 = vadd.f32 %v1199_v56, %v4403_v53 }
 0x20d   : > { %v1206_v62 = vsel %vm1202_vm4, %v1201_v61, -inf }
 0x20e   : > { %1207 = vmax.xlane.f32.xlu0 %v1206_v62 }
 0x212   : > { %1204 = vmax.xlane.f32.xlu0 %v1203_v0 }
 0x29b   : > { %v1208_v8 = vpop.xlane.xlu0 %1207 }
 0x29c   : > { %v1210_v9 = vsub.f32 %v1201_v61, %v1208_v8  ;;  %v4059_v8 = vld [vmem:[%s4286_s20 + $0x20] sm:$0xff]  }
 0x29e   : > { %v1213_v10 = vmul.f32 1.442695, %v1210_v9  ;;  %v4060_v9 = vld [vmem:[%s4286_s20 + $0x28] sm:$0xff]  }
 0x29f   : > { %v1205_v11 = vpop.xlane.xlu0 %1204 }
 0x2a0   : > { %4099 = vpow2.f32 %v1213_v10  ;;  %v1209_v12 = vsub.f32 %v1200_v63, %v1205_v11  ;;  %v4061_v10 = vld [vmem:[%s4286_s20 + $0x30] sm:$0xff]   ;;  %v4062_v11 = vld [vmem:[%s4286_s20 + $0x38] sm:$0xff]  }
 0x2a2   : > { %v1211_v14 = vmul.f32 1.442695, %v1209_v12 }
 0x2a4   : > { %4101 = vpow2.f32 %v1211_v14 }
 0x2aa   : > { %v4100_v15 = vpop.eup %4099 }
 0x2ab   : > { %v1218_v16 = vsel %vm1202_vm4, %v4100_v15, 0.0 }
 0x2ac   : > { %1219 = vadd.xlane.f32.xlu1 %v1218_v16 }
 0x2ae   : > { %v4102_v17 = vpop.eup %4101 }
 0x2af   : > { %v1215_v18 = vsel %vm1202_vm4, %v4102_v17, 0.0 }
 0x2b0   : > { %1216 = vadd.xlane.f32.xlu1 %v1215_v18 }
 0x339   : > { %v1220_v24 = vpop.xlane.xlu1 %1219 }
 0x33a   : > { %4103 = vrcp.f32 %v1220_v24 }
 0x33d   : > { %v1217_v25 = vpop.xlane.xlu1 %1216 }
 0x33e   : > { %4105 = vrcp.f32 %v1217_v25 }
 0x344   : > { %v4104_v26 = vpop.eup %4103 }
 0x345   : > { %v1224_v27 = vmul.f32 %v4104_v26, %v4100_v15 }
 0x347   : > { %v1226_v29 = vpack.c.bf16 %v1224_v27, %v1224_v27 }
 0x348   : > { %v4106_v30 = vpop.eup %4105 }
 0x349   : > { %v1223_v31 = vmul.f32 %v4106_v30, %v4102_v17  ;;  %3797 = vmatmul.mubr.msk.bf16.vlgmr.msra.gmra.mrb[12].mxu1 %vm1202_vm4, %v1226_v29 }
 0x34a   : > { %3813 = vmatpush3.bf16.msra.mxu1 %v4051_v28  ;;  %3820 = vmatprep.mubr.msk.bf16.mxu1 %vm4150_vm1, %v4149_v3 }
 0x34b   : > { %3814 = vmatprep.subr.bf16.mxu1 %v4149_v3  ;;  %v1225_v34 = vpack.c.bf16 %v1223_v31, %v1223_v31 }
 0x34d   : > { %3791 = vmatmul.mubr.msk.bf16.vlgmr.msra.gmra.mrb[8].mxu0 %vm1202_vm4, %v1225_v34 }
 0x34e   : > { %3815 = vmatpush3.bf16.msra.mxu1 %v4052_v32  ;;  %3801 = vmatpush3.bf16.msra.mxu0 %v4053_v33 }
 0x34f   : > { %3816 = vmatprep.subr.bf16.mxu1 %v4149_v3  ;;  %3802 = vmatprep.subr.bf16.mxu0 %v4149_v3 }
 0x350   : > { %3808 = vmatprep.mubr.msk.bf16.mxu0 %vm4150_vm1, %v4149_v3 }
 0x352   : > { %3817 = vmatpush3.bf16.msra.mxu1 %v4054_v35  ;;  %3803 = vmatpush3.bf16.msra.mxu0 %v4055_v36 }
 0x353   : > { %3818 = vmatprep.subr.bf16.mxu1 %v4149_v3  ;;  %3804 = vmatprep.subr.bf16.mxu0 %v4149_v3 }
 0x356   : > { %3819 = vmatpush3.bf16.msra.mxu1 %v4056_v37  ;;  %3805 = vmatpush3.bf16.msra.mxu0 %v4057_v38  ;;  %v3482_v37 = vld [vmem:[%s4291_s2 + $0x1] ss:$0 sm:$0xff] }
 0x357   : > { %3806 = vmatprep.subr.bf16.mxu0 %v4149_v3  ;;  %3836 = vmatprep.subr.bf16.mxu1 %v4149_v3 }
 0x359   : > { %3821 = vmatmul.mubr.msk.bf16.vlgmr.msra.gmra.mrb[16].mxu1 %vm896_vm2, %v4363_v13 }
 0x35a   : > { %3807 = vmatpush3.bf16.msra.mxu0 %v4058_v39  ;;  %3838 = vmatprep.mubr.msk.bf16.mxu1 %vm4150_vm1, %v4149_v3 }
 0x35b   : > { %3824 = vmatprep.subr.bf16.mxu0 %v4149_v3 }
 0x35d   : > { %3809 = vmatmul.mubr.msk.bf16.vlgmr.msra.gmra.mrb[12].mxu0 %vm896_vm2, %v4363_v13 }
 0x35e   : > { %3832 = vmatprep.mubr.msk.bf16.mxu0 %vm4150_vm1, %v4149_v3  ;;  %3825 = vmatpush3.bf16.msra.mxu0 %v4059_v8 }
 0x35f   : > { %3826 = vmatprep.subr.bf16.mxu0 %v4149_v3 }
 0x362   : > { %3827 = vmatpush3.bf16.msra.mxu0 %v4060_v9 }
 0x363   : > { %3828 = vmatprep.subr.bf16.mxu0 %v4149_v3 }
 0x366   : > { %3829 = vmatpush3.bf16.msra.mxu0 %v4061_v10 }
 0x367   : > { %3830 = vmatprep.subr.bf16.mxu0 %v4149_v3 }
 0x36a   : > { %3831 = vmatpush3.bf16.msra.mxu0 %v4062_v11  ;;  %v4070_v11 = vld [vmem:[%s4786_s27 + $0x48] sm:$0xff]  }
 0x36b   : > { %3848 = vmatprep.subr.bf16.mxu0 %v4149_v3 }
 0x36d   : > { %3833 = vmatmul.mubr.msk.bf16.vlgmr.msra.gmra.mrb[16].mxu0 %vm896_vm2, %v4363_v13 }
 0x36e   : > { %3850 = vmatprep.mubr.msk.bf16.mxu0 %vm4150_vm1, %v4149_v3 }
 0x41c   : > { %v4448_v40 = vpop.f32.mrb[12].mxu1 }
 0x41d   : > { %v3798_v41 = vpop.f32.mrb[13].mxu1 }
 0x41e   : > { %v1319_v42 = vpop.f32.mrb[14].mxu1 }
 0x41f   : > { %v3799_v43 = vpop.f32.mrb[15].mxu1 }
 0x420   : > { %v4450_v44 = vpop.f32.mrb[8].mxu0 }
 0x421   : > { %v1324_v45 = vpack.c.bf16 %v4448_v40, %v4450_v44  ;;  %v3792_v46 = vpop.f32.mrb[9].mxu0  ;;  %v4069_v40 = vld [vmem:[%s4785_s5 + $0x58] sm:$0xff]  }
 0x422   : > { %v1273_v47 = vpop.f32.mrb[10].mxu0 }
 0x423   : > { %v3793_v48 = vpop.f32.mrb[11].mxu0 }
 0x42c   : > { %v1482_v50 = vpop.f32.mrb[16].mxu1 }
 0x42d   : > { %v1483_v51 = vadd.f32 %v3467_v49, %v1482_v50  ;;  %v3822_v52 = vpop.f32.mrb[17].mxu1 }
 0x42e   : > { %v1485_v54 = vpop.f32.mrb[18].mxu1 }
 0x42f   : > { %v1573_v56 = vpack.c.bf16 %v1483_v51, %v1483_v51  ;;  %v3823_v57 = vpop.f32.mrb[19].mxu1  ;;  %v1486_v61 = vadd.f32 %v3467_v49, %v1485_v54 }
 0x430   : > { %v1400_v59 = vpop.f32.mrb[12].mxu0 }
 0x431   : > { %v1579_v60 = vsel %vm1105_vm3, %v1573_v56, 0  ;;  %v1401_v62 = vadd.f32 %v3452_v55, %v1400_v59  ;;  %v3810_v63 = vpop.f32.mrb[13].mxu0  ;;  %v1574_v2 = vpack.c.bf16 %v1486_v61, %v1486_v61 }
 0x432   : > { %3837 = vmatpush3.bf16.xpose.msra.mxu1 %v1579_v60  ;;  %v1403_v0 = vpop.f32.mrb[14].mxu0  ;;  %v4063_v60 = vld [vmem:[%s4301_s18] sm:$0xff]   ;;  %v4066_v63 = vld [vmem:[%s4785_s5 + $0x48] sm:$0xff]  }
 0x433   : > { %v3811_v1 = vpop.f32.mrb[15].mxu0  ;;  %3842 = vmatprep.subr.bf16.mxu1 %v4149_v3  ;;  %v1571_v4 = vpack.c.bf16 %v1401_v62, %v1401_v62  ;;  %v1625_v5 = vsel %vm1105_vm3, %v1574_v2, 0  ;;  %v1404_v6 = vadd.f32 %v3452_v55, %v1403_v0  ;;  %v4064_v62 = vld [vmem:[%s4785_s5 + $0x40] sm:$0xff]   ;;  %v4065_v0 = vld [vmem:[%s4301_s18 + $0x8] sm:$0xff]  }
 0x434   : > { %v4067_v1 = vld [vmem:[%s4785_s5 + $0x50] sm:$0xff]  }
 0x435   : > { %v1572_v7 = vpack.c.bf16 %v1404_v6, %v1404_v6  ;;  %v4068_v6 = vld [vmem:[%s4786_s27 + $0x40] sm:$0xff]  }
 0x439   : > { %3839 = vmatmul.mubr.msk.bf16.vlgmr.msra.gmra.mrb[20].mxu1 %vm1105_vm3, %v1571_v4 }
 0x43a   : > { %3843 = vmatpush3.bf16.xpose.msra.mxu1 %v1625_v5  ;;  %3844 = vmatprep.mubr.msk.bf16.mxu1 %vm4150_vm1, %v4149_v3 }
 0x43b   : > { %3854 = vmatprep.subr.bf16.mxu1 %v4149_v3 }
 0x440   : > { %v1564_v38 = vpop.f32.mrb[16].mxu0 }
 0x441   : > { %3845 = vmatmul.mubr.msk.bf16.vlgmr.msra.gmra.mrb[24].mxu1 %vm1105_vm3, %v1572_v7  ;;  %v1565_v39 = vadd.f32 %v3482_v37, %v1564_v38  ;;  %v3834_v41 = vpop.f32.mrb[17].mxu0 }
 0x442   : > { %3856 = vmatprep.mubr.msk.bf16.mxu1 %vm4150_vm1, %v4149_v3  ;;  %v1567_v46 = vpop.f32.mrb[18].mxu0 }
 0x443   : > { %v1695_v42 = vpack.c.bf16 %v1565_v39, %v1565_v39  ;;  %v3835_v47 = vpop.f32.mrb[19].mxu0  ;;  %v1568_v48 = vadd.f32 %v3482_v37, %v1567_v46 }
 0x445   : > { %v1701_v43 = vsel %vm1232_vm5, %v1695_v42, 0  ;;  %v1696_v49 = vpack.c.bf16 %v1568_v48, %v1568_v48  ;;  %v4073_v48 = vld [vmem:[%s4286_s20 + $0x40] sm:$0xff]  }
 0x446   : > { %3849 = vmatpush3.bf16.msra.mxu0 %v1701_v43 }
 0x447   : > { %3860 = vmatprep.subr.bf16.mxu0 %v4149_v3  ;;  %v1747_v50 = vsel %vm1232_vm5, %v1696_v49, 0  ;;  %v4074_v49 = vld [vmem:[%s4286_s20 + $0x48] sm:$0xff]  }
 0x448   : > { %3855 = vmatpush3.bf16.msra.mxu1 %v1747_v50  ;;  %v4075_v50 = vld [vmem:[%s4286_s20 + $0x50] sm:$0xff]  }
 0x449   : > { %3866 = vmatprep.subr.bf16.mxu1 %v4149_v3 }
 0x50c   : > { %v1615_v12 = vpop.f32.mrb[20].mxu1 }
 0x50d   : > { %v1667_v14 = vmul.f32 0.25, %v1615_v12  ;;  %v3840_v15 = vpop.f32.mrb[21].mxu1 }
 0x50e   : > { %v1618_v16 = vpop.f32.mrb[22].mxu1 }
 0x50f   : > { %v3841_v17 = vpop.f32.mrb[23].mxu1  ;;  %v1669_v18 = vadd.f32 %v1667_v14, %v4405_v58  ;;  %v4071_v14 = vld [vmem:[%s4786_s27 + $0x50] sm:$0xff]  }
 0x511   : > { %v1671_v19 = vsel %vm1202_vm4, %v1669_v18, -inf }
 0x512   : > { %1672 = vmax.xlane.f32.xlu0 %v1671_v19  ;;  %v3522_v19 = vld [vmem:[%s4281_s28 + $0x2] ss:$0 sm:$0xff] }
 0x514   : > { %v1661_v20 = vpop.f32.mrb[24].mxu1 }
 0x515   : > { %v1668_v21 = vmul.f32 0.25, %v1661_v20  ;;  %v3846_v22 = vpop.f32.mrb[25].mxu1 }
 0x516   : > { %v1664_v23 = vpop.f32.mrb[26].mxu1 }
 0x517   : > { %v3847_v24 = vpop.f32.mrb[27].mxu1  ;;  %v1670_v25 = vadd.f32 %v1668_v21, %v4403_v53 }
 0x519   : > { %v1674_v26 = vsel %vm1202_vm4, %v1670_v25, -inf }
 0x51a   : > { %1675 = vmax.xlane.f32.xlu1 %v1674_v26 }
 0x59f   : > { %v1673_v27 = vpop.xlane.xlu0 %1672 }
 0x5a0   : > { %v1677_v28 = vsub.f32 %v1669_v18, %v1673_v27  ;;  %v4072_v18 = vld [vmem:[%s4786_s27 + $0x58] sm:$0xff]  }
 0x5a2   : > { %v1679_v29 = vmul.f32 1.442695, %v1677_v28 }
 0x5a4   : > { %4107 = vpow2.f32 %v1679_v29 }
 0x5a7   : > { %v1676_v30 = vpop.xlane.xlu1 %1675 }
 0x5a8   : > { %v1678_v31 = vsub.f32 %v1670_v25, %v1676_v30 }
 0x5aa   : > { %v1681_v32 = vmul.f32 1.442695, %v1678_v31 }
 0x5ac   : > { %4109 = vpow2.f32 %v1681_v32 }
 0x5ae   : > { %v4108_v33 = vpop.eup %4107 }
 0x5af   : > { %v1683_v34 = vsel %vm1202_vm4, %v4108_v33, 0.0 }
 0x5b0   : > { %1684 = vadd.xlane.f32.xlu0 %v1683_v34  ;;  %v3507_v34 = vld [vmem:[%s4787_s12 + $0x2] ss:$0 sm:$0xff] }
 0x5b6   : > { %v4110_v35 = vpop.eup %4109 }
 0x5b7   : > { %v1686_v36 = vsel %vm1202_vm4, %v4110_v35, 0.0 }
 0x5b8   : > { %1687 = vadd.xlane.f32.xlu1 %v1686_v36 }
 0x63d   : > { %v1685_v51 = vpop.xlane.xlu0 %1684 }
 0x63e   : > { %4111 = vrcp.f32 %v1685_v51  ;;  %v4076_v51 = vld [vmem:[%s4286_s20 + $0x58] sm:$0xff]  }
 0x645   : > { %v1688_v52 = vpop.xlane.xlu1 %1687 }
 0x646   : > { %4113 = vrcp.f32 %v1688_v52 }
 0x648   : > { %v4112_v54 = vpop.eup %4111 }
 0x649   : > { %v1691_v55 = vmul.f32 %v4112_v54, %v4108_v33 }
 0x64b   : > { %v1693_v56 = vpack.c.bf16 %v1691_v55, %v1691_v55 }
 0x64d   : > { %3851 = vmatmul.mubr.msk.bf16.vlgmr.msra.gmra.mrb[20].mxu0 %vm1202_vm4, %v1693_v56 }
 0x64e   : > { %3862 = vmatprep.mubr.msk.bf16.mxu0 %vm4150_vm1, %v4149_v3  ;;  %3861 = vmatpush3.bf16.msra.mxu0 %v4065_v0 }
 0x64f   : > { %3872 = vmatprep.subr.bf16.mxu0 %v4149_v3 }
 0x650   : > { %v4114_v57 = vpop.eup %4113 }
 0x651   : > { %v1692_v59 = vmul.f32 %v4114_v57, %v4110_v35 }
 0x653   : > { %v1694_v61 = vpack.c.bf16 %v1692_v59, %v1692_v59 }
 0x655   : > { %3857 = vmatmul.mubr.msk.bf16.vlgmr.msra.gmra.mrb[28].mxu1 %vm1202_vm4, %v1694_v61 }
 0x656   : > { %3867 = vmatpush3.bf16.msra.mxu1 %v4063_v60  ;;  %3868 = vmatprep.mubr.msk.bf16.mxu1 %vm4150_vm1, %v4149_v3 }
 0x657   : > { %3884 = vmatprep.subr.bf16.mxu1 %v4149_v3 }
 0x65d   : > { %3869 = vmatmul.mubr.msk.bf16.vlgmr.msra.gmra.mrb[32].mxu1 %vm1105_vm3, %v1324_v45 }
 0x65e   : > { %3892 = vmatprep.mubr.msk.bf16.mxu1 %vm4150_vm1, %v4149_v3  ;;  %3885 = vmatpush3.bf16.msra.mxu1 %v4064_v62 }
 0x65f   : > { %3886 = vmatprep.subr.bf16.mxu1 %v4149_v3 }
 0x662   : > { %3887 = vmatpush3.bf16.msra.mxu1 %v4066_v63 }
 0x663   : > { %3888 = vmatprep.subr.bf16.mxu1 %v4149_v3 }
 0x666   : > { %3889 = vmatpush3.bf16.msra.mxu1 %v4067_v1 }
 0x667   : > { %3890 = vmatprep.subr.bf16.mxu1 %v4149_v3 }
 0x66a   : > { %3891 = vmatpush3.bf16.msra.mxu1 %v4069_v40 }
 0x66b   : > { %3908 = vmatprep.subr.bf16.mxu1 %v4149_v3 }
 0x66d   : > { %3893 = vmatmul.mubr.msk.bf16.vlgmr.msra.gmra.mrb[36].mxu1 %vm896_vm2, %v4363_v13 }
 0x66e   : > { %3910 = vmatprep.mubr.msk.bf16.mxu1 %vm4150_vm1, %v4149_v3 }
 0x720   : > { %v1737_v44 = vpop.f32.mrb[20].mxu0 }
 0x721   : > { %v3852_v45 = vpop.f32.mrb[21].mxu0 }
 0x722   : > { %v1740_v2 = vpop.f32.mrb[22].mxu0 }
 0x723   : > { %v3853_v4 = vpop.f32.mrb[23].mxu0 }
 0x728   : > { %v1783_v5 = vpop.f32.mrb[28].mxu1 }
 0x729   : > { %v1792_v7 = vpack.c.bf16 %v1783_v5, %v1737_v44  ;;  %v3858_v8 = vpop.f32.mrb[29].mxu1 }
 0x72a   : > { %v1786_v9 = vpop.f32.mrb[30].mxu1 }
 0x72b   : > { %v3859_v10 = vpop.f32.mrb[31].mxu1  ;;  %3863 = vmatmul.mubr.msk.bf16.vlgmr.msra.gmra.mrb[24].mxu0 %vm1105_vm3, %v1792_v7 }
 0x72c   : > { %3873 = vmatpush3.bf16.msra.mxu0 %v4068_v6  ;;  %3880 = vmatprep.mubr.msk.bf16.mxu0 %vm4150_vm1, %v4149_v3 }
 0x72d   : > { %3874 = vmatprep.subr.bf16.mxu0 %v4149_v3 }
 0x730   : > { %3875 = vmatpush3.bf16.msra.mxu0 %v4070_v11  ;;  %v1886_v12 = vpop.f32.mrb[32].mxu1 }
 0x731   : > { %v3870_v15 = vpop.f32.mrb[33].mxu1  ;;  %3876 = vmatprep.subr.bf16.mxu0 %v4149_v3 }
 0x732   : > { %v1889_v16 = vpop.f32.mrb[34].mxu1 }
 0x733   : > { %v3871_v17 = vpop.f32.mrb[35].mxu1 }
 0x734   : > { %3877 = vmatpush3.bf16.msra.mxu0 %v4071_v14 }
 0x735   : > { %3878 = vmatprep.subr.bf16.mxu0 %v4149_v3 }
 0x738   : > { %3879 = vmatpush3.bf16.msra.mxu0 %v4072_v18 }
 0x739   : > { %3896 = vmatprep.subr.bf16.mxu0 %v4149_v3 }
 0x73b   : > { %3881 = vmatmul.mubr.msk.bf16.vlgmr.msra.gmra.mrb[28].mxu0 %vm896_vm2, %v4363_v13 }
 0x73c   : > { %3904 = vmatprep.mubr.msk.bf16.mxu0 %vm4150_vm1, %v4149_v3  ;;  %3897 = vmatpush3.bf16.msra.mxu0 %v4073_v48 }
 0x73d   : > { %3898 = vmatprep.subr.bf16.mxu0 %v4149_v3 }
 0x740   : > { %v2050_v20 = vpop.f32.mrb[36].mxu1  ;;  %3899 = vmatpush3.bf16.msra.mxu0 %v4074_v49 }
 0x741   : > { %v2051_v21 = vadd.f32 %v3522_v19, %v2050_v20  ;;  %v3894_v22 = vpop.f32.mrb[37].mxu1  ;;  %3900 = vmatprep.subr.bf16.mxu0 %v4149_v3 }
 0x742   : > { %v2053_v23 = vpop.f32.mrb[38].mxu1 }
 0x743   : > { %v2141_v24 = vpack.c.bf16 %v2051_v21, %v2051_v21  ;;  %v2054_v25 = vadd.f32 %v3522_v19, %v2053_v23  ;;  %v3895_v26 = vpop.f32.mrb[39].mxu1 }
 0x744   : > { %3901 = vmatpush3.bf16.msra.mxu0 %v4075_v50 }
 0x745   : > { %v2147_v27 = vsel %vm1105_vm3, %v2141_v24, 0  ;;  %v2142_v36 = vpack.c.bf16 %v2054_v25, %v2054_v25  ;;  %3902 = vmatprep.subr.bf16.mxu0 %v4149_v3 }
 0x746   : > { %3909 = vmatpush3.bf16.xpose.msra.mxu1 %v2147_v27 }
 0x747   : > { %3914 = vmatprep.subr.bf16.mxu1 %v4149_v3  ;;  %v2193_v43 = vsel %vm1105_vm3, %v2142_v36, 0  ;;  %v4082_v36 = vld [vmem:[%s4786_s27 + $0x68] sm:$0xff]  }
 0x748   : > { %3903 = vmatpush3.bf16.msra.mxu0 %v4076_v51 }
 0x749   : > { %3920 = vmatprep.subr.bf16.mxu0 %v4149_v3 }
 0x74b   : > { %3905 = vmatmul.mubr.msk.bf16.vlgmr.msra.gmra.mrb[32].mxu0 %vm896_vm2, %v4363_v13 }
 0x74c   : > { %3922 = vmatprep.mubr.msk.bf16.mxu0 %vm4150_vm1, %v4149_v3 }
 0x7fe   : > { %v1836_v28 = vpop.f32.mrb[24].mxu0 }
 0x7ff   : > { %v4535_v29 = vadd.f32 %v1886_v12, %v1836_v28  ;;  %v3864_v30 = vpop.f32.mrb[25].mxu0  ;;  %v3537_v12 = vld [vmem:[%s4291_s2 + $0x2] ss:$0 sm:$0xff] }
 0x800   : > { %v1839_v31 = vpop.f32.mrb[26].mxu0 }
 0x801   : > { %v4537_v32 = vadd.f32 %v1889_v16, %v1839_v31  ;;  %v3865_v33 = vpop.f32.mrb[27].mxu0 }
 0x80e   : > { %v1968_v35 = vpop.f32.mrb[28].mxu0 }
 0x80f   : > { %v1969_v37 = vadd.f32 %v3507_v34, %v1968_v35  ;;  %v3882_v38 = vpop.f32.mrb[29].mxu0  ;;  %v4080_v35 = vld [vmem:[%s4786_s27 + $0x60] sm:$0xff]  }
 0x810   : > { %v1971_v39 = vpop.f32.mrb[30].mxu0  ;;  %v4085_v38 = vld [vmem:[%s4786_s27 + $0x78] sm:$0xff]  }
 0x811   : > { %v2139_v41 = vpack.c.bf16 %v1969_v37, %v1969_v37  ;;  %v3883_v42 = vpop.f32.mrb[31].mxu0  ;;  %v1972_v46 = vadd.f32 %v3507_v34, %v1971_v39  ;;  %v4077_v34 = vld [vmem:[%s4301_s18 + $0x10] sm:$0xff]  }
 0x812   : > { %v4084_v37 = vld [vmem:[%s4786_s27 + $0x70] sm:$0xff]  }
 0x813   : > { %3911 = vmatmul.mubr.msk.bf16.vlgmr.msra.gmra.mrb[40].mxu1 %vm1105_vm3, %v2139_v41  ;;  %v2140_v47 = vpack.c.bf16 %v1972_v46, %v1972_v46 }
 0x814   : > { %3915 = vmatpush3.bf16.xpose.msra.mxu1 %v2193_v43  ;;  %3916 = vmatprep.mubr.msk.bf16.mxu1 %vm4150_vm1, %v4149_v3 }
 0x815   : > { %3926 = vmatprep.subr.bf16.mxu1 %v4149_v3 }
 0x81b   : > { %3917 = vmatmul.mubr.msk.bf16.vlgmr.msra.gmra.mrb[44].mxu1 %vm1105_vm3, %v2140_v47  ;;  %v4078_v47 = vld [vmem:[%s4785_s5 + $0x60] sm:$0xff]  }
 0x81c   : > { %3928 = vmatprep.mubr.msk.bf16.mxu1 %vm4150_vm1, %v4149_v3 }
 0x81e   : > { %v2132_v14 = vpop.f32.mrb[32].mxu0 }
 0x81f   : > { %v2133_v15 = vadd.f32 %v3537_v12, %v2132_v14  ;;  %v3906_v16 = vpop.f32.mrb[33].mxu0 }
 0x820   : > { %v2135_v19 = vpop.f32.mrb[34].mxu0  ;;  %v4086_v16 = vld [vmem:[%s4286_s20 + $0x60] sm:$0xff]  }
 0x821   : > { %v2263_v17 = vpack.c.bf16 %v2133_v15, %v2133_v15  ;;  %v3907_v20 = vpop.f32.mrb[35].mxu0  ;;  %v2136_v21 = vadd.f32 %v3537_v12, %v2135_v19  ;;  %v4089_v19 = vld [vmem:[%s4286_s20 + $0x78] sm:$0xff]  }
 0x823   : > { %v2269_v18 = vsel %vm1232_vm5, %v2263_v17, 0  ;;  %v2264_v22 = vpack.c.bf16 %v2136_v21, %v2136_v21  ;;  %v4087_v17 = vld [vmem:[%s4286_s20 + $0x68] sm:$0xff]  }
 0x824   : > { %3921 = vmatpush3.bf16.msra.mxu0 %v2269_v18  ;;  %v4088_v18 = vld [vmem:[%s4286_s20 + $0x70] sm:$0xff]  }
 0x825   : > { %3932 = vmatprep.subr.bf16.mxu0 %v4149_v3  ;;  %v2315_v23 = vsel %vm1232_vm5, %v2264_v22, 0 }
 0x826   : > { %3927 = vmatpush3.bf16.msra.mxu1 %v2315_v23 }
 0x827   : > { %3938 = vmatprep.subr.bf16.mxu1 %v4149_v3 }
 0x8e6   : > { %v2183_v52 = vpop.f32.mrb[40].mxu1 }
 0x8e7   : > { %v2235_v54 = vmul.f32 0.25, %v2183_v52  ;;  %v3912_v55 = vpop.f32.mrb[41].mxu1  ;;  %v4079_v52 = vld [vmem:[%s4785_s5 + $0x68] sm:$0xff]  }
 0x8e8   : > { %v2186_v56 = vpop.f32.mrb[42].mxu1  ;;  %v4083_v55 = vld [vmem:[%s4785_s5 + $0x78] sm:$0xff]  }
 0x8e9   : > { %v3913_v57 = vpop.f32.mrb[43].mxu1  ;;  %v2237_v59 = vadd.f32 %v2235_v54, %v4405_v58  ;;  %v4081_v54 = vld [vmem:[%s4785_s5 + $0x70] sm:$0xff]  }
 0x8eb   : > { %v2239_v60 = vsel %vm1202_vm4, %v2237_v59, -inf }
 0x8ec   : > { %2240 = vmax.xlane.f32.xlu0 %v2239_v60 }
 0x8ee   : > { %v2229_v61 = vpop.f32.mrb[44].mxu1 }
 0x8ef   : > { %v2236_v62 = vmul.f32 0.25, %v2229_v61  ;;  %v3918_v63 = vpop.f32.mrb[45].mxu1 }
 0x8f0   : > { %v2232_v0 = vpop.f32.mrb[46].mxu1 }
 0x8f1   : > { %v3919_v1 = vpop.f32.mrb[47].mxu1  ;;  %v2238_v40 = vadd.f32 %v2236_v62, %v4403_v53 }
 0x8f3   : > { %v2242_v44 = vsel %vm1202_vm4, %v2238_v40, -inf }
 0x8f4   : > { %2243 = vmax.xlane.f32.xlu1 %v2242_v44  ;;  %v3575_v44 = vld [vmem:[%s4281_s28 + $0x3] ss:$0 sm:$0xff]  ;;  %s4793_s28 = sld [smem:[#allocation18_spill]] (!%p3621_p5) }
 0x979   : > { %v2241_v45 = vpop.xlane.xlu0 %2240 }
 0x97a   : > { %v2245_v2 = vsub.f32 %v2237_v59, %v2241_v45 }
 0x97c   : > { %v2247_v4 = vmul.f32 1.442695, %v2245_v2 }
 0x97e   : > { %4115 = vpow2.f32 %v2247_v4 }
 0x981   : > { %v2244_v5 = vpop.xlane.xlu1 %2243 }
 0x982   : > { %v2246_v6 = vsub.f32 %v2238_v40, %v2244_v5 }
 0x984   : > { %v2249_v7 = vmul.f32 1.442695, %v2246_v6  ;;  %v3560_v6 = vld [vmem:[%s4787_s12 + $0x3] ss:$0 sm:$0xff] }
 0x986   : > { %4117 = vpow2.f32 %v2249_v7 }
 0x988   : > { %v4116_v8 = vpop.eup %4115 }
 0x989   : > { %v2251_v9 = vsel %vm1202_vm4, %v4116_v8, 0.0 }
 0x98a   : > { %2252 = vadd.xlane.f32.xlu0 %v2251_v9 }
 0x990   : > { %v4118_v10 = vpop.eup %4117 }
 0x991   : > { %v2254_v11 = vsel %vm1202_vm4, %v4118_v10, 0.0 }
 0x992   : > { %2255 = vadd.xlane.f32.xlu1 %v2254_v11 }
 0xa17   : > { %v2253_v24 = vpop.xlane.xlu0 %2252 }
 0xa18   : > { %4119 = vrcp.f32 %v2253_v24 }
 0xa1f   : > { %v2256_v25 = vpop.xlane.xlu1 %2255 }
 0xa20   : > { %4121 = vrcp.f32 %v2256_v25 }
 0xa22   : > { %v4120_v26 = vpop.eup %4119 }
 0xa23   : > { %v2259_v27 = vmul.f32 %v4120_v26, %v4116_v8 }
 0xa25   : > { %v2261_v28 = vpack.c.bf16 %v2259_v27, %v2259_v27 }
 0xa27   : > { %3923 = vmatmul.mubr.msk.bf16.vlgmr.msra.gmra.mrb[36].mxu0 %vm1202_vm4, %v2261_v28 }
 0xa28   : > { %3934 = vmatprep.mubr.msk.bf16.mxu0 %vm4150_vm1, %v4149_v3  ;;  %3933 = vmatpush3.bf16.msra.mxu0 %v4077_v34 }
 0xa29   : > { %3950 = vmatprep.subr.bf16.mxu0 %v4149_v3 }
 0xa2a   : > { %v4122_v30 = vpop.eup %4121 }
 0xa2b   : > { %v2260_v31 = vmul.f32 %v4122_v30, %v4118_v10 }
 0xa2d   : > { %v2262_v33 = vpack.c.bf16 %v2260_v31, %v2260_v31 }
 0xa2f   : > { %3929 = vmatmul.mubr.msk.bf16.vlgmr.msra.gmra.mrb[48].mxu1 %vm1202_vm4, %v2262_v33 }
 0xa30   : > { %3946 = vmatprep.mubr.msk.bf16.mxu1 %vm4150_vm1, %v4149_v3  ;;  %3939 = vmatpush3.bf16.msra.mxu1 %v4080_v35 }
 0xa31   : > { %3940 = vmatprep.subr.bf16.mxu1 %v4149_v3 }
 0xa34   : > { %3941 = vmatpush3.bf16.msra.mxu1 %v4082_v36 }
 0xa35   : > { %3942 = vmatprep.subr.bf16.mxu1 %v4149_v3 }
 0xa38   : > { %3943 = vmatpush3.bf16.msra.mxu1 %v4084_v37 }
 0xa39   : > { %3944 = vmatprep.subr.bf16.mxu1 %v4149_v3 }
 0xa3c   : > { %3945 = vmatpush3.bf16.msra.mxu1 %v4085_v38 }
 0xa3d   : > { %3962 = vmatprep.subr.bf16.mxu1 %v4149_v3 }
 0xa3f   : > { %3947 = vmatmul.mubr.msk.bf16.vlgmr.msra.gmra.mrb[52].mxu1 %vm896_vm2, %v4363_v13 }
 0xa40   : > { %3970 = vmatprep.mubr.msk.bf16.mxu1 %vm4150_vm1, %v4149_v3  ;;  %3963 = vmatpush3.bf16.msra.mxu1 %v4086_v16 }
 0xa41   : > { %3964 = vmatprep.subr.bf16.mxu1 %v4149_v3 }
 0xa44   : > { %3965 = vmatpush3.bf16.msra.mxu1 %v4087_v17 }
 0xa45   : > { %3966 = vmatprep.subr.bf16.mxu1 %v4149_v3 }
 0xa48   : > { %3967 = vmatpush3.bf16.msra.mxu1 %v4088_v18 }
 0xa49   : > { %3968 = vmatprep.subr.bf16.mxu1 %v4149_v3 }
 0xa4c   : > { %3969 = vmatpush3.bf16.msra.mxu1 %v4089_v19 }
 0xa4d   : > { %3986 = vmatprep.subr.bf16.mxu1 %v4149_v3 }
 0xa4f   : > { %3971 = vmatmul.mubr.msk.bf16.vlgmr.msra.gmra.mrb[56].mxu1 %vm896_vm2, %v4363_v13 }
 0xa50   : > { %3988 = vmatprep.mubr.msk.bf16.mxu1 %vm4150_vm1, %v4149_v3 }
 0xafa   : > { %v2305_v39 = vpop.f32.mrb[36].mxu0 }
 0xafb   : > { %v3924_v41 = vpop.f32.mrb[37].mxu0 }
 0xafc   : > { %v2308_v42 = vpop.f32.mrb[38].mxu0 }
 0xafd   : > { %v3925_v43 = vpop.f32.mrb[39].mxu0 }
 0xb02   : > { %v2351_v46 = vpop.f32.mrb[48].mxu1 }
 0xb03   : > { %v2360_v48 = vpack.c.bf16 %v2351_v46, %v2305_v39  ;;  %v3930_v49 = vpop.f32.mrb[49].mxu1 }
 0xb04   : > { %v2354_v50 = vpop.f32.mrb[50].mxu1 }
 0xb05   : > { %v3931_v51 = vpop.f32.mrb[51].mxu1  ;;  %3935 = vmatmul.mubr.msk.bf16.vlgmr.msra.gmra.mrb[40].mxu0 %vm1105_vm3, %v2360_v48 }
 0xb06   : > { %3951 = vmatpush3.bf16.msra.mxu0 %v4078_v47  ;;  %3958 = vmatprep.mubr.msk.bf16.mxu0 %vm4150_vm1, %v4149_v3 }
 0xb07   : > { %3952 = vmatprep.subr.bf16.mxu0 %v4149_v3 }
 0xb0a   : > { %3953 = vmatpush3.bf16.msra.mxu0 %v4079_v52 }
 0xb0b   : > { %3954 = vmatprep.subr.bf16.mxu0 %v4149_v3 }
 0xb0e   : > { %3955 = vmatpush3.bf16.msra.mxu0 %v4081_v54 }
 0xb0f   : > { %3956 = vmatprep.subr.bf16.mxu0 %v4149_v3 }
 0xb12   : > { %3957 = vmatpush3.bf16.msra.mxu0 %v4083_v55  ;;  %v2488_v56 = vpop.f32.mrb[52].mxu1 }
 0xb13   : > { %3974 = vmatprep.subr.bf16.mxu0 %v4149_v3  ;;  %v3948_v57 = vpop.f32.mrb[53].mxu1 }
 0xb14   : > { %v2491_v59 = vpop.f32.mrb[54].mxu1 }
 0xb15   : > { %3959 = vmatmul.mubr.msk.bf16.vlgmr.msra.gmra.mrb[44].mxu0 %vm896_vm2, %v4363_v13  ;;  %v3949_v60 = vpop.f32.mrb[55].mxu1  ;;  %v2492_v14 = vadd.f32 %v3560_v6, %v2491_v59 }
 0xb16   : > { %3976 = vmatprep.mubr.msk.bf16.mxu0 %vm4150_vm1, %v4149_v3 }
 0xb17   : > { %v2660_v15 = vpack.c.bf16 %v2492_v14, %v2492_v14 }
 0xb22   : > { %v2652_v47 = vpop.f32.mrb[56].mxu1 }
 0xb23   : > { %v3972_v49 = vpop.f32.mrb[57].mxu1 }
 0xb24   : > { %v2655_v52 = vpop.f32.mrb[58].mxu1 }
 0xb25   : > { %v3973_v55 = vpop.f32.mrb[59].mxu1 }
 0xbd8   : > { %v2404_v61 = vpop.f32.mrb[40].mxu0 }
 0xbd9   : > { %v4607_v62 = vadd.f32 %v2404_v61, %v4535_v29  ;;  %v3936_v63 = vpop.f32.mrb[41].mxu0  ;;  %v2489_v29 = vadd.f32 %v3560_v6, %v2488_v56 }
 0xbda   : > { %v2407_v0 = vpop.f32.mrb[42].mxu0 }
 0xbdb   : > { %v4610_v1 = vadd.f32 %v2407_v0, %v4537_v32  ;;  %v3937_v40 = vpop.f32.mrb[43].mxu0  ;;  %v2659_v11 = vpack.c.bf16 %v2489_v29, %v2489_v29 }
 0xbe8   : > { %v2570_v45 = vpop.f32.mrb[44].mxu0 }
 0xbe9   : > { %v2571_v2 = vadd.f32 %v3575_v44, %v2570_v45  ;;  %v3960_v4 = vpop.f32.mrb[45].mxu0 }
 0xbea   : > { %v2573_v5 = vpop.f32.mrb[46].mxu0 }
 0xbeb   : > { %v2661_v7 = vpack.c.bf16 %v2571_v2, %v2571_v2  ;;  %v3961_v8 = vpop.f32.mrb[47].mxu0  ;;  %v2574_v10 = vadd.f32 %v3575_v44, %v2573_v5  ;;  %v4090_v2 = vld [vmem:[%s4301_s18 + $0x18] sm:$0xff]  }
 0xbed   : > { %v2667_v9 = vsel %vm1105_vm3, %v2661_v7, 0  ;;  %v2662_v32 = vpack.c.bf16 %v2574_v10, %v2574_v10 }
 0xbee   : > { %3975 = vmatpush3.bf16.xpose.msra.mxu0 %v2667_v9 }
 0xbef   : > { %3980 = vmatprep.subr.bf16.mxu0 %v4149_v3  ;;  %v2713_v12 = vsel %vm1105_vm3, %v2662_v32, 0 }
 0xbf5   : > { %3977 = vmatmul.mubr.msk.bf16.vlgmr.msra.gmra.mrb[48].mxu0 %vm1105_vm3, %v2659_v11 }
 0xbf6   : > { %3981 = vmatpush3.bf16.xpose.msra.mxu0 %v2713_v12  ;;  %3982 = vmatprep.mubr.msk.bf16.mxu0 %vm4150_vm1, %v4149_v3 }
 0xbf7   : > { %3992 = vmatprep.subr.bf16.mxu0 %v4149_v3 }
 0xbfd   : > { %3983 = vmatmul.mubr.msk.bf16.vlgmr.msra.gmra.mrb[52].mxu0 %vm1105_vm3, %v2660_v15 }
 0xbfe   : > { %3994 = vmatprep.mubr.msk.bf16.mxu0 %vm4150_vm1, %v4149_v3 }
 0xcc8   : > { %v2703_v20 = vpop.f32.mrb[48].mxu0 }
 0xcc9   : > { %v2755_v21 = vmul.f32 0.25, %v2703_v20  ;;  %v3978_v22 = vpop.f32.mrb[49].mxu0 }
 0xcca   : > { %v2706_v23 = vpop.f32.mrb[50].mxu0 }
 0xccb   : > { %v3979_v24 = vpop.f32.mrb[51].mxu0  ;;  %v2757_v25 = vadd.f32 %v2755_v21, %v4405_v58  ;;  %v4139_v21 = vld [vmem:[#allocation2] sm:$0xff] }
 0xccc   : > { %v4140_v24 = vld [vmem:[#allocation2 + $0x8] sm:$0xff] }
 0xccd   : > { %v2759_v26 = vsel %vm1202_vm4, %v2757_v25, -inf }
 0xcce   : > { %2760 = vmax.xlane.f32.xlu0 %v2759_v26 }
 0xcd0   : > { %v2749_v27 = vpop.f32.mrb[52].mxu0 }
 0xcd1   : > { %v2756_v28 = vmul.f32 0.25, %v2749_v27  ;;  %v3984_v30 = vpop.f32.mrb[53].mxu0 }
 0xcd2   : > { %v2752_v31 = vpop.f32.mrb[54].mxu0 }
 0xcd3   : > { %v3985_v33 = vpop.f32.mrb[55].mxu0  ;;  %v2758_v13 = vadd.f32 %v2756_v28, %v4403_v53  ;;  %v3590_v53 = vld [vmem:[%s4291_s2 + $0x3] ss:$0 sm:$0xff]  ;;  %s4789_s2 = scalar_lea.vmem %s4742_s9, %s4259_s29 }
 0xcd4   : > { %v2653_v48 = vadd.f32 %v3590_v53, %v2652_v47  ;;  %v2656_v54 = vadd.f32 %v3590_v53, %v2655_v52  ;;  %v3604_v12 = vld [vmem:[%s4789_s2] ss:$0 sm:$0xff] }
 0xcd5   : > { %v2762_v34 = vsel %vm1202_vm4, %v2758_v13, -inf }
 0xcd6   : > { %2763 = vmax.xlane.f32.xlu1 %v2762_v34  ;;  %v2783_v50 = vpack.c.bf16 %v2653_v48, %v2653_v48  ;;  %v2784_v56 = vpack.c.bf16 %v2656_v54, %v2656_v54 }
 0xcd8   : > { %v2789_v51 = vsel %vm1232_vm5, %v2783_v50, 0  ;;  %v2835_v57 = vsel %vm1232_vm5, %v2784_v56, 0  ;;  %v3605_v50 = vld [vmem:[%s4790_s22] ss:$0 sm:$0xff] }
 0xcd9   : > { %3987 = vmatpush3.bf16.msra.mxu1 %v2789_v51  ;;  %3993 = vmatpush3.bf16.msra.mxu0 %v2835_v57  ;;  %v3606_v56 = vld [vmem:[%s4791_s3] ss:$0 sm:$0xff] }
 0xcda   : > { %3998 = vmatprep.subr.bf16.mxu1 %v4149_v3  ;;  %4004 = vmatprep.subr.bf16.mxu0 %v4149_v3 }
 0xd5b   : > { %v2761_v35 = vpop.xlane.xlu0 %2760 }
 0xd5c   : > { %v2765_v36 = vsub.f32 %v2757_v25, %v2761_v35 }
 0xd5e   : > { %v2767_v37 = vmul.f32 1.442695, %v2765_v36  ;;  %v4091_v36 = vld [vmem:[%s4314_s6] sm:$0xff]  }
 0xd60   : > { %4123 = vpow2.f32 %v2767_v37  ;;  %v4092_v37 = vld [vmem:[%s4314_s6 + $0x8] sm:$0xff]  }
 0xd63   : > { %v2764_v38 = vpop.xlane.xlu1 %2763 }
 0xd64   : > { %v2766_v58 = vsub.f32 %v2758_v13, %v2764_v38  ;;  %v4093_v38 = vld [vmem:[%s4314_s6 + $0x10] sm:$0xff]  }
 0xd66   : > { %v2769_v39 = vmul.f32 1.442695, %v2766_v58  ;;  %v4094_v58 = vld [vmem:[%s4314_s6 + $0x18] sm:$0xff]  }
 0xd68   : > { %4125 = vpow2.f32 %v2769_v39  ;;  %v4095_v39 = vld [vmem:[%s4323_s7] sm:$0xff]  }
 0xd6a   : > { %v4124_v41 = vpop.eup %4123 }
 0xd6b   : > { %v2771_v42 = vsel %vm1202_vm4, %v4124_v41, 0.0 }
 0xd6c   : > { %2772 = vadd.xlane.f32.xlu0 %v2771_v42 }
 0xd72   : > { %v4126_v43 = vpop.eup %4125 }
 0xd73   : > { %v2774_v46 = vsel %vm1202_vm4, %v4126_v43, 0.0 }
 0xd74   : > { %2775 = vadd.xlane.f32.xlu1 %v2774_v46 }
 0xdf9   : > { %v2773_v59 = vpop.xlane.xlu0 %2772 }
 0xdfa   : > { %4127 = vrcp.f32 %v2773_v59 }
 0xe01   : > { %v2776_v60 = vpop.xlane.xlu1 %2775 }
 0xe02   : > { %4129 = vrcp.f32 %v2776_v60 }
 0xe04   : > { %v4128_v61 = vpop.eup %4127 }
 0xe05   : > { %v2779_v63 = vmul.f32 %v4128_v61, %v4124_v41  ;;  %v4096_v41 = vld [vmem:[%s4323_s7 + $0x8] sm:$0xff]  }
 0xe07   : > { %v2781_v0 = vpack.c.bf16 %v2779_v63, %v2779_v63  ;;  %v4097_v63 = vld [vmem:[%s4323_s7 + $0x10] sm:$0xff]  }
 0xe09   : > { %3989 = vmatmul.mubr.msk.bf16.vlgmr.msra.gmra.mrb[60].mxu1 %vm1202_vm4, %v2781_v0  ;;  %v4098_v0 = vld [vmem:[%s4323_s7 + $0x18] sm:$0xff]  }
 0xe0a   : > { %4000 = vmatprep.mubr.msk.bf16.mxu1 %vm4150_vm1, %v4149_v3  ;;  %3999 = vmatpush3.bf16.msra.mxu1 %v4090_v2 }
 0xe0b   : > { %4016 = vmatprep.subr.bf16.mxu1 %v4149_v3 }
 0xe0c   : > { %v4130_v40 = vpop.eup %4129 }
 0xe0d   : > { %v2780_v44 = vmul.f32 %v4130_v40, %v4126_v43  ;;  %v3607_v40 = vld [vmem:[%s795_s25] ss:$0 sm:$0xff] }
 0xe0f   : > { %v2782_v45 = vpack.c.bf16 %v2780_v44, %v2780_v44 }
 0xe11   : > { %3995 = vmatmul.mubr.msk.bf16.vlgmr.msra.gmra.mrb[56].mxu0 %vm1202_vm4, %v2782_v45 }
 0xe12   : > { %4012 = vmatprep.mubr.msk.bf16.mxu0 %vm4150_vm1, %v4149_v3  ;;  %4005 = vmatpush3.bf16.msra.mxu0 %v4091_v36 }
 0xe13   : > { %4006 = vmatprep.subr.bf16.mxu0 %v4149_v3 }
 0xe16   : > { %4007 = vmatpush3.bf16.msra.mxu0 %v4092_v37 }
 0xe17   : > { %4008 = vmatprep.subr.bf16.mxu0 %v4149_v3 }
 0xe1a   : > { %4009 = vmatpush3.bf16.msra.mxu0 %v4093_v38  ;;  %v3620_v38 = vld [vmem:[%s809_s8] ss:$0 sm:$0xff] }
 0xe1b   : > { %4010 = vmatprep.subr.bf16.mxu0 %v4149_v3 }
 0xe1e   : > { %4011 = vmatpush3.bf16.msra.mxu0 %v4094_v58 }
 0xedc   : > { %v2825_v4 = vpop.f32.mrb[60].mxu1 }
 0xedd   : > { %v3990_v5 = vpop.f32.mrb[61].mxu1 }
 0xede   : > { %v2828_v6 = vpop.f32.mrb[62].mxu1 }
 0xedf   : > { %v3991_v7 = vpop.f32.mrb[63].mxu1 }
 0xee4   : > { %v2871_v8 = vpop.f32.mrb[56].mxu0 }
 0xee5   : > { %v2880_v9 = vpack.c.bf16 %v2871_v8, %v2825_v4  ;;  %v3996_v10 = vpop.f32.mrb[57].mxu0 }
 0xee6   : > { %v2874_v29 = vpop.f32.mrb[58].mxu0 }
 0xee7   : > { %v3997_v32 = vpop.f32.mrb[59].mxu0  ;;  %4001 = vmatmul.mubr.msk.bf16.vlgmr.msra.gmra.mrb[64].mxu1 %vm1105_vm3, %v2880_v9 }
 0xee8   : > { %4024 = vmatprep.mubr.msk.bf16.mxu1 %vm4150_vm1, %v4149_v3  ;;  %4017 = vmatpush3.bf16.msra.mxu1 %v4095_v39 }
 0xee9   : > { %4018 = vmatprep.subr.bf16.mxu1 %v4149_v3 }
 0xeec   : > { %4019 = vmatpush3.bf16.msra.mxu1 %v4096_v41 }
 0xeed   : > { %4020 = vmatprep.subr.bf16.mxu1 %v4149_v3 }
 0xef0   : > { %4021 = vmatpush3.bf16.msra.mxu1 %v4097_v63 }
 0xef1   : > { %4022 = vmatprep.subr.bf16.mxu1 %v4149_v3  ;;  %v3613_v3 = vld [vmem:[%s803_s30] ss:$0 sm:$0xff] }
 0xef4   : > { %4023 = vmatpush3.bf16.msra.mxu1 %v4098_v0 }
 0xfba   : > { %v2924_v11 = vpop.f32.mrb[64].mxu1 }
 0xfbb   : > { %v2931_v14 = vadd.f32 %v2924_v11, %v4607_v62  ;;  %v4002_v15 = vpop.f32.mrb[65].mxu1 }
 0xfbc   : > { %v2927_v16 = vpop.f32.mrb[66].mxu1 }
 0xfbd   : > { %v2940_v17 = vadd.f32 %v3604_v12, %v2931_v14  ;;  %v2932_v18 = vadd.f32 %v2927_v16, %v4610_v1  ;;  %v4003_v19 = vpop.f32.mrb[67].mxu1 }
 0xfbf   : > { %v2941_v20 = vadd.f32 %v3604_v12, %v2932_v18  ;;  %v2942_v22 = vadd.f32 %v4139_v21, %v2940_v17 }
 0xfc1   : > { %v2946_v23 = vsel %vm896_vm2, %v2942_v22, 0.0  ;;  %v2943_v25 = vadd.f32 %v4140_v24, %v2941_v20 }
 0xfc2   : > { %2947 = vadd.xlane.f32.xlu0 %v2946_v23 }
 0xfc3   : > { %v2949_v26 = vsel %vm896_vm2, %v2943_v25, 0.0 }
 0xfc4   : > { %2950 = vadd.xlane.f32.xlu1 %v2949_v26 }
0x104f   : > { %v2948_v62 = vpop.xlane.xlu0 %2947 }
0x1050   : > { %v2953_v27 = vmul.f32 0.015625, %v2948_v62 }
0x1051   : > { %v2951_v28 = vpop.xlane.xlu1 %2950 }
0x1052   : > { %v2955_v30 = vsub.f32 %v2942_v22, %v2953_v27  ;;  %v2954_v1 = vmul.f32 0.015625, %v2951_v28 }
0x1054   : > { %v2956_v31 = vsub.f32 %v2943_v25, %v2954_v1  ;;  %v2957_v33 = vmul.f32 %v2955_v30, %v2955_v30 }
0x1056   : > { %v2959_v13 = vsel %vm896_vm2, %v2957_v33, 0.0  ;;  %v2958_v34 = vmul.f32 %v2956_v31, %v2956_v31 }
0x1057   : > { %2960 = vadd.xlane.f32.xlu0 %v2959_v13 }
0x1058   : > { %v2962_v35 = vsel %vm896_vm2, %v2958_v34, 0.0 }
0x1059   : > { %2963 = vadd.xlane.f32.xlu1 %v2962_v35  ;;  %v3619_v35 = vld [vmem:[%s806_s21] ss:$0 sm:$0xff] }
0x10e4   : > { %v2961_v42 = vpop.xlane.xlu0 %2960 }
0x10e5   : > { %v2965_v43 = vmul.f32 0.015625, %v2961_v42 }
0x10e6   : > { %v2964_v46 = vpop.xlane.xlu1 %2963 }
0x10e7   : > { %v2967_v53 = vadd.f32 1e-05, %v2965_v43  ;;  %v2966_v47 = vmul.f32 0.015625, %v2964_v46 }
0x10e9   : > { %4131 = vrsqrt.f32 %v2967_v53  ;;  %v2968_v48 = vadd.f32 1e-05, %v2966_v47 }
0x10eb   : > { %4133 = vrsqrt.f32 %v2968_v48 }
0x10f3   : > { %v4132_v49 = vpop.eup %4131 }
0x10f4   : > { %v2971_v51 = vmul.f32 %v4132_v49, %v2955_v30 }
0x10f5   : > { %v4134_v52 = vpop.eup %4133 }
0x10f6   : > { %v2979_v54 = vmul.f32 %v3605_v50, %v2971_v51  ;;  %v2972_v55 = vmul.f32 %v4134_v52, %v2956_v31 }
0x10f8   : > { %v2980_v57 = vmul.f32 %v3605_v50, %v2972_v55  ;;  %v2987_v59 = vadd.f32 %v3606_v56, %v2979_v54 }
0x10fa   : > { %v2988_v60 = vadd.f32 %v3606_v56, %v2980_v57 }
0x10fc   : > { %v2989_v61 = vpack.c.bf16 %v2988_v60, %v2987_v59 }
0x10fe   : > { %4013 = vmatmul.mubr.msk.bf16.vlgmr.msra.gmra.mrb[60].mxu0 %vm896_vm2, %v2989_v61 }
0x11d1   : > { %v3066_v44 = vpop.f32.mrb[60].mxu0 }
0x11d2   : > { %v3067_v45 = vadd.f32 %v3607_v40, %v3066_v44  ;;  %v4014_v2 = vpop.f32.mrb[61].mxu0 }
0x11d3   : > { %v3069_v4 = vpop.f32.mrb[62].mxu0 }
0x11d4   : > { %v3070_v5 = vadd.f32 %v3607_v40, %v3069_v4  ;;  %v4015_v6 = vpop.f32.mrb[63].mxu0  ;;  %v3073_v7 = vmax.f32 %v3067_v45, 0.0 }
0x11d6   : > { %v3074_v8 = vmax.f32 %v3070_v5, 0.0 }
0x11d8   : > { %v3083_v9 = vpack.c.bf16 %v3074_v8, %v3073_v7 }
0x11da   : > { %4025 = vmatmul.mubr.msk.bf16.vlgmr.msra.gmra.mrb[68].mxu1 %vm896_vm2, %v3083_v9 }
0x12ad   : > { %v3152_v10 = vpop.f32.mrb[68].mxu1 }
0x12ae   : > { %v3153_v29 = vadd.f32 %v3613_v3, %v3152_v10  ;;  %v4026_v32 = vpop.f32.mrb[69].mxu1 }
0x12af   : > { %v3155_v11 = vpop.f32.mrb[70].mxu1 }
0x12b0   : > { %v3156_v12 = vadd.f32 %v3613_v3, %v3155_v11  ;;  %v4027_v14 = vpop.f32.mrb[71].mxu1  ;;  %v3159_v15 = vadd.f32 %v3153_v29, %v2987_v59 }
0x12b2   : > { %v3163_v16 = vsel %vm896_vm2, %v3159_v15, 0.0  ;;  %v3160_v17 = vadd.f32 %v3156_v12, %v2988_v60 }
0x12b3   : > { %3164 = vadd.xlane.f32.xlu0 %v3163_v16 }
0x12b4   : > { %v3166_v18 = vsel %vm896_vm2, %v3160_v17, 0.0 }
0x12b5   : > { %3167 = vadd.xlane.f32.xlu1 %v3166_v18 }
0x1340   : > { %v3165_v19 = vpop.xlane.xlu0 %3164 }
0x1341   : > { %v3169_v20 = vmul.f32 0.015625, %v3165_v19 }
0x1342   : > { %v3168_v21 = vpop.xlane.xlu1 %3167 }
0x1343   : > { %v3171_v22 = vsub.f32 %v3159_v15, %v3169_v20  ;;  %v3170_v23 = vmul.f32 0.015625, %v3168_v21 }
0x1345   : > { %v3172_v24 = vsub.f32 %v3160_v17, %v3170_v23  ;;  %v3173_v25 = vmul.f32 %v3171_v22, %v3171_v22 }
0x1347   : > { %v3175_v26 = vsel %vm896_vm2, %v3173_v25, 0.0  ;;  %v3174_v62 = vmul.f32 %v3172_v24, %v3172_v24 }
0x1348   : > { %3176 = vadd.xlane.f32.xlu0 %v3175_v26 }
0x1349   : > { %v3178_v27 = vsel %vm896_vm2, %v3174_v62, 0.0 }
0x134a   : > { %3179 = vadd.xlane.f32.xlu1 %v3178_v27 }
0x13d5   : > { %v3177_v28 = vpop.xlane.xlu0 %3176 }
0x13d6   : > { %v3181_v30 = vmul.f32 0.015625, %v3177_v28 }
0x13d7   : > { %v3180_v1 = vpop.xlane.xlu1 %3179 }
0x13d8   : > { %v3183_v31 = vadd.f32 1e-05, %v3181_v30  ;;  %v3182_v33 = vmul.f32 0.015625, %v3180_v1 }
0x13da   : > { %4135 = vrsqrt.f32 %v3183_v31  ;;  %v3184_v13 = vadd.f32 1e-05, %v3182_v33 }
0x13dc   : > { %4137 = vrsqrt.f32 %v3184_v13 }
0x13e4   : > { %v4136_v34 = vpop.eup %4135 }
0x13e5   : > { %v3187_v36 = vmul.f32 %v4136_v34, %v3171_v22 }
0x13e6   : > { %v4138_v37 = vpop.eup %4137 }
0x13e7   : > { %v3195_v58 = vmul.f32 %v3619_v35, %v3187_v36  ;;  %v3188_v39 = vmul.f32 %v4138_v37, %v3172_v24  ;;  %3210 = sbr.rel (%p3621_p5) target bundleno = 5102 (0x13ee), region = 100 }
0x13e9   : > { %v3203_v41 = vadd.f32 %v3620_v38, %v3195_v58  ;;  %v3196_v42 = vmul.f32 %v3619_v35, %v3188_v39 }
0x13eb   : > { %3205 = vst.msk [vmem:[#allocation2] sm:$0xff] %vm896_vm2, %v3203_v41  ;;  %v3204_v43 = vadd.f32 %v3620_v38, %v3196_v42  ;;  %3211 = vst.msk [vmem:[%s4793_s28] sm:$0xff] (!%p3621_p5), %vm896_vm2, %v3203_v41 }
0x13ed   : > { %3206 = vst.msk [vmem:[#allocation2 + $0x8] sm:$0xff] %vm896_vm2, %v3204_v43  ;;  %3212 = vst.msk [vmem:[%s4793_s28 + $0x8] sm:$0xff] (!%p3621_p5), %vm896_vm2, %v3204_v43 }
0x13ee PF: > { %s4794_s20 = sld [smem:[#allocation3_spill]] }
0x13f4   : > { %s28_s27 = sadd.s32 1, %s4794_s20  }
0x13f5   : > { %p25_p6 = scmp.ge.s32.totalorder %s28_s27, 4  }
0x13f7   :  { %27 = sbr.rel (!%p25_p6) target bundleno = 12 (0xc), region = 192 }

// kernel: forward.3
= control target key start
LH: loop header
LB: loop body
LE: loop exit
PB: predicated region body
PF: predicated region fallthrough
CT: control target
= control target key end

     0   :  { %s7051_s6 = smov 1   ;;  %s7052_s10 = smov 2   ;;  %s7957_s0 = inlined_call_operand.smem [shape: u32[31], index: -1, kind: input, shape index: {}] }
   0x1   :  { %s7097_s5 = sld [smem:[%s7957_s0]]   ;;  %s7053_s14 = smov 3  }
   0x2   :  { %s7102_s9 = sld [smem:[%s7957_s0 + %s7051_s6]]   ;;  %s7054_s18 = smov 4  }
   0x3   :  { %s7107_s13 = sld [smem:[%s7957_s0 + %s7052_s10]]   ;;  %s7055_s22 = smov 5  }
   0x4   :  { %s7112_s17 = sld [smem:[%s7957_s0 + %s7053_s14]]   ;;  %s7056_s26 = smov 6  }
   0x5   :  { %s7117_s21 = sld [smem:[%s7957_s0 + %s7054_s18]]   ;;  %s7057_s30 = smov 7  }
   0x6   :  { %s7122_s25 = sld [smem:[%s7957_s0 + %s7055_s22]]   ;;  %s7058_s4 = smov 8  }
   0x7   :  { %7975 = sst [smem:[#allocation6_spill]] %s7097_s5  ;;  %s7059_s10 = smov 9  }
   0x8   :  { %7976 = sst [smem:[#allocation7_spill]] %s7102_s9  ;;  %s7060_s15 = smov 10  }
   0x9   :  { %7977 = sst [smem:[#allocation8_spill]] %s7107_s13  ;;  %s7061_s20 = smov 11  }
   0xa   :  { %7978 = sst [smem:[#allocation9_spill]] %s7112_s17  ;;  %s7063_s1 = smov 13  }
   0xb   :  { %7979 = sst [smem:[#allocation10_spill]] %s7117_s21  ;;  %s7064_s7 = smov 14  }
   0xc   :  { %7980 = sst [smem:[#allocation11_spill]] %s7122_s25  ;;  %s7066_s22 = smov 16  }
   0xd   :  { %s7127_s29 = sld [smem:[%s7957_s0 + %s7056_s26]]   ;;  %s7062_s26 = smov 12  }
   0xe   :  { %s7132_s3 = sld [smem:[%s7957_s0 + %s7057_s30]]   ;;  %s7067_s28 = smov 17  }
   0xf   :  { %s7137_s8 = sld [smem:[%s7957_s0 + %s7058_s4]]  }
  0x10   :  { %s7142_s14 = sld [smem:[%s7957_s0 + %s7059_s10]]  }
  0x11   :  { %s7147_s19 = sld [smem:[%s7957_s0 + %s7060_s15]]   ;;  %s7065_s15 = smov 15  }
  0x12   :  { %s7152_s24 = sld [smem:[%s7957_s0 + %s7061_s20]]  }
  0x13   :  { %7981 = sst [smem:[#allocation12_spill]] %s7127_s29 }
  0x14   :  { %7982 = sst [smem:[#allocation13_spill]] %s7132_s3 }
  0x15   :  { %7983 = sst [smem:[#allocation14_spill]] %s7137_s8 }
  0x16   :  { %7984 = sst [smem:[#allocation15_spill]] %s7142_s14 }
  0x17   :  { %7985 = sst [smem:[#allocation16_spill]] %s7147_s19 }
  0x18   :  { %7986 = sst [smem:[#allocation17_spill]] %s7152_s24 }
  0x19   :  { %s7157_s30 = sld [smem:[%s7957_s0 + %s7062_s26]]  }
  0x1a   :  { %s7162_s6 = sld [smem:[%s7957_s0 + %s7063_s1]]  }
  0x1b   :  { %s7167_s12 = sld [smem:[%s7957_s0 + %s7064_s7]]   ;;  %s7068_s7 = smov 18  }
  0x1c   :  { %s7172_s20 = sld [smem:[%s7957_s0 + %s7065_s15]]   ;;  %s7069_s15 = smov 19  }
  0x1d   :  { %s7177_s27 = sld [smem:[%s7957_s0 + %s7066_s22]]   ;;  %s7070_s22 = smov 20  }
  0x1e   :  { %s7182_s4 = sld [smem:[%s7957_s0 + %s7067_s28]]   ;;  %s7071_s28 = smov 21  }
  0x1f   :  { %7987 = sst [smem:[#allocation18_spill]] %s7157_s30 }
  0x20   :  { %7988 = sst [smem:[#allocation19_spill]] %s7162_s6 }
  0x21   :  { %7989 = sst [smem:[#allocation20_spill]] %s7167_s12 }
  0x22   :  { %7990 = sst [smem:[#allocation21_spill]] %s7172_s20 }
  0x23   :  { %7991 = sst [smem:[#allocation22_spill]] %s7177_s27 }
  0x24   :  { %7992 = sst [smem:[#allocation23_spill]] %s7182_s4 }
  0x25   :  { %s7187_s9 = sld [smem:[%s7957_s0 + %s7068_s7]]   ;;  %s7072_s7 = smov 22  }
  0x26   :  { %s7192_s13 = sld [smem:[%s7957_s0 + %s7069_s15]]   ;;  %s7073_s15 = smov 23  }
  0x27   :  { %s7197_s5 = sld [smem:[%s7957_s0 + %s7070_s22]]   ;;  %s7074_s22 = smov 24  }
  0x28   :  { %s7202_s4 = sld [smem:[%s7957_s0 + %s7071_s28]]   ;;  %s7075_s28 = smov 25  }
  0x2b   :  { %7993 = sst [smem:[#allocation24_spill]] %s7187_s9 }
  0x2c   :  { %7994 = sst [smem:[#allocation25_spill]] %s7192_s13 }
  0x2d   :  { %7995 = sst [smem:[#allocation26_spill]] %s7197_s5 }
  0x2e   :  { %7996 = sst [smem:[#allocation27_spill]] %s7202_s4 }
  0x2f   :  { %s7207_s9 = sld [smem:[%s7957_s0 + %s7072_s7]]   ;;  %s7076_s7 = smov 26  }
  0x30   :  { %s7212_s13 = sld [smem:[%s7957_s0 + %s7073_s15]]   ;;  %s7077_s15 = smov 27  }
  0x31   :  { %s7217_s5 = sld [smem:[%s7957_s0 + %s7074_s22]]   ;;  %s7078_s22 = smov 28  }
  0x32   :  { %s7222_s4 = sld [smem:[%s7957_s0 + %s7075_s28]]   ;;  %s7079_s28 = smov 29  }
  0x35   :  { %7997 = sst [smem:[#allocation28_spill]] %s7207_s9 }
  0x36   :  { %7998 = sst [smem:[#allocation29_spill]] %s7212_s13 }
  0x37   :  { %7999 = sst [smem:[#allocation30_spill]] %s7217_s5 }
  0x38   :  { %8000 = sst [smem:[#allocation31_spill]] %s7222_s4 }
  0x39   :  { %s7227_s9 = sld [smem:[%s7957_s0 + %s7076_s7]]   ;;  %s7080_s7 = smov 30  }
  0x3a   :  { %s7232_s13 = sld [smem:[%s7957_s0 + %s7077_s15]]  }
  0x3b   :  { %s7237_s5 = sld [smem:[%s7957_s0 + %s7078_s22]]  }
  0x3c   :  { %s7242_s4 = sld [smem:[%s7957_s0 + %s7079_s28]]  }
  0x3f   :  { %8001 = sst [smem:[#allocation32_spill]] %s7227_s9 }
  0x40   :  { %s7247_s9 = sld [smem:[%s7957_s0 + %s7080_s7]]  }
  0x41   :  { %8002 = sst [smem:[#allocation33_spill]] %s7237_s5 }
  0x42   :  { %8003 = sst [smem:[#allocation34_spill]] %s7242_s4 }
  0x46   :  { %8004 = sst [smem:[#allocation35_spill]] %s7247_s9 }
  0x47   :  { %66 = vsyncpa [#allocation4], 0  ;;  %s7249_s15 = smov 0  }
  0x48 LB: > { %8005 = sst [smem:[#allocation36_spill]] %s7049_s15  ;;  %s7255_s16 = sadd.s32 4294967295, %s7049_s15   ;;  %s7049_s15 = sphi %s7249_s15, %s72_s15  }
  0x49   : > { %8006 = sst [smem:[#allocation37_spill]] %s7255_s16  ;;  %p5908_p0 = scmp.ge.s32.totalorder %s7049_s15, 1 }
  0x4a   : > { %p1063_p1 = scmp.lt.s32.totalorder %s7049_s15, 3 }
  0x4c   : > { %p1064_p2 = pnand %p5908_p0, %p1063_p1 }
  0x4e   : > { %1067 = sbr.rel (%p1064_p2) target bundleno = 9586 (0x2572), region = 140 }
  0x55   : > { %s8007_s17 = sld [smem:[#allocation9_spill]]  ;;  %s8008_s21 = sld [smem:[#allocation10_spill]] }
  0x56   : > { %s8009_s25 = sld [smem:[#allocation11_spill]]  ;;  %s8010_s29 = sld [smem:[#allocation12_spill]] }
  0x57   : > { %s8011_s3 = sld [smem:[#allocation13_spill]]  ;;  %s8012_s8 = sld [smem:[#allocation14_spill]] }
  0x58   : > { %s8014_s14 = sld [smem:[#allocation15_spill]]  ;;  %s8017_s6 = sld [smem:[#allocation19_spill]] }
  0x59   : > { %p1235_p3 = scmp.lt.s32.totalorder %s7255_s16, 1  ;;  %s8018_s12 = sld [smem:[#allocation20_spill]] }
  0x5a   : > { %s8019_s20 = sld [smem:[#allocation21_spill]]  ;;  %s8020_s27 = sld [smem:[#allocation22_spill]] }
  0x5b   : > { %s7261_s0 = scalar_select %p1235_p3, %s7255_s16, 1 }
  0x5c   : > { %s8021_s23 = sld [smem:[#allocation23_spill]]  ;;  %s8023_s28 = sld [smem:[#allocation24_spill]] }
  0x5d   : > { %s6194_s18 = sshll.u32 %s7261_s0, 6  ;;  %s5911_s22 = sshll.u32 %s7261_s0, 2 }
  0x5e   : > { %s7266_s26 = scalar_lea.vmem %s8007_s17, %s6194_s18  ;;  %s7269_s1 = scalar_lea.vmem %s8008_s21, %s5911_s22 }
  0x5f   : > { %8022 = sst [smem:[#allocation38_spill]] %s7266_s26  ;;  %s8025_s2 = sld [smem:[#allocation25_spill]] }
  0x60   : > { %8024 = sst [smem:[#allocation39_spill]] %s7269_s1  ;;  %s7272_s7 = scalar_lea.vmem %s8009_s25, %s6194_s18 }
  0x61   : > { %8026 = sst [smem:[#allocation40_spill]] %s7272_s7  ;;  %s8027_s10 = sld [smem:[#allocation26_spill]] }
  0x62   : > { %s7275_s11 = scalar_lea.vmem %s8010_s29, %s5911_s22  ;;  %s8029_s15 = sld [smem:[#allocation27_spill]] }
  0x63   : > { %8028 = sst [smem:[#allocation41_spill]] %s7275_s11  ;;  %s7278_s9 = scalar_lea.vmem %s8011_s3, %s6194_s18 }
  0x64   : > { %8030 = sst [smem:[#allocation42_spill]] %s7278_s9  ;;  %s8031_s4 = sld [smem:[#allocation28_spill]] }
  0x65   : > { %s7281_s16 = scalar_lea.vmem %s8012_s8, %s5911_s22  ;;  %s8033_s17 = sld [smem:[#allocation29_spill]] }
  0x66   : > { %8032 = sst [smem:[#allocation43_spill]] %s7281_s16  ;;  %s6197_s26 = sshll.u32 %s7261_s0, 4 }
  0x67   : > { %s8034_s21 = sld [smem:[#allocation30_spill]]  ;;  %s7287_s25 = scalar_lea.vmem %s8014_s14, %s6197_s26 }
  0x68   : > { %8035 = sst [smem:[#allocation44_spill]] %s7287_s25  ;;  %s8036_s7 = sld [smem:[#allocation31_spill]] }
  0x69   : > { %s8037_s29 = sld [smem:[#allocation32_spill]]  ;;  %s7294_s3 = scalar_lea.vmem %s8017_s6, %s6194_s18 }
  0x6a   : > { %8038 = sst [smem:[#allocation45_spill]] %s7294_s3  ;;  %s8039_s8 = sld [smem:[#allocation33_spill]] }
  0x6b   : > { %s7297_s16 = scalar_lea.vmem %s8018_s12, %s5911_s22  ;;  %s7300_s9 = scalar_lea.vmem %s8019_s20, %s6194_s18 }
  0x6c   : > { %8040 = sst [smem:[#allocation46_spill]] %s7297_s16  ;;  %s7303_s1 = scalar_lea.vmem %s8020_s27, %s5911_s22 }
  0x6d   : > { %8041 = sst [smem:[#allocation47_spill]] %s7300_s9  ;;  %s7306_s19 = scalar_lea.vmem %s8021_s23, %s6194_s18 }
  0x6e   : > { %s7309_s14 = scalar_lea.vmem %s8023_s28, %s5911_s22  ;;  %s7312_s5 = scalar_lea.vmem %s8025_s2, %s6197_s26 }
  0x6f   : > { %s1310_s24 = scalar_lea.vmem %s8027_s10, %s7261_s0  ;;  %s1313_s11 = scalar_lea.vmem %s8029_s15, %s7261_s0 }
  0x70   : > { %s1316_s30 = scalar_lea.vmem %s8031_s4, %s7261_s0  ;;  %s7321_s25 = scalar_lea.vmem %s8033_s17, %s6197_s26 }
  0x71   : > { %s1324_s6 = scalar_lea.vmem %s8034_s21, %s7261_s0  ;;  %s6203_s3 = sshll.u32 %s7261_s0, 5 }
  0x72   : > { %s7327_s12 = scalar_lea.vmem %s8036_s7, %s6203_s3  ;;  %s1332_s16 = scalar_lea.vmem %s8037_s29, %s7261_s0 }
  0x73   : > { %s1335_s20 = scalar_lea.vmem %s7232_s13, %s7261_s0  ;;  %s1338_s9 = scalar_lea.vmem %s8039_s8, %s7261_s0 }
  0x74   : > { %s8042_s27 = sld [smem:[#allocation37_spill]] }
  0x7a   : > { %p5935_p4 = scmp.ne.s32.totalorder %s8042_s27, 0 }
  0x7b   : > { %s8043_s18 = sld [smem:[#allocation6_spill]] (!%p5935_p4)  ;;  %vm1346_vm0 = vcmask (!%p5935_p4), 261120  }
  0x7c   : > { %1343 = sbr.rel (%p5935_p4) target bundleno = 131 (0x83), region = 144 }
  0x81   : > { %v1344_v0 = vld [vmem:[%s8043_s18] sm:$0xff] (!%p5935_p4)  ;;  %v1345_v1 = vld [vmem:[%s8043_s18 + $0x8] sm:$0xff] (!%p5935_p4) }
  0x82   : > { %1347 = vst.msk [vmem:[#allocation2] sm:$0xff] (!%p5935_p4), %vm1346_vm0, %v1344_v0  ;;  %1348 = vst.msk [vmem:[#allocation2 + $0x8] sm:$0xff] (!%p5935_p4), %vm1346_vm0, %v1345_v1 }
  0x83 PF: > { %s8044_s17 = sld [smem:[#allocation40_spill]]  ;;  %s8045_s21 = sld [smem:[#allocation38_spill]]  ;;  %v7081_v3 = vmov 0.0   ;;  %vm7082_vm1 = vmmov 0   ;;  %vm1378_vm2 = vcmask 261120   ;;  %vm1555_vm3 = vcmask 64512  }
  0x84   : > { %6375 = vmatprep.subr.bf16.mxu1 %v7081_v3  ;;  %6367 = vmatprep.subr.bf16.mxu0 %v7081_v3  ;;  %s8046_s29 = sld [smem:[#allocation42_spill]]  ;;  %s8047_s3 = sld [smem:[#allocation41_spill]]  ;;  %vm1681_vm4 = vcmask 1043456   ;;  %vm3637_vm5 = vcmask 1040384   ;;  %vm3607_vm6 = vcmask 15360   ;;  %vm5397_vm7 = vcmask 523264  }
  0x85   : > { %6379 = vmatprep.mubr.msk.bf16.mxu1 %vm7082_vm1, %v7081_v3  ;;  %6371 = vmatprep.mubr.msk.bf16.mxu0 %vm7082_vm1, %v7081_v3  ;;  %s8048_s8 = sld [smem:[#allocation39_spill]]  ;;  %s8049_s27 = sld [smem:[#allocation43_spill]] }
  0x86   : > { %s8050_s4 = sld [smem:[#allocation8_spill]]  ;;  %s8051_s15 = sld [smem:[#allocation44_spill]] }
  0x87   : > { %s8052_s22 = sld [smem:[#allocation16_spill]]  ;;  %s8054_s26 = sld [smem:[#allocation47_spill]] }
  0x88   : > { %s8055_s28 = sld [smem:[#allocation7_spill]]  ;;  %s8056_s2 = sld [smem:[#allocation45_spill]] }
  0x89   : > { %v6879_v2 = vld [vmem:[%s8044_s17] sm:$0xff]   ;;  %v6880_v4 = vld [vmem:[%s8044_s17 + $0x8] sm:$0xff]   ;;  %s8057_s7 = sld [smem:[#allocation17_spill]]  ;;  %s8058_s10 = sld [smem:[#allocation18_spill]] }
  0x8a   : > { %6376 = vmatpush3.bf16.msra.mxu1 %v6879_v2  ;;  %v6881_v5 = vld [vmem:[%s8045_s21] sm:$0xff]   ;;  %v1350_v7 = vld [vmem:[#allocation2 + $0x8] sm:$0xff] }
  0x8b   : > { %6377 = vmatprep.subr.bf16.mxu1 %v7081_v3  ;;  %v1349_v6 = vld [vmem:[#allocation2] sm:$0xff]  ;;  %6368 = vmatpush3.bf16.msra.mxu0 %v6881_v5  ;;  %v6882_v8 = vld [vmem:[%s8045_s21 + $0x8] sm:$0xff]  }
  0x8c   : > { %v7349_v9 = vpack.c.bf16 %v1350_v7, %v1349_v6  ;;  %6369 = vmatprep.subr.bf16.mxu0 %v7081_v3  ;;  %v6883_v10 = vld [vmem:[%s8046_s29] sm:$0xff]   ;;  %v6884_v11 = vld [vmem:[%s8046_s29 + $0x8] sm:$0xff]  }
  0x8d   : > { %v5940_v12 = vld [vmem:[%s8047_s3] ss:$0 sm:$0xff]  ;;  %s8053_s23 = scalar_lea.vmem %s8052_s22, %s7261_s0 }
  0x8e   : > { %6378 = vmatpush3.bf16.msra.mxu1 %v6880_v4  ;;  %v5936_v17 = vld [vmem:[%s8048_s8] ss:$0 sm:$0xff] }
  0x8f   : > { %6391 = vmatprep.subr.bf16.mxu1 %v7081_v3  ;;  %6370 = vmatpush3.bf16.msra.mxu0 %v6882_v8  ;;  %v5944_v29 = vld [vmem:[%s8049_s27] ss:$0 sm:$0xff] }
  0x90   : > { %6383 = vmatprep.subr.bf16.mxu0 %v7081_v3  ;;  %v7388_v52 = vld [vmem:[%s8050_s4] sm:$0xff] }
  0x91   : > { %6380 = vmatmul.mubr.msk.bf16.vlgmr.msra.gmra.mrb[0].mxu1 %vm1378_vm2, %v7349_v9 }
  0x92   : > { %6393 = vmatprep.mubr.msk.bf16.mxu1 %vm7082_vm1, %v7081_v3  ;;  %6372 = vmatmul.mubr.msk.bf16.vlgmr.msra.gmra.mrb[0].mxu0 %vm1378_vm2, %v7349_v9 }
  0x93   : > { %6384 = vmatpush3.bf16.msra.mxu0 %v6883_v10  ;;  %6387 = vmatprep.mubr.msk.bf16.mxu0 %vm7082_vm1, %v7081_v3  ;;  %v6885_v10 = vld [vmem:[%s8044_s17 + $0x10] sm:$0xff]  }
  0x94   : > { %6385 = vmatprep.subr.bf16.mxu0 %v7081_v3 }
  0x97   : > { %6386 = vmatpush3.bf16.msra.mxu0 %v6884_v11 }
  0x98   : > { %6397 = vmatprep.subr.bf16.mxu0 %v7081_v3 }
  0x9a   : > { %6388 = vmatmul.mubr.msk.bf16.vlgmr.msra.gmra.mrb[4].mxu0 %vm1378_vm2, %v7349_v9 }
  0x9b   : > { %6399 = vmatprep.mubr.msk.bf16.mxu0 %vm7082_vm1, %v7081_v3 }
 0x164   : > { %v1480_v13 = vpop.f32.mrb[0].mxu1 }
 0x165   : > { %v1481_v14 = vadd.f32 %v5940_v12, %v1480_v13  ;;  %v6381_v15 = vpop.f32.mrb[1].mxu1  ;;  %v1416_v18 = vpop.f32.mrb[0].mxu0 }
 0x166   : > { %v1483_v16 = vpop.f32.mrb[2].mxu1  ;;  %v6373_v22 = vpop.f32.mrb[1].mxu0  ;;  %v1417_v26 = vadd.f32 %v5936_v17, %v1416_v18  ;;  %v6887_v15 = vld [vmem:[%s8045_s21 + $0x10] sm:$0xff]  }
 0x167   : > { %v1553_v19 = vpack.c.bf16 %v1481_v14, %v1481_v14  ;;  %v1484_v20 = vadd.f32 %v5940_v12, %v1483_v16  ;;  %v6382_v21 = vpop.f32.mrb[3].mxu1  ;;  %v1419_v23 = vpop.f32.mrb[2].mxu0  ;;  %v6886_v14 = vld [vmem:[%s8044_s17 + $0x18] sm:$0xff]   ;;  %v6889_v18 = vld [vmem:[%s8046_s29 + $0x10] sm:$0xff]  }
 0x168   : > { %v6374_v27 = vpop.f32.mrb[3].mxu0  ;;  %v1551_v30 = vpack.c.bf16 %v1417_v26, %v1417_v26  ;;  %v1420_v31 = vadd.f32 %v5936_v17, %v1419_v23  ;;  %v6888_v17 = vld [vmem:[%s8045_s21 + $0x18] sm:$0xff]  }
 0x169   : > { %v1560_v24 = vsel %vm1555_vm3, %v1553_v19, 0  ;;  %v1554_v25 = vpack.c.bf16 %v1484_v20, %v1484_v20  ;;  %v6890_v19 = vld [vmem:[%s8046_s29 + $0x18] sm:$0xff]  }
 0x16a   : > { %6392 = vmatpush3.bf16.xpose.msra.mxu1 %v1560_v24  ;;  %v1552_v36 = vpack.c.bf16 %v1420_v31, %v1420_v31 }
 0x16b   : > { %v1606_v28 = vsel %vm1555_vm3, %v1554_v25, 0  ;;  %6403 = vmatprep.subr.bf16.mxu1 %v7081_v3 }
 0x16c   : > { %6398 = vmatpush3.bf16.xpose.msra.mxu0 %v1606_v28  ;;  %v5966_v28 = vld [vmem:[%s8047_s3 + $0x1] ss:$0 sm:$0xff] }
 0x16d   : > { %6409 = vmatprep.subr.bf16.mxu0 %v7081_v3  ;;  %v1544_v32 = vpop.f32.mrb[4].mxu0 }
 0x16e   : > { %v1545_v33 = vadd.f32 %v5944_v29, %v1544_v32  ;;  %v6389_v34 = vpop.f32.mrb[5].mxu0 }
 0x16f   : > { %v1547_v35 = vpop.f32.mrb[6].mxu0  ;;  %v5957_v34 = vld [vmem:[%s8048_s8 + $0x1] ss:$0 sm:$0xff] }
 0x170   : > { %v1676_v37 = vpack.c.bf16 %v1545_v33, %v1545_v33  ;;  %v1548_v38 = vadd.f32 %v5944_v29, %v1547_v35  ;;  %v6390_v39 = vpop.f32.mrb[7].mxu0 }
 0x171   : > { %6394 = vmatmul.mubr.msk.bf16.vlgmr.msra.gmra.mrb[4].mxu1 %vm1555_vm3, %v1551_v30 }
 0x172   : > { %6405 = vmatprep.mubr.msk.bf16.mxu1 %vm7082_vm1, %v7081_v3  ;;  %v1683_v40 = vsel %vm1681_vm4, %v1676_v37, 0  ;;  %v1677_v41 = vpack.c.bf16 %v1548_v38, %v1548_v38 }
 0x173   : > { %6400 = vmatmul.mubr.msk.bf16.vlgmr.msra.gmra.mrb[8].mxu0 %vm1555_vm3, %v1552_v36  ;;  %6404 = vmatpush3.bf16.msra.mxu1 %v1683_v40 }
 0x174   : > { %6411 = vmatprep.mubr.msk.bf16.mxu0 %vm7082_vm1, %v7081_v3  ;;  %v1729_v42 = vsel %vm1681_vm4, %v1677_v41, 0  ;;  %6415 = vmatprep.subr.bf16.mxu1 %v7081_v3 }
 0x175   : > { %6410 = vmatpush3.bf16.msra.mxu0 %v1729_v42 }
 0x176   : > { %6423 = vmatprep.subr.bf16.mxu0 %v7081_v3 }
 0x244   : > { %v1596_v43 = vpop.f32.mrb[4].mxu1 }
 0x245   : > { %v6395_v44 = vpop.f32.mrb[5].mxu1  ;;  %v1648_v47 = vmul.f32 0.35355338, %v1596_v43 }
 0x246   : > { %v1599_v45 = vpop.f32.mrb[6].mxu1  ;;  %v1642_v46 = vpop.f32.mrb[8].mxu0 }
 0x247   : > { %v1649_v48 = vmul.f32 0.35355338, %v1642_v46  ;;  %v6396_v49 = vpop.f32.mrb[7].mxu1  ;;  %v6401_v50 = vpop.f32.mrb[9].mxu0  ;;  %v1650_v56 = vadd.f32 %v1648_v47, %v7388_v52 }
 0x248   : > { %v1645_v51 = vpop.f32.mrb[10].mxu0  ;;  %v5975_v49 = vld [vmem:[%s8049_s27 + $0x1] ss:$0 sm:$0xff] }
 0x249   : > { %v6402_v53 = vpop.f32.mrb[11].mxu0  ;;  %v1651_v54 = vadd.f32 %v1649_v48, %v7388_v52  ;;  %v1652_v57 = vsel %vm1555_vm3, %v1650_v56, -inf }
 0x24b   : > { %v1655_v55 = vsel %vm1555_vm3, %v1651_v54, -inf }
 0x24c   : > { %1656 = vmax.xlane.f32.xlu0 %v1655_v55 }
 0x250   : > { %1653 = vmax.xlane.f32.xlu0 %v1652_v57 }
 0x2d9   : > { %v1657_v58 = vpop.xlane.xlu0 %1656 }
 0x2da   : > { %v1659_v59 = vsub.f32 %v1651_v54, %v1657_v58 }
 0x2dc   : > { %v1662_v60 = vmul.f32 1.442695, %v1659_v59 }
 0x2dd   : > { %v1654_v61 = vpop.xlane.xlu0 %1653 }
 0x2de   : > { %6933 = vpow2.f32 %v1662_v60  ;;  %v1658_v62 = vsub.f32 %v1650_v56, %v1654_v61 }
 0x2e0   : > { %v1660_v63 = vmul.f32 1.442695, %v1658_v62 }
 0x2e2   : > { %6935 = vpow2.f32 %v1660_v63 }
 0x2e8   : > { %v6934_v0 = vpop.eup %6933 }
 0x2e9   : > { %v1667_v1 = vsel %vm1555_vm3, %v6934_v0, 0.0 }
 0x2ea   : > { %1668 = vadd.xlane.f32.xlu1 %v1667_v1 }
 0x2ec   : > { %v6936_v2 = vpop.eup %6935 }
 0x2ed   : > { %v1664_v4 = vsel %vm1555_vm3, %v6936_v2, 0.0 }
 0x2ee   : > { %1665 = vadd.xlane.f32.xlu1 %v1664_v4 }
 0x377   : > { %v1669_v5 = vpop.xlane.xlu1 %1668 }
 0x378   : > { %6937 = vrcp.f32 %v1669_v5 }
 0x37b   : > { %v1666_v6 = vpop.xlane.xlu1 %1665 }
 0x37c   : > { %6939 = vrcp.f32 %v1666_v6 }
 0x382   : > { %v6938_v7 = vpop.eup %6937 }
 0x383   : > { %v1673_v8 = vmul.f32 %v6938_v7, %v6934_v0 }
 0x385   : > { %v1675_v11 = vpack.c.bf16 %v1673_v8, %v1673_v8 }
 0x386   : > { %v6940_v12 = vpop.eup %6939 }
 0x387   : > { %v1672_v13 = vmul.f32 %v6940_v12, %v6936_v2  ;;  %6412 = vmatmul.mubr.msk.bf16.vlgmr.msra.gmra.mrb[12].mxu0 %vm1555_vm3, %v1675_v11 }
 0x388   : > { %6424 = vmatpush3.bf16.msra.mxu0 %v6885_v10  ;;  %6427 = vmatprep.mubr.msk.bf16.mxu0 %vm7082_vm1, %v7081_v3 }
 0x389   : > { %v1674_v16 = vpack.c.bf16 %v1672_v13, %v1672_v13  ;;  %6425 = vmatprep.subr.bf16.mxu0 %v7081_v3 }
 0x38b   : > { %6406 = vmatmul.mubr.msk.bf16.vlgmr.msra.gmra.mrb[8].mxu1 %vm1555_vm3, %v1674_v16 }
 0x38c   : > { %6426 = vmatpush3.bf16.msra.mxu0 %v6886_v14  ;;  %6416 = vmatpush3.bf16.msra.mxu1 %v6887_v15 }
 0x38d   : > { %6417 = vmatprep.subr.bf16.mxu1 %v7081_v3  ;;  %6419 = vmatprep.mubr.msk.bf16.mxu1 %vm7082_vm1, %v7081_v3 }
 0x38e   : > { %6439 = vmatprep.subr.bf16.mxu0 %v7081_v3 }
 0x38f   : > { %6428 = vmatmul.mubr.msk.bf16.vlgmr.msra.gmra.mrb[16].mxu0 %vm1378_vm2, %v7349_v9 }
 0x390   : > { %6418 = vmatpush3.bf16.msra.mxu1 %v6888_v17  ;;  %6441 = vmatprep.mubr.msk.bf16.mxu0 %vm7082_vm1, %v7081_v3 }
 0x391   : > { %6431 = vmatprep.subr.bf16.mxu1 %v7081_v3 }
 0x393   : > { %6420 = vmatmul.mubr.msk.bf16.vlgmr.msra.gmra.mrb[12].mxu1 %vm1378_vm2, %v7349_v9 }
 0x394   : > { %6435 = vmatprep.mubr.msk.bf16.mxu1 %vm7082_vm1, %v7081_v3  ;;  %6432 = vmatpush3.bf16.msra.mxu1 %v6889_v18 }
 0x395   : > { %6433 = vmatprep.subr.bf16.mxu1 %v7081_v3 }
 0x398   : > { %6434 = vmatpush3.bf16.msra.mxu1 %v6890_v19 }
 0x399   : > { %6445 = vmatprep.subr.bf16.mxu1 %v7081_v3 }
 0x39b   : > { %6436 = vmatmul.mubr.msk.bf16.vlgmr.msra.gmra.mrb[16].mxu1 %vm1378_vm2, %v7349_v9 }
 0x39c   : > { %6447 = vmatprep.mubr.msk.bf16.mxu1 %vm7082_vm1, %v7081_v3 }
 0x45a   : > { %v7426_v20 = vpop.f32.mrb[12].mxu0 }
 0x45b   : > { %v6413_v21 = vpop.f32.mrb[13].mxu0 }
 0x45c   : > { %v1768_v22 = vpop.f32.mrb[14].mxu0 }
 0x45d   : > { %v6414_v23 = vpop.f32.mrb[15].mxu0 }
 0x45e   : > { %v7428_v24 = vpop.f32.mrb[8].mxu1 }
 0x45f   : > { %v1772_v25 = vpack.c.bf16 %v7426_v20, %v7428_v24  ;;  %v6407_v26 = vpop.f32.mrb[9].mxu1 }
 0x460   : > { %v1722_v27 = vpop.f32.mrb[10].mxu1 }
 0x461   : > { %v6408_v29 = vpop.f32.mrb[11].mxu1 }
 0x462   : > { %v1898_v30 = vpop.f32.mrb[16].mxu0  ;;  %v5983_v29 = vld [vmem:[%s8051_s15 + $0x4] sm:$0xf] }
 0x463   : > { %v1899_v31 = vadd.f32 %v5966_v28, %v1898_v30  ;;  %v6429_v32 = vpop.f32.mrb[17].mxu0 }
 0x464   : > { %v1901_v33 = vpop.f32.mrb[18].mxu0  ;;  %v1771_v32 = vld [vmem:[%s8051_s15] sm:$0xf] }
 0x465   : > { %v1973_v35 = vpack.c.bf16 %v1899_v31, %v1899_v31  ;;  %v1902_v36 = vadd.f32 %v5966_v28, %v1901_v33  ;;  %v6430_v37 = vpop.f32.mrb[19].mxu0 }
 0x466   : > { %v1832_v38 = vpop.f32.mrb[12].mxu1  ;;  %v2243_v37 = vsel %vm1681_vm4, %v1771_v32, 0 }
 0x467   : > { %v1979_v39 = vsel %vm1555_vm3, %v1973_v35, 0  ;;  %v1974_v40 = vpack.c.bf16 %v1902_v36, %v1902_v36  ;;  %v1833_v41 = vadd.f32 %v5957_v34, %v1832_v38  ;;  %v6421_v42 = vpop.f32.mrb[13].mxu1  ;;  %v2196_v35 = vsel %vm1681_vm4, %v5983_v29, 0  ;;  %v6891_v38 = vld [vmem:[%s8044_s17 + $0x20] sm:$0xff]  }
 0x468   : > { %6440 = vmatpush3.bf16.xpose.msra.mxu0 %v1979_v39  ;;  %v1835_v43 = vpop.f32.mrb[14].mxu1  ;;  %v6892_v39 = vld [vmem:[%s8044_s17 + $0x28] sm:$0xff]  }
 0x469   : > { %v2025_v44 = vsel %vm1555_vm3, %v1974_v40, 0  ;;  %v6422_v45 = vpop.f32.mrb[15].mxu1  ;;  %6451 = vmatprep.subr.bf16.mxu0 %v7081_v3  ;;  %v1971_v46 = vpack.c.bf16 %v1833_v41, %v1833_v41  ;;  %v1836_v47 = vadd.f32 %v5957_v34, %v1835_v43  ;;  %v6893_v41 = vld [vmem:[%s8045_s21 + $0x20] sm:$0xff]  }
 0x46a   : > { %6446 = vmatpush3.bf16.xpose.msra.mxu1 %v2025_v44 }
 0x46b   : > { %6457 = vmatprep.subr.bf16.mxu1 %v7081_v3  ;;  %v1972_v48 = vpack.c.bf16 %v1836_v47, %v1836_v47  ;;  %v6894_v47 = vld [vmem:[%s8045_s21 + $0x28] sm:$0xff]  }
 0x46e   : > { %v1964_v50 = vpop.f32.mrb[16].mxu1 }
 0x46f   : > { %6442 = vmatmul.mubr.msk.bf16.vlgmr.msra.gmra.mrb[20].mxu0 %vm1555_vm3, %v1971_v46  ;;  %v1965_v51 = vadd.f32 %v5975_v49, %v1964_v50  ;;  %v6437_v53 = vpop.f32.mrb[17].mxu1 }
 0x470   : > { %6453 = vmatprep.mubr.msk.bf16.mxu0 %vm7082_vm1, %v7081_v3  ;;  %v1967_v54 = vpop.f32.mrb[18].mxu1 }
 0x471   : > { %6448 = vmatmul.mubr.msk.bf16.vlgmr.msra.gmra.mrb[20].mxu1 %vm1555_vm3, %v1972_v48  ;;  %v2095_v55 = vpack.c.bf16 %v1965_v51, %v1965_v51  ;;  %v1968_v56 = vadd.f32 %v5975_v49, %v1967_v54  ;;  %v6438_v57 = vpop.f32.mrb[19].mxu1  ;;  %v6895_v49 = vld [vmem:[%s8046_s29 + $0x20] sm:$0xff]   ;;  %v6896_v54 = vld [vmem:[%s8046_s29 + $0x28] sm:$0xff]  }
 0x472   : > { %6459 = vmatprep.mubr.msk.bf16.mxu1 %vm7082_vm1, %v7081_v3 }
 0x473   : > { %v2101_v58 = vsel %vm1681_vm4, %v2095_v55, 0  ;;  %v2096_v59 = vpack.c.bf16 %v1968_v56, %v1968_v56  ;;  %v6000_v55 = vld [vmem:[%s8047_s3 + $0x2] ss:$0 sm:$0xff] }
 0x474   : > { %6452 = vmatpush3.bf16.msra.mxu0 %v2101_v58 }
 0x475   : > { %v2147_v60 = vsel %vm1681_vm4, %v2096_v59, 0  ;;  %6463 = vmatprep.subr.bf16.mxu0 %v7081_v3 }
 0x476   : > { %6458 = vmatpush3.bf16.msra.mxu1 %v2147_v60 }
 0x477   : > { %6469 = vmatprep.subr.bf16.mxu1 %v7081_v3 }
 0x542   : > { %v2015_v61 = vpop.f32.mrb[20].mxu0 }
 0x543   : > { %v2067_v62 = vmul.f32 0.35355338, %v2015_v61  ;;  %v6443_v63 = vpop.f32.mrb[21].mxu0 }
 0x544   : > { %v2018_v0 = vpop.f32.mrb[22].mxu0  ;;  %v2061_v1 = vpop.f32.mrb[20].mxu1 }
 0x545   : > { %v2068_v2 = vmul.f32 0.35355338, %v2061_v1  ;;  %v6444_v4 = vpop.f32.mrb[23].mxu0  ;;  %v6449_v5 = vpop.f32.mrb[21].mxu1  ;;  %v2069_v6 = vadd.f32 %v2067_v62, %v7388_v52 }
 0x546   : > { %v2064_v7 = vpop.f32.mrb[22].mxu1 }
 0x547   : > { %v6450_v8 = vpop.f32.mrb[23].mxu1  ;;  %v2071_v10 = vsel %vm1555_vm3, %v2069_v6, -inf  ;;  %v2070_v11 = vadd.f32 %v2068_v2, %v7388_v52 }
 0x548   : > { %2072 = vmax.xlane.f32.xlu0 %v2071_v10  ;;  %v5991_v10 = vld [vmem:[%s8048_s8 + $0x2] ss:$0 sm:$0xff] }
 0x549   : > { %v2074_v12 = vsel %vm1555_vm3, %v2070_v11, -inf }
 0x54a   : > { %2075 = vmax.xlane.f32.xlu1 %v2074_v12 }
 0x5d5   : > { %v2073_v13 = vpop.xlane.xlu0 %2072 }
 0x5d6   : > { %v2077_v14 = vsub.f32 %v2069_v6, %v2073_v13 }
 0x5d7   : > { %v2076_v15 = vpop.xlane.xlu1 %2075 }
 0x5d8   : > { %v2079_v16 = vmul.f32 1.442695, %v2077_v14  ;;  %v2078_v17 = vsub.f32 %v2070_v11, %v2076_v15 }
 0x5da   : > { %6941 = vpow2.f32 %v2079_v16  ;;  %v2081_v18 = vmul.f32 1.442695, %v2078_v17 }
 0x5dc   : > { %6943 = vpow2.f32 %v2081_v18 }
 0x5e4   : > { %v6942_v19 = vpop.eup %6941 }
 0x5e5   : > { %v2083_v21 = vsel %vm1555_vm3, %v6942_v19, 0.0 }
 0x5e6   : > { %v6944_v22 = vpop.eup %6943  ;;  %2084 = vadd.xlane.f32.xlu0 %v2083_v21 }
 0x5e7   : > { %v2086_v23 = vsel %vm1555_vm3, %v6944_v22, 0.0 }
 0x5e8   : > { %2087 = vadd.xlane.f32.xlu1 %v2086_v23 }
 0x673   : > { %v2085_v26 = vpop.xlane.xlu0 %2084 }
 0x674   : > { %6945 = vrcp.f32 %v2085_v26 }
 0x675   : > { %v2088_v27 = vpop.xlane.xlu1 %2087 }
 0x676   : > { %6947 = vrcp.f32 %v2088_v27 }
 0x67e   : > { %v6946_v28 = vpop.eup %6945 }
 0x67f   : > { %v2091_v30 = vmul.f32 %v6946_v28, %v6942_v19  ;;  %v6009_v19 = vld [vmem:[%s8049_s27 + $0x2] ss:$0 sm:$0xff] }
 0x680   : > { %v6948_v31 = vpop.eup %6947 }
 0x681   : > { %v2092_v33 = vmul.f32 %v6948_v31, %v6944_v22  ;;  %v2093_v34 = vpack.c.bf16 %v2091_v30, %v2091_v30 }
 0x683   : > { %6454 = vmatmul.mubr.msk.bf16.vlgmr.msra.gmra.mrb[24].mxu0 %vm1555_vm3, %v2093_v34  ;;  %v2094_v36 = vpack.c.bf16 %v2092_v33, %v2092_v33 }
 0x684   : > { %6464 = vmatpush3.bf16.msra.mxu0 %v2196_v35  ;;  %6465 = vmatprep.mubr.msk.bf16.mxu0 %vm7082_vm1, %v7081_v3 }
 0x685   : > { %6460 = vmatmul.mubr.msk.bf16.vlgmr.msra.gmra.mrb[24].mxu1 %vm1555_vm3, %v2094_v36  ;;  %6475 = vmatprep.subr.bf16.mxu0 %v7081_v3 }
 0x686   : > { %6470 = vmatpush3.bf16.msra.mxu1 %v2243_v37  ;;  %6471 = vmatprep.mubr.msk.bf16.mxu1 %vm7082_vm1, %v7081_v3 }
 0x687   : > { %6483 = vmatprep.subr.bf16.mxu1 %v7081_v3 }
 0x68d   : > { %6472 = vmatmul.mubr.msk.bf16.vlgmr.msra.gmra.mrb[28].mxu1 %vm1555_vm3, %v1772_v25 }
 0x68e   : > { %6484 = vmatpush3.bf16.msra.mxu1 %v6891_v38  ;;  %6487 = vmatprep.mubr.msk.bf16.mxu1 %vm7082_vm1, %v7081_v3 }
 0x68f   : > { %6485 = vmatprep.subr.bf16.mxu1 %v7081_v3 }
 0x692   : > { %6486 = vmatpush3.bf16.msra.mxu1 %v6892_v39 }
 0x693   : > { %6499 = vmatprep.subr.bf16.mxu1 %v7081_v3 }
 0x695   : > { %6488 = vmatmul.mubr.msk.bf16.vlgmr.msra.gmra.mrb[32].mxu1 %vm1378_vm2, %v7349_v9 }
 0x696   : > { %6501 = vmatprep.mubr.msk.bf16.mxu1 %vm7082_vm1, %v7081_v3 }
 0x756   : > { %v2137_v20 = vpop.f32.mrb[24].mxu0 }
 0x757   : > { %v6455_v24 = vpop.f32.mrb[25].mxu0 }
 0x758   : > { %v2140_v25 = vpop.f32.mrb[26].mxu0  ;;  %v2183_v40 = vpop.f32.mrb[24].mxu1 }
 0x759   : > { %v2191_v42 = vpack.c.bf16 %v2183_v40, %v2137_v20  ;;  %v6456_v43 = vpop.f32.mrb[27].mxu0  ;;  %v6461_v44 = vpop.f32.mrb[25].mxu1 }
 0x75a   : > { %v2186_v45 = vpop.f32.mrb[26].mxu1 }
 0x75b   : > { %v6462_v46 = vpop.f32.mrb[27].mxu1  ;;  %6466 = vmatmul.mubr.msk.bf16.vlgmr.msra.gmra.mrb[28].mxu0 %vm1555_vm3, %v2191_v42 }
 0x75c   : > { %6476 = vmatpush3.bf16.msra.mxu0 %v6893_v41  ;;  %6479 = vmatprep.mubr.msk.bf16.mxu0 %vm7082_vm1, %v7081_v3 }
 0x75d   : > { %6477 = vmatprep.subr.bf16.mxu0 %v7081_v3 }
 0x760   : > { %v2279_v48 = vpop.f32.mrb[28].mxu1  ;;  %6478 = vmatpush3.bf16.msra.mxu0 %v6894_v47 }
 0x761   : > { %v6473_v50 = vpop.f32.mrb[29].mxu1  ;;  %6491 = vmatprep.subr.bf16.mxu0 %v7081_v3 }
 0x762   : > { %v2282_v51 = vpop.f32.mrb[30].mxu1 }
 0x763   : > { %v6474_v53 = vpop.f32.mrb[31].mxu1  ;;  %6480 = vmatmul.mubr.msk.bf16.vlgmr.msra.gmra.mrb[32].mxu0 %vm1378_vm2, %v7349_v9 }
 0x764   : > { %6492 = vmatpush3.bf16.msra.mxu0 %v6895_v49  ;;  %6495 = vmatprep.mubr.msk.bf16.mxu0 %vm7082_vm1, %v7081_v3 }
 0x765   : > { %6493 = vmatprep.subr.bf16.mxu0 %v7081_v3 }
 0x768   : > { %v2411_v56 = vpop.f32.mrb[32].mxu1  ;;  %6494 = vmatpush3.bf16.msra.mxu0 %v6896_v54 }
 0x769   : > { %v2412_v57 = vadd.f32 %v6000_v55, %v2411_v56  ;;  %v6489_v58 = vpop.f32.mrb[33].mxu1  ;;  %6505 = vmatprep.subr.bf16.mxu0 %v7081_v3 }
 0x76a   : > { %v2414_v59 = vpop.f32.mrb[34].mxu1  ;;  %v6017_v58 = vld [vmem:[%s8051_s15 + $0x8] sm:$0xf] }
 0x76b   : > { %v2486_v60 = vpack.c.bf16 %v2412_v57, %v2412_v57  ;;  %v2415_v61 = vadd.f32 %v6000_v55, %v2414_v59  ;;  %v6490_v62 = vpop.f32.mrb[35].mxu1  ;;  %6496 = vmatmul.mubr.msk.bf16.vlgmr.msra.gmra.mrb[36].mxu0 %vm1378_vm2, %v7349_v9 }
 0x76c   : > { %6507 = vmatprep.mubr.msk.bf16.mxu0 %vm7082_vm1, %v7081_v3 }
 0x76d   : > { %v2492_v63 = vsel %vm1555_vm3, %v2486_v60, 0  ;;  %v2487_v0 = vpack.c.bf16 %v2415_v61, %v2415_v61 }
 0x76e   : > { %6500 = vmatpush3.bf16.xpose.msra.mxu1 %v2492_v63  ;;  %v2709_v63 = vsel %vm1681_vm4, %v6017_v58, 0 }
 0x76f   : > { %v2538_v1 = vsel %vm1555_vm3, %v2487_v0, 0  ;;  %6511 = vmatprep.subr.bf16.mxu1 %v7081_v3 }
 0x771   : > { %6506 = vmatpush3.bf16.xpose.msra.mxu0 %v2538_v1  ;;  %v6899_v1 = vld [vmem:[%s8045_s21 + $0x30] sm:$0xff]  }
 0x772   : > { %6517 = vmatprep.subr.bf16.mxu0 %v7081_v3 }
 0x82e   : > { %v2232_v2 = vpop.f32.mrb[28].mxu0 }
 0x82f   : > { %v7505_v4 = vadd.f32 %v2279_v48, %v2232_v2  ;;  %v6467_v5 = vpop.f32.mrb[29].mxu0  ;;  %v6900_v2 = vld [vmem:[%s8045_s21 + $0x38] sm:$0xff]   ;;  %s8060_s21 = scalar_lea.vmem %s8058_s10, %s7261_s0 }
 0x830   : > { %v2235_v6 = vpop.f32.mrb[30].mxu0 }
 0x831   : > { %v7507_v7 = vadd.f32 %v2282_v51, %v2235_v6  ;;  %v6468_v8 = vpop.f32.mrb[31].mxu0 }
 0x836   : > { %v2345_v11 = vpop.f32.mrb[32].mxu0 }
 0x837   : > { %v2346_v12 = vadd.f32 %v5991_v10, %v2345_v11  ;;  %v6481_v13 = vpop.f32.mrb[33].mxu0  ;;  %v6897_v11 = vld [vmem:[%s8044_s17 + $0x30] sm:$0xff]  }
 0x838   : > { %v2348_v14 = vpop.f32.mrb[34].mxu0 }
 0x839   : > { %v2484_v15 = vpack.c.bf16 %v2346_v12, %v2346_v12  ;;  %v2349_v16 = vadd.f32 %v5991_v10, %v2348_v14  ;;  %v6482_v17 = vpop.f32.mrb[35].mxu0 }
 0x83a   : > { %v6898_v17 = vld [vmem:[%s8044_s17 + $0x38] sm:$0xff]   ;;  %s8059_s17 = scalar_lea.vmem %s8057_s7, %s7261_s0 }
 0x83b   : > { %v2485_v18 = vpack.c.bf16 %v2349_v16, %v2349_v16  ;;  %6502 = vmatmul.mubr.msk.bf16.vlgmr.msra.gmra.mrb[36].mxu1 %vm1555_vm3, %v2484_v15 }
 0x83c   : > { %6513 = vmatprep.mubr.msk.bf16.mxu1 %vm7082_vm1, %v7081_v3 }
 0x83d   : > { %6508 = vmatmul.mubr.msk.bf16.vlgmr.msra.gmra.mrb[40].mxu0 %vm1555_vm3, %v2485_v18  ;;  %v6901_v18 = vld [vmem:[%s8046_s29 + $0x30] sm:$0xff]  }
 0x83e   : > { %v2477_v21 = vpop.f32.mrb[36].mxu0  ;;  %6519 = vmatprep.mubr.msk.bf16.mxu0 %vm7082_vm1, %v7081_v3 }
 0x83f   : > { %v2478_v22 = vadd.f32 %v6009_v19, %v2477_v21  ;;  %v6497_v23 = vpop.f32.mrb[37].mxu0 }
 0x840   : > { %v2480_v26 = vpop.f32.mrb[38].mxu0 }
 0x841   : > { %v2608_v27 = vpack.c.bf16 %v2478_v22, %v2478_v22  ;;  %v2481_v28 = vadd.f32 %v6009_v19, %v2480_v26  ;;  %v6498_v29 = vpop.f32.mrb[39].mxu0  ;;  %v6902_v19 = vld [vmem:[%s8046_s29 + $0x38] sm:$0xff]   ;;  %s8061_s29 = sld [smem:[#allocation46_spill]] }
 0x843   : > { %v2614_v30 = vsel %vm1681_vm4, %v2608_v27, 0  ;;  %v2609_v31 = vpack.c.bf16 %v2481_v28, %v2481_v28 }
 0x844   : > { %6512 = vmatpush3.bf16.msra.mxu1 %v2614_v30 }
 0x845   : > { %v2660_v32 = vsel %vm1681_vm4, %v2609_v31, 0  ;;  %6523 = vmatprep.subr.bf16.mxu1 %v7081_v3 }
 0x846   : > { %6518 = vmatpush3.bf16.msra.mxu0 %v2660_v32 }
 0x847   : > { %6529 = vmatprep.subr.bf16.mxu0 %v7081_v3 }
 0x90e   : > { %v2528_v33 = vpop.f32.mrb[36].mxu1 }
 0x90f   : > { %v2580_v34 = vmul.f32 0.35355338, %v2528_v33  ;;  %v6503_v35 = vpop.f32.mrb[37].mxu1  ;;  %v6033_v33 = vld [vmem:[%s8047_s3 + $0x3] ss:$0 sm:$0xff] }
 0x910   : > { %v2531_v36 = vpop.f32.mrb[38].mxu1  ;;  %v2574_v37 = vpop.f32.mrb[40].mxu0 }
 0x911   : > { %v2581_v38 = vmul.f32 0.35355338, %v2574_v37  ;;  %v6504_v39 = vpop.f32.mrb[39].mxu1  ;;  %v6509_v20 = vpop.f32.mrb[41].mxu0  ;;  %v2582_v24 = vadd.f32 %v2580_v34, %v7388_v52  ;;  %v6024_v37 = vld [vmem:[%s8048_s8 + $0x3] ss:$0 sm:$0xff] }
 0x912   : > { %v2577_v25 = vpop.f32.mrb[42].mxu0 }
 0x913   : > { %v6510_v40 = vpop.f32.mrb[43].mxu0  ;;  %v2584_v41 = vsel %vm1555_vm3, %v2582_v24, -inf  ;;  %v2583_v42 = vadd.f32 %v2581_v38, %v7388_v52 }
 0x914   : > { %2585 = vmax.xlane.f32.xlu0 %v2584_v41 }
 0x915   : > { %v2587_v43 = vsel %vm1555_vm3, %v2583_v42, -inf }
 0x916   : > { %2588 = vmax.xlane.f32.xlu1 %v2587_v43  ;;  %v6042_v43 = vld [vmem:[%s8049_s27 + $0x3] ss:$0 sm:$0xff] }
 0x9a1   : > { %v2586_v44 = vpop.xlane.xlu0 %2585 }
 0x9a2   : > { %v2590_v45 = vsub.f32 %v2582_v24, %v2586_v44 }
 0x9a3   : > { %v2589_v46 = vpop.xlane.xlu1 %2588 }
 0x9a4   : > { %v2592_v47 = vmul.f32 1.442695, %v2590_v45  ;;  %v2591_v48 = vsub.f32 %v2583_v42, %v2589_v46 }
 0x9a6   : > { %6949 = vpow2.f32 %v2592_v47  ;;  %v2594_v49 = vmul.f32 1.442695, %v2591_v48 }
 0x9a8   : > { %6951 = vpow2.f32 %v2594_v49 }
 0x9b0   : > { %v6950_v50 = vpop.eup %6949 }
 0x9b1   : > { %v2596_v51 = vsel %vm1555_vm3, %v6950_v50, 0.0 }
 0x9b2   : > { %v6952_v53 = vpop.eup %6951  ;;  %2597 = vadd.xlane.f32.xlu0 %v2596_v51 }
 0x9b3   : > { %v2599_v54 = vsel %vm1555_vm3, %v6952_v53, 0.0 }
 0x9b4   : > { %2600 = vadd.xlane.f32.xlu1 %v2599_v54 }
 0xa3f   : > { %v2598_v55 = vpop.xlane.xlu0 %2597 }
 0xa40   : > { %6953 = vrcp.f32 %v2598_v55 }
 0xa41   : > { %v2601_v56 = vpop.xlane.xlu1 %2600 }
 0xa42   : > { %6955 = vrcp.f32 %v2601_v56 }
 0xa4a   : > { %v6954_v57 = vpop.eup %6953 }
 0xa4b   : > { %v2604_v59 = vmul.f32 %v6954_v57, %v6950_v50 }
 0xa4c   : > { %v6956_v60 = vpop.eup %6955 }
 0xa4d   : > { %v2605_v61 = vmul.f32 %v6956_v60, %v6952_v53  ;;  %v2606_v62 = vpack.c.bf16 %v2604_v59, %v2604_v59 }
 0xa4f   : > { %6514 = vmatmul.mubr.msk.bf16.vlgmr.msra.gmra.mrb[40].mxu1 %vm1555_vm3, %v2606_v62  ;;  %v2607_v0 = vpack.c.bf16 %v2605_v61, %v2605_v61 }
 0xa50   : > { %6524 = vmatpush3.bf16.msra.mxu1 %v2709_v63  ;;  %6525 = vmatprep.mubr.msk.bf16.mxu1 %vm7082_vm1, %v7081_v3 }
 0xa51   : > { %6520 = vmatmul.mubr.msk.bf16.vlgmr.msra.gmra.mrb[44].mxu0 %vm1555_vm3, %v2607_v0  ;;  %6537 = vmatprep.subr.bf16.mxu1 %v7081_v3 }
 0xa52   : > { %6533 = vmatprep.mubr.msk.bf16.mxu0 %vm7082_vm1, %v7081_v3  ;;  %6530 = vmatpush3.bf16.msra.mxu0 %v6899_v1 }
 0xa53   : > { %6531 = vmatprep.subr.bf16.mxu0 %v7081_v3 }
 0xa56   : > { %6532 = vmatpush3.bf16.msra.mxu0 %v6900_v2 }
 0xa57   : > { %6545 = vmatprep.subr.bf16.mxu0 %v7081_v3 }
 0xa59   : > { %6534 = vmatmul.mubr.msk.bf16.vlgmr.msra.gmra.mrb[48].mxu0 %vm1378_vm2, %v7349_v9 }
 0xa5a   : > { %6549 = vmatprep.mubr.msk.bf16.mxu0 %vm7082_vm1, %v7081_v3  ;;  %6546 = vmatpush3.bf16.msra.mxu0 %v6901_v18 }
 0xa5b   : > { %6547 = vmatprep.subr.bf16.mxu0 %v7081_v3 }
 0xa5e   : > { %6548 = vmatpush3.bf16.msra.mxu0 %v6902_v19 }
 0xa5f   : > { %6559 = vmatprep.subr.bf16.mxu0 %v7081_v3 }
 0xa61   : > { %6550 = vmatmul.mubr.msk.bf16.vlgmr.msra.gmra.mrb[52].mxu0 %vm1378_vm2, %v7349_v9 }
 0xa62   : > { %6561 = vmatprep.mubr.msk.bf16.mxu0 %vm7082_vm1, %v7081_v3 }
 0xb22   : > { %v2650_v5 = vpop.f32.mrb[40].mxu1 }
 0xb23   : > { %v6515_v6 = vpop.f32.mrb[41].mxu1 }
 0xb24   : > { %v2653_v8 = vpop.f32.mrb[42].mxu1  ;;  %v2696_v10 = vpop.f32.mrb[44].mxu0 }
 0xb25   : > { %v2704_v12 = vpack.c.bf16 %v2696_v10, %v2650_v5  ;;  %v6516_v13 = vpop.f32.mrb[43].mxu1  ;;  %v6521_v14 = vpop.f32.mrb[45].mxu0 }
 0xb26   : > { %v2699_v15 = vpop.f32.mrb[46].mxu0 }
 0xb27   : > { %v6522_v16 = vpop.f32.mrb[47].mxu0  ;;  %6526 = vmatmul.mubr.msk.bf16.vlgmr.msra.gmra.mrb[44].mxu1 %vm1555_vm3, %v2704_v12 }
 0xb28   : > { %6538 = vmatpush3.bf16.msra.mxu1 %v6897_v11  ;;  %6541 = vmatprep.mubr.msk.bf16.mxu1 %vm7082_vm1, %v7081_v3 }
 0xb29   : > { %6539 = vmatprep.subr.bf16.mxu1 %v7081_v3 }
 0xb2c   : > { %6540 = vmatpush3.bf16.msra.mxu1 %v6898_v17  ;;  %v2813_v21 = vpop.f32.mrb[48].mxu0 }
 0xb2d   : > { %6553 = vmatprep.subr.bf16.mxu1 %v7081_v3  ;;  %v6535_v22 = vpop.f32.mrb[49].mxu0  ;;  %v2814_v25 = vadd.f32 %v6024_v37, %v2813_v21 }
 0xb2e   : > { %v2816_v23 = vpop.f32.mrb[50].mxu0  ;;  %v6050_v22 = vld [vmem:[%s8051_s15 + $0xc] sm:$0xf] }
 0xb2f   : > { %6542 = vmatmul.mubr.msk.bf16.vlgmr.msra.gmra.mrb[48].mxu1 %vm1378_vm2, %v7349_v9  ;;  %v6536_v26 = vpop.f32.mrb[51].mxu0  ;;  %v2817_v41 = vadd.f32 %v6024_v37, %v2816_v23 }
 0xb30   : > { %6555 = vmatprep.mubr.msk.bf16.mxu1 %vm7082_vm1, %v7081_v3 }
 0xb31   : > { %v2953_v42 = vpack.c.bf16 %v2817_v41, %v2817_v41 }
 0xb34   : > { %v2945_v44 = vpop.f32.mrb[52].mxu0 }
 0xb35   : > { %v2946_v45 = vadd.f32 %v6042_v43, %v2945_v44  ;;  %v6551_v46 = vpop.f32.mrb[53].mxu0 }
 0xb36   : > { %v2948_v47 = vpop.f32.mrb[54].mxu0 }
 0xb37   : > { %v3076_v48 = vpack.c.bf16 %v2946_v45, %v2946_v45  ;;  %v2949_v49 = vadd.f32 %v6042_v43, %v2948_v47  ;;  %v6552_v50 = vpop.f32.mrb[55].mxu0  ;;  %v7009_v45 = vld [vmem:[#allocation2] sm:$0xff] }
 0xb39   : > { %v3082_v51 = vsel %vm1681_vm4, %v3076_v48, 0  ;;  %v3077_v53 = vpack.c.bf16 %v2949_v49, %v2949_v49  ;;  %v7010_v48 = vld [vmem:[#allocation2 + $0x8] sm:$0xff] }
 0xb3b   : > { %v3128_v54 = vsel %vm1681_vm4, %v3077_v53, 0 }
 0xbfa   : > { %v2745_v27 = vpop.f32.mrb[44].mxu1 }
 0xbfb   : > { %v7564_v28 = vadd.f32 %v2745_v27, %v7505_v4  ;;  %v6527_v29 = vpop.f32.mrb[45].mxu1 }
 0xbfc   : > { %v2748_v30 = vpop.f32.mrb[46].mxu1 }
 0xbfd   : > { %v7567_v31 = vadd.f32 %v2748_v30, %v7507_v7  ;;  %v6528_v32 = vpop.f32.mrb[47].mxu1  ;;  %v2952_v7 = vpack.c.bf16 %v2814_v25, %v2814_v25  ;;  %v3177_v30 = vsel %vm1681_vm4, %v6050_v22, 0  ;;  %v6053_v22 = vld [vmem:[%s8059_s17] ss:$0 sm:$0xff] }
 0xc02   : > { %v2879_v9 = vpop.f32.mrb[48].mxu1 }
 0xc03   : > { %v2880_v34 = vadd.f32 %v6033_v33, %v2879_v9  ;;  %v6543_v35 = vpop.f32.mrb[49].mxu1 }
 0xc04   : > { %v2882_v36 = vpop.f32.mrb[50].mxu1 }
 0xc05   : > { %v2954_v38 = vpack.c.bf16 %v2880_v34, %v2880_v34  ;;  %v2883_v39 = vadd.f32 %v6033_v33, %v2882_v36  ;;  %v6544_v20 = vpop.f32.mrb[51].mxu1 }
 0xc07   : > { %v2960_v24 = vsel %vm1555_vm3, %v2954_v38, 0  ;;  %v2955_v4 = vpack.c.bf16 %v2883_v39, %v2883_v39 }
 0xc08   : > { %6554 = vmatpush3.bf16.xpose.msra.mxu1 %v2960_v24 }
 0xc09   : > { %v3006_v40 = vsel %vm1555_vm3, %v2955_v4, 0  ;;  %6565 = vmatprep.subr.bf16.mxu1 %v7081_v3  ;;  %v6052_v4 = vld [vmem:[%s8053_s23] ss:$0 sm:$0xff] }
 0xc0a   : > { %6560 = vmatpush3.bf16.xpose.msra.mxu0 %v3006_v40 }
 0xc0b   : > { %6571 = vmatprep.subr.bf16.mxu0 %v7081_v3 }
 0xc0f   : > { %6556 = vmatmul.mubr.msk.bf16.vlgmr.msra.gmra.mrb[52].mxu1 %vm1555_vm3, %v2952_v7 }
 0xc10   : > { %6567 = vmatprep.mubr.msk.bf16.mxu1 %vm7082_vm1, %v7081_v3  ;;  %6566 = vmatpush3.bf16.msra.mxu1 %v3082_v51 }
 0xc11   : > { %6562 = vmatmul.mubr.msk.bf16.vlgmr.msra.gmra.mrb[56].mxu0 %vm1555_vm3, %v2953_v42  ;;  %6577 = vmatprep.subr.bf16.mxu1 %v7081_v3 }
 0xc12   : > { %6573 = vmatprep.mubr.msk.bf16.mxu0 %vm7082_vm1, %v7081_v3  ;;  %6572 = vmatpush3.bf16.msra.mxu0 %v3128_v54 }
 0xc13   : > { %6583 = vmatprep.subr.bf16.mxu0 %v7081_v3 }
 0xce2   : > { %v2996_v55 = vpop.f32.mrb[52].mxu1 }
 0xce3   : > { %v3048_v56 = vmul.f32 0.35355338, %v2996_v55  ;;  %v6557_v57 = vpop.f32.mrb[53].mxu1 }
 0xce4   : > { %v2999_v58 = vpop.f32.mrb[54].mxu1  ;;  %v3042_v59 = vpop.f32.mrb[56].mxu0 }
 0xce5   : > { %v3049_v60 = vmul.f32 0.35355338, %v3042_v59  ;;  %v6558_v61 = vpop.f32.mrb[55].mxu1  ;;  %v6563_v62 = vpop.f32.mrb[57].mxu0  ;;  %v3050_v63 = vadd.f32 %v3048_v56, %v7388_v52 }
 0xce6   : > { %v3045_v0 = vpop.f32.mrb[58].mxu0  ;;  %v3285_v62 = vlaneseq }
 0xce7   : > { %v6564_v1 = vpop.f32.mrb[59].mxu0  ;;  %v3052_v2 = vsel %vm1555_vm3, %v3050_v63, -inf  ;;  %v3051_v5 = vadd.f32 %v3049_v60, %v7388_v52  ;;  %v7083_v60 = vmov 1983009808  }
 0xce8   : > { %3053 = vmax.xlane.f32.xlu0 %v3052_v2  ;;  %v3283_v61 = vunpack.c.l.s4 %v7083_v60  ;;  %v3286_v1 = vshrl.u32 %v3285_v62, 7  ;;  %v1351_v2 = vld [vmem:[%s8055_s28] sm:$0x3] }
 0xce9   : > { %v3055_v6 = vsel %vm1555_vm3, %v3051_v5, -inf }
 0xcea   : > { %3056 = vmax.xlane.f32.xlu1 %v3055_v6  ;;  %v3284_v0 = vunpack.c.0.s8 %v3283_v61 }
 0xd75   : > { %v3054_v8 = vpop.xlane.xlu0 %3053 }
 0xd76   : > { %v3058_v10 = vsub.f32 %v3050_v63, %v3054_v8  ;;  %v6903_v63 = vld [vmem:[%s8054_s26] sm:$0xff]   ;;  %v7617_v8 = vsub.s32 %v3284_v0, %v3286_v1 }
 0xd77   : > { %v3057_v11 = vpop.xlane.xlu1 %3056 }
 0xd78   : > { %v3060_v12 = vmul.f32 1.442695, %v3058_v10  ;;  %v3059_v13 = vsub.f32 %v3051_v5, %v3057_v11  ;;  %v1352_v5 = vld [vmem:[%s8055_s28 + $0x2] sm:$0x3]  ;;  %v6904_v10 = vld [vmem:[%s8054_s26 + $0x8] sm:$0xff]  }
 0xd79   : > { %v3281_v6 = vcombine.low %v1351_v2, %v1352_v5 }
 0xd7a   : > { %6957 = vpow2.f32 %v3060_v12  ;;  %v3062_v14 = vmul.f32 1.442695, %v3059_v13  ;;  %v6905_v13 = vld [vmem:[%s8056_s2] sm:$0xff]  }
 0xd7b   : > { %v3288_v11 = vrot.slane %v3281_v6, %v7617_v8 }
 0xd7c   : > { %6959 = vpow2.f32 %v3062_v14  ;;  %v6906_v14 = vld [vmem:[%s8056_s2 + $0x8] sm:$0xff]  }
 0xd7d   : > { %v7621_v12 = vpack.c.bf16 %v3288_v11, %v3288_v11 }
 0xd84   : > { %v6958_v15 = vpop.eup %6957 }
 0xd85   : > { %v3064_v16 = vsel %vm1555_vm3, %v6958_v15, 0.0 }
 0xd86   : > { %v6960_v17 = vpop.eup %6959  ;;  %3065 = vadd.xlane.f32.xlu0 %v3064_v16 }
 0xd87   : > { %v3067_v52 = vsel %vm1555_vm3, %v6960_v17, 0.0 }
 0xd88   : > { %3068 = vadd.xlane.f32.xlu1 %v3067_v52 }
 0xe13   : > { %v3066_v18 = vpop.xlane.xlu0 %3065 }
 0xe14   : > { %6961 = vrcp.f32 %v3066_v18 }
 0xe15   : > { %v3069_v19 = vpop.xlane.xlu1 %3068 }
 0xe16   : > { %6963 = vrcp.f32 %v3069_v19 }
 0xe1e   : > { %v6962_v21 = vpop.eup %6961 }
 0xe1f   : > { %v3072_v23 = vmul.f32 %v6962_v21, %v6958_v15 }
 0xe20   : > { %v6964_v26 = vpop.eup %6963 }
 0xe21   : > { %v3073_v27 = vmul.f32 %v6964_v26, %v6960_v17  ;;  %v3074_v29 = vpack.c.bf16 %v3072_v23, %v3072_v23 }
 0xe23   : > { %6568 = vmatmul.mubr.msk.bf16.vlgmr.msra.gmra.mrb[56].mxu1 %vm1555_vm3, %v3074_v29  ;;  %v3075_v32 = vpack.c.bf16 %v3073_v27, %v3073_v27 }
 0xe24   : > { %6578 = vmatpush3.bf16.msra.mxu1 %v3177_v30  ;;  %6579 = vmatprep.mubr.msk.bf16.mxu1 %vm7082_vm1, %v7081_v3  ;;  %v6054_v30 = vld [vmem:[%s8060_s21] ss:$0 sm:$0xff] }
 0xe25   : > { %6574 = vmatmul.mubr.msk.bf16.vlgmr.msra.gmra.mrb[60].mxu0 %vm1555_vm3, %v3075_v32  ;;  %6591 = vmatprep.subr.bf16.mxu1 %v7081_v3 }
 0xe26   : > { %6587 = vmatprep.mubr.msk.bf16.mxu0 %vm7082_vm1, %v7081_v3  ;;  %6584 = vmatpush3.bf16.msra.mxu0 %v6905_v13 }
 0xe27   : > { %6585 = vmatprep.subr.bf16.mxu0 %v7081_v3 }
 0xe2a   : > { %6586 = vmatpush3.bf16.msra.mxu0 %v6906_v14 }
 0xe2b   : > { %6599 = vmatprep.subr.bf16.mxu0 %v7081_v3 }
 0xef6   : > { %v3118_v33 = vpop.f32.mrb[56].mxu1 }
 0xef7   : > { %v6569_v9 = vpop.f32.mrb[57].mxu1 }
 0xef8   : > { %v3121_v34 = vpop.f32.mrb[58].mxu1  ;;  %v3164_v35 = vpop.f32.mrb[60].mxu0 }
 0xef9   : > { %v3172_v36 = vpack.c.bf16 %v3164_v35, %v3118_v33  ;;  %v6570_v37 = vpop.f32.mrb[59].mxu1  ;;  %v6575_v38 = vpop.f32.mrb[61].mxu0  ;;  %v6907_v34 = vld [vmem:[%s7306_s19] sm:$0xff]  }
 0xefa   : > { %v3167_v39 = vpop.f32.mrb[62].mxu0  ;;  %v6059_v37 = vld [vmem:[%s7303_s1] ss:$0 sm:$0xff] }
 0xefb   : > { %v6576_v20 = vpop.f32.mrb[63].mxu0  ;;  %6580 = vmatmul.mubr.msk.bf16.vlgmr.msra.gmra.mrb[60].mxu1 %vm1555_vm3, %v3172_v36  ;;  %v6908_v36 = vld [vmem:[%s7306_s19 + $0x8] sm:$0xff]  }
 0xefc   : > { %6595 = vmatprep.mubr.msk.bf16.mxu1 %vm7082_vm1, %v7081_v3  ;;  %6592 = vmatpush3.bf16.msra.mxu1 %v6903_v63 }
 0xefd   : > { %6593 = vmatprep.subr.bf16.mxu1 %v7081_v3 }
 0xf00   : > { %6594 = vmatpush3.bf16.msra.mxu1 %v6904_v10 }
 0xf01   : > { %6607 = vmatprep.subr.bf16.mxu1 %v7081_v3 }
 0xf03   : > { %6596 = vmatmul.mubr.msk.bf16.vlgmr.msra.gmra.mrb[64].mxu1 %vm1378_vm2, %v7621_v12 }
 0xf04   : > { %6609 = vmatprep.mubr.msk.bf16.mxu1 %vm7082_vm1, %v7081_v3 }
 0xfce   : > { %v3213_v24 = vpop.f32.mrb[60].mxu1 }
 0xfcf   : > { %v3220_v25 = vadd.f32 %v3213_v24, %v7564_v28  ;;  %v6581_v40 = vpop.f32.mrb[61].mxu1 }
 0xfd0   : > { %v3216_v7 = vpop.f32.mrb[62].mxu1 }
 0xfd1   : > { %v3229_v41 = vadd.f32 %v6052_v4, %v3220_v25  ;;  %v3221_v42 = vadd.f32 %v3216_v7, %v7567_v31  ;;  %v6582_v43 = vpop.f32.mrb[63].mxu1 }
 0xfd3   : > { %v3230_v44 = vadd.f32 %v6052_v4, %v3221_v42  ;;  %v3231_v46 = vadd.f32 %v7009_v45, %v3229_v41 }
 0xfd5   : > { %v3235_v47 = vsel %vm1378_vm2, %v3231_v46, 0.0  ;;  %v3232_v49 = vadd.f32 %v7010_v48, %v3230_v44  ;;  %v6055_v44 = vld [vmem:[%s8061_s29] ss:$0 sm:$0xff] }
 0xfd6   : > { %3236 = vadd.xlane.f32.xlu0 %v3235_v47  ;;  %v3418_v38 = vpop.f32.mrb[64].mxu1 }
 0xfd7   : > { %v3238_v50 = vsel %vm1378_vm2, %v3232_v49, 0.0  ;;  %v3419_v39 = vadd.f32 %v6059_v37, %v3418_v38  ;;  %v6597_v20 = vpop.f32.mrb[65].mxu1 }
 0xfd8   : > { %3239 = vadd.xlane.f32.xlu1 %v3238_v50  ;;  %v3421_v24 = vpop.f32.mrb[66].mxu1 }
 0xfd9   : > { %v3431_v4 = vrot.slane %v3419_v39, %v7617_v8  ;;  %v6598_v25 = vpop.f32.mrb[67].mxu1  ;;  %v6909_v39 = vld [vmem:[%s8056_s2 + $0x10] sm:$0xff]  }
 0xfdb   : > { %v3432_v40 = vcombine.high %v3431_v4, %v3431_v4  ;;  %v3511_v7 = vpack.c.bf16 %v3431_v4, %v3431_v4  ;;  %v6910_v4 = vld [vmem:[%s8054_s26 + $0x10] sm:$0xff]  }
 0xfdd   : > { %v3517_v41 = vsel %vm1555_vm3, %v3511_v7, 0  ;;  %v3512_v42 = vpack.c.bf16 %v3432_v40, %v3432_v40  ;;  %v6911_v40 = vld [vmem:[%s8056_s2 + $0x18] sm:$0xff]  }
 0xfde   : > { %6608 = vmatpush3.bf16.xpose.msra.mxu1 %v3517_v41  ;;  %v6912_v7 = vld [vmem:[%s8054_s26 + $0x18] sm:$0xff]   ;;  %v6913_v41 = vld [vmem:[%s7306_s19 + $0x10] sm:$0xff]  }
 0xfdf   : > { %6619 = vmatprep.subr.bf16.mxu1 %v7081_v3  ;;  %v3563_v43 = vsel %vm1555_vm3, %v3512_v42, 0  ;;  %v6914_v42 = vld [vmem:[%s7306_s19 + $0x18] sm:$0xff]  }
0x1063   : > { %v3237_v51 = vpop.xlane.xlu0 %3236 }
0x1064   : > { %v3242_v28 = vmul.f32 0.03125, %v3237_v51 }
0x1065   : > { %v3240_v53 = vpop.xlane.xlu1 %3239 }
0x1066   : > { %v3244_v54 = vsub.f32 %v3231_v46, %v3242_v28  ;;  %v3243_v55 = vmul.f32 0.03125, %v3240_v53 }
0x1068   : > { %v3245_v31 = vsub.f32 %v3232_v49, %v3243_v55  ;;  %v3246_v56 = vmul.f32 %v3244_v54, %v3244_v54 }
0x106a   : > { %v3248_v57 = vsel %vm1378_vm2, %v3246_v56, 0.0  ;;  %v3247_v58 = vmul.f32 %v3245_v31, %v3245_v31  ;;  %v6063_v56 = vld [vmem:[%s7309_s14] ss:$0 sm:$0xff] }
0x106b   : > { %3249 = vadd.xlane.f32.xlu0 %v3248_v57 }
0x106c   : > { %v3251_v59 = vsel %vm1378_vm2, %v3247_v58, 0.0 }
0x106d   : > { %3252 = vadd.xlane.f32.xlu1 %v3251_v59 }
0x10f8   : > { %v3250_v15 = vpop.xlane.xlu0 %3249 }
0x10f9   : > { %v3254_v16 = vmul.f32 0.03125, %v3250_v15 }
0x10fa   : > { %v3253_v17 = vpop.xlane.xlu1 %3252 }
0x10fb   : > { %v3256_v52 = vadd.f32 1e-05, %v3254_v16  ;;  %v3255_v18 = vmul.f32 0.03125, %v3253_v17 }
0x10fd   : > { %6965 = vrsqrt.f32 %v3256_v52  ;;  %v3257_v19 = vadd.f32 1e-05, %v3255_v18 }
0x10ff   : > { %6967 = vrsqrt.f32 %v3257_v19 }
0x1107   : > { %v6966_v21 = vpop.eup %6965 }
0x1108   : > { %v3260_v23 = vmul.f32 %v6966_v21, %v3244_v54 }
0x1109   : > { %v6968_v26 = vpop.eup %6967 }
0x110a   : > { %v3268_v27 = vmul.f32 %v6053_v22, %v3260_v23  ;;  %v3261_v29 = vmul.f32 %v6968_v26, %v3245_v31 }
0x110c   : > { %v3269_v32 = vmul.f32 %v6053_v22, %v3261_v29  ;;  %v7638_v33 = vadd.f32 %v6054_v30, %v3268_v27 }
0x110e   : > { %v7640_v9 = vadd.f32 %v6054_v30, %v3269_v32 }
0x1110   : > { %v7645_v35 = vpack.c.bf16 %v7640_v9, %v7638_v33 }
0x1112   : > { %6588 = vmatmul.mubr.msk.bf16.vlgmr.msra.gmra.mrb[64].mxu0 %vm1378_vm2, %v7645_v35 }
0x1113   : > { %6600 = vmatpush3.bf16.msra.mxu0 %v6907_v34  ;;  %6603 = vmatprep.mubr.msk.bf16.mxu0 %vm7082_vm1, %v7081_v3 }
0x1114   : > { %6601 = vmatprep.subr.bf16.mxu0 %v7081_v3 }
0x1117   : > { %6602 = vmatpush3.bf16.msra.mxu0 %v6908_v36 }
0x1118   : > { %6613 = vmatprep.subr.bf16.mxu0 %v7081_v3 }
0x111a   : > { %6604 = vmatmul.mubr.msk.bf16.vlgmr.msra.gmra.mrb[68].mxu0 %vm1378_vm2, %v7621_v12 }
0x111b   : > { %6615 = vmatprep.mubr.msk.bf16.mxu0 %vm7082_vm1, %v7081_v3 }
0x1120   : > { %6614 = vmatpush3.bf16.xpose.msra.mxu0 %v3563_v43 }
0x1121   : > { %6625 = vmatprep.subr.bf16.mxu0 %v7081_v3 }
0x11e5   : > { %v3351_v45 = vpop.f32.mrb[64].mxu0 }
0x11e6   : > { %v3352_v46 = vadd.f32 %v6055_v44, %v3351_v45  ;;  %v6589_v47 = vpop.f32.mrb[65].mxu0 }
0x11e7   : > { %v3354_v48 = vpop.f32.mrb[66].mxu0 }
0x11e8   : > { %v3509_v49 = vpack.c.bf16 %v3352_v46, %v3352_v46  ;;  %v3355_v50 = vadd.f32 %v6055_v44, %v3354_v48  ;;  %v6590_v51 = vpop.f32.mrb[67].mxu0 }
0x11ea   : > { %v3510_v28 = vpack.c.bf16 %v3355_v50, %v3355_v50  ;;  %6610 = vmatmul.mubr.msk.bf16.vlgmr.msra.gmra.mrb[68].mxu1 %vm1555_vm3, %v3509_v49 }
0x11eb   : > { %6621 = vmatprep.mubr.msk.bf16.mxu1 %vm7082_vm1, %v7081_v3 }
0x11ec   : > { %6616 = vmatmul.mubr.msk.bf16.vlgmr.msra.gmra.mrb[72].mxu0 %vm1555_vm3, %v3510_v28 }
0x11ed   : > { %v3492_v53 = vpop.f32.mrb[68].mxu0  ;;  %6627 = vmatprep.mubr.msk.bf16.mxu0 %vm7082_vm1, %v7081_v3 }
0x11ee   : > { %v6605_v54 = vpop.f32.mrb[69].mxu0  ;;  %v3493_v57 = vadd.f32 %v6063_v56, %v3492_v53  ;;  %v6085_v53 = vld [vmem:[%s7303_s1 + $0x1] ss:$0 sm:$0xff] }
0x11ef   : > { %v3495_v55 = vpop.f32.mrb[70].mxu0 }
0x11f0   : > { %v6606_v31 = vpop.f32.mrb[71].mxu0  ;;  %v3505_v58 = vrot.slane %v3493_v57, %v7617_v8 }
0x11f2   : > { %v3506_v59 = vcombine.high %v3505_v58, %v3505_v58  ;;  %v3632_v60 = vpack.c.bf16 %v3505_v58, %v3505_v58 }
0x11f4   : > { %v3633_v61 = vpack.c.bf16 %v3506_v59, %v3506_v59  ;;  %v3639_v62 = vsel %vm3637_vm5, %v3632_v60, 0 }
0x11f5   : > { %6620 = vmatpush3.bf16.msra.mxu1 %v3639_v62 }
0x11f6   : > { %v3685_v63 = vsel %vm3637_vm5, %v3633_v61, 0  ;;  %6631 = vmatprep.subr.bf16.mxu1 %v7081_v3 }
0x11f7   : > { %6626 = vmatpush3.bf16.msra.mxu0 %v3685_v63 }
0x11f8   : > { %6639 = vmatprep.subr.bf16.mxu0 %v7081_v3 }
0x12bd   : > { %v3553_v0 = vpop.f32.mrb[68].mxu1 }
0x12be   : > { %v3605_v1 = vmul.f32 0.35355338, %v3553_v0  ;;  %v6611_v2 = vpop.f32.mrb[69].mxu1  ;;  %v6076_v0 = vld [vmem:[%s8061_s29 + $0x1] ss:$0 sm:$0xff] }
0x12bf   : > { %v3556_v5 = vpop.f32.mrb[70].mxu1  ;;  %v3599_v6 = vpop.f32.mrb[72].mxu0 }
0x12c0   : > { %v3606_v10 = vmul.f32 0.35355338, %v3599_v6  ;;  %v6612_v11 = vpop.f32.mrb[71].mxu1  ;;  %v6617_v13 = vpop.f32.mrb[73].mxu0  ;;  %v3608_v14 = vsel %vm3607_vm6, %v3605_v1, -inf }
0x12c1   : > { %3609 = vmax.xlane.f32.xlu1 %v3608_v14  ;;  %v3602_v15 = vpop.f32.mrb[74].mxu0  ;;  %v6094_v14 = vld [vmem:[%s7309_s14 + $0x1] ss:$0 sm:$0xff] }
0x12c2   : > { %v6618_v16 = vpop.f32.mrb[75].mxu0  ;;  %v3611_v17 = vsel %vm3607_vm6, %v3606_v10, -inf }
0x12c3   : > { %3612 = vmax.xlane.f32.xlu0 %v3611_v17 }
0x134e   : > { %v3610_v52 = vpop.xlane.xlu1 %3609 }
0x134f   : > { %v3614_v18 = vsub.f32 %v3605_v1, %v3610_v52 }
0x1350   : > { %v3613_v19 = vpop.xlane.xlu0 %3612 }
0x1351   : > { %v3616_v21 = vmul.f32 1.442695, %v3614_v18  ;;  %v3615_v22 = vsub.f32 %v3606_v10, %v3613_v19 }
0x1353   : > { %6969 = vpow2.f32 %v3616_v21  ;;  %v3618_v23 = vmul.f32 1.442695, %v3615_v22 }
0x1355   : > { %6971 = vpow2.f32 %v3618_v23 }
0x135d   : > { %v6970_v26 = vpop.eup %6969 }
0x135e   : > { %v3620_v27 = vsel %vm3607_vm6, %v6970_v26, 0.0 }
0x135f   : > { %v6972_v29 = vpop.eup %6971  ;;  %3621 = vadd.xlane.f32.xlu1 %v3620_v27 }
0x1360   : > { %v3623_v30 = vsel %vm3607_vm6, %v6972_v29, 0.0 }
0x1361   : > { %3624 = vadd.xlane.f32.xlu0 %v3623_v30 }
0x13ec   : > { %v3622_v32 = vpop.xlane.xlu1 %3621 }
0x13ed   : > { %6973 = vrcp.f32 %v3622_v32 }
0x13ee   : > { %v3625_v34 = vpop.xlane.xlu0 %3624 }
0x13ef   : > { %6975 = vrcp.f32 %v3625_v34 }
0x13f7   : > { %v6974_v36 = vpop.eup %6973 }
0x13f8   : > { %v3628_v37 = vmul.f32 %v6974_v36, %v6970_v26 }
0x13f9   : > { %v6976_v38 = vpop.eup %6975 }
0x13fa   : > { %v3629_v20 = vmul.f32 %v6976_v38, %v6972_v29  ;;  %v3630_v24 = vpack.c.bf16 %v3628_v37, %v3628_v37 }
0x13fc   : > { %6622 = vmatmul.mubr.msk.bf16.vlgmr.msra.gmra.mrb[72].mxu1 %vm3607_vm6, %v3630_v24  ;;  %v3631_v25 = vpack.c.bf16 %v3629_v20, %v3629_v20 }
0x13fd   : > { %6632 = vmatpush3.bf16.msra.mxu1 %v6909_v39  ;;  %6635 = vmatprep.mubr.msk.bf16.mxu1 %vm7082_vm1, %v7081_v3 }
0x13fe   : > { %6628 = vmatmul.mubr.msk.bf16.vlgmr.msra.gmra.mrb[76].mxu0 %vm3607_vm6, %v3631_v25  ;;  %6633 = vmatprep.subr.bf16.mxu1 %v7081_v3 }
0x13ff   : > { %6640 = vmatpush3.bf16.msra.mxu0 %v6910_v4  ;;  %6643 = vmatprep.mubr.msk.bf16.mxu0 %vm7082_vm1, %v7081_v3 }
0x1400   : > { %6641 = vmatprep.subr.bf16.mxu0 %v7081_v3 }
0x1401   : > { %6634 = vmatpush3.bf16.msra.mxu1 %v6911_v40 }
0x1402   : > { %6647 = vmatprep.subr.bf16.mxu1 %v7081_v3 }
0x1403   : > { %6642 = vmatpush3.bf16.msra.mxu0 %v6912_v7 }
0x1404   : > { %6636 = vmatmul.mubr.msk.bf16.vlgmr.msra.gmra.mrb[76].mxu1 %vm1378_vm2, %v7645_v35  ;;  %6655 = vmatprep.subr.bf16.mxu0 %v7081_v3 }
0x1405   : > { %6651 = vmatprep.mubr.msk.bf16.mxu1 %vm7082_vm1, %v7081_v3  ;;  %6648 = vmatpush3.bf16.msra.mxu1 %v6913_v41 }
0x1406   : > { %6644 = vmatmul.mubr.msk.bf16.vlgmr.msra.gmra.mrb[80].mxu0 %vm1378_vm2, %v7621_v12  ;;  %6649 = vmatprep.subr.bf16.mxu1 %v7081_v3 }
0x1407   : > { %6657 = vmatprep.mubr.msk.bf16.mxu0 %vm7082_vm1, %v7081_v3 }
0x1409   : > { %6650 = vmatpush3.bf16.msra.mxu1 %v6914_v42 }
0x140a   : > { %6661 = vmatprep.subr.bf16.mxu1 %v7081_v3 }
0x140c   : > { %6652 = vmatmul.mubr.msk.bf16.vlgmr.msra.gmra.mrb[80].mxu1 %vm1378_vm2, %v7621_v12 }
0x140d   : > { %6663 = vmatprep.mubr.msk.bf16.mxu1 %vm7082_vm1, %v7081_v3 }
0x14cf   : > { %v7711_v43 = vpop.f32.mrb[72].mxu1 }
0x14d0   : > { %v6623_v44 = vpop.f32.mrb[73].mxu1 }
0x14d1   : > { %v3678_v45 = vpop.f32.mrb[74].mxu1  ;;  %v7713_v46 = vpop.f32.mrb[76].mxu0 }
0x14d2   : > { %v3728_v47 = vpack.c.bf16 %v7713_v46, %v7711_v43  ;;  %v6624_v48 = vpop.f32.mrb[75].mxu1  ;;  %v6629_v49 = vpop.f32.mrb[77].mxu0 }
0x14d3   : > { %v3724_v50 = vpop.f32.mrb[78].mxu0 }
0x14d4   : > { %v6630_v51 = vpop.f32.mrb[79].mxu0 }
0x14d7   : > { %v3788_v28 = vpop.f32.mrb[76].mxu1 }
0x14d8   : > { %v6637_v54 = vpop.f32.mrb[77].mxu1  ;;  %v3789_v5 = vadd.f32 %v6076_v0, %v3788_v28 }
0x14d9   : > { %v3791_v55 = vpop.f32.mrb[78].mxu1  ;;  %v3854_v31 = vpop.f32.mrb[80].mxu0 }
0x14da   : > { %v3855_v56 = vadd.f32 %v6085_v53, %v3854_v31  ;;  %v6638_v57 = vpop.f32.mrb[79].mxu1  ;;  %v6645_v58 = vpop.f32.mrb[81].mxu0  ;;  %v3792_v10 = vadd.f32 %v6076_v0, %v3791_v55  ;;  %v3947_v11 = vpack.c.bf16 %v3789_v5, %v3789_v5  ;;  %v6102_v55 = vld [vmem:[%s7312_s5 + $0x4] sm:$0xf]  ;;  %v6916_v0 = vld [vmem:[%s8054_s26 + $0x28] sm:$0xff]  }
0x14db   : > { %v3857_v59 = vpop.f32.mrb[82].mxu0  ;;  %v3727_v57 = vld [vmem:[%s7312_s5] sm:$0xf] }
0x14dc   : > { %v3867_v60 = vrot.slane %v3855_v56, %v7617_v8  ;;  %v6646_v61 = vpop.f32.mrb[83].mxu0  ;;  %v3948_v13 = vpack.c.bf16 %v3792_v10, %v3792_v10 }
0x14de   : > { %v3868_v62 = vcombine.high %v3867_v60, %v3867_v60  ;;  %v3949_v63 = vpack.c.bf16 %v3867_v60, %v3867_v60  ;;  %v4170_v60 = vsel %vm1681_vm4, %v6102_v55, 0 }
0x14df   : > { %v3930_v15 = vpop.f32.mrb[80].mxu1 }
0x14e0   : > { %v3950_v1 = vpack.c.bf16 %v3868_v62, %v3868_v62  ;;  %v3955_v2 = vsel %vm1555_vm3, %v3949_v63, 0  ;;  %v3931_v16 = vadd.f32 %v6094_v14, %v3930_v15  ;;  %v6653_v17 = vpop.f32.mrb[81].mxu1  ;;  %v4217_v62 = vsel %vm1681_vm4, %v3727_v57, 0  ;;  %v6915_v63 = vld [vmem:[%s8054_s26 + $0x20] sm:$0xff]   ;;  %v6918_v14 = vld [vmem:[%s8056_s2 + $0x28] sm:$0xff]  }
0x14e1   : > { %6656 = vmatpush3.bf16.xpose.msra.mxu0 %v3955_v2  ;;  %v3933_v52 = vpop.f32.mrb[82].mxu1  ;;  %v6917_v2 = vld [vmem:[%s8056_s2 + $0x20] sm:$0xff]  }
0x14e2   : > { %v4001_v6 = vsel %vm1555_vm3, %v3950_v1, 0  ;;  %6667 = vmatprep.subr.bf16.mxu0 %v7081_v3  ;;  %v3943_v18 = vrot.slane %v3931_v16, %v7617_v8  ;;  %v6654_v19 = vpop.f32.mrb[83].mxu1  ;;  %v6919_v16 = vld [vmem:[%s7306_s19 + $0x20] sm:$0xff]  }
0x14e3   : > { %6662 = vmatpush3.bf16.xpose.msra.mxu1 %v4001_v6  ;;  %v6920_v19 = vld [vmem:[%s7306_s19 + $0x28] sm:$0xff]  }
0x14e4   : > { %6673 = vmatprep.subr.bf16.mxu1 %v7081_v3  ;;  %v3944_v21 = vcombine.high %v3943_v18, %v3943_v18  ;;  %v4069_v22 = vpack.c.bf16 %v3943_v18, %v3943_v18 }
0x14e6   : > { %v4070_v23 = vpack.c.bf16 %v3944_v21, %v3944_v21  ;;  %v4075_v26 = vsel %vm3637_vm5, %v4069_v22, 0 }
0x14e8   : > { %6658 = vmatmul.mubr.msk.bf16.vlgmr.msra.gmra.mrb[84].mxu0 %vm1555_vm3, %v3947_v11  ;;  %v4121_v27 = vsel %vm3637_vm5, %v4070_v23, 0 }
0x14e9   : > { %6669 = vmatprep.mubr.msk.bf16.mxu0 %vm7082_vm1, %v7081_v3  ;;  %6668 = vmatpush3.bf16.msra.mxu0 %v4075_v26 }
0x14ea   : > { %6664 = vmatmul.mubr.msk.bf16.vlgmr.msra.gmra.mrb[84].mxu1 %vm1555_vm3, %v3948_v13  ;;  %6679 = vmatprep.subr.bf16.mxu0 %v7081_v3 }
0x14eb   : > { %6675 = vmatprep.mubr.msk.bf16.mxu1 %vm7082_vm1, %v7081_v3  ;;  %6674 = vmatpush3.bf16.msra.mxu1 %v4121_v27  ;;  %v6119_v27 = vld [vmem:[%s7303_s1 + $0x2] ss:$0 sm:$0xff] }
0x14ec   : > { %6685 = vmatprep.subr.bf16.mxu1 %v7081_v3 }
0x15bb   : > { %v3991_v29 = vpop.f32.mrb[84].mxu0 }
0x15bc   : > { %v4043_v30 = vmul.f32 0.35355338, %v3991_v29  ;;  %v6659_v32 = vpop.f32.mrb[85].mxu0 }
0x15bd   : > { %v3994_v34 = vpop.f32.mrb[86].mxu0  ;;  %v4037_v36 = vpop.f32.mrb[84].mxu1 }
0x15be   : > { %v4044_v37 = vmul.f32 0.35355338, %v4037_v36  ;;  %v6660_v38 = vpop.f32.mrb[87].mxu0  ;;  %v6665_v39 = vpop.f32.mrb[85].mxu1  ;;  %v4045_v20 = vsel %vm3607_vm6, %v4043_v30, -inf }
0x15bf   : > { %v4040_v24 = vpop.f32.mrb[86].mxu1  ;;  %4046 = vmax.xlane.f32.xlu0 %v4045_v20 }
0x15c0   : > { %v6666_v4 = vpop.f32.mrb[87].mxu1  ;;  %v4048_v25 = vsel %vm3607_vm6, %v4044_v37, -inf }
0x15c1   : > { %4049 = vmax.xlane.f32.xlu1 %v4048_v25 }
0x164c   : > { %v4047_v40 = vpop.xlane.xlu0 %4046 }
0x164d   : > { %v4051_v7 = vsub.f32 %v4043_v30, %v4047_v40 }
0x164e   : > { %v4050_v41 = vpop.xlane.xlu1 %4049 }
0x164f   : > { %v4053_v42 = vmul.f32 1.442695, %v4051_v7  ;;  %v4052_v44 = vsub.f32 %v4044_v37, %v4050_v41  ;;  %v6110_v7 = vld [vmem:[%s8061_s29 + $0x2] ss:$0 sm:$0xff] }
0x1651   : > { %6977 = vpow2.f32 %v4053_v42  ;;  %v4055_v45 = vmul.f32 1.442695, %v4052_v44 }
0x1653   : > { %6979 = vpow2.f32 %v4055_v45 }
0x165b   : > { %v6978_v48 = vpop.eup %6977 }
0x165c   : > { %v4057_v49 = vsel %vm3607_vm6, %v6978_v48, 0.0 }
0x165d   : > { %v6980_v50 = vpop.eup %6979  ;;  %4058 = vadd.xlane.f32.xlu0 %v4057_v49 }
0x165e   : > { %v4060_v51 = vsel %vm3607_vm6, %v6980_v50, 0.0 }
0x165f   : > { %4061 = vadd.xlane.f32.xlu1 %v4060_v51 }
0x16ea   : > { %v4059_v28 = vpop.xlane.xlu0 %4058 }
0x16eb   : > { %6981 = vrcp.f32 %v4059_v28 }
0x16ec   : > { %v4062_v53 = vpop.xlane.xlu1 %4061 }
0x16ed   : > { %6983 = vrcp.f32 %v4062_v53 }
0x16f5   : > { %v6982_v54 = vpop.eup %6981 }
0x16f6   : > { %v4065_v31 = vmul.f32 %v6982_v54, %v6978_v48 }
0x16f7   : > { %v6984_v56 = vpop.eup %6983 }
0x16f8   : > { %v4066_v58 = vmul.f32 %v6984_v56, %v6980_v50  ;;  %v4067_v59 = vpack.c.bf16 %v4065_v31, %v4065_v31  ;;  %v6128_v31 = vld [vmem:[%s7309_s14 + $0x2] ss:$0 sm:$0xff] }
0x16fa   : > { %6670 = vmatmul.mubr.msk.bf16.vlgmr.msra.gmra.mrb[88].mxu0 %vm3607_vm6, %v4067_v59  ;;  %v4068_v61 = vpack.c.bf16 %v4066_v58, %v4066_v58 }
0x16fb   : > { %6680 = vmatpush3.bf16.msra.mxu0 %v4170_v60  ;;  %6681 = vmatprep.mubr.msk.bf16.mxu0 %vm7082_vm1, %v7081_v3 }
0x16fc   : > { %6676 = vmatmul.mubr.msk.bf16.vlgmr.msra.gmra.mrb[88].mxu1 %vm3607_vm6, %v4068_v61  ;;  %6691 = vmatprep.subr.bf16.mxu0 %v7081_v3 }
0x16fd   : > { %6686 = vmatpush3.bf16.msra.mxu1 %v4217_v62  ;;  %6687 = vmatprep.mubr.msk.bf16.mxu1 %vm7082_vm1, %v7081_v3 }
0x16fe   : > { %6699 = vmatprep.subr.bf16.mxu1 %v7081_v3 }
0x1704   : > { %6688 = vmatmul.mubr.msk.bf16.vlgmr.msra.gmra.mrb[92].mxu1 %vm1555_vm3, %v3728_v47 }
0x1705   : > { %6700 = vmatpush3.bf16.msra.mxu1 %v6915_v63  ;;  %6703 = vmatprep.mubr.msk.bf16.mxu1 %vm7082_vm1, %v7081_v3 }
0x1706   : > { %6701 = vmatprep.subr.bf16.mxu1 %v7081_v3 }
0x1709   : > { %6702 = vmatpush3.bf16.msra.mxu1 %v6916_v0 }
0x170a   : > { %6715 = vmatprep.subr.bf16.mxu1 %v7081_v3 }
0x170c   : > { %6704 = vmatmul.mubr.msk.bf16.vlgmr.msra.gmra.mrb[96].mxu1 %vm1378_vm2, %v7621_v12 }
0x170d   : > { %6717 = vmatprep.mubr.msk.bf16.mxu1 %vm7082_vm1, %v7081_v3 }
0x17cd   : > { %v4111_v43 = vpop.f32.mrb[88].mxu0 }
0x17ce   : > { %v6671_v46 = vpop.f32.mrb[89].mxu0 }
0x17cf   : > { %v4114_v47 = vpop.f32.mrb[90].mxu0  ;;  %v4157_v1 = vpop.f32.mrb[88].mxu1 }
0x17d0   : > { %v4165_v5 = vpack.c.bf16 %v4157_v1, %v4111_v43  ;;  %v6672_v6 = vpop.f32.mrb[91].mxu0  ;;  %v6677_v10 = vpop.f32.mrb[89].mxu1 }
0x17d1   : > { %v4160_v11 = vpop.f32.mrb[90].mxu1 }
0x17d2   : > { %v6678_v13 = vpop.f32.mrb[91].mxu1  ;;  %6682 = vmatmul.mubr.msk.bf16.vlgmr.msra.gmra.mrb[92].mxu0 %vm1555_vm3, %v4165_v5 }
0x17d3   : > { %6692 = vmatpush3.bf16.msra.mxu0 %v6917_v2  ;;  %6695 = vmatprep.mubr.msk.bf16.mxu0 %vm7082_vm1, %v7081_v3 }
0x17d4   : > { %6693 = vmatprep.subr.bf16.mxu0 %v7081_v3 }
0x17d7   : > { %v4253_v15 = vpop.f32.mrb[92].mxu1  ;;  %6694 = vmatpush3.bf16.msra.mxu0 %v6918_v14 }
0x17d8   : > { %v6689_v17 = vpop.f32.mrb[93].mxu1  ;;  %6707 = vmatprep.subr.bf16.mxu0 %v7081_v3 }
0x17d9   : > { %v4256_v52 = vpop.f32.mrb[94].mxu1 }
0x17da   : > { %v6690_v18 = vpop.f32.mrb[95].mxu1  ;;  %6696 = vmatmul.mubr.msk.bf16.vlgmr.msra.gmra.mrb[96].mxu0 %vm1378_vm2, %v7645_v35 }
0x17db   : > { %6708 = vmatpush3.bf16.msra.mxu0 %v6919_v16  ;;  %6711 = vmatprep.mubr.msk.bf16.mxu0 %vm7082_vm1, %v7081_v3 }
0x17dc   : > { %6709 = vmatprep.subr.bf16.mxu0 %v7081_v3 }
0x17df   : > { %v4385_v21 = vpop.f32.mrb[96].mxu1  ;;  %6710 = vmatpush3.bf16.msra.mxu0 %v6920_v19 }
0x17e0   : > { %v6705_v22 = vpop.f32.mrb[97].mxu1  ;;  %6721 = vmatprep.subr.bf16.mxu0 %v7081_v3  ;;  %v4386_v29 = vadd.f32 %v6119_v27, %v4385_v21 }
0x17e1   : > { %v4388_v23 = vpop.f32.mrb[98].mxu1 }
0x17e2   : > { %v6706_v26 = vpop.f32.mrb[99].mxu1  ;;  %6712 = vmatmul.mubr.msk.bf16.vlgmr.msra.gmra.mrb[100].mxu0 %vm1378_vm2, %v7621_v12  ;;  %v4398_v30 = vrot.slane %v4386_v29, %v7617_v8 }
0x17e3   : > { %6723 = vmatprep.mubr.msk.bf16.mxu0 %vm7082_vm1, %v7081_v3 }
0x17e4   : > { %v4399_v32 = vcombine.high %v4398_v30, %v4398_v30  ;;  %v4480_v34 = vpack.c.bf16 %v4398_v30, %v4398_v30  ;;  %v6136_v30 = vld [vmem:[%s7312_s5 + $0x8] sm:$0xf] }
0x17e6   : > { %v4481_v36 = vpack.c.bf16 %v4399_v32, %v4399_v32  ;;  %v4486_v37 = vsel %vm1555_vm3, %v4480_v34, 0 }
0x17e7   : > { %6716 = vmatpush3.bf16.xpose.msra.mxu1 %v4486_v37 }
0x17e8   : > { %6727 = vmatprep.subr.bf16.mxu1 %v7081_v3  ;;  %v4532_v38 = vsel %vm1555_vm3, %v4481_v36, 0 }
0x17e9   : > { %6722 = vmatpush3.bf16.xpose.msra.mxu0 %v4532_v38  ;;  %v4701_v38 = vsel %vm1681_vm4, %v6136_v30, 0 }
0x17ea   : > { %6733 = vmatprep.subr.bf16.mxu0 %v7081_v3 }
0x18a5   : > { %v4206_v39 = vpop.f32.mrb[92].mxu0 }
0x18a6   : > { %v7791_v20 = vadd.f32 %v4253_v15, %v4206_v39  ;;  %v6683_v24 = vpop.f32.mrb[93].mxu0  ;;  %v6921_v39 = vld [vmem:[%s8056_s2 + $0x30] sm:$0xff]  }
0x18a7   : > { %v4209_v4 = vpop.f32.mrb[94].mxu0 }
0x18a8   : > { %v7793_v25 = vadd.f32 %v4256_v52, %v4209_v4  ;;  %v6684_v40 = vpop.f32.mrb[95].mxu0  ;;  %v6922_v4 = vld [vmem:[%s8056_s2 + $0x38] sm:$0xff]  }
0x18ad   : > { %v4319_v41 = vpop.f32.mrb[96].mxu0 }
0x18ae   : > { %v4320_v42 = vadd.f32 %v6110_v7, %v4319_v41  ;;  %v6697_v44 = vpop.f32.mrb[97].mxu0 }
0x18af   : > { %v4322_v45 = vpop.f32.mrb[98].mxu0  ;;  %v6923_v44 = vld [vmem:[%s8054_s26 + $0x30] sm:$0xff]  }
0x18b0   : > { %v4478_v48 = vpack.c.bf16 %v4320_v42, %v4320_v42  ;;  %v4323_v49 = vadd.f32 %v6110_v7, %v4322_v45  ;;  %v6698_v50 = vpop.f32.mrb[99].mxu0 }
0x18b2   : > { %v4479_v51 = vpack.c.bf16 %v4323_v49, %v4323_v49  ;;  %6718 = vmatmul.mubr.msk.bf16.vlgmr.msra.gmra.mrb[100].mxu1 %vm1555_vm3, %v4478_v48 }
0x18b3   : > { %6729 = vmatprep.mubr.msk.bf16.mxu1 %vm7082_vm1, %v7081_v3 }
0x18b4   : > { %6724 = vmatmul.mubr.msk.bf16.vlgmr.msra.gmra.mrb[104].mxu0 %vm1555_vm3, %v4479_v51 }
0x18b5   : > { %v4461_v28 = vpop.f32.mrb[100].mxu0  ;;  %6735 = vmatprep.mubr.msk.bf16.mxu0 %vm7082_vm1, %v7081_v3 }
0x18b6   : > { %v6713_v53 = vpop.f32.mrb[101].mxu0  ;;  %v4462_v56 = vadd.f32 %v6128_v31, %v4461_v28  ;;  %v6924_v28 = vld [vmem:[%s8054_s26 + $0x38] sm:$0xff]   ;;  %v6925_v31 = vld [vmem:[%s7306_s19 + $0x30] sm:$0xff]  }
0x18b7   : > { %v4464_v54 = vpop.f32.mrb[102].mxu0 }
0x18b8   : > { %v6714_v55 = vpop.f32.mrb[103].mxu0  ;;  %v4474_v57 = vrot.slane %v4462_v56, %v7617_v8  ;;  %v6926_v56 = vld [vmem:[%s7306_s19 + $0x38] sm:$0xff]  }
0x18ba   : > { %v4475_v58 = vcombine.high %v4474_v57, %v4474_v57  ;;  %v4600_v59 = vpack.c.bf16 %v4474_v57, %v4474_v57 }
0x18bc   : > { %v4601_v60 = vpack.c.bf16 %v4475_v58, %v4475_v58  ;;  %v4606_v61 = vsel %vm3637_vm5, %v4600_v59, 0 }
0x18bd   : > { %6728 = vmatpush3.bf16.msra.mxu1 %v4606_v61 }
0x18be   : > { %v4652_v62 = vsel %vm3637_vm5, %v4601_v60, 0  ;;  %6739 = vmatprep.subr.bf16.mxu1 %v7081_v3 }
0x18bf   : > { %6734 = vmatpush3.bf16.msra.mxu0 %v4652_v62 }
0x18c0   : > { %6745 = vmatprep.subr.bf16.mxu0 %v7081_v3 }
0x1985   : > { %v4522_v63 = vpop.f32.mrb[100].mxu1 }
0x1986   : > { %v4574_v0 = vmul.f32 0.35355338, %v4522_v63  ;;  %v6719_v43 = vpop.f32.mrb[101].mxu1  ;;  %v6152_v63 = vld [vmem:[%s7303_s1 + $0x3] ss:$0 sm:$0xff] }
0x1987   : > { %v4525_v46 = vpop.f32.mrb[102].mxu1  ;;  %v4568_v47 = vpop.f32.mrb[104].mxu0 }
0x1988   : > { %v4575_v1 = vmul.f32 0.35355338, %v4568_v47  ;;  %v6720_v2 = vpop.f32.mrb[103].mxu1  ;;  %v6725_v5 = vpop.f32.mrb[105].mxu0  ;;  %v4576_v6 = vsel %vm3607_vm6, %v4574_v0, -inf }
0x1989   : > { %4577 = vmax.xlane.f32.xlu0 %v4576_v6  ;;  %v4571_v10 = vpop.f32.mrb[106].mxu0  ;;  %v6143_v6 = vld [vmem:[%s8061_s29 + $0x3] ss:$0 sm:$0xff] }
0x198a   : > { %v6726_v11 = vpop.f32.mrb[107].mxu0  ;;  %v4579_v13 = vsel %vm3607_vm6, %v4575_v1, -inf }
0x198b   : > { %4580 = vmax.xlane.f32.xlu1 %v4579_v13 }
0x1a16   : > { %v4578_v14 = vpop.xlane.xlu0 %4577 }
0x1a17   : > { %v4582_v15 = vsub.f32 %v4574_v0, %v4578_v14 }
0x1a18   : > { %v4581_v16 = vpop.xlane.xlu1 %4580 }
0x1a19   : > { %v4584_v17 = vmul.f32 1.442695, %v4582_v15  ;;  %v4583_v52 = vsub.f32 %v4575_v1, %v4581_v16  ;;  %v6161_v16 = vld [vmem:[%s7309_s14 + $0x3] ss:$0 sm:$0xff] }
0x1a1b   : > { %6985 = vpow2.f32 %v4584_v17  ;;  %v4586_v18 = vmul.f32 1.442695, %v4583_v52 }
0x1a1d   : > { %6987 = vpow2.f32 %v4586_v18 }
0x1a25   : > { %v6986_v19 = vpop.eup %6985 }
0x1a26   : > { %v4588_v21 = vsel %vm3607_vm6, %v6986_v19, 0.0 }
0x1a27   : > { %v6988_v22 = vpop.eup %6987  ;;  %4589 = vadd.xlane.f32.xlu0 %v4588_v21 }
0x1a28   : > { %v4591_v23 = vsel %vm3607_vm6, %v6988_v22, 0.0 }
0x1a29   : > { %4592 = vadd.xlane.f32.xlu1 %v4591_v23 }
0x1ab4   : > { %v4590_v26 = vpop.xlane.xlu0 %4589 }
0x1ab5   : > { %6989 = vrcp.f32 %v4590_v26 }
0x1ab6   : > { %v4593_v27 = vpop.xlane.xlu1 %4592 }
0x1ab7   : > { %6991 = vrcp.f32 %v4593_v27 }
0x1abf   : > { %v6990_v29 = vpop.eup %6989 }
0x1ac0   : > { %v4596_v32 = vmul.f32 %v6990_v29, %v6986_v19 }
0x1ac1   : > { %v6992_v34 = vpop.eup %6991 }
0x1ac2   : > { %v4597_v36 = vmul.f32 %v6992_v34, %v6988_v22  ;;  %v4598_v37 = vpack.c.bf16 %v4596_v32, %v4596_v32 }
0x1ac4   : > { %6730 = vmatmul.mubr.msk.bf16.vlgmr.msra.gmra.mrb[104].mxu1 %vm3607_vm6, %v4598_v37  ;;  %v4599_v24 = vpack.c.bf16 %v4597_v36, %v4597_v36 }
0x1ac5   : > { %6740 = vmatpush3.bf16.msra.mxu1 %v4701_v38  ;;  %6741 = vmatprep.mubr.msk.bf16.mxu1 %vm7082_vm1, %v7081_v3 }
0x1ac6   : > { %6736 = vmatmul.mubr.msk.bf16.vlgmr.msra.gmra.mrb[108].mxu0 %vm3607_vm6, %v4599_v24  ;;  %6753 = vmatprep.subr.bf16.mxu1 %v7081_v3 }
0x1ac7   : > { %6746 = vmatpush3.bf16.msra.mxu0 %v6921_v39  ;;  %6749 = vmatprep.mubr.msk.bf16.mxu0 %vm7082_vm1, %v7081_v3 }
0x1ac8   : > { %6747 = vmatprep.subr.bf16.mxu0 %v7081_v3 }
0x1acb   : > { %6748 = vmatpush3.bf16.msra.mxu0 %v6922_v4 }
0x1acc   : > { %6761 = vmatprep.subr.bf16.mxu0 %v7081_v3 }
0x1ace   : > { %6750 = vmatmul.mubr.msk.bf16.vlgmr.msra.gmra.mrb[112].mxu0 %vm1378_vm2, %v7645_v35 }
0x1acf   : > { %6765 = vmatprep.mubr.msk.bf16.mxu0 %vm7082_vm1, %v7081_v3  ;;  %6762 = vmatpush3.bf16.msra.mxu0 %v6925_v31 }
0x1ad0   : > { %6763 = vmatprep.subr.bf16.mxu0 %v7081_v3 }
0x1ad3   : > { %6764 = vmatpush3.bf16.msra.mxu0 %v6926_v56  ;;  %v6169_v56 = vld [vmem:[%s7312_s5 + $0xc] sm:$0xf] }
0x1ad4   : > { %6775 = vmatprep.subr.bf16.mxu0 %v7081_v3 }
0x1ad6   : > { %6766 = vmatmul.mubr.msk.bf16.vlgmr.msra.gmra.mrb[116].mxu0 %vm1378_vm2, %v7621_v12 }
0x1ad7   : > { %6777 = vmatprep.mubr.msk.bf16.mxu0 %vm7082_vm1, %v7081_v3 }
0x1b97   : > { %v4642_v40 = vpop.f32.mrb[104].mxu1 }
0x1b98   : > { %v6731_v7 = vpop.f32.mrb[105].mxu1 }
0x1b99   : > { %v4645_v41 = vpop.f32.mrb[106].mxu1  ;;  %v4688_v42 = vpop.f32.mrb[108].mxu0 }
0x1b9a   : > { %v4696_v45 = vpack.c.bf16 %v4688_v42, %v4642_v40  ;;  %v6732_v48 = vpop.f32.mrb[107].mxu1  ;;  %v6737_v49 = vpop.f32.mrb[109].mxu0 }
0x1b9b   : > { %v4691_v50 = vpop.f32.mrb[110].mxu0 }
0x1b9c   : > { %v6738_v51 = vpop.f32.mrb[111].mxu0  ;;  %6742 = vmatmul.mubr.msk.bf16.vlgmr.msra.gmra.mrb[108].mxu1 %vm1555_vm3, %v4696_v45 }
0x1b9d   : > { %6754 = vmatpush3.bf16.msra.mxu1 %v6923_v44  ;;  %6757 = vmatprep.mubr.msk.bf16.mxu1 %vm7082_vm1, %v7081_v3 }
0x1b9e   : > { %6755 = vmatprep.subr.bf16.mxu1 %v7081_v3 }
0x1ba1   : > { %v4805_v35 = vpop.f32.mrb[112].mxu0  ;;  %6756 = vmatpush3.bf16.msra.mxu1 %v6924_v28 }
0x1ba2   : > { %v6751_v53 = vpop.f32.mrb[113].mxu0  ;;  %6769 = vmatprep.subr.bf16.mxu1 %v7081_v3  ;;  %v4806_v11 = vadd.f32 %v6143_v6, %v4805_v35 }
0x1ba3   : > { %v4808_v54 = vpop.f32.mrb[114].mxu0 }
0x1ba4   : > { %v6752_v55 = vpop.f32.mrb[115].mxu0  ;;  %6758 = vmatmul.mubr.msk.bf16.vlgmr.msra.gmra.mrb[112].mxu1 %vm1378_vm2, %v7621_v12  ;;  %v4809_v13 = vadd.f32 %v6143_v6, %v4808_v54  ;;  %v4964_v14 = vpack.c.bf16 %v4806_v11, %v4806_v11  ;;  %v6171_v11 = vld [vmem:[%s1310_s24] ss:$0 sm:$0xff] }
0x1ba5   : > { %6771 = vmatprep.mubr.msk.bf16.mxu1 %vm7082_vm1, %v7081_v3 }
0x1ba6   : > { %v4965_v15 = vpack.c.bf16 %v4809_v13, %v4809_v13 }
0x1ba9   : > { %v4947_v17 = vpop.f32.mrb[116].mxu0 }
0x1baa   : > { %v4948_v52 = vadd.f32 %v6161_v16, %v4947_v17  ;;  %v6767_v18 = vpop.f32.mrb[117].mxu0 }
0x1bab   : > { %v4950_v19 = vpop.f32.mrb[118].mxu0 }
0x1bac   : > { %v4960_v21 = vrot.slane %v4948_v52, %v7617_v8  ;;  %v6768_v22 = vpop.f32.mrb[119].mxu0 }
0x1bae   : > { %v4961_v23 = vcombine.high %v4960_v21, %v4960_v21  ;;  %v5086_v26 = vpack.c.bf16 %v4960_v21, %v4960_v21 }
0x1bb0   : > { %v5087_v27 = vpack.c.bf16 %v4961_v23, %v4961_v23  ;;  %v5092_v29 = vsel %vm3637_vm5, %v5086_v26, 0 }
0x1bb2   : > { %v5138_v30 = vsel %vm3637_vm5, %v5087_v27, 0 }
0x1c6f   : > { %v4737_v57 = vpop.f32.mrb[108].mxu1 }
0x1c70   : > { %v7849_v58 = vadd.f32 %v4737_v57, %v7791_v20  ;;  %v6743_v59 = vpop.f32.mrb[109].mxu1 }
0x1c71   : > { %v4740_v60 = vpop.f32.mrb[110].mxu1 }
0x1c72   : > { %v7852_v61 = vadd.f32 %v4740_v60, %v7793_v25  ;;  %v6744_v62 = vpop.f32.mrb[111].mxu1 }
0x1c77   : > { %v4871_v0 = vpop.f32.mrb[112].mxu1 }
0x1c78   : > { %v4872_v43 = vadd.f32 %v6152_v63, %v4871_v0  ;;  %v6759_v46 = vpop.f32.mrb[113].mxu1  ;;  %v5187_v63 = vsel %vm1681_vm4, %v6169_v56, 0 }
0x1c79   : > { %v4874_v47 = vpop.f32.mrb[114].mxu1 }
0x1c7a   : > { %v4884_v12 = vrot.slane %v4872_v43, %v7617_v8  ;;  %v6760_v1 = vpop.f32.mrb[115].mxu1 }
0x1c7c   : > { %v4885_v2 = vcombine.high %v4884_v12, %v4884_v12  ;;  %v4966_v5 = vpack.c.bf16 %v4884_v12, %v4884_v12 }
0x1c7e   : > { %v4967_v20 = vpack.c.bf16 %v4885_v2, %v4885_v2  ;;  %v4972_v10 = vsel %vm1555_vm3, %v4966_v5, 0 }
0x1c7f   : > { %6770 = vmatpush3.bf16.xpose.msra.mxu1 %v4972_v10 }
0x1c80   : > { %v5018_v25 = vsel %vm1555_vm3, %v4967_v20, 0  ;;  %6781 = vmatprep.subr.bf16.mxu1 %v7081_v3 }
0x1c81   : > { %6776 = vmatpush3.bf16.xpose.msra.mxu0 %v5018_v25 }
0x1c82   : > { %6787 = vmatprep.subr.bf16.mxu0 %v7081_v3 }
0x1c86   : > { %6772 = vmatmul.mubr.msk.bf16.vlgmr.msra.gmra.mrb[116].mxu1 %vm1555_vm3, %v4964_v14 }
0x1c87   : > { %6783 = vmatprep.mubr.msk.bf16.mxu1 %vm7082_vm1, %v7081_v3  ;;  %6782 = vmatpush3.bf16.msra.mxu1 %v5092_v29 }
0x1c88   : > { %6778 = vmatmul.mubr.msk.bf16.vlgmr.msra.gmra.mrb[120].mxu0 %vm1555_vm3, %v4965_v15  ;;  %6793 = vmatprep.subr.bf16.mxu1 %v7081_v3 }
0x1c89   : > { %6789 = vmatprep.mubr.msk.bf16.mxu0 %vm7082_vm1, %v7081_v3  ;;  %6788 = vmatpush3.bf16.msra.mxu0 %v5138_v30 }
0x1c8a   : > { %6799 = vmatprep.subr.bf16.mxu0 %v7081_v3 }
0x1d59   : > { %v5008_v32 = vpop.f32.mrb[116].mxu1 }
0x1d5a   : > { %v5060_v34 = vmul.f32 0.35355338, %v5008_v32  ;;  %v6773_v36 = vpop.f32.mrb[117].mxu1 }
0x1d5b   : > { %v5011_v37 = vpop.f32.mrb[118].mxu1  ;;  %v5054_v38 = vpop.f32.mrb[120].mxu0  ;;  %v6928_v36 = vld [vmem:[%s7321_s25 + $0x8] sm:$0xff]  }
0x1d5c   : > { %v5061_v8 = vmul.f32 0.35355338, %v5054_v38  ;;  %v6774_v39 = vpop.f32.mrb[119].mxu1  ;;  %v6779_v24 = vpop.f32.mrb[121].mxu0  ;;  %v5062_v4 = vsel %vm3607_vm6, %v5060_v34, -inf  ;;  %v6929_v37 = vld [vmem:[%s7327_s12] sm:$0xff]  }
0x1d5d   : > { %5063 = vmax.xlane.f32.xlu0 %v5062_v4  ;;  %v5057_v40 = vpop.f32.mrb[122].mxu0  ;;  %v6930_v38 = vld [vmem:[%s7327_s12 + $0x8] sm:$0xff]  }
0x1d5e   : > { %v6780_v7 = vpop.f32.mrb[123].mxu0  ;;  %v5065_v41 = vsel %vm3607_vm6, %v5061_v8, -inf }
0x1d5f   : > { %5066 = vmax.xlane.f32.xlu1 %v5065_v41 }
0x1dea   : > { %v5064_v42 = vpop.xlane.xlu0 %5063 }
0x1deb   : > { %v5068_v44 = vsub.f32 %v5060_v34, %v5064_v42  ;;  %v6927_v34 = vld [vmem:[%s7321_s25] sm:$0xff]  }
0x1dec   : > { %v5067_v45 = vpop.xlane.xlu1 %5066  ;;  %v6172_v42 = vld [vmem:[%s1313_s11] ss:$0 sm:$0xff] }
0x1ded   : > { %v5070_v48 = vmul.f32 1.442695, %v5068_v44  ;;  %v5069_v49 = vsub.f32 %v5061_v8, %v5067_v45 }
0x1def   : > { %6993 = vpow2.f32 %v5070_v48  ;;  %v5072_v50 = vmul.f32 1.442695, %v5069_v49 }
0x1df1   : > { %6995 = vpow2.f32 %v5072_v50  ;;  %v6173_v50 = vld [vmem:[%s1316_s30] ss:$0 sm:$0xff] }
0x1df9   : > { %v6994_v51 = vpop.eup %6993 }
0x1dfa   : > { %v5074_v28 = vsel %vm3607_vm6, %v6994_v51, 0.0 }
0x1dfb   : > { %v6996_v35 = vpop.eup %6995  ;;  %5075 = vadd.xlane.f32.xlu0 %v5074_v28 }
0x1dfc   : > { %v5077_v53 = vsel %vm3607_vm6, %v6996_v35, 0.0 }
0x1dfd   : > { %5078 = vadd.xlane.f32.xlu1 %v5077_v53 }
0x1e88   : > { %v5076_v54 = vpop.xlane.xlu0 %5075 }
0x1e89   : > { %6997 = vrcp.f32 %v5076_v54  ;;  %v6931_v54 = vld [vmem:[%s7327_s12 + $0x10] sm:$0xff]  }
0x1e8a   : > { %v5079_v55 = vpop.xlane.xlu1 %5078 }
0x1e8b   : > { %6999 = vrcp.f32 %v5079_v55  ;;  %v6932_v55 = vld [vmem:[%s7327_s12 + $0x18] sm:$0xff]  }
0x1e93   : > { %v6998_v31 = vpop.eup %6997 }
0x1e94   : > { %v5082_v57 = vmul.f32 %v6998_v31, %v6994_v51  ;;  %v6174_v31 = vld [vmem:[%s1324_s6] ss:$0 sm:$0xff]  ;;  %s8068_s6 = sld [smem:[#allocation37_spill]] }
0x1e95   : > { %v7000_v59 = vpop.eup %6999 }
0x1e96   : > { %v5083_v60 = vmul.f32 %v7000_v59, %v6996_v35  ;;  %v5084_v62 = vpack.c.bf16 %v5082_v57, %v5082_v57 }
0x1e98   : > { %6784 = vmatmul.mubr.msk.bf16.vlgmr.msra.gmra.mrb[120].mxu1 %vm3607_vm6, %v5084_v62  ;;  %v5085_v0 = vpack.c.bf16 %v5083_v60, %v5083_v60 }
0x1e99   : > { %6794 = vmatpush3.bf16.msra.mxu1 %v5187_v63  ;;  %6795 = vmatprep.mubr.msk.bf16.mxu1 %vm7082_vm1, %v7081_v3 }
0x1e9a   : > { %6790 = vmatmul.mubr.msk.bf16.vlgmr.msra.gmra.mrb[124].mxu0 %vm3607_vm6, %v5085_v0  ;;  %6807 = vmatprep.subr.bf16.mxu1 %v7081_v3  ;;  %p6186_p5 = scmp.ne.s32.totalorder %s8068_s6, 1 }
0x1e9b   : > { %6803 = vmatprep.mubr.msk.bf16.mxu0 %vm7082_vm1, %v7081_v3  ;;  %6800 = vmatpush3.bf16.msra.mxu0 %v6927_v34  ;;  %v6185_v34 = vld [vmem:[%s1338_s9] ss:$0 sm:$0xff]  ;;  %s8069_s12 = sld [smem:[#allocation34_spill]] (!%p6186_p5)  ;;  %vm7085_vm8 = vmmov (!%p6186_p5), 0  }
0x1e9c   : > { %6801 = vmatprep.subr.bf16.mxu0 %v7081_v3 }
0x1e9f   : > { %6802 = vmatpush3.bf16.msra.mxu0 %v6928_v36 }
0x1f6b   : > { %v5128_v43 = vpop.f32.mrb[120].mxu1 }
0x1f6c   : > { %v6785_v46 = vpop.f32.mrb[121].mxu1 }
0x1f6d   : > { %v5131_v47 = vpop.f32.mrb[122].mxu1  ;;  %v5174_v12 = vpop.f32.mrb[124].mxu0 }
0x1f6e   : > { %v5182_v1 = vpack.c.bf16 %v5174_v12, %v5128_v43  ;;  %v6786_v2 = vpop.f32.mrb[123].mxu1  ;;  %v6791_v5 = vpop.f32.mrb[125].mxu0  ;;  %v6178_v47 = vld [vmem:[%s1332_s16] ss:$0 sm:$0xff] }
0x1f6f   : > { %v5177_v6 = vpop.f32.mrb[126].mxu0 }
0x1f70   : > { %v6792_v20 = vpop.f32.mrb[127].mxu0  ;;  %6796 = vmatmul.mubr.msk.bf16.vlgmr.msra.gmra.mrb[124].mxu1 %vm1555_vm3, %v5182_v1 }
0x1f71   : > { %6815 = vmatprep.mubr.msk.bf16.mxu1 %vm7082_vm1, %v7081_v3  ;;  %6808 = vmatpush3.bf16.msra.mxu1 %v6929_v37 }
0x1f72   : > { %6809 = vmatprep.subr.bf16.mxu1 %v7081_v3 }
0x1f75   : > { %6810 = vmatpush3.bf16.msra.mxu1 %v6930_v38 }
0x1f76   : > { %6811 = vmatprep.subr.bf16.mxu1 %v7081_v3 }
0x1f79   : > { %6812 = vmatpush3.bf16.msra.mxu1 %v6931_v54 }
0x1f7a   : > { %6813 = vmatprep.subr.bf16.mxu1 %v7081_v3 }
0x1f7d   : > { %6814 = vmatpush3.bf16.msra.mxu1 %v6932_v55 }
0x2043   : > { %v5223_v10 = vpop.f32.mrb[124].mxu1 }
0x2044   : > { %v5230_v25 = vadd.f32 %v5223_v10, %v7849_v58  ;;  %v6797_v13 = vpop.f32.mrb[125].mxu1 }
0x2045   : > { %v5226_v14 = vpop.f32.mrb[126].mxu1 }
0x2046   : > { %v5239_v15 = vadd.f32 %v6171_v11, %v5230_v25  ;;  %v5231_v16 = vadd.f32 %v5226_v14, %v7852_v61  ;;  %v6798_v17 = vpop.f32.mrb[127].mxu1 }
0x2048   : > { %v5240_v52 = vadd.f32 %v6171_v11, %v5231_v16  ;;  %v5241_v18 = vadd.f32 %v5239_v15, %v7638_v33 }
0x204a   : > { %v5245_v19 = vsel %vm1378_vm2, %v5241_v18, 0.0  ;;  %v5242_v21 = vadd.f32 %v5240_v52, %v7640_v9 }
0x204b   : > { %5246 = vadd.xlane.f32.xlu0 %v5245_v19 }
0x204c   : > { %v5248_v22 = vsel %vm1378_vm2, %v5242_v21, 0.0 }
0x204d   : > { %5249 = vadd.xlane.f32.xlu1 %v5248_v22 }
0x20d8   : > { %v5247_v58 = vpop.xlane.xlu0 %5246 }
0x20d9   : > { %v5251_v23 = vmul.f32 0.03125, %v5247_v58 }
0x20da   : > { %v5250_v26 = vpop.xlane.xlu1 %5249 }
0x20db   : > { %v5253_v27 = vsub.f32 %v5241_v18, %v5251_v23  ;;  %v5252_v61 = vmul.f32 0.03125, %v5250_v26 }
0x20dd   : > { %v5254_v29 = vsub.f32 %v5242_v21, %v5252_v61  ;;  %v5255_v30 = vmul.f32 %v5253_v27, %v5253_v27 }
0x20df   : > { %v5257_v33 = vsel %vm1378_vm2, %v5255_v30, 0.0  ;;  %v5256_v32 = vmul.f32 %v5254_v29, %v5254_v29 }
0x20e0   : > { %5258 = vadd.xlane.f32.xlu0 %v5257_v33  ;;  %v6184_v33 = vld [vmem:[%s1335_s20] ss:$0 sm:$0xff] }
0x20e1   : > { %v5260_v9 = vsel %vm1378_vm2, %v5256_v32, 0.0 }
0x20e2   : > { %5261 = vadd.xlane.f32.xlu1 %v5260_v9 }
0x216d   : > { %v5259_v8 = vpop.xlane.xlu0 %5258 }
0x216e   : > { %v5263_v39 = vmul.f32 0.03125, %v5259_v8 }
0x216f   : > { %v5262_v24 = vpop.xlane.xlu1 %5261 }
0x2170   : > { %v5265_v4 = vadd.f32 1e-05, %v5263_v39  ;;  %v5264_v40 = vmul.f32 0.03125, %v5262_v24  ;;  %v7011_v24 = vld [vmem:[%s8069_s12] sm:$0xff] (!%p6186_p5)  }
0x2172   : > { %7001 = vrsqrt.f32 %v5265_v4  ;;  %v5266_v7 = vadd.f32 1e-05, %v5264_v40  ;;  %v7084_v4 = vmov (!%p6186_p5), 0.0   ;;  %v7012_v40 = vld [vmem:[%s8069_s12 + $0x8] sm:$0xff] (!%p6186_p5)  }
0x2173   : > { %6819 = vmatprep.subr.bf16.mxu0 (!%p6186_p5), %v7084_v4 }
0x2174   : > { %7003 = vrsqrt.f32 %v5266_v7 }
0x217c   : > { %v7002_v41 = vpop.eup %7001 }
0x217d   : > { %v5269_v44 = vmul.f32 %v7002_v41, %v5253_v27 }
0x217e   : > { %v7004_v45 = vpop.eup %7003 }
0x217f   : > { %v5277_v48 = vmul.f32 %v6172_v42, %v5269_v44  ;;  %v5270_v49 = vmul.f32 %v7004_v45, %v5254_v29 }
0x2181   : > { %v5278_v51 = vmul.f32 %v6172_v42, %v5270_v49  ;;  %v5285_v28 = vadd.f32 %v6173_v50, %v5277_v48 }
0x2183   : > { %v5286_v35 = vadd.f32 %v6173_v50, %v5278_v51 }
0x2185   : > { %v5287_v53 = vpack.c.bf16 %v5286_v35, %v5285_v28 }
0x2187   : > { %6804 = vmatmul.mubr.msk.bf16.vlgmr.msra.gmra.mrb[128].mxu0 %vm1378_vm2, %v5287_v53 }
0x2188   : > { %6820 = vmatpush3.bf16.msra.mxu0 (!%p6186_p5), %v7011_v24  ;;  %6823 = vmatprep.mubr.msk.bf16.mxu0 (!%p6186_p5), %vm7085_vm8, %v7084_v4 }
0x2189   : > { %6821 = vmatprep.subr.bf16.mxu0 (!%p6186_p5), %v7084_v4 }
0x218c   : > { %6822 = vmatpush3.bf16.msra.mxu0 (!%p6186_p5), %v7012_v40 }
0x225a   : > { %v5348_v56 = vpop.f32.mrb[128].mxu0 }
0x225b   : > { %v5349_v57 = vadd.f32 %v6174_v31, %v5348_v56  ;;  %v6805_v59 = vpop.f32.mrb[129].mxu0 }
0x225c   : > { %v5351_v60 = vpop.f32.mrb[130].mxu0 }
0x225d   : > { %v5352_v62 = vadd.f32 %v6174_v31, %v5351_v60  ;;  %v6806_v63 = vpop.f32.mrb[131].mxu0  ;;  %v5355_v0 = vmax.f32 %v5349_v57, 0.0 }
0x225f   : > { %v5356_v43 = vmax.f32 %v5352_v62, 0.0 }
0x2261   : > { %v5365_v46 = vpack.c.bf16 %v5356_v43, %v5355_v0 }
0x2263   : > { %6816 = vmatmul.mubr.msk.bf16.vlgmr.msra.gmra.mrb[128].mxu1 %vm5397_vm7, %v5365_v46 }
0x2336   : > { %v5435_v12 = vpop.f32.mrb[128].mxu1 }
0x2337   : > { %v5436_v1 = vadd.f32 %v6178_v47, %v5435_v12  ;;  %v6817_v3 = vpop.f32.mrb[129].mxu1 }
0x2338   : > { %v5438_v2 = vpop.f32.mrb[130].mxu1 }
0x2339   : > { %v5439_v5 = vadd.f32 %v6178_v47, %v5438_v2  ;;  %v6818_v6 = vpop.f32.mrb[131].mxu1  ;;  %v5442_v20 = vadd.f32 %v5436_v1, %v5285_v28 }
0x233b   : > { %v5446_v10 = vsel %vm1378_vm2, %v5442_v20, 0.0  ;;  %v5443_v11 = vadd.f32 %v5439_v5, %v5286_v35 }
0x233c   : > { %5447 = vadd.xlane.f32.xlu0 %v5446_v10 }
0x233d   : > { %v5449_v25 = vsel %vm1378_vm2, %v5443_v11, 0.0 }
0x233e   : > { %5450 = vadd.xlane.f32.xlu1 %v5449_v25 }
0x23c9   : > { %v5448_v13 = vpop.xlane.xlu0 %5447 }
0x23ca   : > { %v5452_v14 = vmul.f32 0.03125, %v5448_v13 }
0x23cb   : > { %v5451_v15 = vpop.xlane.xlu1 %5450 }
0x23cc   : > { %v5454_v16 = vsub.f32 %v5442_v20, %v5452_v14  ;;  %v5453_v17 = vmul.f32 0.03125, %v5451_v15 }
0x23ce   : > { %v5455_v52 = vsub.f32 %v5443_v11, %v5453_v17  ;;  %v5456_v18 = vmul.f32 %v5454_v16, %v5454_v16 }
0x23d0   : > { %v5458_v19 = vsel %vm1378_vm2, %v5456_v18, 0.0  ;;  %v5457_v21 = vmul.f32 %v5455_v52, %v5455_v52 }
0x23d1   : > { %5459 = vadd.xlane.f32.xlu0 %v5458_v19 }
0x23d2   : > { %v5461_v22 = vsel %vm1378_vm2, %v5457_v21, 0.0 }
0x23d3   : > { %5462 = vadd.xlane.f32.xlu1 %v5461_v22 }
0x245e   : > { %v5460_v58 = vpop.xlane.xlu0 %5459 }
0x245f   : > { %v5464_v23 = vmul.f32 0.03125, %v5460_v58 }
0x2460   : > { %v5463_v26 = vpop.xlane.xlu1 %5462 }
0x2461   : > { %v5466_v27 = vadd.f32 1e-05, %v5464_v23  ;;  %v5465_v61 = vmul.f32 0.03125, %v5463_v26 }
0x2463   : > { %7005 = vrsqrt.f32 %v5466_v27  ;;  %v5467_v29 = vadd.f32 1e-05, %v5465_v61 }
0x2465   : > { %7007 = vrsqrt.f32 %v5467_v29 }
0x246d   : > { %v7006_v30 = vpop.eup %7005 }
0x246e   : > { %v5470_v32 = vmul.f32 %v7006_v30, %v5454_v16 }
0x246f   : > { %v7008_v9 = vpop.eup %7007 }
0x2470   : > { %v5478_v36 = vmul.f32 %v6184_v33, %v5470_v32  ;;  %v5471_v37 = vmul.f32 %v7008_v9, %v5455_v52  ;;  %5493 = sbr.rel (%p6186_p5) target bundleno = 9551 (0x254f), region = 148 }
0x2472   : > { %v5486_v38 = vadd.f32 %v6185_v34, %v5478_v36  ;;  %v5479_v8 = vmul.f32 %v6184_v33, %v5471_v37 }
0x2474   : > { %5488 = vst.msk [vmem:[#allocation2] sm:$0xff] %vm1378_vm2, %v5486_v38  ;;  %v5487_v39 = vadd.f32 %v6185_v34, %v5479_v8 }
0x2476   : > { %5489 = vst.msk [vmem:[#allocation2 + $0x8] sm:$0xff] %vm1378_vm2, %v5487_v39  ;;  %v5498_v7 = vpack.c.bf16 (!%p6186_p5), %v5487_v39, %v5486_v38 }
0x2478   : > { %6824 = vmatmul.mubr.msk.bf16.vlgmr.msra.gmra.mrb[0].mxu0 %vm1378_vm2, %v5498_v7 }
0x254b   : > { %v5548_v41 = vpop.f32.mrb[0].mxu0 }
0x254c   : > { %5555 = vst [vmem:[#allocation3] sm:$0xff] %v5548_v41  ;;  %v6825_v42 = vpop.f32.mrb[1].mxu0 }
0x254d   : > { %v5551_v44 = vpop.f32.mrb[2].mxu0 }
0x254e   : > { %5556 = vst [vmem:[#allocation3 + $0x8] sm:$0xff] %v5551_v44  ;;  %v6826_v45 = vpop.f32.mrb[3].mxu0 }
0x254f PF: > { %s8070_s9 = sld [smem:[#allocation37_spill]]  ;;  %s7086_s20 = smov [#allocation3]  }
0x2550   : > { %s5563_s16 = sshll.u32 %s7086_s20, 4  ;;  %s5564_s16 = int_to_ptr.vmem [resolvable:$true] %s5563_s16 }
0x2551   : > { %s7013_s0 = scalar_lea.vmem %s5564_s16, 256  ;;  %p7020_p10 = scmp.lt.s32.totalorder %s5564_s16, %s5564_s16 }
0x2552   : > { %p7014_p7 = scmp.ne.s32.totalorder %s5564_s16, %s7013_s0  ;;  %p7021_p11 = scmp.lt.s32.totalorder %s7013_s0, %s7013_s0 }
0x2554   : > { %p7022_p12 = por %p7021_p11, %p7020_p10 }
0x2555   : > { %p6831_p6 = scmp.eq.s32.totalorder %s8070_s9, 1 }
0x2557   : > { %p7015_p8 = pnand %p7014_p7, %p6831_p6 }
0x2559   : > { %p7016_p9 = pneg %p7015_p8 }
0x255b   : > { %p7023_p13 = pnand %p7022_p12, %p7016_p9 }
0x255d   : > { %7026 = shalt.err (!%p7023_p13)
}
0x255e   : > { %s8071_s1 = sld [smem:[#allocation35_spill]] }
0x2564   : > { %s7027_s11 = scalar_lea.hbm %s8071_s1, 256 }
0x2565   : > { %p7028_p0 = scmp.ne.s32.totalorder %s8071_s1, %s7027_s11  ;;  %p7033_p3 = scmp.lt.u32.totalorder %s7027_s11, %s8071_s1 }
0x2567   : > { %p7029_p1 = pnand %p7028_p0, %p6831_p6 }
0x2569   : > { %p7030_p2 = pneg %p7029_p1 }
0x256b   : > { %p7035_p4 = pnand %p7033_p3, %p7030_p2 }
0x256d   : > { %7038 = shalt.err (!%p7035_p4)
}
0x256e   : > { %s7087_s3 = smov 128   ;;  %s7088_s8 = smov 8  }
0x256f   : > { %6828 = dma.vmem_to_hbm [thread:$0]  (%p6831_p6), %s5564_s16, 256, %s8071_s1, [#allocation4], %s7087_s3, %s7087_s3, %s7088_s8  }
0x2570   : > { %7044 = dma.done.wait (%p6831_p6), [#allocation4], 256  }
0x2571   : > { %7046 = vsyncadd (%p6831_p6), [#allocation4], 4294967040 }
0x2572 PF: > { %s8072_s27 = sld [smem:[#allocation36_spill]] }
0x2578   : > { %s72_s15 = sadd.s32 1, %s8072_s27  }
0x2579   : > { %p69_p5 = scmp.ge.s32.totalorder %s72_s15, 4  }
0x257b   :  { %71 = sbr.rel (!%p69_p5) target bundleno = 72 (0x48), region = 322 }
0x2582   :  { %5579 = vsyncpa [#allocation4], 1 }
0x2583   :  { %5581 = vsyncpa [#allocation4 + $0x1], 1 }

</bundles_post_ra>
